<compile_context>
chip_gen: v7x
topology: tpu7x:2x2x1
jax: 0.10.0
libtpu: 0.0.40
codegen_flags: <defaults>
</compile_context>

<pallas_src>
import jax
import jax.numpy as jnp
from jax.experimental import pallas as pl
from jax.experimental.pallas import tpu as pltpu


def make_lstm_reg_kernel(num_layers, S, B):
    """Builds the fused kernel.

    Ref order:
      x2 (S*B, D), y2 (S*B, O),
      [wih_g (4, D_in, H), whh_g (4, H, H), b_g (4, 1, H)] * num_layers,
      w_reg (H, O), b_reg (1, O),
      out (S*B, O),
      hs_scr (S*B, H)   -- VMEM scratch holding the current layer's h_t's.
    """

    def kernel(*refs):
        x_ref, y_ref = refs[0], refs[1]
        layer_refs = refs[2:2 + 3 * num_layers]
        wreg_ref = refs[2 + 3 * num_layers]
        breg_ref = refs[3 + 3 * num_layers]
        out_ref = refs[4 + 3 * num_layers]
        hs_scr = refs[5 + 3 * num_layers]

        layer_in = x_ref[...]                              # (S*B, D_in) f32

        for l in range(num_layers):
            wih_ref = layer_refs[3 * l + 0]                # (4, D_in, H)
            whh_ref = layer_refs[3 * l + 1]                # (4, H, H)
            b_ref = layer_refs[3 * l + 2]                  # (4, 1, H)
            H = whh_ref.shape[-1]

            # Hoisted, time-parallel input projection (+ combined bias),
            # one (S*B, D_in) @ (D_in, H) MXU matmul per gate.
            proj = [
                jnp.dot(layer_in, wih_ref[g],
                        preferred_element_type=jnp.float32) + b_ref[g]
                for g in range(4)
            ]                                              # each (S*B, H)

            h = jnp.zeros((B, H), jnp.float32)
            c = jnp.zeros((B, H), jnp.float32)

            # Sequential recurrence, statically unrolled over S steps.
            for t in range(S):
                r0, r1 = t * B, (t + 1) * B
                i_g = jax.nn.sigmoid(
                    proj[0][r0:r1, :]
                    + jnp.dot(h, whh_ref[0],
                              preferred_element_type=jnp.float32))
                f_g = jax.nn.sigmoid(
                    proj[1][r0:r1, :]
                    + jnp.dot(h, whh_ref[1],
                              preferred_element_type=jnp.float32))
                g_g = jnp.tanh(
                    proj[2][r0:r1, :]
                    + jnp.dot(h, whh_ref[2],
                              preferred_element_type=jnp.float32))
                o_g = jax.nn.sigmoid(
                    proj[3][r0:r1, :]
                    + jnp.dot(h, whh_ref[3],
                              preferred_element_type=jnp.float32))
                c = f_g * c + i_g * g_g
                h = o_g * jnp.tanh(c)
                hs_scr[r0:r1, :] = h                       # (B, H) slab

            layer_in = hs_scr[...]                         # (S*B, H)

        # reg: Linear(hidden -> output) fused with "+ y * 10"; single write.
        out = (jnp.dot(layer_in, wreg_ref[...],
                       preferred_element_type=jnp.float32)
               + breg_ref[...]
               + y_ref[...] * 10.0)
        out_ref[...] = out.astype(out_ref.dtype)

    return kernel


def lstm_reg_forward(x, y, lstm_params, w_reg, b_reg):
    """x: (S, B, D); y: (S, B, O); lstm_params: [(w_ih, w_hh, b_ih, b_hh)]
    in PyTorch layout (w_ih: (4H, D_in), w_hh: (4H, H), biases: (4H,));
    w_reg: (O, H); b_reg: (O,).  Matches lstm_reg.forward(x, y)."""
    S, B, D = x.shape
    num_layers = len(lstm_params)
    H = lstm_params[0][1].shape[1]                         # w_hh: (4H, H)
    O = w_reg.shape[0]

    args = [x.reshape(S * B, D), y.reshape(S * B, O)]
    for (w_ih, w_hh, b_ih, b_hh) in lstm_params:
        d_in = w_ih.shape[1]
        # PyTorch stacks gate rows in (i, f, g, o) order along dim 0.
        args.append(jnp.transpose(w_ih.reshape(4, H, d_in), (0, 2, 1)))  # (4,D_in,H)
        args.append(jnp.transpose(w_hh.reshape(4, H, H), (0, 2, 1)))     # (4,H,H)
        args.append((b_ih + b_hh).reshape(4, 1, H))                      # (4,1,H)
    args.append(w_reg.T)                                   # (H, O)
    args.append(b_reg[None, :])                            # (1, O)

    out2 = pl.pallas_call(
        make_lstm_reg_kernel(num_layers, S, B),
        out_shape=jax.ShapeDtypeStruct((S * B, O), jnp.float32),
        scratch_shapes=[pltpu.VMEM((S * B, H), jnp.float32)],
        compiler_params=pltpu.CompilerParams(
            vmem_limit_bytes=32 * 1024 * 1024),
    )(*args)
    return out2.reshape(S, B, O)


# Pure-JAX reference for correctness checking (mirrors PyTorch semantics).
def lstm_reg_ref(x, y, lstm_params, w_reg, b_reg):
    h_in = x
    for (w_ih, w_hh, b_ih, b_hh) in lstm_params:
        S, B, _ = h_in.shape
        H = w_hh.shape[1]

        def step(carry, x_t):
            h, c = carry
            gates = x_t @ w_ih.T + b_ih + h @ w_hh.T + b_hh
            i, f, g, o = jnp.split(gates, 4, axis=-1)
            i, f, o = jax.nn.sigmoid(i), jax.nn.sigmoid(f), jax.nn.sigmoid(o)
            g = jnp.tanh(g)
            c = f * c + i * g
            h = o * jnp.tanh(c)
            return (h, c), h

        init = (jnp.zeros((B, H), jnp.float32), jnp.zeros((B, H), jnp.float32))
        _, h_in = jax.lax.scan(step, init, h_in)
    out = h_in @ w_reg.T + b_reg
    return out + y * 10.0


if __name__ == "__main__":
    S, B, D, H, O, L = 8, 2, 16, 32, 1, 4  # seq, batch, input, hidden, out, layers

    key = jax.random.PRNGKey(0)
    keys = jax.random.split(key, 4 * L + 4)
    bound = 1.0 / float(jnp.sqrt(H))

    lstm_params = []
    ki = 0
    for l in range(L):
        d_in = D if l == 0 else H
        w_ih = jax.random.uniform(keys[ki], (4 * H, d_in), jnp.float32,
                                  -bound, bound); ki += 1
        w_hh = jax.random.uniform(keys[ki], (4 * H, H), jnp.float32,
                                  -bound, bound); ki += 1
        b_ih = jax.random.uniform(keys[ki], (4 * H,), jnp.float32,
                                  -bound, bound); ki += 1
        b_hh = jax.random.uniform(keys[ki], (4 * H,), jnp.float32,
                                  -bound, bound); ki += 1
        lstm_params.append((w_ih, w_hh, b_ih, b_hh))

    w_reg = jax.random.uniform(keys[ki], (O, H), jnp.float32, -bound, bound); ki += 1
    b_reg = jax.random.uniform(keys[ki], (O,), jnp.float32, -bound, bound); ki += 1
    x = jax.random.normal(keys[ki], (S, B, D), jnp.float32); ki += 1
    y = jax.random.normal(keys[ki], (S, B, O), jnp.float32); ki += 1

    out = lstm_reg_forward(x, y, lstm_params, w_reg, b_reg)
    out = jax.block_until_ready(out)

    ref = lstm_reg_ref(x, y, lstm_params, w_reg, b_reg)
    assert out.shape == (S, B, O)
    assert jnp.allclose(out, ref, atol=1e-4, rtol=1e-4), "mismatch vs reference"

    print("KERNEL_OK")
</pallas_src>

<mosaic_0001>
module attributes {stable_mosaic.version = 11 : i64} {
  func.func @kernel(%arg0: memref<16x16xf32, #tpu.memory_space<vmem>>, %arg1: memref<16x1xf32, #tpu.memory_space<vmem>>, %arg2: memref<4x16x32xf32, #tpu.memory_space<vmem>>, %arg3: memref<4x32x32xf32, #tpu.memory_space<vmem>>, %arg4: memref<4x1x32xf32, #tpu.memory_space<vmem>>, %arg5: memref<4x32x32xf32, #tpu.memory_space<vmem>>, %arg6: memref<4x32x32xf32, #tpu.memory_space<vmem>>, %arg7: memref<4x1x32xf32, #tpu.memory_space<vmem>>, %arg8: memref<4x32x32xf32, #tpu.memory_space<vmem>>, %arg9: memref<4x32x32xf32, #tpu.memory_space<vmem>>, %arg10: memref<4x1x32xf32, #tpu.memory_space<vmem>>, %arg11: memref<4x32x32xf32, #tpu.memory_space<vmem>>, %arg12: memref<4x32x32xf32, #tpu.memory_space<vmem>>, %arg13: memref<4x1x32xf32, #tpu.memory_space<vmem>>, %arg14: memref<32x1xf32, #tpu.memory_space<vmem>>, %arg15: memref<1x1xf32, #tpu.memory_space<vmem>>, %arg16: memref<16x1xf32, #tpu.memory_space<vmem>>, %arg17: memref<16x32xf32, #tpu.memory_space<vmem>>) attributes {dimension_semantics = [], scalar_prefetch = 0 : i64, scratch_operands = 1 : i64, tpu.core_type = #tpu.core_type<tc>} {
    %c0 = arith.constant 0 : index
    %c0_0 = arith.constant 0 : index
    %0 = vector.load %arg0[%c0, %c0_0] : memref<16x16xf32, #tpu.memory_space<vmem>>, vector<16x16xf32>
    %c0_1 = arith.constant 0 : index
    %c0_2 = arith.constant 0 : index
    %c0_3 = arith.constant 0 : index
    %1 = vector.load %arg2[%c0_1, %c0_2, %c0_3] : memref<4x16x32xf32, #tpu.memory_space<vmem>>, vector<1x16x32xf32>
    %2 = vector.shape_cast %1 : vector<1x16x32xf32> to vector<16x32xf32>
    %cst = arith.constant dense<0.000000e+00> : vector<16x32xf32>
    %3 = tpu.matmul %0, %2, %cst {dimension_numbers = #tpu.dot_dimension_numbers<[1], [0], [0], [1], [0, 0, 1, 1], [], []>} : vector<16x16xf32>, vector<16x32xf32>, vector<16x32xf32> -> vector<16x32xf32>
    %c0_4 = arith.constant 0 : index
    %c0_5 = arith.constant 0 : index
    %c0_6 = arith.constant 0 : index
    %4 = vector.load %arg4[%c0_4, %c0_5, %c0_6] : memref<4x1x32xf32, #tpu.memory_space<vmem>>, vector<1x1x32xf32>
    %5 = vector.shape_cast %4 : vector<1x1x32xf32> to vector<1x32xf32>
    %6 = vector.broadcast %5 : vector<1x32xf32> to vector<16x32xf32>
    %7 = arith.addf %3, %6 : vector<16x32xf32>
    %c1 = arith.constant 1 : index
    %c0_7 = arith.constant 0 : index
    %c0_8 = arith.constant 0 : index
    %8 = vector.load %arg2[%c1, %c0_7, %c0_8] : memref<4x16x32xf32, #tpu.memory_space<vmem>>, vector<1x16x32xf32>
    %9 = vector.shape_cast %8 : vector<1x16x32xf32> to vector<16x32xf32>
    %cst_9 = arith.constant dense<0.000000e+00> : vector<16x32xf32>
    %10 = tpu.matmul %0, %9, %cst_9 {dimension_numbers = #tpu.dot_dimension_numbers<[1], [0], [0], [1], [0, 0, 1, 1], [], []>} : vector<16x16xf32>, vector<16x32xf32>, vector<16x32xf32> -> vector<16x32xf32>
    %c1_10 = arith.constant 1 : index
    %c0_11 = arith.constant 0 : index
    %c0_12 = arith.constant 0 : index
    %11 = vector.load %arg4[%c1_10, %c0_11, %c0_12] : memref<4x1x32xf32, #tpu.memory_space<vmem>>, vector<1x1x32xf32>
    %12 = vector.shape_cast %11 : vector<1x1x32xf32> to vector<1x32xf32>
    %13 = vector.broadcast %12 : vector<1x32xf32> to vector<16x32xf32>
    %14 = arith.addf %10, %13 : vector<16x32xf32>
    %c2 = arith.constant 2 : index
    %c0_13 = arith.constant 0 : index
    %c0_14 = arith.constant 0 : index
    %15 = vector.load %arg2[%c2, %c0_13, %c0_14] : memref<4x16x32xf32, #tpu.memory_space<vmem>>, vector<1x16x32xf32>
    %16 = vector.shape_cast %15 : vector<1x16x32xf32> to vector<16x32xf32>
    %cst_15 = arith.constant dense<0.000000e+00> : vector<16x32xf32>
    %17 = tpu.matmul %0, %16, %cst_15 {dimension_numbers = #tpu.dot_dimension_numbers<[1], [0], [0], [1], [0, 0, 1, 1], [], []>} : vector<16x16xf32>, vector<16x32xf32>, vector<16x32xf32> -> vector<16x32xf32>
    %c2_16 = arith.constant 2 : index
    %c0_17 = arith.constant 0 : index
    %c0_18 = arith.constant 0 : index
    %18 = vector.load %arg4[%c2_16, %c0_17, %c0_18] : memref<4x1x32xf32, #tpu.memory_space<vmem>>, vector<1x1x32xf32>
    %19 = vector.shape_cast %18 : vector<1x1x32xf32> to vector<1x32xf32>
    %20 = vector.broadcast %19 : vector<1x32xf32> to vector<16x32xf32>
    %21 = arith.addf %17, %20 : vector<16x32xf32>
    %c3 = arith.constant 3 : index
    %c0_19 = arith.constant 0 : index
    %c0_20 = arith.constant 0 : index
    %22 = vector.load %arg2[%c3, %c0_19, %c0_20] : memref<4x16x32xf32, #tpu.memory_space<vmem>>, vector<1x16x32xf32>
    %23 = vector.shape_cast %22 : vector<1x16x32xf32> to vector<16x32xf32>
    %cst_21 = arith.constant dense<0.000000e+00> : vector<16x32xf32>
    %24 = tpu.matmul %0, %23, %cst_21 {dimension_numbers = #tpu.dot_dimension_numbers<[1], [0], [0], [1], [0, 0, 1, 1], [], []>} : vector<16x16xf32>, vector<16x32xf32>, vector<16x32xf32> -> vector<16x32xf32>
    %c3_22 = arith.constant 3 : index
    %c0_23 = arith.constant 0 : index
    %c0_24 = arith.constant 0 : index
    %25 = vector.load %arg4[%c3_22, %c0_23, %c0_24] : memref<4x1x32xf32, #tpu.memory_space<vmem>>, vector<1x1x32xf32>
    %26 = vector.shape_cast %25 : vector<1x1x32xf32> to vector<1x32xf32>
    %27 = vector.broadcast %26 : vector<1x32xf32> to vector<16x32xf32>
    %28 = arith.addf %24, %27 : vector<16x32xf32>
    %cst_25 = arith.constant 0.000000e+00 : f32
    %29 = vector.broadcast %cst_25 : f32 to vector<2x32xf32>
    %cst_26 = arith.constant 0.000000e+00 : f32
    %30 = vector.broadcast %cst_26 : f32 to vector<2x32xf32>
    %31 = vector.extract_strided_slice %7 {offsets = [0, 0], sizes = [2, 32], strides = [1, 1]} : vector<16x32xf32> to vector<2x32xf32>
    %c0_27 = arith.constant 0 : index
    %c0_28 = arith.constant 0 : index
    %c0_29 = arith.constant 0 : index
    %32 = vector.load %arg3[%c0_27, %c0_28, %c0_29] : memref<4x32x32xf32, #tpu.memory_space<vmem>>, vector<1x32x32xf32>
    %33 = vector.shape_cast %32 : vector<1x32x32xf32> to vector<32x32xf32>
    %cst_30 = arith.constant dense<0.000000e+00> : vector<2x32xf32>
    %34 = tpu.matmul %29, %33, %cst_30 {dimension_numbers = #tpu.dot_dimension_numbers<[1], [0], [0], [1], [0, 0, 1, 1], [], []>} : vector<2x32xf32>, vector<32x32xf32>, vector<2x32xf32> -> vector<2x32xf32>
    %35 = arith.addf %31, %34 : vector<2x32xf32>
    %36 = arith.negf %35 : vector<2x32xf32>
    %37 = math.exp %36 : vector<2x32xf32>
    %cst_31 = arith.constant 1.000000e+00 : f32
    %38 = vector.broadcast %cst_31 : f32 to vector<2x32xf32>
    %39 = arith.addf %38, %37 : vector<2x32xf32>
    %40 = arith.divf %38, %39 : vector<2x32xf32>
    %41 = vector.extract_strided_slice %14 {offsets = [0, 0], sizes = [2, 32], strides = [1, 1]} : vector<16x32xf32> to vector<2x32xf32>
    %c1_32 = arith.constant 1 : index
    %c0_33 = arith.constant 0 : index
    %c0_34 = arith.constant 0 : index
    %42 = vector.load %arg3[%c1_32, %c0_33, %c0_34] : memref<4x32x32xf32, #tpu.memory_space<vmem>>, vector<1x32x32xf32>
    %43 = vector.shape_cast %42 : vector<1x32x32xf32> to vector<32x32xf32>
    %cst_35 = arith.constant dense<0.000000e+00> : vector<2x32xf32>
    %44 = tpu.matmul %29, %43, %cst_35 {dimension_numbers = #tpu.dot_dimension_numbers<[1], [0], [0], [1], [0, 0, 1, 1], [], []>} : vector<2x32xf32>, vector<32x32xf32>, vector<2x32xf32> -> vector<2x32xf32>
    %45 = arith.addf %41, %44 : vector<2x32xf32>
    %46 = arith.negf %45 : vector<2x32xf32>
    %47 = math.exp %46 : vector<2x32xf32>
    %cst_36 = arith.constant 1.000000e+00 : f32
    %48 = vector.broadcast %cst_36 : f32 to vector<2x32xf32>
    %49 = arith.addf %48, %47 : vector<2x32xf32>
    %50 = arith.divf %48, %49 : vector<2x32xf32>
    %51 = vector.extract_strided_slice %21 {offsets = [0, 0], sizes = [2, 32], strides = [1, 1]} : vector<16x32xf32> to vector<2x32xf32>
    %c2_37 = arith.constant 2 : index
    %c0_38 = arith.constant 0 : index
    %c0_39 = arith.constant 0 : index
    %52 = vector.load %arg3[%c2_37, %c0_38, %c0_39] : memref<4x32x32xf32, #tpu.memory_space<vmem>>, vector<1x32x32xf32>
    %53 = vector.shape_cast %52 : vector<1x32x32xf32> to vector<32x32xf32>
    %cst_40 = arith.constant dense<0.000000e+00> : vector<2x32xf32>
    %54 = tpu.matmul %29, %53, %cst_40 {dimension_numbers = #tpu.dot_dimension_numbers<[1], [0], [0], [1], [0, 0, 1, 1], [], []>} : vector<2x32xf32>, vector<32x32xf32>, vector<2x32xf32> -> vector<2x32xf32>
    %55 = arith.addf %51, %54 : vector<2x32xf32>
    %56 = math.tanh %55 : vector<2x32xf32>
    %57 = vector.extract_strided_slice %28 {offsets = [0, 0], sizes = [2, 32], strides = [1, 1]} : vector<16x32xf32> to vector<2x32xf32>
    %c3_41 = arith.constant 3 : index
    %c0_42 = arith.constant 0 : index
    %c0_43 = arith.constant 0 : index
    %58 = vector.load %arg3[%c3_41, %c0_42, %c0_43] : memref<4x32x32xf32, #tpu.memory_space<vmem>>, vector<1x32x32xf32>
    %59 = vector.shape_cast %58 : vector<1x32x32xf32> to vector<32x32xf32>
    %cst_44 = arith.constant dense<0.000000e+00> : vector<2x32xf32>
    %60 = tpu.matmul %29, %59, %cst_44 {dimension_numbers = #tpu.dot_dimension_numbers<[1], [0], [0], [1], [0, 0, 1, 1], [], []>} : vector<2x32xf32>, vector<32x32xf32>, vector<2x32xf32> -> vector<2x32xf32>
    %61 = arith.addf %57, %60 : vector<2x32xf32>
    %62 = arith.negf %61 : vector<2x32xf32>
    %63 = math.exp %62 : vector<2x32xf32>
    %cst_45 = arith.constant 1.000000e+00 : f32
    %64 = vector.broadcast %cst_45 : f32 to vector<2x32xf32>
    %65 = arith.addf %64, %63 : vector<2x32xf32>
    %66 = arith.divf %64, %65 : vector<2x32xf32>
    %67 = arith.mulf %50, %30 : vector<2x32xf32>
    %68 = arith.mulf %40, %56 : vector<2x32xf32>
    %69 = arith.addf %67, %68 : vector<2x32xf32>
    %70 = math.tanh %69 : vector<2x32xf32>
    %71 = arith.mulf %66, %70 : vector<2x32xf32>
    %c0_46 = arith.constant 0 : index
    %c0_47 = arith.constant 0 : index
    %72 = vector.load %arg17[%c0_46, %c0_47] : memref<16x32xf32, #tpu.memory_space<vmem>>, vector<2x32xf32>
    tpu.vector_store %arg17[%c0_46, %c0_47], %71 {strides = array<i32>} : memref<16x32xf32, #tpu.memory_space<vmem>>, vector<2x32xf32>,
    %73 = vector.extract_strided_slice %7 {offsets = [2, 0], sizes = [2, 32], strides = [1, 1]} : vector<16x32xf32> to vector<2x32xf32>
    %c0_48 = arith.constant 0 : index
    %c0_49 = arith.constant 0 : index
    %c0_50 = arith.constant 0 : index
    %74 = vector.load %arg3[%c0_48, %c0_49, %c0_50] : memref<4x32x32xf32, #tpu.memory_space<vmem>>, vector<1x32x32xf32>
    %75 = vector.shape_cast %74 : vector<1x32x32xf32> to vector<32x32xf32>
    %cst_51 = arith.constant dense<0.000000e+00> : vector<2x32xf32>
    %76 = tpu.matmul %71, %75, %cst_51 {dimension_numbers = #tpu.dot_dimension_numbers<[1], [0], [0], [1], [0, 0, 1, 1], [], []>} : vector<2x32xf32>, vector<32x32xf32>, vector<2x32xf32> -> vector<2x32xf32>
    %77 = arith.addf %73, %76 : vector<2x32xf32>
    %78 = arith.negf %77 : vector<2x32xf32>
    %79 = math.exp %78 : vector<2x32xf32>
    %cst_52 = arith.constant 1.000000e+00 : f32
    %80 = vector.broadcast %cst_52 : f32 to vector<2x32xf32>
    %81 = arith.addf %80, %79 : vector<2x32xf32>
    %82 = arith.divf %80, %81 : vector<2x32xf32>
    %83 = vector.extract_strided_slice %14 {offsets = [2, 0], sizes = [2, 32], strides = [1, 1]} : vector<16x32xf32> to vector<2x32xf32>
    %c1_53 = arith.constant 1 : index
    %c0_54 = arith.constant 0 : index
    %c0_55 = arith.constant 0 : index
    %84 = vector.load %arg3[%c1_53, %c0_54, %c0_55] : memref<4x32x32xf32, #tpu.memory_space<vmem>>, vector<1x32x32xf32>
    %85 = vector.shape_cast %84 : vector<1x32x32xf32> to vector<32x32xf32>
    %cst_56 = arith.constant dense<0.000000e+00> : vector<2x32xf32>
    %86 = tpu.matmul %71, %85, %cst_56 {dimension_numbers = #tpu.dot_dimension_numbers<[1], [0], [0], [1], [0, 0, 1, 1], [], []>} : vector<2x32xf32>, vector<32x32xf32>, vector<2x32xf32> -> vector<2x32xf32>
    %87 = arith.addf %83, %86 : vector<2x32xf32>
    %88 = arith.negf %87 : vector<2x32xf32>
    %89 = math.exp %88 : vector<2x32xf32>
    %cst_57 = arith.constant 1.000000e+00 : f32
    %90 = vector.broadcast %cst_57 : f32 to vector<2x32xf32>
    %91 = arith.addf %90, %89 : vector<2x32xf32>
    %92 = arith.divf %90, %91 : vector<2x32xf32>
    %93 = vector.extract_strided_slice %21 {offsets = [2, 0], sizes = [2, 32], strides = [1, 1]} : vector<16x32xf32> to vector<2x32xf32>
    %c2_58 = arith.constant 2 : index
    %c0_59 = arith.constant 0 : index
    %c0_60 = arith.constant 0 : index
    %94 = vector.load %arg3[%c2_58, %c0_59, %c0_60] : memref<4x32x32xf32, #tpu.memory_space<vmem>>, vector<1x32x32xf32>
    %95 = vector.shape_cast %94 : vector<1x32x32xf32> to vector<32x32xf32>
    %cst_61 = arith.constant dense<0.000000e+00> : vector<2x32xf32>
    %96 = tpu.matmul %71, %95, %cst_61 {dimension_numbers = #tpu.dot_dimension_numbers<[1], [0], [0], [1], [0, 0, 1, 1], [], []>} : vector<2x32xf32>, vector<32x32xf32>, vector<2x32xf32> -> vector<2x32xf32>
    %97 = arith.addf %93, %96 : vector<2x32xf32>
    %98 = math.tanh %97 : vector<2x32xf32>
    %99 = vector.extract_strided_slice %28 {offsets = [2, 0], sizes = [2, 32], strides = [1, 1]} : vector<16x32xf32> to vector<2x32xf32>
    %c3_62 = arith.constant 3 : index
    %c0_63 = arith.constant 0 : index
    %c0_64 = arith.constant 0 : index
    %100 = vector.load %arg3[%c3_62, %c0_63, %c0_64] : memref<4x32x32xf32, #tpu.memory_space<vmem>>, vector<1x32x32xf32>
    %101 = vector.shape_cast %100 : vector<1x32x32xf32> to vector<32x32xf32>
    %cst_65 = arith.constant dense<0.000000e+00> : vector<2x32xf32>
    %102 = tpu.matmul %71, %101, %cst_65 {dimension_numbers = #tpu.dot_dimension_numbers<[1], [0], [0], [1], [0, 0, 1, 1], [], []>} : vector<2x32xf32>, vector<32x32xf32>, vector<2x32xf32> -> vector<2x32xf32>
    %103 = arith.addf %99, %102 : vector<2x32xf32>
    %104 = arith.negf %103 : vector<2x32xf32>
    %105 = math.exp %104 : vector<2x32xf32>
    %cst_66 = arith.constant 1.000000e+00 : f32
    %106 = vector.broadcast %cst_66 : f32 to vector<2x32xf32>
    %107 = arith.addf %106, %105 : vector<2x32xf32>
    %108 = arith.divf %106, %107 : vector<2x32xf32>
    %109 = arith.mulf %92, %69 : vector<2x32xf32>
    %110 = arith.mulf %82, %98 : vector<2x32xf32>
    %111 = arith.addf %109, %110 : vector<2x32xf32>
    %112 = math.tanh %111 : vector<2x32xf32>
    %113 = arith.mulf %108, %112 : vector<2x32xf32>
    %c2_67 = arith.constant 2 : index
    %c0_68 = arith.constant 0 : index
    %114 = vector.load %arg17[%c2_67, %c0_68] : memref<16x32xf32, #tpu.memory_space<vmem>>, vector<2x32xf32>
    tpu.vector_store %arg17[%c2_67, %c0_68], %113 {strides = array<i32>} : memref<16x32xf32, #tpu.memory_space<vmem>>, vector<2x32xf32>,
    %115 = vector.extract_strided_slice %7 {offsets = [4, 0], sizes = [2, 32], strides = [1, 1]} : vector<16x32xf32> to vector<2x32xf32>
    %c0_69 = arith.constant 0 : index
    %c0_70 = arith.constant 0 : index
    %c0_71 = arith.constant 0 : index
    %116 = vector.load %arg3[%c0_69, %c0_70, %c0_71] : memref<4x32x32xf32, #tpu.memory_space<vmem>>, vector<1x32x32xf32>
    %117 = vector.shape_cast %116 : vector<1x32x32xf32> to vector<32x32xf32>
    %cst_72 = arith.constant dense<0.000000e+00> : vector<2x32xf32>
    %118 = tpu.matmul %113, %117, %cst_72 {dimension_numbers = #tpu.dot_dimension_numbers<[1], [0], [0], [1], [0, 0, 1, 1], [], []>} : vector<2x32xf32>, vector<32x32xf32>, vector<2x32xf32> -> vector<2x32xf32>
    %119 = arith.addf %115, %118 : vector<2x32xf32>
    %120 = arith.negf %119 : vector<2x32xf32>
    %121 = math.exp %120 : vector<2x32xf32>
    %cst_73 = arith.constant 1.000000e+00 : f32
    %122 = vector.broadcast %cst_73 : f32 to vector<2x32xf32>
    %123 = arith.addf %122, %121 : vector<2x32xf32>
    %124 = arith.divf %122, %123 : vector<2x32xf32>
    %125 = vector.extract_strided_slice %14 {offsets = [4, 0], sizes = [2, 32], strides = [1, 1]} : vector<16x32xf32> to vector<2x32xf32>
    %c1_74 = arith.constant 1 : index
    %c0_75 = arith.constant 0 : index
    %c0_76 = arith.constant 0 : index
    %126 = vector.load %arg3[%c1_74, %c0_75, %c0_76] : memref<4x32x32xf32, #tpu.memory_space<vmem>>, vector<1x32x32xf32>
    %127 = vector.shape_cast %126 : vector<1x32x32xf32> to vector<32x32xf32>
    %cst_77 = arith.constant dense<0.000000e+00> : vector<2x32xf32>
    %128 = tpu.matmul %113, %127, %cst_77 {dimension_numbers = #tpu.dot_dimension_numbers<[1], [0], [0], [1], [0, 0, 1, 1], [], []>} : vector<2x32xf32>, vector<32x32xf32>, vector<2x32xf32> -> vector<2x32xf32>
    %129 = arith.addf %125, %128 : vector<2x32xf32>
    %130 = arith.negf %129 : vector<2x32xf32>
    %131 = math.exp %130 : vector<2x32xf32>
    %cst_78 = arith.constant 1.000000e+00 : f32
    %132 = vector.broadcast %cst_78 : f32 to vector<2x32xf32>
    %133 = arith.addf %132, %131 : vector<2x32xf32>
    %134 = arith.divf %132, %133 : vector<2x32xf32>
    %135 = vector.extract_strided_slice %21 {offsets = [4, 0], sizes = [2, 32], strides = [1, 1]} : vector<16x32xf32> to vector<2x32xf32>
    %c2_79 = arith.constant 2 : index
    %c0_80 = arith.constant 0 : index
    %c0_81 = arith.constant 0 : index
    %136 = vector.load %arg3[%c2_79, %c0_80, %c0_81] : memref<4x32x32xf32, #tpu.memory_space<vmem>>, vector<1x32x32xf32>
    %137 = vector.shape_cast %136 : vector<1x32x32xf32> to vector<32x32xf32>
    %cst_82 = arith.constant dense<0.000000e+00> : vector<2x32xf32>
    %138 = tpu.matmul %113, %137, %cst_82 {dimension_numbers = #tpu.dot_dimension_numbers<[1], [0], [0], [1], [0, 0, 1, 1], [], []>} : vector<2x32xf32>, vector<32x32xf32>, vector<2x32xf32> -> vector<2x32xf32>
    %139 = arith.addf %135, %138 : vector<2x32xf32>
    %140 = math.tanh %139 : vector<2x32xf32>
    %141 = vector.extract_strided_slice %28 {offsets = [4, 0], sizes = [2, 32], strides = [1, 1]} : vector<16x32xf32> to vector<2x32xf32>
    %c3_83 = arith.constant 3 : index
    %c0_84 = arith.constant 0 : index
    %c0_85 = arith.constant 0 : index
    %142 = vector.load %arg3[%c3_83, %c0_84, %c0_85] : memref<4x32x32xf32, #tpu.memory_space<vmem>>, vector<1x32x32xf32>
    %143 = vector.shape_cast %142 : vector<1x32x32xf32> to vector<32x32xf32>
    %cst_86 = arith.constant dense<0.000000e+00> : vector<2x32xf32>
    %144 = tpu.matmul %113, %143, %cst_86 {dimension_numbers = #tpu.dot_dimension_numbers<[1], [0], [0], [1], [0, 0, 1, 1], [], []>} : vector<2x32xf32>, vector<32x32xf32>, vector<2x32xf32> -> vector<2x32xf32>
    %145 = arith.addf %141, %144 : vector<2x32xf32>
    %146 = arith.negf %145 : vector<2x32xf32>
    %147 = math.exp %146 : vector<2x32xf32>
    %cst_87 = arith.constant 1.000000e+00 : f32
    %148 = vector.broadcast %cst_87 : f32 to vector<2x32xf32>
    %149 = arith.addf %148, %147 : vector<2x32xf32>
    %150 = arith.divf %148, %149 : vector<2x32xf32>
    %151 = arith.mulf %134, %111 : vector<2x32xf32>
    %152 = arith.mulf %124, %140 : vector<2x32xf32>
    %153 = arith.addf %151, %152 : vector<2x32xf32>
    %154 = math.tanh %153 : vector<2x32xf32>
    %155 = arith.mulf %150, %154 : vector<2x32xf32>
    %c4 = arith.constant 4 : index
    %c0_88 = arith.constant 0 : index
    %156 = vector.load %arg17[%c4, %c0_88] : memref<16x32xf32, #tpu.memory_space<vmem>>, vector<2x32xf32>
    tpu.vector_store %arg17[%c4, %c0_88], %155 {strides = array<i32>} : memref<16x32xf32, #tpu.memory_space<vmem>>, vector<2x32xf32>,
    %157 = vector.extract_strided_slice %7 {offsets = [6, 0], sizes = [2, 32], strides = [1, 1]} : vector<16x32xf32> to vector<2x32xf32>
    %c0_89 = arith.constant 0 : index
    %c0_90 = arith.constant 0 : index
    %c0_91 = arith.constant 0 : index
    %158 = vector.load %arg3[%c0_89, %c0_90, %c0_91] : memref<4x32x32xf32, #tpu.memory_space<vmem>>, vector<1x32x32xf32>
    %159 = vector.shape_cast %158 : vector<1x32x32xf32> to vector<32x32xf32>
    %cst_92 = arith.constant dense<0.000000e+00> : vector<2x32xf32>
    %160 = tpu.matmul %155, %159, %cst_92 {dimension_numbers = #tpu.dot_dimension_numbers<[1], [0], [0], [1], [0, 0, 1, 1], [], []>} : vector<2x32xf32>, vector<32x32xf32>, vector<2x32xf32> -> vector<2x32xf32>
    %161 = arith.addf %157, %160 : vector<2x32xf32>
    %162 = arith.negf %161 : vector<2x32xf32>
    %163 = math.exp %162 : vector<2x32xf32>
    %cst_93 = arith.constant 1.000000e+00 : f32
    %164 = vector.broadcast %cst_93 : f32 to vector<2x32xf32>
    %165 = arith.addf %164, %163 : vector<2x32xf32>
    %166 = arith.divf %164, %165 : vector<2x32xf32>
    %167 = vector.extract_strided_slice %14 {offsets = [6, 0], sizes = [2, 32], strides = [1, 1]} : vector<16x32xf32> to vector<2x32xf32>
    %c1_94 = arith.constant 1 : index
    %c0_95 = arith.constant 0 : index
    %c0_96 = arith.constant 0 : index
    %168 = vector.load %arg3[%c1_94, %c0_95, %c0_96] : memref<4x32x32xf32, #tpu.memory_space<vmem>>, vector<1x32x32xf32>
    %169 = vector.shape_cast %168 : vector<1x32x32xf32> to vector<32x32xf32>
    %cst_97 = arith.constant dense<0.000000e+00> : vector<2x32xf32>
    %170 = tpu.matmul %155, %169, %cst_97 {dimension_numbers = #tpu.dot_dimension_numbers<[1], [0], [0], [1], [0, 0, 1, 1], [], []>} : vector<2x32xf32>, vector<32x32xf32>, vector<2x32xf32> -> vector<2x32xf32>
    %171 = arith.addf %167, %170 : vector<2x32xf32>
    %172 = arith.negf %171 : vector<2x32xf32>
    %173 = math.exp %172 : vector<2x32xf32>
    %cst_98 = arith.constant 1.000000e+00 : f32
    %174 = vector.broadcast %cst_98 : f32 to vector<2x32xf32>
    %175 = arith.addf %174, %173 : vector<2x32xf32>
    %176 = arith.divf %174, %175 : vector<2x32xf32>
    %177 = vector.extract_strided_slice %21 {offsets = [6, 0], sizes = [2, 32], strides = [1, 1]} : vector<16x32xf32> to vector<2x32xf32>
    %c2_99 = arith.constant 2 : index
    %c0_100 = arith.constant 0 : index
    %c0_101 = arith.constant 0 : index
    %178 = vector.load %arg3[%c2_99, %c0_100, %c0_101] : memref<4x32x32xf32, #tpu.memory_space<vmem>>, vector<1x32x32xf32>
    %179 = vector.shape_cast %178 : vector<1x32x32xf32> to vector<32x32xf32>
    %cst_102 = arith.constant dense<0.000000e+00> : vector<2x32xf32>
    %180 = tpu.matmul %155, %179, %cst_102 {dimension_numbers = #tpu.dot_dimension_numbers<[1], [0], [0], [1], [0, 0, 1, 1], [], []>} : vector<2x32xf32>, vector<32x32xf32>, vector<2x32xf32> -> vector<2x32xf32>
    %181 = arith.addf %177, %180 : vector<2x32xf32>
    %182 = math.tanh %181 : vector<2x32xf32>
    %183 = vector.extract_strided_slice %28 {offsets = [6, 0], sizes = [2, 32], strides = [1, 1]} : vector<16x32xf32> to vector<2x32xf32>
    %c3_103 = arith.constant 3 : index
    %c0_104 = arith.constant 0 : index
    %c0_105 = arith.constant 0 : index
    %184 = vector.load %arg3[%c3_103, %c0_104, %c0_105] : memref<4x32x32xf32, #tpu.memory_space<vmem>>, vector<1x32x32xf32>
    %185 = vector.shape_cast %184 : vector<1x32x32xf32> to vector<32x32xf32>
    %cst_106 = arith.constant dense<0.000000e+00> : vector<2x32xf32>
    %186 = tpu.matmul %155, %185, %cst_106 {dimension_numbers = #tpu.dot_dimension_numbers<[1], [0], [0], [1], [0, 0, 1, 1], [], []>} : vector<2x32xf32>, vector<32x32xf32>, vector<2x32xf32> -> vector<2x32xf32>
    %187 = arith.addf %183, %186 : vector<2x32xf32>
    %188 = arith.negf %187 : vector<2x32xf32>
    %189 = math.exp %188 : vector<2x32xf32>
    %cst_107 = arith.constant 1.000000e+00 : f32
    %190 = vector.broadcast %cst_107 : f32 to vector<2x32xf32>
    %191 = arith.addf %190, %189 : vector<2x32xf32>
    %192 = arith.divf %190, %191 : vector<2x32xf32>
    %193 = arith.mulf %176, %153 : vector<2x32xf32>
    %194 = arith.mulf %166, %182 : vector<2x32xf32>
    %195 = arith.addf %193, %194 : vector<2x32xf32>
    %196 = math.tanh %195 : vector<2x32xf32>
    %197 = arith.mulf %192, %196 : vector<2x32xf32>
    %c6 = arith.constant 6 : index
    %c0_108 = arith.constant 0 : index
    %198 = vector.load %arg17[%c6, %c0_108] : memref<16x32xf32, #tpu.memory_space<vmem>>, vector<2x32xf32>
    tpu.vector_store %arg17[%c6, %c0_108], %197 {strides = array<i32>} : memref<16x32xf32, #tpu.memory_space<vmem>>, vector<2x32xf32>,
    %199 = vector.extract_strided_slice %7 {offsets = [8, 0], sizes = [2, 32], strides = [1, 1]} : vector<16x32xf32> to vector<2x32xf32>
    %c0_109 = arith.constant 0 : index
    %c0_110 = arith.constant 0 : index
    %c0_111 = arith.constant 0 : index
    %200 = vector.load %arg3[%c0_109, %c0_110, %c0_111] : memref<4x32x32xf32, #tpu.memory_space<vmem>>, vector<1x32x32xf32>
    %201 = vector.shape_cast %200 : vector<1x32x32xf32> to vector<32x32xf32>
    %cst_112 = arith.constant dense<0.000000e+00> : vector<2x32xf32>
    %202 = tpu.matmul %197, %201, %cst_112 {dimension_numbers = #tpu.dot_dimension_numbers<[1], [0], [0], [1], [0, 0, 1, 1], [], []>} : vector<2x32xf32>, vector<32x32xf32>, vector<2x32xf32> -> vector<2x32xf32>
    %203 = arith.addf %199, %202 : vector<2x32xf32>
    %204 = arith.negf %203 : vector<2x32xf32>
    %205 = math.exp %204 : vector<2x32xf32>
    %cst_113 = arith.constant 1.000000e+00 : f32
    %206 = vector.broadcast %cst_113 : f32 to vector<2x32xf32>
    %207 = arith.addf %206, %205 : vector<2x32xf32>
    %208 = arith.divf %206, %207 : vector<2x32xf32>
    %209 = vector.extract_strided_slice %14 {offsets = [8, 0], sizes = [2, 32], strides = [1, 1]} : vector<16x32xf32> to vector<2x32xf32>
    %c1_114 = arith.constant 1 : index
    %c0_115 = arith.constant 0 : index
    %c0_116 = arith.constant 0 : index
    %210 = vector.load %arg3[%c1_114, %c0_115, %c0_116] : memref<4x32x32xf32, #tpu.memory_space<vmem>>, vector<1x32x32xf32>
    %211 = vector.shape_cast %210 : vector<1x32x32xf32> to vector<32x32xf32>
    %cst_117 = arith.constant dense<0.000000e+00> : vector<2x32xf32>
    %212 = tpu.matmul %197, %211, %cst_117 {dimension_numbers = #tpu.dot_dimension_numbers<[1], [0], [0], [1], [0, 0, 1, 1], [], []>} : vector<2x32xf32>, vector<32x32xf32>, vector<2x32xf32> -> vector<2x32xf32>
    %213 = arith.addf %209, %212 : vector<2x32xf32>
    %214 = arith.negf %213 : vector<2x32xf32>
    %215 = math.exp %214 : vector<2x32xf32>
    %cst_118 = arith.constant 1.000000e+00 : f32
    %216 = vector.broadcast %cst_118 : f32 to vector<2x32xf32>
    %217 = arith.addf %216, %215 : vector<2x32xf32>
    %218 = arith.divf %216, %217 : vector<2x32xf32>
    %219 = vector.extract_strided_slice %21 {offsets = [8, 0], sizes = [2, 32], strides = [1, 1]} : vector<16x32xf32> to vector<2x32xf32>
    %c2_119 = arith.constant 2 : index
    %c0_120 = arith.constant 0 : index
    %c0_121 = arith.constant 0 : index
    %220 = vector.load %arg3[%c2_119, %c0_120, %c0_121] : memref<4x32x32xf32, #tpu.memory_space<vmem>>, vector<1x32x32xf32>
    %221 = vector.shape_cast %220 : vector<1x32x32xf32> to vector<32x32xf32>
    %cst_122 = arith.constant dense<0.000000e+00> : vector<2x32xf32>
    %222 = tpu.matmul %197, %221, %cst_122 {dimension_numbers = #tpu.dot_dimension_numbers<[1], [0], [0], [1], [0, 0, 1, 1], [], []>} : vector<2x32xf32>, vector<32x32xf32>, vector<2x32xf32> -> vector<2x32xf32>
    %223 = arith.addf %219, %222 : vector<2x32xf32>
    %224 = math.tanh %223 : vector<2x32xf32>
    %225 = vector.extract_strided_slice %28 {offsets = [8, 0], sizes = [2, 32], strides = [1, 1]} : vector<16x32xf32> to vector<2x32xf32>
    %c3_123 = arith.constant 3 : index
    %c0_124 = arith.constant 0 : index
    %c0_125 = arith.constant 0 : index
    %226 = vector.load %arg3[%c3_123, %c0_124, %c0_125] : memref<4x32x32xf32, #tpu.memory_space<vmem>>, vector<1x32x32xf32>
    %227 = vector.shape_cast %226 : vector<1x32x32xf32> to vector<32x32xf32>
    %cst_126 = arith.constant dense<0.000000e+00> : vector<2x32xf32>
    %228 = tpu.matmul %197, %227, %cst_126 {dimension_numbers = #tpu.dot_dimension_numbers<[1], [0], [0], [1], [0, 0, 1, 1], [], []>} : vector<2x32xf32>, vector<32x32xf32>, vector<2x32xf32> -> vector<2x32xf32>
    %229 = arith.addf %225, %228 : vector<2x32xf32>
    %230 = arith.negf %229 : vector<2x32xf32>
    %231 = math.exp %230 : vector<2x32xf32>
    %cst_127 = arith.constant 1.000000e+00 : f32
    %232 = vector.broadcast %cst_127 : f32 to vector<2x32xf32>
    %233 = arith.addf %232, %231 : vector<2x32xf32>
    %234 = arith.divf %232, %233 : vector<2x32xf32>
    %235 = arith.mulf %218, %195 : vector<2x32xf32>
    %236 = arith.mulf %208, %224 : vector<2x32xf32>
    %237 = arith.addf %235, %236 : vector<2x32xf32>
    %238 = math.tanh %237 : vector<2x32xf32>
    %239 = arith.mulf %234, %238 : vector<2x32xf32>
    %c8 = arith.constant 8 : index
    %c0_128 = arith.constant 0 : index
    %240 = vector.load %arg17[%c8, %c0_128] : memref<16x32xf32, #tpu.memory_space<vmem>>, vector<2x32xf32>
    tpu.vector_store %arg17[%c8, %c0_128], %239 {strides = array<i32>} : memref<16x32xf32, #tpu.memory_space<vmem>>, vector<2x32xf32>,
    %241 = vector.extract_strided_slice %7 {offsets = [10, 0], sizes = [2, 32], strides = [1, 1]} : vector<16x32xf32> to vector<2x32xf32>
    %c0_129 = arith.constant 0 : index
    %c0_130 = arith.constant 0 : index
    %c0_131 = arith.constant 0 : index
    %242 = vector.load %arg3[%c0_129, %c0_130, %c0_131] : memref<4x32x32xf32, #tpu.memory_space<vmem>>, vector<1x32x32xf32>
    %243 = vector.shape_cast %242 : vector<1x32x32xf32> to vector<32x32xf32>
    %cst_132 = arith.constant dense<0.000000e+00> : vector<2x32xf32>
    %244 = tpu.matmul %239, %243, %cst_132 {dimension_numbers = #tpu.dot_dimension_numbers<[1], [0], [0], [1], [0, 0, 1, 1], [], []>} : vector<2x32xf32>, vector<32x32xf32>, vector<2x32xf32> -> vector<2x32xf32>
    %245 = arith.addf %241, %244 : vector<2x32xf32>
    %246 = arith.negf %245 : vector<2x32xf32>
    %247 = math.exp %246 : vector<2x32xf32>
    %cst_133 = arith.constant 1.000000e+00 : f32
    %248 = vector.broadcast %cst_133 : f32 to vector<2x32xf32>
    %249 = arith.addf %248, %247 : vector<2x32xf32>
    %250 = arith.divf %248, %249 : vector<2x32xf32>
    %251 = vector.extract_strided_slice %14 {offsets = [10, 0], sizes = [2, 32], strides = [1, 1]} : vector<16x32xf32> to vector<2x32xf32>
    %c1_134 = arith.constant 1 : index
    %c0_135 = arith.constant 0 : index
    %c0_136 = arith.constant 0 : index
    %252 = vector.load %arg3[%c1_134, %c0_135, %c0_136] : memref<4x32x32xf32, #tpu.memory_space<vmem>>, vector<1x32x32xf32>
    %253 = vector.shape_cast %252 : vector<1x32x32xf32> to vector<32x32xf32>
    %cst_137 = arith.constant dense<0.000000e+00> : vector<2x32xf32>
    %254 = tpu.matmul %239, %253, %cst_137 {dimension_numbers = #tpu.dot_dimension_numbers<[1], [0], [0], [1], [0, 0, 1, 1], [], []>} : vector<2x32xf32>, vector<32x32xf32>, vector<2x32xf32> -> vector<2x32xf32>
    %255 = arith.addf %251, %254 : vector<2x32xf32>
    %256 = arith.negf %255 : vector<2x32xf32>
    %257 = math.exp %256 : vector<2x32xf32>
    %cst_138 = arith.constant 1.000000e+00 : f32
    %258 = vector.broadcast %cst_138 : f32 to vector<2x32xf32>
    %259 = arith.addf %258, %257 : vector<2x32xf32>
    %260 = arith.divf %258, %259 : vector<2x32xf32>
    %261 = vector.extract_strided_slice %21 {offsets = [10, 0], sizes = [2, 32], strides = [1, 1]} : vector<16x32xf32> to vector<2x32xf32>
    %c2_139 = arith.constant 2 : index
    %c0_140 = arith.constant 0 : index
    %c0_141 = arith.constant 0 : index
    %262 = vector.load %arg3[%c2_139, %c0_140, %c0_141] : memref<4x32x32xf32, #tpu.memory_space<vmem>>, vector<1x32x32xf32>
    %263 = vector.shape_cast %262 : vector<1x32x32xf32> to vector<32x32xf32>
    %cst_142 = arith.constant dense<0.000000e+00> : vector<2x32xf32>
    %264 = tpu.matmul %239, %263, %cst_142 {dimension_numbers = #tpu.dot_dimension_numbers<[1], [0], [0], [1], [0, 0, 1, 1], [], []>} : vector<2x32xf32>, vector<32x32xf32>, vector<2x32xf32> -> vector<2x32xf32>
    %265 = arith.addf %261, %264 : vector<2x32xf32>
    %266 = math.tanh %265 : vector<2x32xf32>
    %267 = vector.extract_strided_slice %28 {offsets = [10, 0], sizes = [2, 32], strides = [1, 1]} : vector<16x32xf32> to vector<2x32xf32>
    %c3_143 = arith.constant 3 : index
    %c0_144 = arith.constant 0 : index
    %c0_145 = arith.constant 0 : index
    %268 = vector.load %arg3[%c3_143, %c0_144, %c0_145] : memref<4x32x32xf32, #tpu.memory_space<vmem>>, vector<1x32x32xf32>
    %269 = vector.shape_cast %268 : vector<1x32x32xf32> to vector<32x32xf32>
    %cst_146 = arith.constant dense<0.000000e+00> : vector<2x32xf32>
    %270 = tpu.matmul %239, %269, %cst_146 {dimension_numbers = #tpu.dot_dimension_numbers<[1], [0], [0], [1], [0, 0, 1, 1], [], []>} : vector<2x32xf32>, vector<32x32xf32>, vector<2x32xf32> -> vector<2x32xf32>
    %271 = arith.addf %267, %270 : vector<2x32xf32>
    %272 = arith.negf %271 : vector<2x32xf32>
    %273 = math.exp %272 : vector<2x32xf32>
    %cst_147 = arith.constant 1.000000e+00 : f32
    %274 = vector.broadcast %cst_147 : f32 to vector<2x32xf32>
    %275 = arith.addf %274, %273 : vector<2x32xf32>
    %276 = arith.divf %274, %275 : vector<2x32xf32>
    %277 = arith.mulf %260, %237 : vector<2x32xf32>
    %278 = arith.mulf %250, %266 : vector<2x32xf32>
    %279 = arith.addf %277, %278 : vector<2x32xf32>
    %280 = math.tanh %279 : vector<2x32xf32>
    %281 = arith.mulf %276, %280 : vector<2x32xf32>
    %c10 = arith.constant 10 : index
    %c0_148 = arith.constant 0 : index
    %282 = vector.load %arg17[%c10, %c0_148] : memref<16x32xf32, #tpu.memory_space<vmem>>, vector<2x32xf32>
    tpu.vector_store %arg17[%c10, %c0_148], %281 {strides = array<i32>} : memref<16x32xf32, #tpu.memory_space<vmem>>, vector<2x32xf32>,
    %283 = vector.extract_strided_slice %7 {offsets = [12, 0], sizes = [2, 32], strides = [1, 1]} : vector<16x32xf32> to vector<2x32xf32>
    %c0_149 = arith.constant 0 : index
    %c0_150 = arith.constant 0 : index
    %c0_151 = arith.constant 0 : index
    %284 = vector.load %arg3[%c0_149, %c0_150, %c0_151] : memref<4x32x32xf32, #tpu.memory_space<vmem>>, vector<1x32x32xf32>
    %285 = vector.shape_cast %284 : vector<1x32x32xf32> to vector<32x32xf32>
    %cst_152 = arith.constant dense<0.000000e+00> : vector<2x32xf32>
    %286 = tpu.matmul %281, %285, %cst_152 {dimension_numbers = #tpu.dot_dimension_numbers<[1], [0], [0], [1], [0, 0, 1, 1], [], []>} : vector<2x32xf32>, vector<32x32xf32>, vector<2x32xf32> -> vector<2x32xf32>
    %287 = arith.addf %283, %286 : vector<2x32xf32>
    %288 = arith.negf %287 : vector<2x32xf32>
    %289 = math.exp %288 : vector<2x32xf32>
    %cst_153 = arith.constant 1.000000e+00 : f32
    %290 = vector.broadcast %cst_153 : f32 to vector<2x32xf32>
    %291 = arith.addf %290, %289 : vector<2x32xf32>
    %292 = arith.divf %290, %291 : vector<2x32xf32>
    %293 = vector.extract_strided_slice %14 {offsets = [12, 0], sizes = [2, 32], strides = [1, 1]} : vector<16x32xf32> to vector<2x32xf32>
    %c1_154 = arith.constant 1 : index
    %c0_155 = arith.constant 0 : index
    %c0_156 = arith.constant 0 : index
    %294 = vector.load %arg3[%c1_154, %c0_155, %c0_156] : memref<4x32x32xf32, #tpu.memory_space<vmem>>, vector<1x32x32xf32>
    %295 = vector.shape_cast %294 : vector<1x32x32xf32> to vector<32x32xf32>
    %cst_157 = arith.constant dense<0.000000e+00> : vector<2x32xf32>
    %296 = tpu.matmul %281, %295, %cst_157 {dimension_numbers = #tpu.dot_dimension_numbers<[1], [0], [0], [1], [0, 0, 1, 1], [], []>} : vector<2x32xf32>, vector<32x32xf32>, vector<2x32xf32> -> vector<2x32xf32>
    %297 = arith.addf %293, %296 : vector<2x32xf32>
    %298 = arith.negf %297 : vector<2x32xf32>
    %299 = math.exp %298 : vector<2x32xf32>
    %cst_158 = arith.constant 1.000000e+00 : f32
    %300 = vector.broadcast %cst_158 : f32 to vector<2x32xf32>
    %301 = arith.addf %300, %299 : vector<2x32xf32>
    %302 = arith.divf %300, %301 : vector<2x32xf32>
    %303 = vector.extract_strided_slice %21 {offsets = [12, 0], sizes = [2, 32], strides = [1, 1]} : vector<16x32xf32> to vector<2x32xf32>
    %c2_159 = arith.constant 2 : index
    %c0_160 = arith.constant 0 : index
    %c0_161 = arith.constant 0 : index
    %304 = vector.load %arg3[%c2_159, %c0_160, %c0_161] : memref<4x32x32xf32, #tpu.memory_space<vmem>>, vector<1x32x32xf32>
    %305 = vector.shape_cast %304 : vector<1x32x32xf32> to vector<32x32xf32>
    %cst_162 = arith.constant dense<0.000000e+00> : vector<2x32xf32>
    %306 = tpu.matmul %281, %305, %cst_162 {dimension_numbers = #tpu.dot_dimension_numbers<[1], [0], [0], [1], [0, 0, 1, 1], [], []>} : vector<2x32xf32>, vector<32x32xf32>, vector<2x32xf32> -> vector<2x32xf32>
    %307 = arith.addf %303, %306 : vector<2x32xf32>
    %308 = math.tanh %307 : vector<2x32xf32>
    %309 = vector.extract_strided_slice %28 {offsets = [12, 0], sizes = [2, 32], strides = [1, 1]} : vector<16x32xf32> to vector<2x32xf32>
    %c3_163 = arith.constant 3 : index
    %c0_164 = arith.constant 0 : index
    %c0_165 = arith.constant 0 : index
    %310 = vector.load %arg3[%c3_163, %c0_164, %c0_165] : memref<4x32x32xf32, #tpu.memory_space<vmem>>, vector<1x32x32xf32>
    %311 = vector.shape_cast %310 : vector<1x32x32xf32> to vector<32x32xf32>
    %cst_166 = arith.constant dense<0.000000e+00> : vector<2x32xf32>
    %312 = tpu.matmul %281, %311, %cst_166 {dimension_numbers = #tpu.dot_dimension_numbers<[1], [0], [0], [1], [0, 0, 1, 1], [], []>} : vector<2x32xf32>, vector<32x32xf32>, vector<2x32xf32> -> vector<2x32xf32>
    %313 = arith.addf %309, %312 : vector<2x32xf32>
    %314 = arith.negf %313 : vector<2x32xf32>
    %315 = math.exp %314 : vector<2x32xf32>
    %cst_167 = arith.constant 1.000000e+00 : f32
    %316 = vector.broadcast %cst_167 : f32 to vector<2x32xf32>
    %317 = arith.addf %316, %315 : vector<2x32xf32>
    %318 = arith.divf %316, %317 : vector<2x32xf32>
    %319 = arith.mulf %302, %279 : vector<2x32xf32>
    %320 = arith.mulf %292, %308 : vector<2x32xf32>
    %321 = arith.addf %319, %320 : vector<2x32xf32>
    %322 = math.tanh %321 : vector<2x32xf32>
    %323 = arith.mulf %318, %322 : vector<2x32xf32>
    %c12 = arith.constant 12 : index
    %c0_168 = arith.constant 0 : index
    %324 = vector.load %arg17[%c12, %c0_168] : memref<16x32xf32, #tpu.memory_space<vmem>>, vector<2x32xf32>
    tpu.vector_store %arg17[%c12, %c0_168], %323 {strides = array<i32>} : memref<16x32xf32, #tpu.memory_space<vmem>>, vector<2x32xf32>,
    %325 = vector.extract_strided_slice %7 {offsets = [14, 0], sizes = [2, 32], strides = [1, 1]} : vector<16x32xf32> to vector<2x32xf32>
    %c0_169 = arith.constant 0 : index
    %c0_170 = arith.constant 0 : index
    %c0_171 = arith.constant 0 : index
    %326 = vector.load %arg3[%c0_169, %c0_170, %c0_171] : memref<4x32x32xf32, #tpu.memory_space<vmem>>, vector<1x32x32xf32>
    %327 = vector.shape_cast %326 : vector<1x32x32xf32> to vector<32x32xf32>
    %cst_172 = arith.constant dense<0.000000e+00> : vector<2x32xf32>
    %328 = tpu.matmul %323, %327, %cst_172 {dimension_numbers = #tpu.dot_dimension_numbers<[1], [0], [0], [1], [0, 0, 1, 1], [], []>} : vector<2x32xf32>, vector<32x32xf32>, vector<2x32xf32> -> vector<2x32xf32>
    %329 = arith.addf %325, %328 : vector<2x32xf32>
    %330 = arith.negf %329 : vector<2x32xf32>
    %331 = math.exp %330 : vector<2x32xf32>
    %cst_173 = arith.constant 1.000000e+00 : f32
    %332 = vector.broadcast %cst_173 : f32 to vector<2x32xf32>
    %333 = arith.addf %332, %331 : vector<2x32xf32>
    %334 = arith.divf %332, %333 : vector<2x32xf32>
    %335 = vector.extract_strided_slice %14 {offsets = [14, 0], sizes = [2, 32], strides = [1, 1]} : vector<16x32xf32> to vector<2x32xf32>
    %c1_174 = arith.constant 1 : index
    %c0_175 = arith.constant 0 : index
    %c0_176 = arith.constant 0 : index
    %336 = vector.load %arg3[%c1_174, %c0_175, %c0_176] : memref<4x32x32xf32, #tpu.memory_space<vmem>>, vector<1x32x32xf32>
    %337 = vector.shape_cast %336 : vector<1x32x32xf32> to vector<32x32xf32>
    %cst_177 = arith.constant dense<0.000000e+00> : vector<2x32xf32>
    %338 = tpu.matmul %323, %337, %cst_177 {dimension_numbers = #tpu.dot_dimension_numbers<[1], [0], [0], [1], [0, 0, 1, 1], [], []>} : vector<2x32xf32>, vector<32x32xf32>, vector<2x32xf32> -> vector<2x32xf32>
    %339 = arith.addf %335, %338 : vector<2x32xf32>
    %340 = arith.negf %339 : vector<2x32xf32>
    %341 = math.exp %340 : vector<2x32xf32>
    %cst_178 = arith.constant 1.000000e+00 : f32
    %342 = vector.broadcast %cst_178 : f32 to vector<2x32xf32>
    %343 = arith.addf %342, %341 : vector<2x32xf32>
    %344 = arith.divf %342, %343 : vector<2x32xf32>
    %345 = vector.extract_strided_slice %21 {offsets = [14, 0], sizes = [2, 32], strides = [1, 1]} : vector<16x32xf32> to vector<2x32xf32>
    %c2_179 = arith.constant 2 : index
    %c0_180 = arith.constant 0 : index
    %c0_181 = arith.constant 0 : index
    %346 = vector.load %arg3[%c2_179, %c0_180, %c0_181] : memref<4x32x32xf32, #tpu.memory_space<vmem>>, vector<1x32x32xf32>
    %347 = vector.shape_cast %346 : vector<1x32x32xf32> to vector<32x32xf32>
    %cst_182 = arith.constant dense<0.000000e+00> : vector<2x32xf32>
    %348 = tpu.matmul %323, %347, %cst_182 {dimension_numbers = #tpu.dot_dimension_numbers<[1], [0], [0], [1], [0, 0, 1, 1], [], []>} : vector<2x32xf32>, vector<32x32xf32>, vector<2x32xf32> -> vector<2x32xf32>
    %349 = arith.addf %345, %348 : vector<2x32xf32>
    %350 = math.tanh %349 : vector<2x32xf32>
    %351 = vector.extract_strided_slice %28 {offsets = [14, 0], sizes = [2, 32], strides = [1, 1]} : vector<16x32xf32> to vector<2x32xf32>
    %c3_183 = arith.constant 3 : index
    %c0_184 = arith.constant 0 : index
    %c0_185 = arith.constant 0 : index
    %352 = vector.load %arg3[%c3_183, %c0_184, %c0_185] : memref<4x32x32xf32, #tpu.memory_space<vmem>>, vector<1x32x32xf32>
    %353 = vector.shape_cast %352 : vector<1x32x32xf32> to vector<32x32xf32>
    %cst_186 = arith.constant dense<0.000000e+00> : vector<2x32xf32>
    %354 = tpu.matmul %323, %353, %cst_186 {dimension_numbers = #tpu.dot_dimension_numbers<[1], [0], [0], [1], [0, 0, 1, 1], [], []>} : vector<2x32xf32>, vector<32x32xf32>, vector<2x32xf32> -> vector<2x32xf32>
    %355 = arith.addf %351, %354 : vector<2x32xf32>
    %356 = arith.negf %355 : vector<2x32xf32>
    %357 = math.exp %356 : vector<2x32xf32>
    %cst_187 = arith.constant 1.000000e+00 : f32
    %358 = vector.broadcast %cst_187 : f32 to vector<2x32xf32>
    %359 = arith.addf %358, %357 : vector<2x32xf32>
    %360 = arith.divf %358, %359 : vector<2x32xf32>
    %361 = arith.mulf %344, %321 : vector<2x32xf32>
    %362 = arith.mulf %334, %350 : vector<2x32xf32>
    %363 = arith.addf %361, %362 : vector<2x32xf32>
    %364 = math.tanh %363 : vector<2x32xf32>
    %365 = arith.mulf %360, %364 : vector<2x32xf32>
    %c14 = arith.constant 14 : index
    %c0_188 = arith.constant 0 : index
    %366 = vector.load %arg17[%c14, %c0_188] : memref<16x32xf32, #tpu.memory_space<vmem>>, vector<2x32xf32>
    tpu.vector_store %arg17[%c14, %c0_188], %365 {strides = array<i32>} : memref<16x32xf32, #tpu.memory_space<vmem>>, vector<2x32xf32>,
    %c0_189 = arith.constant 0 : index
    %c0_190 = arith.constant 0 : index
    %367 = vector.load %arg17[%c0_189, %c0_190] : memref<16x32xf32, #tpu.memory_space<vmem>>, vector<16x32xf32>
    %c0_191 = arith.constant 0 : index
    %c0_192 = arith.constant 0 : index
    %c0_193 = arith.constant 0 : index
    %368 = vector.load %arg5[%c0_191, %c0_192, %c0_193] : memref<4x32x32xf32, #tpu.memory_space<vmem>>, vector<1x32x32xf32>
    %369 = vector.shape_cast %368 : vector<1x32x32xf32> to vector<32x32xf32>
    %cst_194 = arith.constant dense<0.000000e+00> : vector<16x32xf32>
    %370 = tpu.matmul %367, %369, %cst_194 {dimension_numbers = #tpu.dot_dimension_numbers<[1], [0], [0], [1], [0, 0, 1, 1], [], []>} : vector<16x32xf32>, vector<32x32xf32>, vector<16x32xf32> -> vector<16x32xf32>
    %c0_195 = arith.constant 0 : index
    %c0_196 = arith.constant 0 : index
    %c0_197 = arith.constant 0 : index
    %371 = vector.load %arg7[%c0_195, %c0_196, %c0_197] : memref<4x1x32xf32, #tpu.memory_space<vmem>>, vector<1x1x32xf32>
    %372 = vector.shape_cast %371 : vector<1x1x32xf32> to vector<1x32xf32>
    %373 = vector.broadcast %372 : vector<1x32xf32> to vector<16x32xf32>
    %374 = arith.addf %370, %373 : vector<16x32xf32>
    %c1_198 = arith.constant 1 : index
    %c0_199 = arith.constant 0 : index
    %c0_200 = arith.constant 0 : index
    %375 = vector.load %arg5[%c1_198, %c0_199, %c0_200] : memref<4x32x32xf32, #tpu.memory_space<vmem>>, vector<1x32x32xf32>
    %376 = vector.shape_cast %375 : vector<1x32x32xf32> to vector<32x32xf32>
    %cst_201 = arith.constant dense<0.000000e+00> : vector<16x32xf32>
    %377 = tpu.matmul %367, %376, %cst_201 {dimension_numbers = #tpu.dot_dimension_numbers<[1], [0], [0], [1], [0, 0, 1, 1], [], []>} : vector<16x32xf32>, vector<32x32xf32>, vector<16x32xf32> -> vector<16x32xf32>
    %c1_202 = arith.constant 1 : index
    %c0_203 = arith.constant 0 : index
    %c0_204 = arith.constant 0 : index
    %378 = vector.load %arg7[%c1_202, %c0_203, %c0_204] : memref<4x1x32xf32, #tpu.memory_space<vmem>>, vector<1x1x32xf32>
    %379 = vector.shape_cast %378 : vector<1x1x32xf32> to vector<1x32xf32>
    %380 = vector.broadcast %379 : vector<1x32xf32> to vector<16x32xf32>
    %381 = arith.addf %377, %380 : vector<16x32xf32>
    %c2_205 = arith.constant 2 : index
    %c0_206 = arith.constant 0 : index
    %c0_207 = arith.constant 0 : index
    %382 = vector.load %arg5[%c2_205, %c0_206, %c0_207] : memref<4x32x32xf32, #tpu.memory_space<vmem>>, vector<1x32x32xf32>
    %383 = vector.shape_cast %382 : vector<1x32x32xf32> to vector<32x32xf32>
    %cst_208 = arith.constant dense<0.000000e+00> : vector<16x32xf32>
    %384 = tpu.matmul %367, %383, %cst_208 {dimension_numbers = #tpu.dot_dimension_numbers<[1], [0], [0], [1], [0, 0, 1, 1], [], []>} : vector<16x32xf32>, vector<32x32xf32>, vector<16x32xf32> -> vector<16x32xf32>
    %c2_209 = arith.constant 2 : index
    %c0_210 = arith.constant 0 : index
    %c0_211 = arith.constant 0 : index
    %385 = vector.load %arg7[%c2_209, %c0_210, %c0_211] : memref<4x1x32xf32, #tpu.memory_space<vmem>>, vector<1x1x32xf32>
    %386 = vector.shape_cast %385 : vector<1x1x32xf32> to vector<1x32xf32>
    %387 = vector.broadcast %386 : vector<1x32xf32> to vector<16x32xf32>
    %388 = arith.addf %384, %387 : vector<16x32xf32>
    %c3_212 = arith.constant 3 : index
    %c0_213 = arith.constant 0 : index
    %c0_214 = arith.constant 0 : index
    %389 = vector.load %arg5[%c3_212, %c0_213, %c0_214] : memref<4x32x32xf32, #tpu.memory_space<vmem>>, vector<1x32x32xf32>
    %390 = vector.shape_cast %389 : vector<1x32x32xf32> to vector<32x32xf32>
    %cst_215 = arith.constant dense<0.000000e+00> : vector<16x32xf32>
    %391 = tpu.matmul %367, %390, %cst_215 {dimension_numbers = #tpu.dot_dimension_numbers<[1], [0], [0], [1], [0, 0, 1, 1], [], []>} : vector<16x32xf32>, vector<32x32xf32>, vector<16x32xf32> -> vector<16x32xf32>
    %c3_216 = arith.constant 3 : index
    %c0_217 = arith.constant 0 : index
    %c0_218 = arith.constant 0 : index
    %392 = vector.load %arg7[%c3_216, %c0_217, %c0_218] : memref<4x1x32xf32, #tpu.memory_space<vmem>>, vector<1x1x32xf32>
    %393 = vector.shape_cast %392 : vector<1x1x32xf32> to vector<1x32xf32>
    %394 = vector.broadcast %393 : vector<1x32xf32> to vector<16x32xf32>
    %395 = arith.addf %391, %394 : vector<16x32xf32>
    %cst_219 = arith.constant 0.000000e+00 : f32
    %396 = vector.broadcast %cst_219 : f32 to vector<2x32xf32>
    %cst_220 = arith.constant 0.000000e+00 : f32
    %397 = vector.broadcast %cst_220 : f32 to vector<2x32xf32>
    %398 = vector.extract_strided_slice %374 {offsets = [0, 0], sizes = [2, 32], strides = [1, 1]} : vector<16x32xf32> to vector<2x32xf32>
    %c0_221 = arith.constant 0 : index
    %c0_222 = arith.constant 0 : index
    %c0_223 = arith.constant 0 : index
    %399 = vector.load %arg6[%c0_221, %c0_222, %c0_223] : memref<4x32x32xf32, #tpu.memory_space<vmem>>, vector<1x32x32xf32>
    %400 = vector.shape_cast %399 : vector<1x32x32xf32> to vector<32x32xf32>
    %cst_224 = arith.constant dense<0.000000e+00> : vector<2x32xf32>
    %401 = tpu.matmul %396, %400, %cst_224 {dimension_numbers = #tpu.dot_dimension_numbers<[1], [0], [0], [1], [0, 0, 1, 1], [], []>} : vector<2x32xf32>, vector<32x32xf32>, vector<2x32xf32> -> vector<2x32xf32>
    %402 = arith.addf %398, %401 : vector<2x32xf32>
    %403 = arith.negf %402 : vector<2x32xf32>
    %404 = math.exp %403 : vector<2x32xf32>
    %cst_225 = arith.constant 1.000000e+00 : f32
    %405 = vector.broadcast %cst_225 : f32 to vector<2x32xf32>
    %406 = arith.addf %405, %404 : vector<2x32xf32>
    %407 = arith.divf %405, %406 : vector<2x32xf32>
    %408 = vector.extract_strided_slice %381 {offsets = [0, 0], sizes = [2, 32], strides = [1, 1]} : vector<16x32xf32> to vector<2x32xf32>
    %c1_226 = arith.constant 1 : index
    %c0_227 = arith.constant 0 : index
    %c0_228 = arith.constant 0 : index
    %409 = vector.load %arg6[%c1_226, %c0_227, %c0_228] : memref<4x32x32xf32, #tpu.memory_space<vmem>>, vector<1x32x32xf32>
    %410 = vector.shape_cast %409 : vector<1x32x32xf32> to vector<32x32xf32>
    %cst_229 = arith.constant dense<0.000000e+00> : vector<2x32xf32>
    %411 = tpu.matmul %396, %410, %cst_229 {dimension_numbers = #tpu.dot_dimension_numbers<[1], [0], [0], [1], [0, 0, 1, 1], [], []>} : vector<2x32xf32>, vector<32x32xf32>, vector<2x32xf32> -> vector<2x32xf32>
    %412 = arith.addf %408, %411 : vector<2x32xf32>
    %413 = arith.negf %412 : vector<2x32xf32>
    %414 = math.exp %413 : vector<2x32xf32>
    %cst_230 = arith.constant 1.000000e+00 : f32
    %415 = vector.broadcast %cst_230 : f32 to vector<2x32xf32>
    %416 = arith.addf %415, %414 : vector<2x32xf32>
    %417 = arith.divf %415, %416 : vector<2x32xf32>
    %418 = vector.extract_strided_slice %388 {offsets = [0, 0], sizes = [2, 32], strides = [1, 1]} : vector<16x32xf32> to vector<2x32xf32>
    %c2_231 = arith.constant 2 : index
    %c0_232 = arith.constant 0 : index
    %c0_233 = arith.constant 0 : index
    %419 = vector.load %arg6[%c2_231, %c0_232, %c0_233] : memref<4x32x32xf32, #tpu.memory_space<vmem>>, vector<1x32x32xf32>
    %420 = vector.shape_cast %419 : vector<1x32x32xf32> to vector<32x32xf32>
    %cst_234 = arith.constant dense<0.000000e+00> : vector<2x32xf32>
    %421 = tpu.matmul %396, %420, %cst_234 {dimension_numbers = #tpu.dot_dimension_numbers<[1], [0], [0], [1], [0, 0, 1, 1], [], []>} : vector<2x32xf32>, vector<32x32xf32>, vector<2x32xf32> -> vector<2x32xf32>
    %422 = arith.addf %418, %421 : vector<2x32xf32>
    %423 = math.tanh %422 : vector<2x32xf32>
    %424 = vector.extract_strided_slice %395 {offsets = [0, 0], sizes = [2, 32], strides = [1, 1]} : vector<16x32xf32> to vector<2x32xf32>
    %c3_235 = arith.constant 3 : index
    %c0_236 = arith.constant 0 : index
    %c0_237 = arith.constant 0 : index
    %425 = vector.load %arg6[%c3_235, %c0_236, %c0_237] : memref<4x32x32xf32, #tpu.memory_space<vmem>>, vector<1x32x32xf32>
    %426 = vector.shape_cast %425 : vector<1x32x32xf32> to vector<32x32xf32>
    %cst_238 = arith.constant dense<0.000000e+00> : vector<2x32xf32>
    %427 = tpu.matmul %396, %426, %cst_238 {dimension_numbers = #tpu.dot_dimension_numbers<[1], [0], [0], [1], [0, 0, 1, 1], [], []>} : vector<2x32xf32>, vector<32x32xf32>, vector<2x32xf32> -> vector<2x32xf32>
    %428 = arith.addf %424, %427 : vector<2x32xf32>
    %429 = arith.negf %428 : vector<2x32xf32>
    %430 = math.exp %429 : vector<2x32xf32>
    %cst_239 = arith.constant 1.000000e+00 : f32
    %431 = vector.broadcast %cst_239 : f32 to vector<2x32xf32>
    %432 = arith.addf %431, %430 : vector<2x32xf32>
    %433 = arith.divf %431, %432 : vector<2x32xf32>
    %434 = arith.mulf %417, %397 : vector<2x32xf32>
    %435 = arith.mulf %407, %423 : vector<2x32xf32>
    %436 = arith.addf %434, %435 : vector<2x32xf32>
    %437 = math.tanh %436 : vector<2x32xf32>
    %438 = arith.mulf %433, %437 : vector<2x32xf32>
    %c0_240 = arith.constant 0 : index
    %c0_241 = arith.constant 0 : index
    %439 = vector.load %arg17[%c0_240, %c0_241] : memref<16x32xf32, #tpu.memory_space<vmem>>, vector<2x32xf32>
    tpu.vector_store %arg17[%c0_240, %c0_241], %438 {strides = array<i32>} : memref<16x32xf32, #tpu.memory_space<vmem>>, vector<2x32xf32>,
    %440 = vector.extract_strided_slice %374 {offsets = [2, 0], sizes = [2, 32], strides = [1, 1]} : vector<16x32xf32> to vector<2x32xf32>
    %c0_242 = arith.constant 0 : index
    %c0_243 = arith.constant 0 : index
    %c0_244 = arith.constant 0 : index
    %441 = vector.load %arg6[%c0_242, %c0_243, %c0_244] : memref<4x32x32xf32, #tpu.memory_space<vmem>>, vector<1x32x32xf32>
    %442 = vector.shape_cast %441 : vector<1x32x32xf32> to vector<32x32xf32>
    %cst_245 = arith.constant dense<0.000000e+00> : vector<2x32xf32>
    %443 = tpu.matmul %438, %442, %cst_245 {dimension_numbers = #tpu.dot_dimension_numbers<[1], [0], [0], [1], [0, 0, 1, 1], [], []>} : vector<2x32xf32>, vector<32x32xf32>, vector<2x32xf32> -> vector<2x32xf32>
    %444 = arith.addf %440, %443 : vector<2x32xf32>
    %445 = arith.negf %444 : vector<2x32xf32>
    %446 = math.exp %445 : vector<2x32xf32>
    %cst_246 = arith.constant 1.000000e+00 : f32
    %447 = vector.broadcast %cst_246 : f32 to vector<2x32xf32>
    %448 = arith.addf %447, %446 : vector<2x32xf32>
    %449 = arith.divf %447, %448 : vector<2x32xf32>
    %450 = vector.extract_strided_slice %381 {offsets = [2, 0], sizes = [2, 32], strides = [1, 1]} : vector<16x32xf32> to vector<2x32xf32>
    %c1_247 = arith.constant 1 : index
    %c0_248 = arith.constant 0 : index
    %c0_249 = arith.constant 0 : index
    %451 = vector.load %arg6[%c1_247, %c0_248, %c0_249] : memref<4x32x32xf32, #tpu.memory_space<vmem>>, vector<1x32x32xf32>
    %452 = vector.shape_cast %451 : vector<1x32x32xf32> to vector<32x32xf32>
    %cst_250 = arith.constant dense<0.000000e+00> : vector<2x32xf32>
    %453 = tpu.matmul %438, %452, %cst_250 {dimension_numbers = #tpu.dot_dimension_numbers<[1], [0], [0], [1], [0, 0, 1, 1], [], []>} : vector<2x32xf32>, vector<32x32xf32>, vector<2x32xf32> -> vector<2x32xf32>
    %454 = arith.addf %450, %453 : vector<2x32xf32>
    %455 = arith.negf %454 : vector<2x32xf32>
    %456 = math.exp %455 : vector<2x32xf32>
    %cst_251 = arith.constant 1.000000e+00 : f32
    %457 = vector.broadcast %cst_251 : f32 to vector<2x32xf32>
    %458 = arith.addf %457, %456 : vector<2x32xf32>
    %459 = arith.divf %457, %458 : vector<2x32xf32>
    %460 = vector.extract_strided_slice %388 {offsets = [2, 0], sizes = [2, 32], strides = [1, 1]} : vector<16x32xf32> to vector<2x32xf32>
    %c2_252 = arith.constant 2 : index
    %c0_253 = arith.constant 0 : index
    %c0_254 = arith.constant 0 : index
    %461 = vector.load %arg6[%c2_252, %c0_253, %c0_254] : memref<4x32x32xf32, #tpu.memory_space<vmem>>, vector<1x32x32xf32>
    %462 = vector.shape_cast %461 : vector<1x32x32xf32> to vector<32x32xf32>
    %cst_255 = arith.constant dense<0.000000e+00> : vector<2x32xf32>
    %463 = tpu.matmul %438, %462, %cst_255 {dimension_numbers = #tpu.dot_dimension_numbers<[1], [0], [0], [1], [0, 0, 1, 1], [], []>} : vector<2x32xf32>, vector<32x32xf32>, vector<2x32xf32> -> vector<2x32xf32>
    %464 = arith.addf %460, %463 : vector<2x32xf32>
    %465 = math.tanh %464 : vector<2x32xf32>
    %466 = vector.extract_strided_slice %395 {offsets = [2, 0], sizes = [2, 32], strides = [1, 1]} : vector<16x32xf32> to vector<2x32xf32>
    %c3_256 = arith.constant 3 : index
    %c0_257 = arith.constant 0 : index
    %c0_258 = arith.constant 0 : index
    %467 = vector.load %arg6[%c3_256, %c0_257, %c0_258] : memref<4x32x32xf32, #tpu.memory_space<vmem>>, vector<1x32x32xf32>
    %468 = vector.shape_cast %467 : vector<1x32x32xf32> to vector<32x32xf32>
    %cst_259 = arith.constant dense<0.000000e+00> : vector<2x32xf32>
    %469 = tpu.matmul %438, %468, %cst_259 {dimension_numbers = #tpu.dot_dimension_numbers<[1], [0], [0], [1], [0, 0, 1, 1], [], []>} : vector<2x32xf32>, vector<32x32xf32>, vector<2x32xf32> -> vector<2x32xf32>
    %470 = arith.addf %466, %469 : vector<2x32xf32>
    %471 = arith.negf %470 : vector<2x32xf32>
    %472 = math.exp %471 : vector<2x32xf32>
    %cst_260 = arith.constant 1.000000e+00 : f32
    %473 = vector.broadcast %cst_260 : f32 to vector<2x32xf32>
    %474 = arith.addf %473, %472 : vector<2x32xf32>
    %475 = arith.divf %473, %474 : vector<2x32xf32>
    %476 = arith.mulf %459, %436 : vector<2x32xf32>
    %477 = arith.mulf %449, %465 : vector<2x32xf32>
    %478 = arith.addf %476, %477 : vector<2x32xf32>
    %479 = math.tanh %478 : vector<2x32xf32>
    %480 = arith.mulf %475, %479 : vector<2x32xf32>
    %c2_261 = arith.constant 2 : index
    %c0_262 = arith.constant 0 : index
    %481 = vector.load %arg17[%c2_261, %c0_262] : memref<16x32xf32, #tpu.memory_space<vmem>>, vector<2x32xf32>
    tpu.vector_store %arg17[%c2_261, %c0_262], %480 {strides = array<i32>} : memref<16x32xf32, #tpu.memory_space<vmem>>, vector<2x32xf32>,
    %482 = vector.extract_strided_slice %374 {offsets = [4, 0], sizes = [2, 32], strides = [1, 1]} : vector<16x32xf32> to vector<2x32xf32>
    %c0_263 = arith.constant 0 : index
    %c0_264 = arith.constant 0 : index
    %c0_265 = arith.constant 0 : index
    %483 = vector.load %arg6[%c0_263, %c0_264, %c0_265] : memref<4x32x32xf32, #tpu.memory_space<vmem>>, vector<1x32x32xf32>
    %484 = vector.shape_cast %483 : vector<1x32x32xf32> to vector<32x32xf32>
    %cst_266 = arith.constant dense<0.000000e+00> : vector<2x32xf32>
    %485 = tpu.matmul %480, %484, %cst_266 {dimension_numbers = #tpu.dot_dimension_numbers<[1], [0], [0], [1], [0, 0, 1, 1], [], []>} : vector<2x32xf32>, vector<32x32xf32>, vector<2x32xf32> -> vector<2x32xf32>
    %486 = arith.addf %482, %485 : vector<2x32xf32>
    %487 = arith.negf %486 : vector<2x32xf32>
    %488 = math.exp %487 : vector<2x32xf32>
    %cst_267 = arith.constant 1.000000e+00 : f32
    %489 = vector.broadcast %cst_267 : f32 to vector<2x32xf32>
    %490 = arith.addf %489, %488 : vector<2x32xf32>
    %491 = arith.divf %489, %490 : vector<2x32xf32>
    %492 = vector.extract_strided_slice %381 {offsets = [4, 0], sizes = [2, 32], strides = [1, 1]} : vector<16x32xf32> to vector<2x32xf32>
    %c1_268 = arith.constant 1 : index
    %c0_269 = arith.constant 0 : index
    %c0_270 = arith.constant 0 : index
    %493 = vector.load %arg6[%c1_268, %c0_269, %c0_270] : memref<4x32x32xf32, #tpu.memory_space<vmem>>, vector<1x32x32xf32>
    %494 = vector.shape_cast %493 : vector<1x32x32xf32> to vector<32x32xf32>
    %cst_271 = arith.constant dense<0.000000e+00> : vector<2x32xf32>
    %495 = tpu.matmul %480, %494, %cst_271 {dimension_numbers = #tpu.dot_dimension_numbers<[1], [0], [0], [1], [0, 0, 1, 1], [], []>} : vector<2x32xf32>, vector<32x32xf32>, vector<2x32xf32> -> vector<2x32xf32>
    %496 = arith.addf %492, %495 : vector<2x32xf32>
    %497 = arith.negf %496 : vector<2x32xf32>
    %498 = math.exp %497 : vector<2x32xf32>
    %cst_272 = arith.constant 1.000000e+00 : f32
    %499 = vector.broadcast %cst_272 : f32 to vector<2x32xf32>
    %500 = arith.addf %499, %498 : vector<2x32xf32>
    %501 = arith.divf %499, %500 : vector<2x32xf32>
    %502 = vector.extract_strided_slice %388 {offsets = [4, 0], sizes = [2, 32], strides = [1, 1]} : vector<16x32xf32> to vector<2x32xf32>
    %c2_273 = arith.constant 2 : index
    %c0_274 = arith.constant 0 : index
    %c0_275 = arith.constant 0 : index
    %503 = vector.load %arg6[%c2_273, %c0_274, %c0_275] : memref<4x32x32xf32, #tpu.memory_space<vmem>>, vector<1x32x32xf32>
    %504 = vector.shape_cast %503 : vector<1x32x32xf32> to vector<32x32xf32>
    %cst_276 = arith.constant dense<0.000000e+00> : vector<2x32xf32>
    %505 = tpu.matmul %480, %504, %cst_276 {dimension_numbers = #tpu.dot_dimension_numbers<[1], [0], [0], [1], [0, 0, 1, 1], [], []>} : vector<2x32xf32>, vector<32x32xf32>, vector<2x32xf32> -> vector<2x32xf32>
    %506 = arith.addf %502, %505 : vector<2x32xf32>
    %507 = math.tanh %506 : vector<2x32xf32>
    %508 = vector.extract_strided_slice %395 {offsets = [4, 0], sizes = [2, 32], strides = [1, 1]} : vector<16x32xf32> to vector<2x32xf32>
    %c3_277 = arith.constant 3 : index
    %c0_278 = arith.constant 0 : index
    %c0_279 = arith.constant 0 : index
    %509 = vector.load %arg6[%c3_277, %c0_278, %c0_279] : memref<4x32x32xf32, #tpu.memory_space<vmem>>, vector<1x32x32xf32>
    %510 = vector.shape_cast %509 : vector<1x32x32xf32> to vector<32x32xf32>
    %cst_280 = arith.constant dense<0.000000e+00> : vector<2x32xf32>
    %511 = tpu.matmul %480, %510, %cst_280 {dimension_numbers = #tpu.dot_dimension_numbers<[1], [0], [0], [1], [0, 0, 1, 1], [], []>} : vector<2x32xf32>, vector<32x32xf32>, vector<2x32xf32> -> vector<2x32xf32>
    %512 = arith.addf %508, %511 : vector<2x32xf32>
    %513 = arith.negf %512 : vector<2x32xf32>
    %514 = math.exp %513 : vector<2x32xf32>
    %cst_281 = arith.constant 1.000000e+00 : f32
    %515 = vector.broadcast %cst_281 : f32 to vector<2x32xf32>
    %516 = arith.addf %515, %514 : vector<2x32xf32>
    %517 = arith.divf %515, %516 : vector<2x32xf32>
    %518 = arith.mulf %501, %478 : vector<2x32xf32>
    %519 = arith.mulf %491, %507 : vector<2x32xf32>
    %520 = arith.addf %518, %519 : vector<2x32xf32>
    %521 = math.tanh %520 : vector<2x32xf32>
    %522 = arith.mulf %517, %521 : vector<2x32xf32>
    %c4_282 = arith.constant 4 : index
    %c0_283 = arith.constant 0 : index
    %523 = vector.load %arg17[%c4_282, %c0_283] : memref<16x32xf32, #tpu.memory_space<vmem>>, vector<2x32xf32>
    tpu.vector_store %arg17[%c4_282, %c0_283], %522 {strides = array<i32>} : memref<16x32xf32, #tpu.memory_space<vmem>>, vector<2x32xf32>,
    %524 = vector.extract_strided_slice %374 {offsets = [6, 0], sizes = [2, 32], strides = [1, 1]} : vector<16x32xf32> to vector<2x32xf32>
    %c0_284 = arith.constant 0 : index
    %c0_285 = arith.constant 0 : index
    %c0_286 = arith.constant 0 : index
    %525 = vector.load %arg6[%c0_284, %c0_285, %c0_286] : memref<4x32x32xf32, #tpu.memory_space<vmem>>, vector<1x32x32xf32>
    %526 = vector.shape_cast %525 : vector<1x32x32xf32> to vector<32x32xf32>
    %cst_287 = arith.constant dense<0.000000e+00> : vector<2x32xf32>
    %527 = tpu.matmul %522, %526, %cst_287 {dimension_numbers = #tpu.dot_dimension_numbers<[1], [0], [0], [1], [0, 0, 1, 1], [], []>} : vector<2x32xf32>, vector<32x32xf32>, vector<2x32xf32> -> vector<2x32xf32>
    %528 = arith.addf %524, %527 : vector<2x32xf32>
    %529 = arith.negf %528 : vector<2x32xf32>
    %530 = math.exp %529 : vector<2x32xf32>
    %cst_288 = arith.constant 1.000000e+00 : f32
    %531 = vector.broadcast %cst_288 : f32 to vector<2x32xf32>
    %532 = arith.addf %531, %530 : vector<2x32xf32>
    %533 = arith.divf %531, %532 : vector<2x32xf32>
    %534 = vector.extract_strided_slice %381 {offsets = [6, 0], sizes = [2, 32], strides = [1, 1]} : vector<16x32xf32> to vector<2x32xf32>
    %c1_289 = arith.constant 1 : index
    %c0_290 = arith.constant 0 : index
    %c0_291 = arith.constant 0 : index
    %535 = vector.load %arg6[%c1_289, %c0_290, %c0_291] : memref<4x32x32xf32, #tpu.memory_space<vmem>>, vector<1x32x32xf32>
    %536 = vector.shape_cast %535 : vector<1x32x32xf32> to vector<32x32xf32>
    %cst_292 = arith.constant dense<0.000000e+00> : vector<2x32xf32>
    %537 = tpu.matmul %522, %536, %cst_292 {dimension_numbers = #tpu.dot_dimension_numbers<[1], [0], [0], [1], [0, 0, 1, 1], [], []>} : vector<2x32xf32>, vector<32x32xf32>, vector<2x32xf32> -> vector<2x32xf32>
    %538 = arith.addf %534, %537 : vector<2x32xf32>
    %539 = arith.negf %538 : vector<2x32xf32>
    %540 = math.exp %539 : vector<2x32xf32>
    %cst_293 = arith.constant 1.000000e+00 : f32
    %541 = vector.broadcast %cst_293 : f32 to vector<2x32xf32>
    %542 = arith.addf %541, %540 : vector<2x32xf32>
    %543 = arith.divf %541, %542 : vector<2x32xf32>
    %544 = vector.extract_strided_slice %388 {offsets = [6, 0], sizes = [2, 32], strides = [1, 1]} : vector<16x32xf32> to vector<2x32xf32>
    %c2_294 = arith.constant 2 : index
    %c0_295 = arith.constant 0 : index
    %c0_296 = arith.constant 0 : index
    %545 = vector.load %arg6[%c2_294, %c0_295, %c0_296] : memref<4x32x32xf32, #tpu.memory_space<vmem>>, vector<1x32x32xf32>
    %546 = vector.shape_cast %545 : vector<1x32x32xf32> to vector<32x32xf32>
    %cst_297 = arith.constant dense<0.000000e+00> : vector<2x32xf32>
    %547 = tpu.matmul %522, %546, %cst_297 {dimension_numbers = #tpu.dot_dimension_numbers<[1], [0], [0], [1], [0, 0, 1, 1], [], []>} : vector<2x32xf32>, vector<32x32xf32>, vector<2x32xf32> -> vector<2x32xf32>
    %548 = arith.addf %544, %547 : vector<2x32xf32>
    %549 = math.tanh %548 : vector<2x32xf32>
    %550 = vector.extract_strided_slice %395 {offsets = [6, 0], sizes = [2, 32], strides = [1, 1]} : vector<16x32xf32> to vector<2x32xf32>
    %c3_298 = arith.constant 3 : index
    %c0_299 = arith.constant 0 : index
    %c0_300 = arith.constant 0 : index
    %551 = vector.load %arg6[%c3_298, %c0_299, %c0_300] : memref<4x32x32xf32, #tpu.memory_space<vmem>>, vector<1x32x32xf32>
    %552 = vector.shape_cast %551 : vector<1x32x32xf32> to vector<32x32xf32>
    %cst_301 = arith.constant dense<0.000000e+00> : vector<2x32xf32>
    %553 = tpu.matmul %522, %552, %cst_301 {dimension_numbers = #tpu.dot_dimension_numbers<[1], [0], [0], [1], [0, 0, 1, 1], [], []>} : vector<2x32xf32>, vector<32x32xf32>, vector<2x32xf32> -> vector<2x32xf32>
    %554 = arith.addf %550, %553 : vector<2x32xf32>
    %555 = arith.negf %554 : vector<2x32xf32>
    %556 = math.exp %555 : vector<2x32xf32>
    %cst_302 = arith.constant 1.000000e+00 : f32
    %557 = vector.broadcast %cst_302 : f32 to vector<2x32xf32>
    %558 = arith.addf %557, %556 : vector<2x32xf32>
    %559 = arith.divf %557, %558 : vector<2x32xf32>
    %560 = arith.mulf %543, %520 : vector<2x32xf32>
    %561 = arith.mulf %533, %549 : vector<2x32xf32>
    %562 = arith.addf %560, %561 : vector<2x32xf32>
    %563 = math.tanh %562 : vector<2x32xf32>
    %564 = arith.mulf %559, %563 : vector<2x32xf32>
    %c6_303 = arith.constant 6 : index
    %c0_304 = arith.constant 0 : index
    %565 = vector.load %arg17[%c6_303, %c0_304] : memref<16x32xf32, #tpu.memory_space<vmem>>, vector<2x32xf32>
    tpu.vector_store %arg17[%c6_303, %c0_304], %564 {strides = array<i32>} : memref<16x32xf32, #tpu.memory_space<vmem>>, vector<2x32xf32>,
    %566 = vector.extract_strided_slice %374 {offsets = [8, 0], sizes = [2, 32], strides = [1, 1]} : vector<16x32xf32> to vector<2x32xf32>
    %c0_305 = arith.constant 0 : index
    %c0_306 = arith.constant 0 : index
    %c0_307 = arith.constant 0 : index
    %567 = vector.load %arg6[%c0_305, %c0_306, %c0_307] : memref<4x32x32xf32, #tpu.memory_space<vmem>>, vector<1x32x32xf32>
    %568 = vector.shape_cast %567 : vector<1x32x32xf32> to vector<32x32xf32>
    %cst_308 = arith.constant dense<0.000000e+00> : vector<2x32xf32>
    %569 = tpu.matmul %564, %568, %cst_308 {dimension_numbers = #tpu.dot_dimension_numbers<[1], [0], [0], [1], [0, 0, 1, 1], [], []>} : vector<2x32xf32>, vector<32x32xf32>, vector<2x32xf32> -> vector<2x32xf32>
    %570 = arith.addf %566, %569 : vector<2x32xf32>
    %571 = arith.negf %570 : vector<2x32xf32>
    %572 = math.exp %571 : vector<2x32xf32>
    %cst_309 = arith.constant 1.000000e+00 : f32
    %573 = vector.broadcast %cst_309 : f32 to vector<2x32xf32>
    %574 = arith.addf %573, %572 : vector<2x32xf32>
    %575 = arith.divf %573, %574 : vector<2x32xf32>
    %576 = vector.extract_strided_slice %381 {offsets = [8, 0], sizes = [2, 32], strides = [1, 1]} : vector<16x32xf32> to vector<2x32xf32>
    %c1_310 = arith.constant 1 : index
    %c0_311 = arith.constant 0 : index
    %c0_312 = arith.constant 0 : index
    %577 = vector.load %arg6[%c1_310, %c0_311, %c0_312] : memref<4x32x32xf32, #tpu.memory_space<vmem>>, vector<1x32x32xf32>
    %578 = vector.shape_cast %577 : vector<1x32x32xf32> to vector<32x32xf32>
    %cst_313 = arith.constant dense<0.000000e+00> : vector<2x32xf32>
    %579 = tpu.matmul %564, %578, %cst_313 {dimension_numbers = #tpu.dot_dimension_numbers<[1], [0], [0], [1], [0, 0, 1, 1], [], []>} : vector<2x32xf32>, vector<32x32xf32>, vector<2x32xf32> -> vector<2x32xf32>
    %580 = arith.addf %576, %579 : vector<2x32xf32>
    %581 = arith.negf %580 : vector<2x32xf32>
    %582 = math.exp %581 : vector<2x32xf32>
    %cst_314 = arith.constant 1.000000e+00 : f32
    %583 = vector.broadcast %cst_314 : f32 to vector<2x32xf32>
    %584 = arith.addf %583, %582 : vector<2x32xf32>
    %585 = arith.divf %583, %584 : vector<2x32xf32>
    %586 = vector.extract_strided_slice %388 {offsets = [8, 0], sizes = [2, 32], strides = [1, 1]} : vector<16x32xf32> to vector<2x32xf32>
    %c2_315 = arith.constant 2 : index
    %c0_316 = arith.constant 0 : index
    %c0_317 = arith.constant 0 : index
    %587 = vector.load %arg6[%c2_315, %c0_316, %c0_317] : memref<4x32x32xf32, #tpu.memory_space<vmem>>, vector<1x32x32xf32>
    %588 = vector.shape_cast %587 : vector<1x32x32xf32> to vector<32x32xf32>
    %cst_318 = arith.constant dense<0.000000e+00> : vector<2x32xf32>
    %589 = tpu.matmul %564, %588, %cst_318 {dimension_numbers = #tpu.dot_dimension_numbers<[1], [0], [0], [1], [0, 0, 1, 1], [], []>} : vector<2x32xf32>, vector<32x32xf32>, vector<2x32xf32> -> vector<2x32xf32>
    %590 = arith.addf %586, %589 : vector<2x32xf32>
    %591 = math.tanh %590 : vector<2x32xf32>
    %592 = vector.extract_strided_slice %395 {offsets = [8, 0], sizes = [2, 32], strides = [1, 1]} : vector<16x32xf32> to vector<2x32xf32>
    %c3_319 = arith.constant 3 : index
    %c0_320 = arith.constant 0 : index
    %c0_321 = arith.constant 0 : index
    %593 = vector.load %arg6[%c3_319, %c0_320, %c0_321] : memref<4x32x32xf32, #tpu.memory_space<vmem>>, vector<1x32x32xf32>
    %594 = vector.shape_cast %593 : vector<1x32x32xf32> to vector<32x32xf32>
    %cst_322 = arith.constant dense<0.000000e+00> : vector<2x32xf32>
    %595 = tpu.matmul %564, %594, %cst_322 {dimension_numbers = #tpu.dot_dimension_numbers<[1], [0], [0], [1], [0, 0, 1, 1], [], []>} : vector<2x32xf32>, vector<32x32xf32>, vector<2x32xf32> -> vector<2x32xf32>
    %596 = arith.addf %592, %595 : vector<2x32xf32>
    %597 = arith.negf %596 : vector<2x32xf32>
    %598 = math.exp %597 : vector<2x32xf32>
    %cst_323 = arith.constant 1.000000e+00 : f32
    %599 = vector.broadcast %cst_323 : f32 to vector<2x32xf32>
    %600 = arith.addf %599, %598 : vector<2x32xf32>
    %601 = arith.divf %599, %600 : vector<2x32xf32>
    %602 = arith.mulf %585, %562 : vector<2x32xf32>
    %603 = arith.mulf %575, %591 : vector<2x32xf32>
    %604 = arith.addf %602, %603 : vector<2x32xf32>
    %605 = math.tanh %604 : vector<2x32xf32>
    %606 = arith.mulf %601, %605 : vector<2x32xf32>
    %c8_324 = arith.constant 8 : index
    %c0_325 = arith.constant 0 : index
    %607 = vector.load %arg17[%c8_324, %c0_325] : memref<16x32xf32, #tpu.memory_space<vmem>>, vector<2x32xf32>
    tpu.vector_store %arg17[%c8_324, %c0_325], %606 {strides = array<i32>} : memref<16x32xf32, #tpu.memory_space<vmem>>, vector<2x32xf32>,
    %608 = vector.extract_strided_slice %374 {offsets = [10, 0], sizes = [2, 32], strides = [1, 1]} : vector<16x32xf32> to vector<2x32xf32>
    %c0_326 = arith.constant 0 : index
    %c0_327 = arith.constant 0 : index
    %c0_328 = arith.constant 0 : index
    %609 = vector.load %arg6[%c0_326, %c0_327, %c0_328] : memref<4x32x32xf32, #tpu.memory_space<vmem>>, vector<1x32x32xf32>
    %610 = vector.shape_cast %609 : vector<1x32x32xf32> to vector<32x32xf32>
    %cst_329 = arith.constant dense<0.000000e+00> : vector<2x32xf32>
    %611 = tpu.matmul %606, %610, %cst_329 {dimension_numbers = #tpu.dot_dimension_numbers<[1], [0], [0], [1], [0, 0, 1, 1], [], []>} : vector<2x32xf32>, vector<32x32xf32>, vector<2x32xf32> -> vector<2x32xf32>
    %612 = arith.addf %608, %611 : vector<2x32xf32>
    %613 = arith.negf %612 : vector<2x32xf32>
    %614 = math.exp %613 : vector<2x32xf32>
    %cst_330 = arith.constant 1.000000e+00 : f32
    %615 = vector.broadcast %cst_330 : f32 to vector<2x32xf32>
    %616 = arith.addf %615, %614 : vector<2x32xf32>
    %617 = arith.divf %615, %616 : vector<2x32xf32>
    %618 = vector.extract_strided_slice %381 {offsets = [10, 0], sizes = [2, 32], strides = [1, 1]} : vector<16x32xf32> to vector<2x32xf32>
    %c1_331 = arith.constant 1 : index
    %c0_332 = arith.constant 0 : index
    %c0_333 = arith.constant 0 : index
    %619 = vector.load %arg6[%c1_331, %c0_332, %c0_333] : memref<4x32x32xf32, #tpu.memory_space<vmem>>, vector<1x32x32xf32>
    %620 = vector.shape_cast %619 : vector<1x32x32xf32> to vector<32x32xf32>
    %cst_334 = arith.constant dense<0.000000e+00> : vector<2x32xf32>
    %621 = tpu.matmul %606, %620, %cst_334 {dimension_numbers = #tpu.dot_dimension_numbers<[1], [0], [0], [1], [0, 0, 1, 1], [], []>} : vector<2x32xf32>, vector<32x32xf32>, vector<2x32xf32> -> vector<2x32xf32>
    %622 = arith.addf %618, %621 : vector<2x32xf32>
    %623 = arith.negf %622 : vector<2x32xf32>
    %624 = math.exp %623 : vector<2x32xf32>
    %cst_335 = arith.constant 1.000000e+00 : f32
    %625 = vector.broadcast %cst_335 : f32 to vector<2x32xf32>
    %626 = arith.addf %625, %624 : vector<2x32xf32>
    %627 = arith.divf %625, %626 : vector<2x32xf32>
    %628 = vector.extract_strided_slice %388 {offsets = [10, 0], sizes = [2, 32], strides = [1, 1]} : vector<16x32xf32> to vector<2x32xf32>
    %c2_336 = arith.constant 2 : index
    %c0_337 = arith.constant 0 : index
    %c0_338 = arith.constant 0 : index
    %629 = vector.load %arg6[%c2_336, %c0_337, %c0_338] : memref<4x32x32xf32, #tpu.memory_space<vmem>>, vector<1x32x32xf32>
    %630 = vector.shape_cast %629 : vector<1x32x32xf32> to vector<32x32xf32>
    %cst_339 = arith.constant dense<0.000000e+00> : vector<2x32xf32>
    %631 = tpu.matmul %606, %630, %cst_339 {dimension_numbers = #tpu.dot_dimension_numbers<[1], [0], [0], [1], [0, 0, 1, 1], [], []>} : vector<2x32xf32>, vector<32x32xf32>, vector<2x32xf32> -> vector<2x32xf32>
    %632 = arith.addf %628, %631 : vector<2x32xf32>
    %633 = math.tanh %632 : vector<2x32xf32>
    %634 = vector.extract_strided_slice %395 {offsets = [10, 0], sizes = [2, 32], strides = [1, 1]} : vector<16x32xf32> to vector<2x32xf32>
    %c3_340 = arith.constant 3 : index
    %c0_341 = arith.constant 0 : index
    %c0_342 = arith.constant 0 : index
    %635 = vector.load %arg6[%c3_340, %c0_341, %c0_342] : memref<4x32x32xf32, #tpu.memory_space<vmem>>, vector<1x32x32xf32>
    %636 = vector.shape_cast %635 : vector<1x32x32xf32> to vector<32x32xf32>
    %cst_343 = arith.constant dense<0.000000e+00> : vector<2x32xf32>
    %637 = tpu.matmul %606, %636, %cst_343 {dimension_numbers = #tpu.dot_dimension_numbers<[1], [0], [0], [1], [0, 0, 1, 1], [], []>} : vector<2x32xf32>, vector<32x32xf32>, vector<2x32xf32> -> vector<2x32xf32>
    %638 = arith.addf %634, %637 : vector<2x32xf32>
    %639 = arith.negf %638 : vector<2x32xf32>
    %640 = math.exp %639 : vector<2x32xf32>
    %cst_344 = arith.constant 1.000000e+00 : f32
    %641 = vector.broadcast %cst_344 : f32 to vector<2x32xf32>
    %642 = arith.addf %641, %640 : vector<2x32xf32>
    %643 = arith.divf %641, %642 : vector<2x32xf32>
    %644 = arith.mulf %627, %604 : vector<2x32xf32>
    %645 = arith.mulf %617, %633 : vector<2x32xf32>
    %646 = arith.addf %644, %645 : vector<2x32xf32>
    %647 = math.tanh %646 : vector<2x32xf32>
    %648 = arith.mulf %643, %647 : vector<2x32xf32>
    %c10_345 = arith.constant 10 : index
    %c0_346 = arith.constant 0 : index
    %649 = vector.load %arg17[%c10_345, %c0_346] : memref<16x32xf32, #tpu.memory_space<vmem>>, vector<2x32xf32>
    tpu.vector_store %arg17[%c10_345, %c0_346], %648 {strides = array<i32>} : memref<16x32xf32, #tpu.memory_space<vmem>>, vector<2x32xf32>,
    %650 = vector.extract_strided_slice %374 {offsets = [12, 0], sizes = [2, 32], strides = [1, 1]} : vector<16x32xf32> to vector<2x32xf32>
    %c0_347 = arith.constant 0 : index
    %c0_348 = arith.constant 0 : index
    %c0_349 = arith.constant 0 : index
    %651 = vector.load %arg6[%c0_347, %c0_348, %c0_349] : memref<4x32x32xf32, #tpu.memory_space<vmem>>, vector<1x32x32xf32>
    %652 = vector.shape_cast %651 : vector<1x32x32xf32> to vector<32x32xf32>
    %cst_350 = arith.constant dense<0.000000e+00> : vector<2x32xf32>
    %653 = tpu.matmul %648, %652, %cst_350 {dimension_numbers = #tpu.dot_dimension_numbers<[1], [0], [0], [1], [0, 0, 1, 1], [], []>} : vector<2x32xf32>, vector<32x32xf32>, vector<2x32xf32> -> vector<2x32xf32>
    %654 = arith.addf %650, %653 : vector<2x32xf32>
    %655 = arith.negf %654 : vector<2x32xf32>
    %656 = math.exp %655 : vector<2x32xf32>
    %cst_351 = arith.constant 1.000000e+00 : f32
    %657 = vector.broadcast %cst_351 : f32 to vector<2x32xf32>
    %658 = arith.addf %657, %656 : vector<2x32xf32>
    %659 = arith.divf %657, %658 : vector<2x32xf32>
    %660 = vector.extract_strided_slice %381 {offsets = [12, 0], sizes = [2, 32], strides = [1, 1]} : vector<16x32xf32> to vector<2x32xf32>
    %c1_352 = arith.constant 1 : index
    %c0_353 = arith.constant 0 : index
    %c0_354 = arith.constant 0 : index
    %661 = vector.load %arg6[%c1_352, %c0_353, %c0_354] : memref<4x32x32xf32, #tpu.memory_space<vmem>>, vector<1x32x32xf32>
    %662 = vector.shape_cast %661 : vector<1x32x32xf32> to vector<32x32xf32>
    %cst_355 = arith.constant dense<0.000000e+00> : vector<2x32xf32>
    %663 = tpu.matmul %648, %662, %cst_355 {dimension_numbers = #tpu.dot_dimension_numbers<[1], [0], [0], [1], [0, 0, 1, 1], [], []>} : vector<2x32xf32>, vector<32x32xf32>, vector<2x32xf32> -> vector<2x32xf32>
    %664 = arith.addf %660, %663 : vector<2x32xf32>
    %665 = arith.negf %664 : vector<2x32xf32>
    %666 = math.exp %665 : vector<2x32xf32>
    %cst_356 = arith.constant 1.000000e+00 : f32
    %667 = vector.broadcast %cst_356 : f32 to vector<2x32xf32>
    %668 = arith.addf %667, %666 : vector<2x32xf32>
    %669 = arith.divf %667, %668 : vector<2x32xf32>
    %670 = vector.extract_strided_slice %388 {offsets = [12, 0], sizes = [2, 32], strides = [1, 1]} : vector<16x32xf32> to vector<2x32xf32>
    %c2_357 = arith.constant 2 : index
    %c0_358 = arith.constant 0 : index
    %c0_359 = arith.constant 0 : index
    %671 = vector.load %arg6[%c2_357, %c0_358, %c0_359] : memref<4x32x32xf32, #tpu.memory_space<vmem>>, vector<1x32x32xf32>
    %672 = vector.shape_cast %671 : vector<1x32x32xf32> to vector<32x32xf32>
    %cst_360 = arith.constant dense<0.000000e+00> : vector<2x32xf32>
    %673 = tpu.matmul %648, %672, %cst_360 {dimension_numbers = #tpu.dot_dimension_numbers<[1], [0], [0], [1], [0, 0, 1, 1], [], []>} : vector<2x32xf32>, vector<32x32xf32>, vector<2x32xf32> -> vector<2x32xf32>
    %674 = arith.addf %670, %673 : vector<2x32xf32>
    %675 = math.tanh %674 : vector<2x32xf32>
    %676 = vector.extract_strided_slice %395 {offsets = [12, 0], sizes = [2, 32], strides = [1, 1]} : vector<16x32xf32> to vector<2x32xf32>
    %c3_361 = arith.constant 3 : index
    %c0_362 = arith.constant 0 : index
    %c0_363 = arith.constant 0 : index
    %677 = vector.load %arg6[%c3_361, %c0_362, %c0_363] : memref<4x32x32xf32, #tpu.memory_space<vmem>>, vector<1x32x32xf32>
    %678 = vector.shape_cast %677 : vector<1x32x32xf32> to vector<32x32xf32>
    %cst_364 = arith.constant dense<0.000000e+00> : vector<2x32xf32>
    %679 = tpu.matmul %648, %678, %cst_364 {dimension_numbers = #tpu.dot_dimension_numbers<[1], [0], [0], [1], [0, 0, 1, 1], [], []>} : vector<2x32xf32>, vector<32x32xf32>, vector<2x32xf32> -> vector<2x32xf32>
    %680 = arith.addf %676, %679 : vector<2x32xf32>
    %681 = arith.negf %680 : vector<2x32xf32>
    %682 = math.exp %681 : vector<2x32xf32>
    %cst_365 = arith.constant 1.000000e+00 : f32
    %683 = vector.broadcast %cst_365 : f32 to vector<2x32xf32>
    %684 = arith.addf %683, %682 : vector<2x32xf32>
    %685 = arith.divf %683, %684 : vector<2x32xf32>
    %686 = arith.mulf %669, %646 : vector<2x32xf32>
    %687 = arith.mulf %659, %675 : vector<2x32xf32>
    %688 = arith.addf %686, %687 : vector<2x32xf32>
    %689 = math.tanh %688 : vector<2x32xf32>
    %690 = arith.mulf %685, %689 : vector<2x32xf32>
    %c12_366 = arith.constant 12 : index
    %c0_367 = arith.constant 0 : index
    %691 = vector.load %arg17[%c12_366, %c0_367] : memref<16x32xf32, #tpu.memory_space<vmem>>, vector<2x32xf32>
    tpu.vector_store %arg17[%c12_366, %c0_367], %690 {strides = array<i32>} : memref<16x32xf32, #tpu.memory_space<vmem>>, vector<2x32xf32>,
    %692 = vector.extract_strided_slice %374 {offsets = [14, 0], sizes = [2, 32], strides = [1, 1]} : vector<16x32xf32> to vector<2x32xf32>
    %c0_368 = arith.constant 0 : index
    %c0_369 = arith.constant 0 : index
    %c0_370 = arith.constant 0 : index
    %693 = vector.load %arg6[%c0_368, %c0_369, %c0_370] : memref<4x32x32xf32, #tpu.memory_space<vmem>>, vector<1x32x32xf32>
    %694 = vector.shape_cast %693 : vector<1x32x32xf32> to vector<32x32xf32>
    %cst_371 = arith.constant dense<0.000000e+00> : vector<2x32xf32>
    %695 = tpu.matmul %690, %694, %cst_371 {dimension_numbers = #tpu.dot_dimension_numbers<[1], [0], [0], [1], [0, 0, 1, 1], [], []>} : vector<2x32xf32>, vector<32x32xf32>, vector<2x32xf32> -> vector<2x32xf32>
    %696 = arith.addf %692, %695 : vector<2x32xf32>
    %697 = arith.negf %696 : vector<2x32xf32>
    %698 = math.exp %697 : vector<2x32xf32>
    %cst_372 = arith.constant 1.000000e+00 : f32
    %699 = vector.broadcast %cst_372 : f32 to vector<2x32xf32>
    %700 = arith.addf %699, %698 : vector<2x32xf32>
    %701 = arith.divf %699, %700 : vector<2x32xf32>
    %702 = vector.extract_strided_slice %381 {offsets = [14, 0], sizes = [2, 32], strides = [1, 1]} : vector<16x32xf32> to vector<2x32xf32>
    %c1_373 = arith.constant 1 : index
    %c0_374 = arith.constant 0 : index
    %c0_375 = arith.constant 0 : index
    %703 = vector.load %arg6[%c1_373, %c0_374, %c0_375] : memref<4x32x32xf32, #tpu.memory_space<vmem>>, vector<1x32x32xf32>
    %704 = vector.shape_cast %703 : vector<1x32x32xf32> to vector<32x32xf32>
    %cst_376 = arith.constant dense<0.000000e+00> : vector<2x32xf32>
    %705 = tpu.matmul %690, %704, %cst_376 {dimension_numbers = #tpu.dot_dimension_numbers<[1], [0], [0], [1], [0, 0, 1, 1], [], []>} : vector<2x32xf32>, vector<32x32xf32>, vector<2x32xf32> -> vector<2x32xf32>
    %706 = arith.addf %702, %705 : vector<2x32xf32>
    %707 = arith.negf %706 : vector<2x32xf32>
    %708 = math.exp %707 : vector<2x32xf32>
    %cst_377 = arith.constant 1.000000e+00 : f32
    %709 = vector.broadcast %cst_377 : f32 to vector<2x32xf32>
    %710 = arith.addf %709, %708 : vector<2x32xf32>
    %711 = arith.divf %709, %710 : vector<2x32xf32>
    %712 = vector.extract_strided_slice %388 {offsets = [14, 0], sizes = [2, 32], strides = [1, 1]} : vector<16x32xf32> to vector<2x32xf32>
    %c2_378 = arith.constant 2 : index
    %c0_379 = arith.constant 0 : index
    %c0_380 = arith.constant 0 : index
    %713 = vector.load %arg6[%c2_378, %c0_379, %c0_380] : memref<4x32x32xf32, #tpu.memory_space<vmem>>, vector<1x32x32xf32>
    %714 = vector.shape_cast %713 : vector<1x32x32xf32> to vector<32x32xf32>
    %cst_381 = arith.constant dense<0.000000e+00> : vector<2x32xf32>
    %715 = tpu.matmul %690, %714, %cst_381 {dimension_numbers = #tpu.dot_dimension_numbers<[1], [0], [0], [1], [0, 0, 1, 1], [], []>} : vector<2x32xf32>, vector<32x32xf32>, vector<2x32xf32> -> vector<2x32xf32>
    %716 = arith.addf %712, %715 : vector<2x32xf32>
    %717 = math.tanh %716 : vector<2x32xf32>
    %718 = vector.extract_strided_slice %395 {offsets = [14, 0], sizes = [2, 32], strides = [1, 1]} : vector<16x32xf32> to vector<2x32xf32>
    %c3_382 = arith.constant 3 : index
    %c0_383 = arith.constant 0 : index
    %c0_384 = arith.constant 0 : index
    %719 = vector.load %arg6[%c3_382, %c0_383, %c0_384] : memref<4x32x32xf32, #tpu.memory_space<vmem>>, vector<1x32x32xf32>
    %720 = vector.shape_cast %719 : vector<1x32x32xf32> to vector<32x32xf32>
    %cst_385 = arith.constant dense<0.000000e+00> : vector<2x32xf32>
    %721 = tpu.matmul %690, %720, %cst_385 {dimension_numbers = #tpu.dot_dimension_numbers<[1], [0], [0], [1], [0, 0, 1, 1], [], []>} : vector<2x32xf32>, vector<32x32xf32>, vector<2x32xf32> -> vector<2x32xf32>
    %722 = arith.addf %718, %721 : vector<2x32xf32>
    %723 = arith.negf %722 : vector<2x32xf32>
    %724 = math.exp %723 : vector<2x32xf32>
    %cst_386 = arith.constant 1.000000e+00 : f32
    %725 = vector.broadcast %cst_386 : f32 to vector<2x32xf32>
    %726 = arith.addf %725, %724 : vector<2x32xf32>
    %727 = arith.divf %725, %726 : vector<2x32xf32>
    %728 = arith.mulf %711, %688 : vector<2x32xf32>
    %729 = arith.mulf %701, %717 : vector<2x32xf32>
    %730 = arith.addf %728, %729 : vector<2x32xf32>
    %731 = math.tanh %730 : vector<2x32xf32>
    %732 = arith.mulf %727, %731 : vector<2x32xf32>
    %c14_387 = arith.constant 14 : index
    %c0_388 = arith.constant 0 : index
    %733 = vector.load %arg17[%c14_387, %c0_388] : memref<16x32xf32, #tpu.memory_space<vmem>>, vector<2x32xf32>
    tpu.vector_store %arg17[%c14_387, %c0_388], %732 {strides = array<i32>} : memref<16x32xf32, #tpu.memory_space<vmem>>, vector<2x32xf32>,
    %c0_389 = arith.constant 0 : index
    %c0_390 = arith.constant 0 : index
    %734 = vector.load %arg17[%c0_389, %c0_390] : memref<16x32xf32, #tpu.memory_space<vmem>>, vector<16x32xf32>
    %c0_391 = arith.constant 0 : index
    %c0_392 = arith.constant 0 : index
    %c0_393 = arith.constant 0 : index
    %735 = vector.load %arg8[%c0_391, %c0_392, %c0_393] : memref<4x32x32xf32, #tpu.memory_space<vmem>>, vector<1x32x32xf32>
    %736 = vector.shape_cast %735 : vector<1x32x32xf32> to vector<32x32xf32>
    %cst_394 = arith.constant dense<0.000000e+00> : vector<16x32xf32>
    %737 = tpu.matmul %734, %736, %cst_394 {dimension_numbers = #tpu.dot_dimension_numbers<[1], [0], [0], [1], [0, 0, 1, 1], [], []>} : vector<16x32xf32>, vector<32x32xf32>, vector<16x32xf32> -> vector<16x32xf32>
    %c0_395 = arith.constant 0 : index
    %c0_396 = arith.constant 0 : index
    %c0_397 = arith.constant 0 : index
    %738 = vector.load %arg10[%c0_395, %c0_396, %c0_397] : memref<4x1x32xf32, #tpu.memory_space<vmem>>, vector<1x1x32xf32>
    %739 = vector.shape_cast %738 : vector<1x1x32xf32> to vector<1x32xf32>
    %740 = vector.broadcast %739 : vector<1x32xf32> to vector<16x32xf32>
    %741 = arith.addf %737, %740 : vector<16x32xf32>
    %c1_398 = arith.constant 1 : index
    %c0_399 = arith.constant 0 : index
    %c0_400 = arith.constant 0 : index
    %742 = vector.load %arg8[%c1_398, %c0_399, %c0_400] : memref<4x32x32xf32, #tpu.memory_space<vmem>>, vector<1x32x32xf32>
    %743 = vector.shape_cast %742 : vector<1x32x32xf32> to vector<32x32xf32>
    %cst_401 = arith.constant dense<0.000000e+00> : vector<16x32xf32>
    %744 = tpu.matmul %734, %743, %cst_401 {dimension_numbers = #tpu.dot_dimension_numbers<[1], [0], [0], [1], [0, 0, 1, 1], [], []>} : vector<16x32xf32>, vector<32x32xf32>, vector<16x32xf32> -> vector<16x32xf32>
    %c1_402 = arith.constant 1 : index
    %c0_403 = arith.constant 0 : index
    %c0_404 = arith.constant 0 : index
    %745 = vector.load %arg10[%c1_402, %c0_403, %c0_404] : memref<4x1x32xf32, #tpu.memory_space<vmem>>, vector<1x1x32xf32>
    %746 = vector.shape_cast %745 : vector<1x1x32xf32> to vector<1x32xf32>
    %747 = vector.broadcast %746 : vector<1x32xf32> to vector<16x32xf32>
    %748 = arith.addf %744, %747 : vector<16x32xf32>
    %c2_405 = arith.constant 2 : index
    %c0_406 = arith.constant 0 : index
    %c0_407 = arith.constant 0 : index
    %749 = vector.load %arg8[%c2_405, %c0_406, %c0_407] : memref<4x32x32xf32, #tpu.memory_space<vmem>>, vector<1x32x32xf32>
    %750 = vector.shape_cast %749 : vector<1x32x32xf32> to vector<32x32xf32>
    %cst_408 = arith.constant dense<0.000000e+00> : vector<16x32xf32>
    %751 = tpu.matmul %734, %750, %cst_408 {dimension_numbers = #tpu.dot_dimension_numbers<[1], [0], [0], [1], [0, 0, 1, 1], [], []>} : vector<16x32xf32>, vector<32x32xf32>, vector<16x32xf32> -> vector<16x32xf32>
    %c2_409 = arith.constant 2 : index
    %c0_410 = arith.constant 0 : index
    %c0_411 = arith.constant 0 : index
    %752 = vector.load %arg10[%c2_409, %c0_410, %c0_411] : memref<4x1x32xf32, #tpu.memory_space<vmem>>, vector<1x1x32xf32>
    %753 = vector.shape_cast %752 : vector<1x1x32xf32> to vector<1x32xf32>
    %754 = vector.broadcast %753 : vector<1x32xf32> to vector<16x32xf32>
    %755 = arith.addf %751, %754 : vector<16x32xf32>
    %c3_412 = arith.constant 3 : index
    %c0_413 = arith.constant 0 : index
    %c0_414 = arith.constant 0 : index
    %756 = vector.load %arg8[%c3_412, %c0_413, %c0_414] : memref<4x32x32xf32, #tpu.memory_space<vmem>>, vector<1x32x32xf32>
    %757 = vector.shape_cast %756 : vector<1x32x32xf32> to vector<32x32xf32>
    %cst_415 = arith.constant dense<0.000000e+00> : vector<16x32xf32>
    %758 = tpu.matmul %734, %757, %cst_415 {dimension_numbers = #tpu.dot_dimension_numbers<[1], [0], [0], [1], [0, 0, 1, 1], [], []>} : vector<16x32xf32>, vector<32x32xf32>, vector<16x32xf32> -> vector<16x32xf32>
    %c3_416 = arith.constant 3 : index
    %c0_417 = arith.constant 0 : index
    %c0_418 = arith.constant 0 : index
    %759 = vector.load %arg10[%c3_416, %c0_417, %c0_418] : memref<4x1x32xf32, #tpu.memory_space<vmem>>, vector<1x1x32xf32>
    %760 = vector.shape_cast %759 : vector<1x1x32xf32> to vector<1x32xf32>
    %761 = vector.broadcast %760 : vector<1x32xf32> to vector<16x32xf32>
    %762 = arith.addf %758, %761 : vector<16x32xf32>
    %cst_419 = arith.constant 0.000000e+00 : f32
    %763 = vector.broadcast %cst_419 : f32 to vector<2x32xf32>
    %cst_420 = arith.constant 0.000000e+00 : f32
    %764 = vector.broadcast %cst_420 : f32 to vector<2x32xf32>
    %765 = vector.extract_strided_slice %741 {offsets = [0, 0], sizes = [2, 32], strides = [1, 1]} : vector<16x32xf32> to vector<2x32xf32>
    %c0_421 = arith.constant 0 : index
    %c0_422 = arith.constant 0 : index
    %c0_423 = arith.constant 0 : index
    %766 = vector.load %arg9[%c0_421, %c0_422, %c0_423] : memref<4x32x32xf32, #tpu.memory_space<vmem>>, vector<1x32x32xf32>
    %767 = vector.shape_cast %766 : vector<1x32x32xf32> to vector<32x32xf32>
    %cst_424 = arith.constant dense<0.000000e+00> : vector<2x32xf32>
    %768 = tpu.matmul %763, %767, %cst_424 {dimension_numbers = #tpu.dot_dimension_numbers<[1], [0], [0], [1], [0, 0, 1, 1], [], []>} : vector<2x32xf32>, vector<32x32xf32>, vector<2x32xf32> -> vector<2x32xf32>
    %769 = arith.addf %765, %768 : vector<2x32xf32>
    %770 = arith.negf %769 : vector<2x32xf32>
    %771 = math.exp %770 : vector<2x32xf32>
    %cst_425 = arith.constant 1.000000e+00 : f32
    %772 = vector.broadcast %cst_425 : f32 to vector<2x32xf32>
    %773 = arith.addf %772, %771 : vector<2x32xf32>
    %774 = arith.divf %772, %773 : vector<2x32xf32>
    %775 = vector.extract_strided_slice %748 {offsets = [0, 0], sizes = [2, 32], strides = [1, 1]} : vector<16x32xf32> to vector<2x32xf32>
    %c1_426 = arith.constant 1 : index
    %c0_427 = arith.constant 0 : index
    %c0_428 = arith.constant 0 : index
    %776 = vector.load %arg9[%c1_426, %c0_427, %c0_428] : memref<4x32x32xf32, #tpu.memory_space<vmem>>, vector<1x32x32xf32>
    %777 = vector.shape_cast %776 : vector<1x32x32xf32> to vector<32x32xf32>
    %cst_429 = arith.constant dense<0.000000e+00> : vector<2x32xf32>
    %778 = tpu.matmul %763, %777, %cst_429 {dimension_numbers = #tpu.dot_dimension_numbers<[1], [0], [0], [1], [0, 0, 1, 1], [], []>} : vector<2x32xf32>, vector<32x32xf32>, vector<2x32xf32> -> vector<2x32xf32>
    %779 = arith.addf %775, %778 : vector<2x32xf32>
    %780 = arith.negf %779 : vector<2x32xf32>
    %781 = math.exp %780 : vector<2x32xf32>
    %cst_430 = arith.constant 1.000000e+00 : f32
    %782 = vector.broadcast %cst_430 : f32 to vector<2x32xf32>
    %783 = arith.addf %782, %781 : vector<2x32xf32>
    %784 = arith.divf %782, %783 : vector<2x32xf32>
    %785 = vector.extract_strided_slice %755 {offsets = [0, 0], sizes = [2, 32], strides = [1, 1]} : vector<16x32xf32> to vector<2x32xf32>
    %c2_431 = arith.constant 2 : index
    %c0_432 = arith.constant 0 : index
    %c0_433 = arith.constant 0 : index
    %786 = vector.load %arg9[%c2_431, %c0_432, %c0_433] : memref<4x32x32xf32, #tpu.memory_space<vmem>>, vector<1x32x32xf32>
    %787 = vector.shape_cast %786 : vector<1x32x32xf32> to vector<32x32xf32>
    %cst_434 = arith.constant dense<0.000000e+00> : vector<2x32xf32>
    %788 = tpu.matmul %763, %787, %cst_434 {dimension_numbers = #tpu.dot_dimension_numbers<[1], [0], [0], [1], [0, 0, 1, 1], [], []>} : vector<2x32xf32>, vector<32x32xf32>, vector<2x32xf32> -> vector<2x32xf32>
    %789 = arith.addf %785, %788 : vector<2x32xf32>
    %790 = math.tanh %789 : vector<2x32xf32>
    %791 = vector.extract_strided_slice %762 {offsets = [0, 0], sizes = [2, 32], strides = [1, 1]} : vector<16x32xf32> to vector<2x32xf32>
    %c3_435 = arith.constant 3 : index
    %c0_436 = arith.constant 0 : index
    %c0_437 = arith.constant 0 : index
    %792 = vector.load %arg9[%c3_435, %c0_436, %c0_437] : memref<4x32x32xf32, #tpu.memory_space<vmem>>, vector<1x32x32xf32>
    %793 = vector.shape_cast %792 : vector<1x32x32xf32> to vector<32x32xf32>
    %cst_438 = arith.constant dense<0.000000e+00> : vector<2x32xf32>
    %794 = tpu.matmul %763, %793, %cst_438 {dimension_numbers = #tpu.dot_dimension_numbers<[1], [0], [0], [1], [0, 0, 1, 1], [], []>} : vector<2x32xf32>, vector<32x32xf32>, vector<2x32xf32> -> vector<2x32xf32>
    %795 = arith.addf %791, %794 : vector<2x32xf32>
    %796 = arith.negf %795 : vector<2x32xf32>
    %797 = math.exp %796 : vector<2x32xf32>
    %cst_439 = arith.constant 1.000000e+00 : f32
    %798 = vector.broadcast %cst_439 : f32 to vector<2x32xf32>
    %799 = arith.addf %798, %797 : vector<2x32xf32>
    %800 = arith.divf %798, %799 : vector<2x32xf32>
    %801 = arith.mulf %784, %764 : vector<2x32xf32>
    %802 = arith.mulf %774, %790 : vector<2x32xf32>
    %803 = arith.addf %801, %802 : vector<2x32xf32>
    %804 = math.tanh %803 : vector<2x32xf32>
    %805 = arith.mulf %800, %804 : vector<2x32xf32>
    %c0_440 = arith.constant 0 : index
    %c0_441 = arith.constant 0 : index
    %806 = vector.load %arg17[%c0_440, %c0_441] : memref<16x32xf32, #tpu.memory_space<vmem>>, vector<2x32xf32>
    tpu.vector_store %arg17[%c0_440, %c0_441], %805 {strides = array<i32>} : memref<16x32xf32, #tpu.memory_space<vmem>>, vector<2x32xf32>,
    %807 = vector.extract_strided_slice %741 {offsets = [2, 0], sizes = [2, 32], strides = [1, 1]} : vector<16x32xf32> to vector<2x32xf32>
    %c0_442 = arith.constant 0 : index
    %c0_443 = arith.constant 0 : index
    %c0_444 = arith.constant 0 : index
    %808 = vector.load %arg9[%c0_442, %c0_443, %c0_444] : memref<4x32x32xf32, #tpu.memory_space<vmem>>, vector<1x32x32xf32>
    %809 = vector.shape_cast %808 : vector<1x32x32xf32> to vector<32x32xf32>
    %cst_445 = arith.constant dense<0.000000e+00> : vector<2x32xf32>
    %810 = tpu.matmul %805, %809, %cst_445 {dimension_numbers = #tpu.dot_dimension_numbers<[1], [0], [0], [1], [0, 0, 1, 1], [], []>} : vector<2x32xf32>, vector<32x32xf32>, vector<2x32xf32> -> vector<2x32xf32>
    %811 = arith.addf %807, %810 : vector<2x32xf32>
    %812 = arith.negf %811 : vector<2x32xf32>
    %813 = math.exp %812 : vector<2x32xf32>
    %cst_446 = arith.constant 1.000000e+00 : f32
    %814 = vector.broadcast %cst_446 : f32 to vector<2x32xf32>
    %815 = arith.addf %814, %813 : vector<2x32xf32>
    %816 = arith.divf %814, %815 : vector<2x32xf32>
    %817 = vector.extract_strided_slice %748 {offsets = [2, 0], sizes = [2, 32], strides = [1, 1]} : vector<16x32xf32> to vector<2x32xf32>
    %c1_447 = arith.constant 1 : index
    %c0_448 = arith.constant 0 : index
    %c0_449 = arith.constant 0 : index
    %818 = vector.load %arg9[%c1_447, %c0_448, %c0_449] : memref<4x32x32xf32, #tpu.memory_space<vmem>>, vector<1x32x32xf32>
    %819 = vector.shape_cast %818 : vector<1x32x32xf32> to vector<32x32xf32>
    %cst_450 = arith.constant dense<0.000000e+00> : vector<2x32xf32>
    %820 = tpu.matmul %805, %819, %cst_450 {dimension_numbers = #tpu.dot_dimension_numbers<[1], [0], [0], [1], [0, 0, 1, 1], [], []>} : vector<2x32xf32>, vector<32x32xf32>, vector<2x32xf32> -> vector<2x32xf32>
    %821 = arith.addf %817, %820 : vector<2x32xf32>
    %822 = arith.negf %821 : vector<2x32xf32>
    %823 = math.exp %822 : vector<2x32xf32>
    %cst_451 = arith.constant 1.000000e+00 : f32
    %824 = vector.broadcast %cst_451 : f32 to vector<2x32xf32>
    %825 = arith.addf %824, %823 : vector<2x32xf32>
    %826 = arith.divf %824, %825 : vector<2x32xf32>
    %827 = vector.extract_strided_slice %755 {offsets = [2, 0], sizes = [2, 32], strides = [1, 1]} : vector<16x32xf32> to vector<2x32xf32>
    %c2_452 = arith.constant 2 : index
    %c0_453 = arith.constant 0 : index
    %c0_454 = arith.constant 0 : index
    %828 = vector.load %arg9[%c2_452, %c0_453, %c0_454] : memref<4x32x32xf32, #tpu.memory_space<vmem>>, vector<1x32x32xf32>
    %829 = vector.shape_cast %828 : vector<1x32x32xf32> to vector<32x32xf32>
    %cst_455 = arith.constant dense<0.000000e+00> : vector<2x32xf32>
    %830 = tpu.matmul %805, %829, %cst_455 {dimension_numbers = #tpu.dot_dimension_numbers<[1], [0], [0], [1], [0, 0, 1, 1], [], []>} : vector<2x32xf32>, vector<32x32xf32>, vector<2x32xf32> -> vector<2x32xf32>
    %831 = arith.addf %827, %830 : vector<2x32xf32>
    %832 = math.tanh %831 : vector<2x32xf32>
    %833 = vector.extract_strided_slice %762 {offsets = [2, 0], sizes = [2, 32], strides = [1, 1]} : vector<16x32xf32> to vector<2x32xf32>
    %c3_456 = arith.constant 3 : index
    %c0_457 = arith.constant 0 : index
    %c0_458 = arith.constant 0 : index
    %834 = vector.load %arg9[%c3_456, %c0_457, %c0_458] : memref<4x32x32xf32, #tpu.memory_space<vmem>>, vector<1x32x32xf32>
    %835 = vector.shape_cast %834 : vector<1x32x32xf32> to vector<32x32xf32>
    %cst_459 = arith.constant dense<0.000000e+00> : vector<2x32xf32>
    %836 = tpu.matmul %805, %835, %cst_459 {dimension_numbers = #tpu.dot_dimension_numbers<[1], [0], [0], [1], [0, 0, 1, 1], [], []>} : vector<2x32xf32>, vector<32x32xf32>, vector<2x32xf32> -> vector<2x32xf32>
    %837 = arith.addf %833, %836 : vector<2x32xf32>
    %838 = arith.negf %837 : vector<2x32xf32>
    %839 = math.exp %838 : vector<2x32xf32>
    %cst_460 = arith.constant 1.000000e+00 : f32
    %840 = vector.broadcast %cst_460 : f32 to vector<2x32xf32>
    %841 = arith.addf %840, %839 : vector<2x32xf32>
    %842 = arith.divf %840, %841 : vector<2x32xf32>
    %843 = arith.mulf %826, %803 : vector<2x32xf32>
    %844 = arith.mulf %816, %832 : vector<2x32xf32>
    %845 = arith.addf %843, %844 : vector<2x32xf32>
    %846 = math.tanh %845 : vector<2x32xf32>
    %847 = arith.mulf %842, %846 : vector<2x32xf32>
    %c2_461 = arith.constant 2 : index
    %c0_462 = arith.constant 0 : index
    %848 = vector.load %arg17[%c2_461, %c0_462] : memref<16x32xf32, #tpu.memory_space<vmem>>, vector<2x32xf32>
    tpu.vector_store %arg17[%c2_461, %c0_462], %847 {strides = array<i32>} : memref<16x32xf32, #tpu.memory_space<vmem>>, vector<2x32xf32>,
    %849 = vector.extract_strided_slice %741 {offsets = [4, 0], sizes = [2, 32], strides = [1, 1]} : vector<16x32xf32> to vector<2x32xf32>
    %c0_463 = arith.constant 0 : index
    %c0_464 = arith.constant 0 : index
    %c0_465 = arith.constant 0 : index
    %850 = vector.load %arg9[%c0_463, %c0_464, %c0_465] : memref<4x32x32xf32, #tpu.memory_space<vmem>>, vector<1x32x32xf32>
    %851 = vector.shape_cast %850 : vector<1x32x32xf32> to vector<32x32xf32>
    %cst_466 = arith.constant dense<0.000000e+00> : vector<2x32xf32>
    %852 = tpu.matmul %847, %851, %cst_466 {dimension_numbers = #tpu.dot_dimension_numbers<[1], [0], [0], [1], [0, 0, 1, 1], [], []>} : vector<2x32xf32>, vector<32x32xf32>, vector<2x32xf32> -> vector<2x32xf32>
    %853 = arith.addf %849, %852 : vector<2x32xf32>
    %854 = arith.negf %853 : vector<2x32xf32>
    %855 = math.exp %854 : vector<2x32xf32>
    %cst_467 = arith.constant 1.000000e+00 : f32
    %856 = vector.broadcast %cst_467 : f32 to vector<2x32xf32>
    %857 = arith.addf %856, %855 : vector<2x32xf32>
    %858 = arith.divf %856, %857 : vector<2x32xf32>
    %859 = vector.extract_strided_slice %748 {offsets = [4, 0], sizes = [2, 32], strides = [1, 1]} : vector<16x32xf32> to vector<2x32xf32>
    %c1_468 = arith.constant 1 : index
    %c0_469 = arith.constant 0 : index
    %c0_470 = arith.constant 0 : index
    %860 = vector.load %arg9[%c1_468, %c0_469, %c0_470] : memref<4x32x32xf32, #tpu.memory_space<vmem>>, vector<1x32x32xf32>
    %861 = vector.shape_cast %860 : vector<1x32x32xf32> to vector<32x32xf32>
    %cst_471 = arith.constant dense<0.000000e+00> : vector<2x32xf32>
    %862 = tpu.matmul %847, %861, %cst_471 {dimension_numbers = #tpu.dot_dimension_numbers<[1], [0], [0], [1], [0, 0, 1, 1], [], []>} : vector<2x32xf32>, vector<32x32xf32>, vector<2x32xf32> -> vector<2x32xf32>
    %863 = arith.addf %859, %862 : vector<2x32xf32>
    %864 = arith.negf %863 : vector<2x32xf32>
    %865 = math.exp %864 : vector<2x32xf32>
    %cst_472 = arith.constant 1.000000e+00 : f32
    %866 = vector.broadcast %cst_472 : f32 to vector<2x32xf32>
    %867 = arith.addf %866, %865 : vector<2x32xf32>
    %868 = arith.divf %866, %867 : vector<2x32xf32>
    %869 = vector.extract_strided_slice %755 {offsets = [4, 0], sizes = [2, 32], strides = [1, 1]} : vector<16x32xf32> to vector<2x32xf32>
    %c2_473 = arith.constant 2 : index
    %c0_474 = arith.constant 0 : index
    %c0_475 = arith.constant 0 : index
    %870 = vector.load %arg9[%c2_473, %c0_474, %c0_475] : memref<4x32x32xf32, #tpu.memory_space<vmem>>, vector<1x32x32xf32>
    %871 = vector.shape_cast %870 : vector<1x32x32xf32> to vector<32x32xf32>
    %cst_476 = arith.constant dense<0.000000e+00> : vector<2x32xf32>
    %872 = tpu.matmul %847, %871, %cst_476 {dimension_numbers = #tpu.dot_dimension_numbers<[1], [0], [0], [1], [0, 0, 1, 1], [], []>} : vector<2x32xf32>, vector<32x32xf32>, vector<2x32xf32> -> vector<2x32xf32>
    %873 = arith.addf %869, %872 : vector<2x32xf32>
    %874 = math.tanh %873 : vector<2x32xf32>
    %875 = vector.extract_strided_slice %762 {offsets = [4, 0], sizes = [2, 32], strides = [1, 1]} : vector<16x32xf32> to vector<2x32xf32>
    %c3_477 = arith.constant 3 : index
    %c0_478 = arith.constant 0 : index
    %c0_479 = arith.constant 0 : index
    %876 = vector.load %arg9[%c3_477, %c0_478, %c0_479] : memref<4x32x32xf32, #tpu.memory_space<vmem>>, vector<1x32x32xf32>
    %877 = vector.shape_cast %876 : vector<1x32x32xf32> to vector<32x32xf32>
    %cst_480 = arith.constant dense<0.000000e+00> : vector<2x32xf32>
    %878 = tpu.matmul %847, %877, %cst_480 {dimension_numbers = #tpu.dot_dimension_numbers<[1], [0], [0], [1], [0, 0, 1, 1], [], []>} : vector<2x32xf32>, vector<32x32xf32>, vector<2x32xf32> -> vector<2x32xf32>
    %879 = arith.addf %875, %878 : vector<2x32xf32>
    %880 = arith.negf %879 : vector<2x32xf32>
    %881 = math.exp %880 : vector<2x32xf32>
    %cst_481 = arith.constant 1.000000e+00 : f32
    %882 = vector.broadcast %cst_481 : f32 to vector<2x32xf32>
    %883 = arith.addf %882, %881 : vector<2x32xf32>
    %884 = arith.divf %882, %883 : vector<2x32xf32>
    %885 = arith.mulf %868, %845 : vector<2x32xf32>
    %886 = arith.mulf %858, %874 : vector<2x32xf32>
    %887 = arith.addf %885, %886 : vector<2x32xf32>
    %888 = math.tanh %887 : vector<2x32xf32>
    %889 = arith.mulf %884, %888 : vector<2x32xf32>
    %c4_482 = arith.constant 4 : index
    %c0_483 = arith.constant 0 : index
    %890 = vector.load %arg17[%c4_482, %c0_483] : memref<16x32xf32, #tpu.memory_space<vmem>>, vector<2x32xf32>
    tpu.vector_store %arg17[%c4_482, %c0_483], %889 {strides = array<i32>} : memref<16x32xf32, #tpu.memory_space<vmem>>, vector<2x32xf32>,
    %891 = vector.extract_strided_slice %741 {offsets = [6, 0], sizes = [2, 32], strides = [1, 1]} : vector<16x32xf32> to vector<2x32xf32>
    %c0_484 = arith.constant 0 : index
    %c0_485 = arith.constant 0 : index
    %c0_486 = arith.constant 0 : index
    %892 = vector.load %arg9[%c0_484, %c0_485, %c0_486] : memref<4x32x32xf32, #tpu.memory_space<vmem>>, vector<1x32x32xf32>
    %893 = vector.shape_cast %892 : vector<1x32x32xf32> to vector<32x32xf32>
    %cst_487 = arith.constant dense<0.000000e+00> : vector<2x32xf32>
    %894 = tpu.matmul %889, %893, %cst_487 {dimension_numbers = #tpu.dot_dimension_numbers<[1], [0], [0], [1], [0, 0, 1, 1], [], []>} : vector<2x32xf32>, vector<32x32xf32>, vector<2x32xf32> -> vector<2x32xf32>
    %895 = arith.addf %891, %894 : vector<2x32xf32>
    %896 = arith.negf %895 : vector<2x32xf32>
    %897 = math.exp %896 : vector<2x32xf32>
    %cst_488 = arith.constant 1.000000e+00 : f32
    %898 = vector.broadcast %cst_488 : f32 to vector<2x32xf32>
    %899 = arith.addf %898, %897 : vector<2x32xf32>
    %900 = arith.divf %898, %899 : vector<2x32xf32>
    %901 = vector.extract_strided_slice %748 {offsets = [6, 0], sizes = [2, 32], strides = [1, 1]} : vector<16x32xf32> to vector<2x32xf32>
    %c1_489 = arith.constant 1 : index
    %c0_490 = arith.constant 0 : index
    %c0_491 = arith.constant 0 : index
    %902 = vector.load %arg9[%c1_489, %c0_490, %c0_491] : memref<4x32x32xf32, #tpu.memory_space<vmem>>, vector<1x32x32xf32>
    %903 = vector.shape_cast %902 : vector<1x32x32xf32> to vector<32x32xf32>
    %cst_492 = arith.constant dense<0.000000e+00> : vector<2x32xf32>
    %904 = tpu.matmul %889, %903, %cst_492 {dimension_numbers = #tpu.dot_dimension_numbers<[1], [0], [0], [1], [0, 0, 1, 1], [], []>} : vector<2x32xf32>, vector<32x32xf32>, vector<2x32xf32> -> vector<2x32xf32>
    %905 = arith.addf %901, %904 : vector<2x32xf32>
    %906 = arith.negf %905 : vector<2x32xf32>
    %907 = math.exp %906 : vector<2x32xf32>
    %cst_493 = arith.constant 1.000000e+00 : f32
    %908 = vector.broadcast %cst_493 : f32 to vector<2x32xf32>
    %909 = arith.addf %908, %907 : vector<2x32xf32>
    %910 = arith.divf %908, %909 : vector<2x32xf32>
    %911 = vector.extract_strided_slice %755 {offsets = [6, 0], sizes = [2, 32], strides = [1, 1]} : vector<16x32xf32> to vector<2x32xf32>
    %c2_494 = arith.constant 2 : index
    %c0_495 = arith.constant 0 : index
    %c0_496 = arith.constant 0 : index
    %912 = vector.load %arg9[%c2_494, %c0_495, %c0_496] : memref<4x32x32xf32, #tpu.memory_space<vmem>>, vector<1x32x32xf32>
    %913 = vector.shape_cast %912 : vector<1x32x32xf32> to vector<32x32xf32>
    %cst_497 = arith.constant dense<0.000000e+00> : vector<2x32xf32>
    %914 = tpu.matmul %889, %913, %cst_497 {dimension_numbers = #tpu.dot_dimension_numbers<[1], [0], [0], [1], [0, 0, 1, 1], [], []>} : vector<2x32xf32>, vector<32x32xf32>, vector<2x32xf32> -> vector<2x32xf32>
    %915 = arith.addf %911, %914 : vector<2x32xf32>
    %916 = math.tanh %915 : vector<2x32xf32>
    %917 = vector.extract_strided_slice %762 {offsets = [6, 0], sizes = [2, 32], strides = [1, 1]} : vector<16x32xf32> to vector<2x32xf32>
    %c3_498 = arith.constant 3 : index
    %c0_499 = arith.constant 0 : index
    %c0_500 = arith.constant 0 : index
    %918 = vector.load %arg9[%c3_498, %c0_499, %c0_500] : memref<4x32x32xf32, #tpu.memory_space<vmem>>, vector<1x32x32xf32>
    %919 = vector.shape_cast %918 : vector<1x32x32xf32> to vector<32x32xf32>
    %cst_501 = arith.constant dense<0.000000e+00> : vector<2x32xf32>
    %920 = tpu.matmul %889, %919, %cst_501 {dimension_numbers = #tpu.dot_dimension_numbers<[1], [0], [0], [1], [0, 0, 1, 1], [], []>} : vector<2x32xf32>, vector<32x32xf32>, vector<2x32xf32> -> vector<2x32xf32>
    %921 = arith.addf %917, %920 : vector<2x32xf32>
    %922 = arith.negf %921 : vector<2x32xf32>
    %923 = math.exp %922 : vector<2x32xf32>
    %cst_502 = arith.constant 1.000000e+00 : f32
    %924 = vector.broadcast %cst_502 : f32 to vector<2x32xf32>
    %925 = arith.addf %924, %923 : vector<2x32xf32>
    %926 = arith.divf %924, %925 : vector<2x32xf32>
    %927 = arith.mulf %910, %887 : vector<2x32xf32>
    %928 = arith.mulf %900, %916 : vector<2x32xf32>
    %929 = arith.addf %927, %928 : vector<2x32xf32>
    %930 = math.tanh %929 : vector<2x32xf32>
    %931 = arith.mulf %926, %930 : vector<2x32xf32>
    %c6_503 = arith.constant 6 : index
    %c0_504 = arith.constant 0 : index
    %932 = vector.load %arg17[%c6_503, %c0_504] : memref<16x32xf32, #tpu.memory_space<vmem>>, vector<2x32xf32>
    tpu.vector_store %arg17[%c6_503, %c0_504], %931 {strides = array<i32>} : memref<16x32xf32, #tpu.memory_space<vmem>>, vector<2x32xf32>,
    %933 = vector.extract_strided_slice %741 {offsets = [8, 0], sizes = [2, 32], strides = [1, 1]} : vector<16x32xf32> to vector<2x32xf32>
    %c0_505 = arith.constant 0 : index
    %c0_506 = arith.constant 0 : index
    %c0_507 = arith.constant 0 : index
    %934 = vector.load %arg9[%c0_505, %c0_506, %c0_507] : memref<4x32x32xf32, #tpu.memory_space<vmem>>, vector<1x32x32xf32>
    %935 = vector.shape_cast %934 : vector<1x32x32xf32> to vector<32x32xf32>
    %cst_508 = arith.constant dense<0.000000e+00> : vector<2x32xf32>
    %936 = tpu.matmul %931, %935, %cst_508 {dimension_numbers = #tpu.dot_dimension_numbers<[1], [0], [0], [1], [0, 0, 1, 1], [], []>} : vector<2x32xf32>, vector<32x32xf32>, vector<2x32xf32> -> vector<2x32xf32>
    %937 = arith.addf %933, %936 : vector<2x32xf32>
    %938 = arith.negf %937 : vector<2x32xf32>
    %939 = math.exp %938 : vector<2x32xf32>
    %cst_509 = arith.constant 1.000000e+00 : f32
    %940 = vector.broadcast %cst_509 : f32 to vector<2x32xf32>
    %941 = arith.addf %940, %939 : vector<2x32xf32>
    %942 = arith.divf %940, %941 : vector<2x32xf32>
    %943 = vector.extract_strided_slice %748 {offsets = [8, 0], sizes = [2, 32], strides = [1, 1]} : vector<16x32xf32> to vector<2x32xf32>
    %c1_510 = arith.constant 1 : index
    %c0_511 = arith.constant 0 : index
    %c0_512 = arith.constant 0 : index
    %944 = vector.load %arg9[%c1_510, %c0_511, %c0_512] : memref<4x32x32xf32, #tpu.memory_space<vmem>>, vector<1x32x32xf32>
    %945 = vector.shape_cast %944 : vector<1x32x32xf32> to vector<32x32xf32>
    %cst_513 = arith.constant dense<0.000000e+00> : vector<2x32xf32>
    %946 = tpu.matmul %931, %945, %cst_513 {dimension_numbers = #tpu.dot_dimension_numbers<[1], [0], [0], [1], [0, 0, 1, 1], [], []>} : vector<2x32xf32>, vector<32x32xf32>, vector<2x32xf32> -> vector<2x32xf32>
    %947 = arith.addf %943, %946 : vector<2x32xf32>
    %948 = arith.negf %947 : vector<2x32xf32>
    %949 = math.exp %948 : vector<2x32xf32>
    %cst_514 = arith.constant 1.000000e+00 : f32
    %950 = vector.broadcast %cst_514 : f32 to vector<2x32xf32>
    %951 = arith.addf %950, %949 : vector<2x32xf32>
    %952 = arith.divf %950, %951 : vector<2x32xf32>
    %953 = vector.extract_strided_slice %755 {offsets = [8, 0], sizes = [2, 32], strides = [1, 1]} : vector<16x32xf32> to vector<2x32xf32>
    %c2_515 = arith.constant 2 : index
    %c0_516 = arith.constant 0 : index
    %c0_517 = arith.constant 0 : index
    %954 = vector.load %arg9[%c2_515, %c0_516, %c0_517] : memref<4x32x32xf32, #tpu.memory_space<vmem>>, vector<1x32x32xf32>
    %955 = vector.shape_cast %954 : vector<1x32x32xf32> to vector<32x32xf32>
    %cst_518 = arith.constant dense<0.000000e+00> : vector<2x32xf32>
    %956 = tpu.matmul %931, %955, %cst_518 {dimension_numbers = #tpu.dot_dimension_numbers<[1], [0], [0], [1], [0, 0, 1, 1], [], []>} : vector<2x32xf32>, vector<32x32xf32>, vector<2x32xf32> -> vector<2x32xf32>
    %957 = arith.addf %953, %956 : vector<2x32xf32>
    %958 = math.tanh %957 : vector<2x32xf32>
    %959 = vector.extract_strided_slice %762 {offsets = [8, 0], sizes = [2, 32], strides = [1, 1]} : vector<16x32xf32> to vector<2x32xf32>
    %c3_519 = arith.constant 3 : index
    %c0_520 = arith.constant 0 : index
    %c0_521 = arith.constant 0 : index
    %960 = vector.load %arg9[%c3_519, %c0_520, %c0_521] : memref<4x32x32xf32, #tpu.memory_space<vmem>>, vector<1x32x32xf32>
    %961 = vector.shape_cast %960 : vector<1x32x32xf32> to vector<32x32xf32>
    %cst_522 = arith.constant dense<0.000000e+00> : vector<2x32xf32>
    %962 = tpu.matmul %931, %961, %cst_522 {dimension_numbers = #tpu.dot_dimension_numbers<[1], [0], [0], [1], [0, 0, 1, 1], [], []>} : vector<2x32xf32>, vector<32x32xf32>, vector<2x32xf32> -> vector<2x32xf32>
    %963 = arith.addf %959, %962 : vector<2x32xf32>
    %964 = arith.negf %963 : vector<2x32xf32>
    %965 = math.exp %964 : vector<2x32xf32>
    %cst_523 = arith.constant 1.000000e+00 : f32
    %966 = vector.broadcast %cst_523 : f32 to vector<2x32xf32>
    %967 = arith.addf %966, %965 : vector<2x32xf32>
    %968 = arith.divf %966, %967 : vector<2x32xf32>
    %969 = arith.mulf %952, %929 : vector<2x32xf32>
    %970 = arith.mulf %942, %958 : vector<2x32xf32>
    %971 = arith.addf %969, %970 : vector<2x32xf32>
    %972 = math.tanh %971 : vector<2x32xf32>
    %973 = arith.mulf %968, %972 : vector<2x32xf32>
    %c8_524 = arith.constant 8 : index
    %c0_525 = arith.constant 0 : index
    %974 = vector.load %arg17[%c8_524, %c0_525] : memref<16x32xf32, #tpu.memory_space<vmem>>, vector<2x32xf32>
    tpu.vector_store %arg17[%c8_524, %c0_525], %973 {strides = array<i32>} : memref<16x32xf32, #tpu.memory_space<vmem>>, vector<2x32xf32>,
    %975 = vector.extract_strided_slice %741 {offsets = [10, 0], sizes = [2, 32], strides = [1, 1]} : vector<16x32xf32> to vector<2x32xf32>
    %c0_526 = arith.constant 0 : index
    %c0_527 = arith.constant 0 : index
    %c0_528 = arith.constant 0 : index
    %976 = vector.load %arg9[%c0_526, %c0_527, %c0_528] : memref<4x32x32xf32, #tpu.memory_space<vmem>>, vector<1x32x32xf32>
    %977 = vector.shape_cast %976 : vector<1x32x32xf32> to vector<32x32xf32>
    %cst_529 = arith.constant dense<0.000000e+00> : vector<2x32xf32>
    %978 = tpu.matmul %973, %977, %cst_529 {dimension_numbers = #tpu.dot_dimension_numbers<[1], [0], [0], [1], [0, 0, 1, 1], [], []>} : vector<2x32xf32>, vector<32x32xf32>, vector<2x32xf32> -> vector<2x32xf32>
    %979 = arith.addf %975, %978 : vector<2x32xf32>
    %980 = arith.negf %979 : vector<2x32xf32>
    %981 = math.exp %980 : vector<2x32xf32>
    %cst_530 = arith.constant 1.000000e+00 : f32
    %982 = vector.broadcast %cst_530 : f32 to vector<2x32xf32>
    %983 = arith.addf %982, %981 : vector<2x32xf32>
    %984 = arith.divf %982, %983 : vector<2x32xf32>
    %985 = vector.extract_strided_slice %748 {offsets = [10, 0], sizes = [2, 32], strides = [1, 1]} : vector<16x32xf32> to vector<2x32xf32>
    %c1_531 = arith.constant 1 : index
    %c0_532 = arith.constant 0 : index
    %c0_533 = arith.constant 0 : index
    %986 = vector.load %arg9[%c1_531, %c0_532, %c0_533] : memref<4x32x32xf32, #tpu.memory_space<vmem>>, vector<1x32x32xf32>
    %987 = vector.shape_cast %986 : vector<1x32x32xf32> to vector<32x32xf32>
    %cst_534 = arith.constant dense<0.000000e+00> : vector<2x32xf32>
    %988 = tpu.matmul %973, %987, %cst_534 {dimension_numbers = #tpu.dot_dimension_numbers<[1], [0], [0], [1], [0, 0, 1, 1], [], []>} : vector<2x32xf32>, vector<32x32xf32>, vector<2x32xf32> -> vector<2x32xf32>
    %989 = arith.addf %985, %988 : vector<2x32xf32>
    %990 = arith.negf %989 : vector<2x32xf32>
    %991 = math.exp %990 : vector<2x32xf32>
    %cst_535 = arith.constant 1.000000e+00 : f32
    %992 = vector.broadcast %cst_535 : f32 to vector<2x32xf32>
    %993 = arith.addf %992, %991 : vector<2x32xf32>
    %994 = arith.divf %992, %993 : vector<2x32xf32>
    %995 = vector.extract_strided_slice %755 {offsets = [10, 0], sizes = [2, 32], strides = [1, 1]} : vector<16x32xf32> to vector<2x32xf32>
    %c2_536 = arith.constant 2 : index
    %c0_537 = arith.constant 0 : index
    %c0_538 = arith.constant 0 : index
    %996 = vector.load %arg9[%c2_536, %c0_537, %c0_538] : memref<4x32x32xf32, #tpu.memory_space<vmem>>, vector<1x32x32xf32>
    %997 = vector.shape_cast %996 : vector<1x32x32xf32> to vector<32x32xf32>
    %cst_539 = arith.constant dense<0.000000e+00> : vector<2x32xf32>
    %998 = tpu.matmul %973, %997, %cst_539 {dimension_numbers = #tpu.dot_dimension_numbers<[1], [0], [0], [1], [0, 0, 1, 1], [], []>} : vector<2x32xf32>, vector<32x32xf32>, vector<2x32xf32> -> vector<2x32xf32>
    %999 = arith.addf %995, %998 : vector<2x32xf32>
    %1000 = math.tanh %999 : vector<2x32xf32>
    %1001 = vector.extract_strided_slice %762 {offsets = [10, 0], sizes = [2, 32], strides = [1, 1]} : vector<16x32xf32> to vector<2x32xf32>
    %c3_540 = arith.constant 3 : index
    %c0_541 = arith.constant 0 : index
    %c0_542 = arith.constant 0 : index
    %1002 = vector.load %arg9[%c3_540, %c0_541, %c0_542] : memref<4x32x32xf32, #tpu.memory_space<vmem>>, vector<1x32x32xf32>
    %1003 = vector.shape_cast %1002 : vector<1x32x32xf32> to vector<32x32xf32>
    %cst_543 = arith.constant dense<0.000000e+00> : vector<2x32xf32>
    %1004 = tpu.matmul %973, %1003, %cst_543 {dimension_numbers = #tpu.dot_dimension_numbers<[1], [0], [0], [1], [0, 0, 1, 1], [], []>} : vector<2x32xf32>, vector<32x32xf32>, vector<2x32xf32> -> vector<2x32xf32>
    %1005 = arith.addf %1001, %1004 : vector<2x32xf32>
    %1006 = arith.negf %1005 : vector<2x32xf32>
    %1007 = math.exp %1006 : vector<2x32xf32>
    %cst_544 = arith.constant 1.000000e+00 : f32
    %1008 = vector.broadcast %cst_544 : f32 to vector<2x32xf32>
    %1009 = arith.addf %1008, %1007 : vector<2x32xf32>
    %1010 = arith.divf %1008, %1009 : vector<2x32xf32>
    %1011 = arith.mulf %994, %971 : vector<2x32xf32>
    %1012 = arith.mulf %984, %1000 : vector<2x32xf32>
    %1013 = arith.addf %1011, %1012 : vector<2x32xf32>
    %1014 = math.tanh %1013 : vector<2x32xf32>
    %1015 = arith.mulf %1010, %1014 : vector<2x32xf32>
    %c10_545 = arith.constant 10 : index
    %c0_546 = arith.constant 0 : index
    %1016 = vector.load %arg17[%c10_545, %c0_546] : memref<16x32xf32, #tpu.memory_space<vmem>>, vector<2x32xf32>
    tpu.vector_store %arg17[%c10_545, %c0_546], %1015 {strides = array<i32>} : memref<16x32xf32, #tpu.memory_space<vmem>>, vector<2x32xf32>,
    %1017 = vector.extract_strided_slice %741 {offsets = [12, 0], sizes = [2, 32], strides = [1, 1]} : vector<16x32xf32> to vector<2x32xf32>
    %c0_547 = arith.constant 0 : index
    %c0_548 = arith.constant 0 : index
    %c0_549 = arith.constant 0 : index
    %1018 = vector.load %arg9[%c0_547, %c0_548, %c0_549] : memref<4x32x32xf32, #tpu.memory_space<vmem>>, vector<1x32x32xf32>
    %1019 = vector.shape_cast %1018 : vector<1x32x32xf32> to vector<32x32xf32>
    %cst_550 = arith.constant dense<0.000000e+00> : vector<2x32xf32>
    %1020 = tpu.matmul %1015, %1019, %cst_550 {dimension_numbers = #tpu.dot_dimension_numbers<[1], [0], [0], [1], [0, 0, 1, 1], [], []>} : vector<2x32xf32>, vector<32x32xf32>, vector<2x32xf32> -> vector<2x32xf32>
    %1021 = arith.addf %1017, %1020 : vector<2x32xf32>
    %1022 = arith.negf %1021 : vector<2x32xf32>
    %1023 = math.exp %1022 : vector<2x32xf32>
    %cst_551 = arith.constant 1.000000e+00 : f32
    %1024 = vector.broadcast %cst_551 : f32 to vector<2x32xf32>
    %1025 = arith.addf %1024, %1023 : vector<2x32xf32>
    %1026 = arith.divf %1024, %1025 : vector<2x32xf32>
    %1027 = vector.extract_strided_slice %748 {offsets = [12, 0], sizes = [2, 32], strides = [1, 1]} : vector<16x32xf32> to vector<2x32xf32>
    %c1_552 = arith.constant 1 : index
    %c0_553 = arith.constant 0 : index
    %c0_554 = arith.constant 0 : index
    %1028 = vector.load %arg9[%c1_552, %c0_553, %c0_554] : memref<4x32x32xf32, #tpu.memory_space<vmem>>, vector<1x32x32xf32>
    %1029 = vector.shape_cast %1028 : vector<1x32x32xf32> to vector<32x32xf32>
    %cst_555 = arith.constant dense<0.000000e+00> : vector<2x32xf32>
    %1030 = tpu.matmul %1015, %1029, %cst_555 {dimension_numbers = #tpu.dot_dimension_numbers<[1], [0], [0], [1], [0, 0, 1, 1], [], []>} : vector<2x32xf32>, vector<32x32xf32>, vector<2x32xf32> -> vector<2x32xf32>
    %1031 = arith.addf %1027, %1030 : vector<2x32xf32>
    %1032 = arith.negf %1031 : vector<2x32xf32>
    %1033 = math.exp %1032 : vector<2x32xf32>
    %cst_556 = arith.constant 1.000000e+00 : f32
    %1034 = vector.broadcast %cst_556 : f32 to vector<2x32xf32>
    %1035 = arith.addf %1034, %1033 : vector<2x32xf32>
    %1036 = arith.divf %1034, %1035 : vector<2x32xf32>
    %1037 = vector.extract_strided_slice %755 {offsets = [12, 0], sizes = [2, 32], strides = [1, 1]} : vector<16x32xf32> to vector<2x32xf32>
    %c2_557 = arith.constant 2 : index
    %c0_558 = arith.constant 0 : index
    %c0_559 = arith.constant 0 : index
    %1038 = vector.load %arg9[%c2_557, %c0_558, %c0_559] : memref<4x32x32xf32, #tpu.memory_space<vmem>>, vector<1x32x32xf32>
    %1039 = vector.shape_cast %1038 : vector<1x32x32xf32> to vector<32x32xf32>
    %cst_560 = arith.constant dense<0.000000e+00> : vector<2x32xf32>
    %1040 = tpu.matmul %1015, %1039, %cst_560 {dimension_numbers = #tpu.dot_dimension_numbers<[1], [0], [0], [1], [0, 0, 1, 1], [], []>} : vector<2x32xf32>, vector<32x32xf32>, vector<2x32xf32> -> vector<2x32xf32>
    %1041 = arith.addf %1037, %1040 : vector<2x32xf32>
    %1042 = math.tanh %1041 : vector<2x32xf32>
    %1043 = vector.extract_strided_slice %762 {offsets = [12, 0], sizes = [2, 32], strides = [1, 1]} : vector<16x32xf32> to vector<2x32xf32>
    %c3_561 = arith.constant 3 : index
    %c0_562 = arith.constant 0 : index
    %c0_563 = arith.constant 0 : index
    %1044 = vector.load %arg9[%c3_561, %c0_562, %c0_563] : memref<4x32x32xf32, #tpu.memory_space<vmem>>, vector<1x32x32xf32>
    %1045 = vector.shape_cast %1044 : vector<1x32x32xf32> to vector<32x32xf32>
    %cst_564 = arith.constant dense<0.000000e+00> : vector<2x32xf32>
    %1046 = tpu.matmul %1015, %1045, %cst_564 {dimension_numbers = #tpu.dot_dimension_numbers<[1], [0], [0], [1], [0, 0, 1, 1], [], []>} : vector<2x32xf32>, vector<32x32xf32>, vector<2x32xf32> -> vector<2x32xf32>
    %1047 = arith.addf %1043, %1046 : vector<2x32xf32>
    %1048 = arith.negf %1047 : vector<2x32xf32>
    %1049 = math.exp %1048 : vector<2x32xf32>
    %cst_565 = arith.constant 1.000000e+00 : f32
    %1050 = vector.broadcast %cst_565 : f32 to vector<2x32xf32>
    %1051 = arith.addf %1050, %1049 : vector<2x32xf32>
    %1052 = arith.divf %1050, %1051 : vector<2x32xf32>
    %1053 = arith.mulf %1036, %1013 : vector<2x32xf32>
    %1054 = arith.mulf %1026, %1042 : vector<2x32xf32>
    %1055 = arith.addf %1053, %1054 : vector<2x32xf32>
    %1056 = math.tanh %1055 : vector<2x32xf32>
    %1057 = arith.mulf %1052, %1056 : vector<2x32xf32>
    %c12_566 = arith.constant 12 : index
    %c0_567 = arith.constant 0 : index
    %1058 = vector.load %arg17[%c12_566, %c0_567] : memref<16x32xf32, #tpu.memory_space<vmem>>, vector<2x32xf32>
    tpu.vector_store %arg17[%c12_566, %c0_567], %1057 {strides = array<i32>} : memref<16x32xf32, #tpu.memory_space<vmem>>, vector<2x32xf32>,
    %1059 = vector.extract_strided_slice %741 {offsets = [14, 0], sizes = [2, 32], strides = [1, 1]} : vector<16x32xf32> to vector<2x32xf32>
    %c0_568 = arith.constant 0 : index
    %c0_569 = arith.constant 0 : index
    %c0_570 = arith.constant 0 : index
    %1060 = vector.load %arg9[%c0_568, %c0_569, %c0_570] : memref<4x32x32xf32, #tpu.memory_space<vmem>>, vector<1x32x32xf32>
    %1061 = vector.shape_cast %1060 : vector<1x32x32xf32> to vector<32x32xf32>
    %cst_571 = arith.constant dense<0.000000e+00> : vector<2x32xf32>
    %1062 = tpu.matmul %1057, %1061, %cst_571 {dimension_numbers = #tpu.dot_dimension_numbers<[1], [0], [0], [1], [0, 0, 1, 1], [], []>} : vector<2x32xf32>, vector<32x32xf32>, vector<2x32xf32> -> vector<2x32xf32>
    %1063 = arith.addf %1059, %1062 : vector<2x32xf32>
    %1064 = arith.negf %1063 : vector<2x32xf32>
    %1065 = math.exp %1064 : vector<2x32xf32>
    %cst_572 = arith.constant 1.000000e+00 : f32
    %1066 = vector.broadcast %cst_572 : f32 to vector<2x32xf32>
    %1067 = arith.addf %1066, %1065 : vector<2x32xf32>
    %1068 = arith.divf %1066, %1067 : vector<2x32xf32>
    %1069 = vector.extract_strided_slice %748 {offsets = [14, 0], sizes = [2, 32], strides = [1, 1]} : vector<16x32xf32> to vector<2x32xf32>
    %c1_573 = arith.constant 1 : index
    %c0_574 = arith.constant 0 : index
    %c0_575 = arith.constant 0 : index
    %1070 = vector.load %arg9[%c1_573, %c0_574, %c0_575] : memref<4x32x32xf32, #tpu.memory_space<vmem>>, vector<1x32x32xf32>
    %1071 = vector.shape_cast %1070 : vector<1x32x32xf32> to vector<32x32xf32>
    %cst_576 = arith.constant dense<0.000000e+00> : vector<2x32xf32>
    %1072 = tpu.matmul %1057, %1071, %cst_576 {dimension_numbers = #tpu.dot_dimension_numbers<[1], [0], [0], [1], [0, 0, 1, 1], [], []>} : vector<2x32xf32>, vector<32x32xf32>, vector<2x32xf32> -> vector<2x32xf32>
    %1073 = arith.addf %1069, %1072 : vector<2x32xf32>
    %1074 = arith.negf %1073 : vector<2x32xf32>
    %1075 = math.exp %1074 : vector<2x32xf32>
    %cst_577 = arith.constant 1.000000e+00 : f32
    %1076 = vector.broadcast %cst_577 : f32 to vector<2x32xf32>
    %1077 = arith.addf %1076, %1075 : vector<2x32xf32>
    %1078 = arith.divf %1076, %1077 : vector<2x32xf32>
    %1079 = vector.extract_strided_slice %755 {offsets = [14, 0], sizes = [2, 32], strides = [1, 1]} : vector<16x32xf32> to vector<2x32xf32>
    %c2_578 = arith.constant 2 : index
    %c0_579 = arith.constant 0 : index
    %c0_580 = arith.constant 0 : index
    %1080 = vector.load %arg9[%c2_578, %c0_579, %c0_580] : memref<4x32x32xf32, #tpu.memory_space<vmem>>, vector<1x32x32xf32>
    %1081 = vector.shape_cast %1080 : vector<1x32x32xf32> to vector<32x32xf32>
    %cst_581 = arith.constant dense<0.000000e+00> : vector<2x32xf32>
    %1082 = tpu.matmul %1057, %1081, %cst_581 {dimension_numbers = #tpu.dot_dimension_numbers<[1], [0], [0], [1], [0, 0, 1, 1], [], []>} : vector<2x32xf32>, vector<32x32xf32>, vector<2x32xf32> -> vector<2x32xf32>
    %1083 = arith.addf %1079, %1082 : vector<2x32xf32>
    %1084 = math.tanh %1083 : vector<2x32xf32>
    %1085 = vector.extract_strided_slice %762 {offsets = [14, 0], sizes = [2, 32], strides = [1, 1]} : vector<16x32xf32> to vector<2x32xf32>
    %c3_582 = arith.constant 3 : index
    %c0_583 = arith.constant 0 : index
    %c0_584 = arith.constant 0 : index
    %1086 = vector.load %arg9[%c3_582, %c0_583, %c0_584] : memref<4x32x32xf32, #tpu.memory_space<vmem>>, vector<1x32x32xf32>
    %1087 = vector.shape_cast %1086 : vector<1x32x32xf32> to vector<32x32xf32>
    %cst_585 = arith.constant dense<0.000000e+00> : vector<2x32xf32>
    %1088 = tpu.matmul %1057, %1087, %cst_585 {dimension_numbers = #tpu.dot_dimension_numbers<[1], [0], [0], [1], [0, 0, 1, 1], [], []>} : vector<2x32xf32>, vector<32x32xf32>, vector<2x32xf32> -> vector<2x32xf32>
    %1089 = arith.addf %1085, %1088 : vector<2x32xf32>
    %1090 = arith.negf %1089 : vector<2x32xf32>
    %1091 = math.exp %1090 : vector<2x32xf32>
    %cst_586 = arith.constant 1.000000e+00 : f32
    %1092 = vector.broadcast %cst_586 : f32 to vector<2x32xf32>
    %1093 = arith.addf %1092, %1091 : vector<2x32xf32>
    %1094 = arith.divf %1092, %1093 : vector<2x32xf32>
    %1095 = arith.mulf %1078, %1055 : vector<2x32xf32>
    %1096 = arith.mulf %1068, %1084 : vector<2x32xf32>
    %1097 = arith.addf %1095, %1096 : vector<2x32xf32>
    %1098 = math.tanh %1097 : vector<2x32xf32>
    %1099 = arith.mulf %1094, %1098 : vector<2x32xf32>
    %c14_587 = arith.constant 14 : index
    %c0_588 = arith.constant 0 : index
    %1100 = vector.load %arg17[%c14_587, %c0_588] : memref<16x32xf32, #tpu.memory_space<vmem>>, vector<2x32xf32>
    tpu.vector_store %arg17[%c14_587, %c0_588], %1099 {strides = array<i32>} : memref<16x32xf32, #tpu.memory_space<vmem>>, vector<2x32xf32>,
    %c0_589 = arith.constant 0 : index
    %c0_590 = arith.constant 0 : index
    %1101 = vector.load %arg17[%c0_589, %c0_590] : memref<16x32xf32, #tpu.memory_space<vmem>>, vector<16x32xf32>
    %c0_591 = arith.constant 0 : index
    %c0_592 = arith.constant 0 : index
    %c0_593 = arith.constant 0 : index
    %1102 = vector.load %arg11[%c0_591, %c0_592, %c0_593] : memref<4x32x32xf32, #tpu.memory_space<vmem>>, vector<1x32x32xf32>
    %1103 = vector.shape_cast %1102 : vector<1x32x32xf32> to vector<32x32xf32>
    %cst_594 = arith.constant dense<0.000000e+00> : vector<16x32xf32>
    %1104 = tpu.matmul %1101, %1103, %cst_594 {dimension_numbers = #tpu.dot_dimension_numbers<[1], [0], [0], [1], [0, 0, 1, 1], [], []>} : vector<16x32xf32>, vector<32x32xf32>, vector<16x32xf32> -> vector<16x32xf32>
    %c0_595 = arith.constant 0 : index
    %c0_596 = arith.constant 0 : index
    %c0_597 = arith.constant 0 : index
    %1105 = vector.load %arg13[%c0_595, %c0_596, %c0_597] : memref<4x1x32xf32, #tpu.memory_space<vmem>>, vector<1x1x32xf32>
    %1106 = vector.shape_cast %1105 : vector<1x1x32xf32> to vector<1x32xf32>
    %1107 = vector.broadcast %1106 : vector<1x32xf32> to vector<16x32xf32>
    %1108 = arith.addf %1104, %1107 : vector<16x32xf32>
    %c1_598 = arith.constant 1 : index
    %c0_599 = arith.constant 0 : index
    %c0_600 = arith.constant 0 : index
    %1109 = vector.load %arg11[%c1_598, %c0_599, %c0_600] : memref<4x32x32xf32, #tpu.memory_space<vmem>>, vector<1x32x32xf32>
    %1110 = vector.shape_cast %1109 : vector<1x32x32xf32> to vector<32x32xf32>
    %cst_601 = arith.constant dense<0.000000e+00> : vector<16x32xf32>
    %1111 = tpu.matmul %1101, %1110, %cst_601 {dimension_numbers = #tpu.dot_dimension_numbers<[1], [0], [0], [1], [0, 0, 1, 1], [], []>} : vector<16x32xf32>, vector<32x32xf32>, vector<16x32xf32> -> vector<16x32xf32>
    %c1_602 = arith.constant 1 : index
    %c0_603 = arith.constant 0 : index
    %c0_604 = arith.constant 0 : index
    %1112 = vector.load %arg13[%c1_602, %c0_603, %c0_604] : memref<4x1x32xf32, #tpu.memory_space<vmem>>, vector<1x1x32xf32>
    %1113 = vector.shape_cast %1112 : vector<1x1x32xf32> to vector<1x32xf32>
    %1114 = vector.broadcast %1113 : vector<1x32xf32> to vector<16x32xf32>
    %1115 = arith.addf %1111, %1114 : vector<16x32xf32>
    %c2_605 = arith.constant 2 : index
    %c0_606 = arith.constant 0 : index
    %c0_607 = arith.constant 0 : index
    %1116 = vector.load %arg11[%c2_605, %c0_606, %c0_607] : memref<4x32x32xf32, #tpu.memory_space<vmem>>, vector<1x32x32xf32>
    %1117 = vector.shape_cast %1116 : vector<1x32x32xf32> to vector<32x32xf32>
    %cst_608 = arith.constant dense<0.000000e+00> : vector<16x32xf32>
    %1118 = tpu.matmul %1101, %1117, %cst_608 {dimension_numbers = #tpu.dot_dimension_numbers<[1], [0], [0], [1], [0, 0, 1, 1], [], []>} : vector<16x32xf32>, vector<32x32xf32>, vector<16x32xf32> -> vector<16x32xf32>
    %c2_609 = arith.constant 2 : index
    %c0_610 = arith.constant 0 : index
    %c0_611 = arith.constant 0 : index
    %1119 = vector.load %arg13[%c2_609, %c0_610, %c0_611] : memref<4x1x32xf32, #tpu.memory_space<vmem>>, vector<1x1x32xf32>
    %1120 = vector.shape_cast %1119 : vector<1x1x32xf32> to vector<1x32xf32>
    %1121 = vector.broadcast %1120 : vector<1x32xf32> to vector<16x32xf32>
    %1122 = arith.addf %1118, %1121 : vector<16x32xf32>
    %c3_612 = arith.constant 3 : index
    %c0_613 = arith.constant 0 : index
    %c0_614 = arith.constant 0 : index
    %1123 = vector.load %arg11[%c3_612, %c0_613, %c0_614] : memref<4x32x32xf32, #tpu.memory_space<vmem>>, vector<1x32x32xf32>
    %1124 = vector.shape_cast %1123 : vector<1x32x32xf32> to vector<32x32xf32>
    %cst_615 = arith.constant dense<0.000000e+00> : vector<16x32xf32>
    %1125 = tpu.matmul %1101, %1124, %cst_615 {dimension_numbers = #tpu.dot_dimension_numbers<[1], [0], [0], [1], [0, 0, 1, 1], [], []>} : vector<16x32xf32>, vector<32x32xf32>, vector<16x32xf32> -> vector<16x32xf32>
    %c3_616 = arith.constant 3 : index
    %c0_617 = arith.constant 0 : index
    %c0_618 = arith.constant 0 : index
    %1126 = vector.load %arg13[%c3_616, %c0_617, %c0_618] : memref<4x1x32xf32, #tpu.memory_space<vmem>>, vector<1x1x32xf32>
    %1127 = vector.shape_cast %1126 : vector<1x1x32xf32> to vector<1x32xf32>
    %1128 = vector.broadcast %1127 : vector<1x32xf32> to vector<16x32xf32>
    %1129 = arith.addf %1125, %1128 : vector<16x32xf32>
    %cst_619 = arith.constant 0.000000e+00 : f32
    %1130 = vector.broadcast %cst_619 : f32 to vector<2x32xf32>
    %cst_620 = arith.constant 0.000000e+00 : f32
    %1131 = vector.broadcast %cst_620 : f32 to vector<2x32xf32>
    %1132 = vector.extract_strided_slice %1108 {offsets = [0, 0], sizes = [2, 32], strides = [1, 1]} : vector<16x32xf32> to vector<2x32xf32>
    %c0_621 = arith.constant 0 : index
    %c0_622 = arith.constant 0 : index
    %c0_623 = arith.constant 0 : index
    %1133 = vector.load %arg12[%c0_621, %c0_622, %c0_623] : memref<4x32x32xf32, #tpu.memory_space<vmem>>, vector<1x32x32xf32>
    %1134 = vector.shape_cast %1133 : vector<1x32x32xf32> to vector<32x32xf32>
    %cst_624 = arith.constant dense<0.000000e+00> : vector<2x32xf32>
    %1135 = tpu.matmul %1130, %1134, %cst_624 {dimension_numbers = #tpu.dot_dimension_numbers<[1], [0], [0], [1], [0, 0, 1, 1], [], []>} : vector<2x32xf32>, vector<32x32xf32>, vector<2x32xf32> -> vector<2x32xf32>
    %1136 = arith.addf %1132, %1135 : vector<2x32xf32>
    %1137 = arith.negf %1136 : vector<2x32xf32>
    %1138 = math.exp %1137 : vector<2x32xf32>
    %cst_625 = arith.constant 1.000000e+00 : f32
    %1139 = vector.broadcast %cst_625 : f32 to vector<2x32xf32>
    %1140 = arith.addf %1139, %1138 : vector<2x32xf32>
    %1141 = arith.divf %1139, %1140 : vector<2x32xf32>
    %1142 = vector.extract_strided_slice %1115 {offsets = [0, 0], sizes = [2, 32], strides = [1, 1]} : vector<16x32xf32> to vector<2x32xf32>
    %c1_626 = arith.constant 1 : index
    %c0_627 = arith.constant 0 : index
    %c0_628 = arith.constant 0 : index
    %1143 = vector.load %arg12[%c1_626, %c0_627, %c0_628] : memref<4x32x32xf32, #tpu.memory_space<vmem>>, vector<1x32x32xf32>
    %1144 = vector.shape_cast %1143 : vector<1x32x32xf32> to vector<32x32xf32>
    %cst_629 = arith.constant dense<0.000000e+00> : vector<2x32xf32>
    %1145 = tpu.matmul %1130, %1144, %cst_629 {dimension_numbers = #tpu.dot_dimension_numbers<[1], [0], [0], [1], [0, 0, 1, 1], [], []>} : vector<2x32xf32>, vector<32x32xf32>, vector<2x32xf32> -> vector<2x32xf32>
    %1146 = arith.addf %1142, %1145 : vector<2x32xf32>
    %1147 = arith.negf %1146 : vector<2x32xf32>
    %1148 = math.exp %1147 : vector<2x32xf32>
    %cst_630 = arith.constant 1.000000e+00 : f32
    %1149 = vector.broadcast %cst_630 : f32 to vector<2x32xf32>
    %1150 = arith.addf %1149, %1148 : vector<2x32xf32>
    %1151 = arith.divf %1149, %1150 : vector<2x32xf32>
    %1152 = vector.extract_strided_slice %1122 {offsets = [0, 0], sizes = [2, 32], strides = [1, 1]} : vector<16x32xf32> to vector<2x32xf32>
    %c2_631 = arith.constant 2 : index
    %c0_632 = arith.constant 0 : index
    %c0_633 = arith.constant 0 : index
    %1153 = vector.load %arg12[%c2_631, %c0_632, %c0_633] : memref<4x32x32xf32, #tpu.memory_space<vmem>>, vector<1x32x32xf32>
    %1154 = vector.shape_cast %1153 : vector<1x32x32xf32> to vector<32x32xf32>
    %cst_634 = arith.constant dense<0.000000e+00> : vector<2x32xf32>
    %1155 = tpu.matmul %1130, %1154, %cst_634 {dimension_numbers = #tpu.dot_dimension_numbers<[1], [0], [0], [1], [0, 0, 1, 1], [], []>} : vector<2x32xf32>, vector<32x32xf32>, vector<2x32xf32> -> vector<2x32xf32>
    %1156 = arith.addf %1152, %1155 : vector<2x32xf32>
    %1157 = math.tanh %1156 : vector<2x32xf32>
    %1158 = vector.extract_strided_slice %1129 {offsets = [0, 0], sizes = [2, 32], strides = [1, 1]} : vector<16x32xf32> to vector<2x32xf32>
    %c3_635 = arith.constant 3 : index
    %c0_636 = arith.constant 0 : index
    %c0_637 = arith.constant 0 : index
    %1159 = vector.load %arg12[%c3_635, %c0_636, %c0_637] : memref<4x32x32xf32, #tpu.memory_space<vmem>>, vector<1x32x32xf32>
    %1160 = vector.shape_cast %1159 : vector<1x32x32xf32> to vector<32x32xf32>
    %cst_638 = arith.constant dense<0.000000e+00> : vector<2x32xf32>
    %1161 = tpu.matmul %1130, %1160, %cst_638 {dimension_numbers = #tpu.dot_dimension_numbers<[1], [0], [0], [1], [0, 0, 1, 1], [], []>} : vector<2x32xf32>, vector<32x32xf32>, vector<2x32xf32> -> vector<2x32xf32>
    %1162 = arith.addf %1158, %1161 : vector<2x32xf32>
    %1163 = arith.negf %1162 : vector<2x32xf32>
    %1164 = math.exp %1163 : vector<2x32xf32>
    %cst_639 = arith.constant 1.000000e+00 : f32
    %1165 = vector.broadcast %cst_639 : f32 to vector<2x32xf32>
    %1166 = arith.addf %1165, %1164 : vector<2x32xf32>
    %1167 = arith.divf %1165, %1166 : vector<2x32xf32>
    %1168 = arith.mulf %1151, %1131 : vector<2x32xf32>
    %1169 = arith.mulf %1141, %1157 : vector<2x32xf32>
    %1170 = arith.addf %1168, %1169 : vector<2x32xf32>
    %1171 = math.tanh %1170 : vector<2x32xf32>
    %1172 = arith.mulf %1167, %1171 : vector<2x32xf32>
    %c0_640 = arith.constant 0 : index
    %c0_641 = arith.constant 0 : index
    %1173 = vector.load %arg17[%c0_640, %c0_641] : memref<16x32xf32, #tpu.memory_space<vmem>>, vector<2x32xf32>
    tpu.vector_store %arg17[%c0_640, %c0_641], %1172 {strides = array<i32>} : memref<16x32xf32, #tpu.memory_space<vmem>>, vector<2x32xf32>,
    %1174 = vector.extract_strided_slice %1108 {offsets = [2, 0], sizes = [2, 32], strides = [1, 1]} : vector<16x32xf32> to vector<2x32xf32>
    %c0_642 = arith.constant 0 : index
    %c0_643 = arith.constant 0 : index
    %c0_644 = arith.constant 0 : index
    %1175 = vector.load %arg12[%c0_642, %c0_643, %c0_644] : memref<4x32x32xf32, #tpu.memory_space<vmem>>, vector<1x32x32xf32>
    %1176 = vector.shape_cast %1175 : vector<1x32x32xf32> to vector<32x32xf32>
    %cst_645 = arith.constant dense<0.000000e+00> : vector<2x32xf32>
    %1177 = tpu.matmul %1172, %1176, %cst_645 {dimension_numbers = #tpu.dot_dimension_numbers<[1], [0], [0], [1], [0, 0, 1, 1], [], []>} : vector<2x32xf32>, vector<32x32xf32>, vector<2x32xf32> -> vector<2x32xf32>
    %1178 = arith.addf %1174, %1177 : vector<2x32xf32>
    %1179 = arith.negf %1178 : vector<2x32xf32>
    %1180 = math.exp %1179 : vector<2x32xf32>
    %cst_646 = arith.constant 1.000000e+00 : f32
    %1181 = vector.broadcast %cst_646 : f32 to vector<2x32xf32>
    %1182 = arith.addf %1181, %1180 : vector<2x32xf32>
    %1183 = arith.divf %1181, %1182 : vector<2x32xf32>
    %1184 = vector.extract_strided_slice %1115 {offsets = [2, 0], sizes = [2, 32], strides = [1, 1]} : vector<16x32xf32> to vector<2x32xf32>
    %c1_647 = arith.constant 1 : index
    %c0_648 = arith.constant 0 : index
    %c0_649 = arith.constant 0 : index
    %1185 = vector.load %arg12[%c1_647, %c0_648, %c0_649] : memref<4x32x32xf32, #tpu.memory_space<vmem>>, vector<1x32x32xf32>
    %1186 = vector.shape_cast %1185 : vector<1x32x32xf32> to vector<32x32xf32>
    %cst_650 = arith.constant dense<0.000000e+00> : vector<2x32xf32>
    %1187 = tpu.matmul %1172, %1186, %cst_650 {dimension_numbers = #tpu.dot_dimension_numbers<[1], [0], [0], [1], [0, 0, 1, 1], [], []>} : vector<2x32xf32>, vector<32x32xf32>, vector<2x32xf32> -> vector<2x32xf32>
    %1188 = arith.addf %1184, %1187 : vector<2x32xf32>
    %1189 = arith.negf %1188 : vector<2x32xf32>
    %1190 = math.exp %1189 : vector<2x32xf32>
    %cst_651 = arith.constant 1.000000e+00 : f32
    %1191 = vector.broadcast %cst_651 : f32 to vector<2x32xf32>
    %1192 = arith.addf %1191, %1190 : vector<2x32xf32>
    %1193 = arith.divf %1191, %1192 : vector<2x32xf32>
    %1194 = vector.extract_strided_slice %1122 {offsets = [2, 0], sizes = [2, 32], strides = [1, 1]} : vector<16x32xf32> to vector<2x32xf32>
    %c2_652 = arith.constant 2 : index
    %c0_653 = arith.constant 0 : index
    %c0_654 = arith.constant 0 : index
    %1195 = vector.load %arg12[%c2_652, %c0_653, %c0_654] : memref<4x32x32xf32, #tpu.memory_space<vmem>>, vector<1x32x32xf32>
    %1196 = vector.shape_cast %1195 : vector<1x32x32xf32> to vector<32x32xf32>
    %cst_655 = arith.constant dense<0.000000e+00> : vector<2x32xf32>
    %1197 = tpu.matmul %1172, %1196, %cst_655 {dimension_numbers = #tpu.dot_dimension_numbers<[1], [0], [0], [1], [0, 0, 1, 1], [], []>} : vector<2x32xf32>, vector<32x32xf32>, vector<2x32xf32> -> vector<2x32xf32>
    %1198 = arith.addf %1194, %1197 : vector<2x32xf32>
    %1199 = math.tanh %1198 : vector<2x32xf32>
    %1200 = vector.extract_strided_slice %1129 {offsets = [2, 0], sizes = [2, 32], strides = [1, 1]} : vector<16x32xf32> to vector<2x32xf32>
    %c3_656 = arith.constant 3 : index
    %c0_657 = arith.constant 0 : index
    %c0_658 = arith.constant 0 : index
    %1201 = vector.load %arg12[%c3_656, %c0_657, %c0_658] : memref<4x32x32xf32, #tpu.memory_space<vmem>>, vector<1x32x32xf32>
    %1202 = vector.shape_cast %1201 : vector<1x32x32xf32> to vector<32x32xf32>
    %cst_659 = arith.constant dense<0.000000e+00> : vector<2x32xf32>
    %1203 = tpu.matmul %1172, %1202, %cst_659 {dimension_numbers = #tpu.dot_dimension_numbers<[1], [0], [0], [1], [0, 0, 1, 1], [], []>} : vector<2x32xf32>, vector<32x32xf32>, vector<2x32xf32> -> vector<2x32xf32>
    %1204 = arith.addf %1200, %1203 : vector<2x32xf32>
    %1205 = arith.negf %1204 : vector<2x32xf32>
    %1206 = math.exp %1205 : vector<2x32xf32>
    %cst_660 = arith.constant 1.000000e+00 : f32
    %1207 = vector.broadcast %cst_660 : f32 to vector<2x32xf32>
    %1208 = arith.addf %1207, %1206 : vector<2x32xf32>
    %1209 = arith.divf %1207, %1208 : vector<2x32xf32>
    %1210 = arith.mulf %1193, %1170 : vector<2x32xf32>
    %1211 = arith.mulf %1183, %1199 : vector<2x32xf32>
    %1212 = arith.addf %1210, %1211 : vector<2x32xf32>
    %1213 = math.tanh %1212 : vector<2x32xf32>
    %1214 = arith.mulf %1209, %1213 : vector<2x32xf32>
    %c2_661 = arith.constant 2 : index
    %c0_662 = arith.constant 0 : index
    %1215 = vector.load %arg17[%c2_661, %c0_662] : memref<16x32xf32, #tpu.memory_space<vmem>>, vector<2x32xf32>
    tpu.vector_store %arg17[%c2_661, %c0_662], %1214 {strides = array<i32>} : memref<16x32xf32, #tpu.memory_space<vmem>>, vector<2x32xf32>,
    %1216 = vector.extract_strided_slice %1108 {offsets = [4, 0], sizes = [2, 32], strides = [1, 1]} : vector<16x32xf32> to vector<2x32xf32>
    %c0_663 = arith.constant 0 : index
    %c0_664 = arith.constant 0 : index
    %c0_665 = arith.constant 0 : index
    %1217 = vector.load %arg12[%c0_663, %c0_664, %c0_665] : memref<4x32x32xf32, #tpu.memory_space<vmem>>, vector<1x32x32xf32>
    %1218 = vector.shape_cast %1217 : vector<1x32x32xf32> to vector<32x32xf32>
    %cst_666 = arith.constant dense<0.000000e+00> : vector<2x32xf32>
    %1219 = tpu.matmul %1214, %1218, %cst_666 {dimension_numbers = #tpu.dot_dimension_numbers<[1], [0], [0], [1], [0, 0, 1, 1], [], []>} : vector<2x32xf32>, vector<32x32xf32>, vector<2x32xf32> -> vector<2x32xf32>
    %1220 = arith.addf %1216, %1219 : vector<2x32xf32>
    %1221 = arith.negf %1220 : vector<2x32xf32>
    %1222 = math.exp %1221 : vector<2x32xf32>
    %cst_667 = arith.constant 1.000000e+00 : f32
    %1223 = vector.broadcast %cst_667 : f32 to vector<2x32xf32>
    %1224 = arith.addf %1223, %1222 : vector<2x32xf32>
    %1225 = arith.divf %1223, %1224 : vector<2x32xf32>
    %1226 = vector.extract_strided_slice %1115 {offsets = [4, 0], sizes = [2, 32], strides = [1, 1]} : vector<16x32xf32> to vector<2x32xf32>
    %c1_668 = arith.constant 1 : index
    %c0_669 = arith.constant 0 : index
    %c0_670 = arith.constant 0 : index
    %1227 = vector.load %arg12[%c1_668, %c0_669, %c0_670] : memref<4x32x32xf32, #tpu.memory_space<vmem>>, vector<1x32x32xf32>
    %1228 = vector.shape_cast %1227 : vector<1x32x32xf32> to vector<32x32xf32>
    %cst_671 = arith.constant dense<0.000000e+00> : vector<2x32xf32>
    %1229 = tpu.matmul %1214, %1228, %cst_671 {dimension_numbers = #tpu.dot_dimension_numbers<[1], [0], [0], [1], [0, 0, 1, 1], [], []>} : vector<2x32xf32>, vector<32x32xf32>, vector<2x32xf32> -> vector<2x32xf32>
    %1230 = arith.addf %1226, %1229 : vector<2x32xf32>
    %1231 = arith.negf %1230 : vector<2x32xf32>
    %1232 = math.exp %1231 : vector<2x32xf32>
    %cst_672 = arith.constant 1.000000e+00 : f32
    %1233 = vector.broadcast %cst_672 : f32 to vector<2x32xf32>
    %1234 = arith.addf %1233, %1232 : vector<2x32xf32>
    %1235 = arith.divf %1233, %1234 : vector<2x32xf32>
    %1236 = vector.extract_strided_slice %1122 {offsets = [4, 0], sizes = [2, 32], strides = [1, 1]} : vector<16x32xf32> to vector<2x32xf32>
    %c2_673 = arith.constant 2 : index
    %c0_674 = arith.constant 0 : index
    %c0_675 = arith.constant 0 : index
    %1237 = vector.load %arg12[%c2_673, %c0_674, %c0_675] : memref<4x32x32xf32, #tpu.memory_space<vmem>>, vector<1x32x32xf32>
    %1238 = vector.shape_cast %1237 : vector<1x32x32xf32> to vector<32x32xf32>
    %cst_676 = arith.constant dense<0.000000e+00> : vector<2x32xf32>
    %1239 = tpu.matmul %1214, %1238, %cst_676 {dimension_numbers = #tpu.dot_dimension_numbers<[1], [0], [0], [1], [0, 0, 1, 1], [], []>} : vector<2x32xf32>, vector<32x32xf32>, vector<2x32xf32> -> vector<2x32xf32>
    %1240 = arith.addf %1236, %1239 : vector<2x32xf32>
    %1241 = math.tanh %1240 : vector<2x32xf32>
    %1242 = vector.extract_strided_slice %1129 {offsets = [4, 0], sizes = [2, 32], strides = [1, 1]} : vector<16x32xf32> to vector<2x32xf32>
    %c3_677 = arith.constant 3 : index
    %c0_678 = arith.constant 0 : index
    %c0_679 = arith.constant 0 : index
    %1243 = vector.load %arg12[%c3_677, %c0_678, %c0_679] : memref<4x32x32xf32, #tpu.memory_space<vmem>>, vector<1x32x32xf32>
    %1244 = vector.shape_cast %1243 : vector<1x32x32xf32> to vector<32x32xf32>
    %cst_680 = arith.constant dense<0.000000e+00> : vector<2x32xf32>
    %1245 = tpu.matmul %1214, %1244, %cst_680 {dimension_numbers = #tpu.dot_dimension_numbers<[1], [0], [0], [1], [0, 0, 1, 1], [], []>} : vector<2x32xf32>, vector<32x32xf32>, vector<2x32xf32> -> vector<2x32xf32>
    %1246 = arith.addf %1242, %1245 : vector<2x32xf32>
    %1247 = arith.negf %1246 : vector<2x32xf32>
    %1248 = math.exp %1247 : vector<2x32xf32>
    %cst_681 = arith.constant 1.000000e+00 : f32
    %1249 = vector.broadcast %cst_681 : f32 to vector<2x32xf32>
    %1250 = arith.addf %1249, %1248 : vector<2x32xf32>
    %1251 = arith.divf %1249, %1250 : vector<2x32xf32>
    %1252 = arith.mulf %1235, %1212 : vector<2x32xf32>
    %1253 = arith.mulf %1225, %1241 : vector<2x32xf32>
    %1254 = arith.addf %1252, %1253 : vector<2x32xf32>
    %1255 = math.tanh %1254 : vector<2x32xf32>
    %1256 = arith.mulf %1251, %1255 : vector<2x32xf32>
    %c4_682 = arith.constant 4 : index
    %c0_683 = arith.constant 0 : index
    %1257 = vector.load %arg17[%c4_682, %c0_683] : memref<16x32xf32, #tpu.memory_space<vmem>>, vector<2x32xf32>
    tpu.vector_store %arg17[%c4_682, %c0_683], %1256 {strides = array<i32>} : memref<16x32xf32, #tpu.memory_space<vmem>>, vector<2x32xf32>,
    %1258 = vector.extract_strided_slice %1108 {offsets = [6, 0], sizes = [2, 32], strides = [1, 1]} : vector<16x32xf32> to vector<2x32xf32>
    %c0_684 = arith.constant 0 : index
    %c0_685 = arith.constant 0 : index
    %c0_686 = arith.constant 0 : index
    %1259 = vector.load %arg12[%c0_684, %c0_685, %c0_686] : memref<4x32x32xf32, #tpu.memory_space<vmem>>, vector<1x32x32xf32>
    %1260 = vector.shape_cast %1259 : vector<1x32x32xf32> to vector<32x32xf32>
    %cst_687 = arith.constant dense<0.000000e+00> : vector<2x32xf32>
    %1261 = tpu.matmul %1256, %1260, %cst_687 {dimension_numbers = #tpu.dot_dimension_numbers<[1], [0], [0], [1], [0, 0, 1, 1], [], []>} : vector<2x32xf32>, vector<32x32xf32>, vector<2x32xf32> -> vector<2x32xf32>
    %1262 = arith.addf %1258, %1261 : vector<2x32xf32>
    %1263 = arith.negf %1262 : vector<2x32xf32>
    %1264 = math.exp %1263 : vector<2x32xf32>
    %cst_688 = arith.constant 1.000000e+00 : f32
    %1265 = vector.broadcast %cst_688 : f32 to vector<2x32xf32>
    %1266 = arith.addf %1265, %1264 : vector<2x32xf32>
    %1267 = arith.divf %1265, %1266 : vector<2x32xf32>
    %1268 = vector.extract_strided_slice %1115 {offsets = [6, 0], sizes = [2, 32], strides = [1, 1]} : vector<16x32xf32> to vector<2x32xf32>
    %c1_689 = arith.constant 1 : index
    %c0_690 = arith.constant 0 : index
    %c0_691 = arith.constant 0 : index
    %1269 = vector.load %arg12[%c1_689, %c0_690, %c0_691] : memref<4x32x32xf32, #tpu.memory_space<vmem>>, vector<1x32x32xf32>
    %1270 = vector.shape_cast %1269 : vector<1x32x32xf32> to vector<32x32xf32>
    %cst_692 = arith.constant dense<0.000000e+00> : vector<2x32xf32>
    %1271 = tpu.matmul %1256, %1270, %cst_692 {dimension_numbers = #tpu.dot_dimension_numbers<[1], [0], [0], [1], [0, 0, 1, 1], [], []>} : vector<2x32xf32>, vector<32x32xf32>, vector<2x32xf32> -> vector<2x32xf32>
    %1272 = arith.addf %1268, %1271 : vector<2x32xf32>
    %1273 = arith.negf %1272 : vector<2x32xf32>
    %1274 = math.exp %1273 : vector<2x32xf32>
    %cst_693 = arith.constant 1.000000e+00 : f32
    %1275 = vector.broadcast %cst_693 : f32 to vector<2x32xf32>
    %1276 = arith.addf %1275, %1274 : vector<2x32xf32>
    %1277 = arith.divf %1275, %1276 : vector<2x32xf32>
    %1278 = vector.extract_strided_slice %1122 {offsets = [6, 0], sizes = [2, 32], strides = [1, 1]} : vector<16x32xf32> to vector<2x32xf32>
    %c2_694 = arith.constant 2 : index
    %c0_695 = arith.constant 0 : index
    %c0_696 = arith.constant 0 : index
    %1279 = vector.load %arg12[%c2_694, %c0_695, %c0_696] : memref<4x32x32xf32, #tpu.memory_space<vmem>>, vector<1x32x32xf32>
    %1280 = vector.shape_cast %1279 : vector<1x32x32xf32> to vector<32x32xf32>
    %cst_697 = arith.constant dense<0.000000e+00> : vector<2x32xf32>
    %1281 = tpu.matmul %1256, %1280, %cst_697 {dimension_numbers = #tpu.dot_dimension_numbers<[1], [0], [0], [1], [0, 0, 1, 1], [], []>} : vector<2x32xf32>, vector<32x32xf32>, vector<2x32xf32> -> vector<2x32xf32>
    %1282 = arith.addf %1278, %1281 : vector<2x32xf32>
    %1283 = math.tanh %1282 : vector<2x32xf32>
    %1284 = vector.extract_strided_slice %1129 {offsets = [6, 0], sizes = [2, 32], strides = [1, 1]} : vector<16x32xf32> to vector<2x32xf32>
    %c3_698 = arith.constant 3 : index
    %c0_699 = arith.constant 0 : index
    %c0_700 = arith.constant 0 : index
    %1285 = vector.load %arg12[%c3_698, %c0_699, %c0_700] : memref<4x32x32xf32, #tpu.memory_space<vmem>>, vector<1x32x32xf32>
    %1286 = vector.shape_cast %1285 : vector<1x32x32xf32> to vector<32x32xf32>
    %cst_701 = arith.constant dense<0.000000e+00> : vector<2x32xf32>
    %1287 = tpu.matmul %1256, %1286, %cst_701 {dimension_numbers = #tpu.dot_dimension_numbers<[1], [0], [0], [1], [0, 0, 1, 1], [], []>} : vector<2x32xf32>, vector<32x32xf32>, vector<2x32xf32> -> vector<2x32xf32>
    %1288 = arith.addf %1284, %1287 : vector<2x32xf32>
    %1289 = arith.negf %1288 : vector<2x32xf32>
    %1290 = math.exp %1289 : vector<2x32xf32>
    %cst_702 = arith.constant 1.000000e+00 : f32
    %1291 = vector.broadcast %cst_702 : f32 to vector<2x32xf32>
    %1292 = arith.addf %1291, %1290 : vector<2x32xf32>
    %1293 = arith.divf %1291, %1292 : vector<2x32xf32>
    %1294 = arith.mulf %1277, %1254 : vector<2x32xf32>
    %1295 = arith.mulf %1267, %1283 : vector<2x32xf32>
    %1296 = arith.addf %1294, %1295 : vector<2x32xf32>
    %1297 = math.tanh %1296 : vector<2x32xf32>
    %1298 = arith.mulf %1293, %1297 : vector<2x32xf32>
    %c6_703 = arith.constant 6 : index
    %c0_704 = arith.constant 0 : index
    %1299 = vector.load %arg17[%c6_703, %c0_704] : memref<16x32xf32, #tpu.memory_space<vmem>>, vector<2x32xf32>
    tpu.vector_store %arg17[%c6_703, %c0_704], %1298 {strides = array<i32>} : memref<16x32xf32, #tpu.memory_space<vmem>>, vector<2x32xf32>,
    %1300 = vector.extract_strided_slice %1108 {offsets = [8, 0], sizes = [2, 32], strides = [1, 1]} : vector<16x32xf32> to vector<2x32xf32>
    %c0_705 = arith.constant 0 : index
    %c0_706 = arith.constant 0 : index
    %c0_707 = arith.constant 0 : index
    %1301 = vector.load %arg12[%c0_705, %c0_706, %c0_707] : memref<4x32x32xf32, #tpu.memory_space<vmem>>, vector<1x32x32xf32>
    %1302 = vector.shape_cast %1301 : vector<1x32x32xf32> to vector<32x32xf32>
    %cst_708 = arith.constant dense<0.000000e+00> : vector<2x32xf32>
    %1303 = tpu.matmul %1298, %1302, %cst_708 {dimension_numbers = #tpu.dot_dimension_numbers<[1], [0], [0], [1], [0, 0, 1, 1], [], []>} : vector<2x32xf32>, vector<32x32xf32>, vector<2x32xf32> -> vector<2x32xf32>
    %1304 = arith.addf %1300, %1303 : vector<2x32xf32>
    %1305 = arith.negf %1304 : vector<2x32xf32>
    %1306 = math.exp %1305 : vector<2x32xf32>
    %cst_709 = arith.constant 1.000000e+00 : f32
    %1307 = vector.broadcast %cst_709 : f32 to vector<2x32xf32>
    %1308 = arith.addf %1307, %1306 : vector<2x32xf32>
    %1309 = arith.divf %1307, %1308 : vector<2x32xf32>
    %1310 = vector.extract_strided_slice %1115 {offsets = [8, 0], sizes = [2, 32], strides = [1, 1]} : vector<16x32xf32> to vector<2x32xf32>
    %c1_710 = arith.constant 1 : index
    %c0_711 = arith.constant 0 : index
    %c0_712 = arith.constant 0 : index
    %1311 = vector.load %arg12[%c1_710, %c0_711, %c0_712] : memref<4x32x32xf32, #tpu.memory_space<vmem>>, vector<1x32x32xf32>
    %1312 = vector.shape_cast %1311 : vector<1x32x32xf32> to vector<32x32xf32>
    %cst_713 = arith.constant dense<0.000000e+00> : vector<2x32xf32>
    %1313 = tpu.matmul %1298, %1312, %cst_713 {dimension_numbers = #tpu.dot_dimension_numbers<[1], [0], [0], [1], [0, 0, 1, 1], [], []>} : vector<2x32xf32>, vector<32x32xf32>, vector<2x32xf32> -> vector<2x32xf32>
    %1314 = arith.addf %1310, %1313 : vector<2x32xf32>
    %1315 = arith.negf %1314 : vector<2x32xf32>
    %1316 = math.exp %1315 : vector<2x32xf32>
    %cst_714 = arith.constant 1.000000e+00 : f32
    %1317 = vector.broadcast %cst_714 : f32 to vector<2x32xf32>
    %1318 = arith.addf %1317, %1316 : vector<2x32xf32>
    %1319 = arith.divf %1317, %1318 : vector<2x32xf32>
    %1320 = vector.extract_strided_slice %1122 {offsets = [8, 0], sizes = [2, 32], strides = [1, 1]} : vector<16x32xf32> to vector<2x32xf32>
    %c2_715 = arith.constant 2 : index
    %c0_716 = arith.constant 0 : index
    %c0_717 = arith.constant 0 : index
    %1321 = vector.load %arg12[%c2_715, %c0_716, %c0_717] : memref<4x32x32xf32, #tpu.memory_space<vmem>>, vector<1x32x32xf32>
    %1322 = vector.shape_cast %1321 : vector<1x32x32xf32> to vector<32x32xf32>
    %cst_718 = arith.constant dense<0.000000e+00> : vector<2x32xf32>
    %1323 = tpu.matmul %1298, %1322, %cst_718 {dimension_numbers = #tpu.dot_dimension_numbers<[1], [0], [0], [1], [0, 0, 1, 1], [], []>} : vector<2x32xf32>, vector<32x32xf32>, vector<2x32xf32> -> vector<2x32xf32>
    %1324 = arith.addf %1320, %1323 : vector<2x32xf32>
    %1325 = math.tanh %1324 : vector<2x32xf32>
    %1326 = vector.extract_strided_slice %1129 {offsets = [8, 0], sizes = [2, 32], strides = [1, 1]} : vector<16x32xf32> to vector<2x32xf32>
    %c3_719 = arith.constant 3 : index
    %c0_720 = arith.constant 0 : index
    %c0_721 = arith.constant 0 : index
    %1327 = vector.load %arg12[%c3_719, %c0_720, %c0_721] : memref<4x32x32xf32, #tpu.memory_space<vmem>>, vector<1x32x32xf32>
    %1328 = vector.shape_cast %1327 : vector<1x32x32xf32> to vector<32x32xf32>
    %cst_722 = arith.constant dense<0.000000e+00> : vector<2x32xf32>
    %1329 = tpu.matmul %1298, %1328, %cst_722 {dimension_numbers = #tpu.dot_dimension_numbers<[1], [0], [0], [1], [0, 0, 1, 1], [], []>} : vector<2x32xf32>, vector<32x32xf32>, vector<2x32xf32> -> vector<2x32xf32>
    %1330 = arith.addf %1326, %1329 : vector<2x32xf32>
    %1331 = arith.negf %1330 : vector<2x32xf32>
    %1332 = math.exp %1331 : vector<2x32xf32>
    %cst_723 = arith.constant 1.000000e+00 : f32
    %1333 = vector.broadcast %cst_723 : f32 to vector<2x32xf32>
    %1334 = arith.addf %1333, %1332 : vector<2x32xf32>
    %1335 = arith.divf %1333, %1334 : vector<2x32xf32>
    %1336 = arith.mulf %1319, %1296 : vector<2x32xf32>
    %1337 = arith.mulf %1309, %1325 : vector<2x32xf32>
    %1338 = arith.addf %1336, %1337 : vector<2x32xf32>
    %1339 = math.tanh %1338 : vector<2x32xf32>
    %1340 = arith.mulf %1335, %1339 : vector<2x32xf32>
    %c8_724 = arith.constant 8 : index
    %c0_725 = arith.constant 0 : index
    %1341 = vector.load %arg17[%c8_724, %c0_725] : memref<16x32xf32, #tpu.memory_space<vmem>>, vector<2x32xf32>
    tpu.vector_store %arg17[%c8_724, %c0_725], %1340 {strides = array<i32>} : memref<16x32xf32, #tpu.memory_space<vmem>>, vector<2x32xf32>,
    %1342 = vector.extract_strided_slice %1108 {offsets = [10, 0], sizes = [2, 32], strides = [1, 1]} : vector<16x32xf32> to vector<2x32xf32>
    %c0_726 = arith.constant 0 : index
    %c0_727 = arith.constant 0 : index
    %c0_728 = arith.constant 0 : index
    %1343 = vector.load %arg12[%c0_726, %c0_727, %c0_728] : memref<4x32x32xf32, #tpu.memory_space<vmem>>, vector<1x32x32xf32>
    %1344 = vector.shape_cast %1343 : vector<1x32x32xf32> to vector<32x32xf32>
    %cst_729 = arith.constant dense<0.000000e+00> : vector<2x32xf32>
    %1345 = tpu.matmul %1340, %1344, %cst_729 {dimension_numbers = #tpu.dot_dimension_numbers<[1], [0], [0], [1], [0, 0, 1, 1], [], []>} : vector<2x32xf32>, vector<32x32xf32>, vector<2x32xf32> -> vector<2x32xf32>
    %1346 = arith.addf %1342, %1345 : vector<2x32xf32>
    %1347 = arith.negf %1346 : vector<2x32xf32>
    %1348 = math.exp %1347 : vector<2x32xf32>
    %cst_730 = arith.constant 1.000000e+00 : f32
    %1349 = vector.broadcast %cst_730 : f32 to vector<2x32xf32>
    %1350 = arith.addf %1349, %1348 : vector<2x32xf32>
    %1351 = arith.divf %1349, %1350 : vector<2x32xf32>
    %1352 = vector.extract_strided_slice %1115 {offsets = [10, 0], sizes = [2, 32], strides = [1, 1]} : vector<16x32xf32> to vector<2x32xf32>
    %c1_731 = arith.constant 1 : index
    %c0_732 = arith.constant 0 : index
    %c0_733 = arith.constant 0 : index
    %1353 = vector.load %arg12[%c1_731, %c0_732, %c0_733] : memref<4x32x32xf32, #tpu.memory_space<vmem>>, vector<1x32x32xf32>
    %1354 = vector.shape_cast %1353 : vector<1x32x32xf32> to vector<32x32xf32>
    %cst_734 = arith.constant dense<0.000000e+00> : vector<2x32xf32>
    %1355 = tpu.matmul %1340, %1354, %cst_734 {dimension_numbers = #tpu.dot_dimension_numbers<[1], [0], [0], [1], [0, 0, 1, 1], [], []>} : vector<2x32xf32>, vector<32x32xf32>, vector<2x32xf32> -> vector<2x32xf32>
    %1356 = arith.addf %1352, %1355 : vector<2x32xf32>
    %1357 = arith.negf %1356 : vector<2x32xf32>
    %1358 = math.exp %1357 : vector<2x32xf32>
    %cst_735 = arith.constant 1.000000e+00 : f32
    %1359 = vector.broadcast %cst_735 : f32 to vector<2x32xf32>
    %1360 = arith.addf %1359, %1358 : vector<2x32xf32>
    %1361 = arith.divf %1359, %1360 : vector<2x32xf32>
    %1362 = vector.extract_strided_slice %1122 {offsets = [10, 0], sizes = [2, 32], strides = [1, 1]} : vector<16x32xf32> to vector<2x32xf32>
    %c2_736 = arith.constant 2 : index
    %c0_737 = arith.constant 0 : index
    %c0_738 = arith.constant 0 : index
    %1363 = vector.load %arg12[%c2_736, %c0_737, %c0_738] : memref<4x32x32xf32, #tpu.memory_space<vmem>>, vector<1x32x32xf32>
    %1364 = vector.shape_cast %1363 : vector<1x32x32xf32> to vector<32x32xf32>
    %cst_739 = arith.constant dense<0.000000e+00> : vector<2x32xf32>
    %1365 = tpu.matmul %1340, %1364, %cst_739 {dimension_numbers = #tpu.dot_dimension_numbers<[1], [0], [0], [1], [0, 0, 1, 1], [], []>} : vector<2x32xf32>, vector<32x32xf32>, vector<2x32xf32> -> vector<2x32xf32>
    %1366 = arith.addf %1362, %1365 : vector<2x32xf32>
    %1367 = math.tanh %1366 : vector<2x32xf32>
    %1368 = vector.extract_strided_slice %1129 {offsets = [10, 0], sizes = [2, 32], strides = [1, 1]} : vector<16x32xf32> to vector<2x32xf32>
    %c3_740 = arith.constant 3 : index
    %c0_741 = arith.constant 0 : index
    %c0_742 = arith.constant 0 : index
    %1369 = vector.load %arg12[%c3_740, %c0_741, %c0_742] : memref<4x32x32xf32, #tpu.memory_space<vmem>>, vector<1x32x32xf32>
    %1370 = vector.shape_cast %1369 : vector<1x32x32xf32> to vector<32x32xf32>
    %cst_743 = arith.constant dense<0.000000e+00> : vector<2x32xf32>
    %1371 = tpu.matmul %1340, %1370, %cst_743 {dimension_numbers = #tpu.dot_dimension_numbers<[1], [0], [0], [1], [0, 0, 1, 1], [], []>} : vector<2x32xf32>, vector<32x32xf32>, vector<2x32xf32> -> vector<2x32xf32>
    %1372 = arith.addf %1368, %1371 : vector<2x32xf32>
    %1373 = arith.negf %1372 : vector<2x32xf32>
    %1374 = math.exp %1373 : vector<2x32xf32>
    %cst_744 = arith.constant 1.000000e+00 : f32
    %1375 = vector.broadcast %cst_744 : f32 to vector<2x32xf32>
    %1376 = arith.addf %1375, %1374 : vector<2x32xf32>
    %1377 = arith.divf %1375, %1376 : vector<2x32xf32>
    %1378 = arith.mulf %1361, %1338 : vector<2x32xf32>
    %1379 = arith.mulf %1351, %1367 : vector<2x32xf32>
    %1380 = arith.addf %1378, %1379 : vector<2x32xf32>
    %1381 = math.tanh %1380 : vector<2x32xf32>
    %1382 = arith.mulf %1377, %1381 : vector<2x32xf32>
    %c10_745 = arith.constant 10 : index
    %c0_746 = arith.constant 0 : index
    %1383 = vector.load %arg17[%c10_745, %c0_746] : memref<16x32xf32, #tpu.memory_space<vmem>>, vector<2x32xf32>
    tpu.vector_store %arg17[%c10_745, %c0_746], %1382 {strides = array<i32>} : memref<16x32xf32, #tpu.memory_space<vmem>>, vector<2x32xf32>,
    %1384 = vector.extract_strided_slice %1108 {offsets = [12, 0], sizes = [2, 32], strides = [1, 1]} : vector<16x32xf32> to vector<2x32xf32>
    %c0_747 = arith.constant 0 : index
    %c0_748 = arith.constant 0 : index
    %c0_749 = arith.constant 0 : index
    %1385 = vector.load %arg12[%c0_747, %c0_748, %c0_749] : memref<4x32x32xf32, #tpu.memory_space<vmem>>, vector<1x32x32xf32>
    %1386 = vector.shape_cast %1385 : vector<1x32x32xf32> to vector<32x32xf32>
    %cst_750 = arith.constant dense<0.000000e+00> : vector<2x32xf32>
    %1387 = tpu.matmul %1382, %1386, %cst_750 {dimension_numbers = #tpu.dot_dimension_numbers<[1], [0], [0], [1], [0, 0, 1, 1], [], []>} : vector<2x32xf32>, vector<32x32xf32>, vector<2x32xf32> -> vector<2x32xf32>
    %1388 = arith.addf %1384, %1387 : vector<2x32xf32>
    %1389 = arith.negf %1388 : vector<2x32xf32>
    %1390 = math.exp %1389 : vector<2x32xf32>
    %cst_751 = arith.constant 1.000000e+00 : f32
    %1391 = vector.broadcast %cst_751 : f32 to vector<2x32xf32>
    %1392 = arith.addf %1391, %1390 : vector<2x32xf32>
    %1393 = arith.divf %1391, %1392 : vector<2x32xf32>
    %1394 = vector.extract_strided_slice %1115 {offsets = [12, 0], sizes = [2, 32], strides = [1, 1]} : vector<16x32xf32> to vector<2x32xf32>
    %c1_752 = arith.constant 1 : index
    %c0_753 = arith.constant 0 : index
    %c0_754 = arith.constant 0 : index
    %1395 = vector.load %arg12[%c1_752, %c0_753, %c0_754] : memref<4x32x32xf32, #tpu.memory_space<vmem>>, vector<1x32x32xf32>
    %1396 = vector.shape_cast %1395 : vector<1x32x32xf32> to vector<32x32xf32>
    %cst_755 = arith.constant dense<0.000000e+00> : vector<2x32xf32>
    %1397 = tpu.matmul %1382, %1396, %cst_755 {dimension_numbers = #tpu.dot_dimension_numbers<[1], [0], [0], [1], [0, 0, 1, 1], [], []>} : vector<2x32xf32>, vector<32x32xf32>, vector<2x32xf32> -> vector<2x32xf32>
    %1398 = arith.addf %1394, %1397 : vector<2x32xf32>
    %1399 = arith.negf %1398 : vector<2x32xf32>
    %1400 = math.exp %1399 : vector<2x32xf32>
    %cst_756 = arith.constant 1.000000e+00 : f32
    %1401 = vector.broadcast %cst_756 : f32 to vector<2x32xf32>
    %1402 = arith.addf %1401, %1400 : vector<2x32xf32>
    %1403 = arith.divf %1401, %1402 : vector<2x32xf32>
    %1404 = vector.extract_strided_slice %1122 {offsets = [12, 0], sizes = [2, 32], strides = [1, 1]} : vector<16x32xf32> to vector<2x32xf32>
    %c2_757 = arith.constant 2 : index
    %c0_758 = arith.constant 0 : index
    %c0_759 = arith.constant 0 : index
    %1405 = vector.load %arg12[%c2_757, %c0_758, %c0_759] : memref<4x32x32xf32, #tpu.memory_space<vmem>>, vector<1x32x32xf32>
    %1406 = vector.shape_cast %1405 : vector<1x32x32xf32> to vector<32x32xf32>
    %cst_760 = arith.constant dense<0.000000e+00> : vector<2x32xf32>
    %1407 = tpu.matmul %1382, %1406, %cst_760 {dimension_numbers = #tpu.dot_dimension_numbers<[1], [0], [0], [1], [0, 0, 1, 1], [], []>} : vector<2x32xf32>, vector<32x32xf32>, vector<2x32xf32> -> vector<2x32xf32>
    %1408 = arith.addf %1404, %1407 : vector<2x32xf32>
    %1409 = math.tanh %1408 : vector<2x32xf32>
    %1410 = vector.extract_strided_slice %1129 {offsets = [12, 0], sizes = [2, 32], strides = [1, 1]} : vector<16x32xf32> to vector<2x32xf32>
    %c3_761 = arith.constant 3 : index
    %c0_762 = arith.constant 0 : index
    %c0_763 = arith.constant 0 : index
    %1411 = vector.load %arg12[%c3_761, %c0_762, %c0_763] : memref<4x32x32xf32, #tpu.memory_space<vmem>>, vector<1x32x32xf32>
    %1412 = vector.shape_cast %1411 : vector<1x32x32xf32> to vector<32x32xf32>
    %cst_764 = arith.constant dense<0.000000e+00> : vector<2x32xf32>
    %1413 = tpu.matmul %1382, %1412, %cst_764 {dimension_numbers = #tpu.dot_dimension_numbers<[1], [0], [0], [1], [0, 0, 1, 1], [], []>} : vector<2x32xf32>, vector<32x32xf32>, vector<2x32xf32> -> vector<2x32xf32>
    %1414 = arith.addf %1410, %1413 : vector<2x32xf32>
    %1415 = arith.negf %1414 : vector<2x32xf32>
    %1416 = math.exp %1415 : vector<2x32xf32>
    %cst_765 = arith.constant 1.000000e+00 : f32
    %1417 = vector.broadcast %cst_765 : f32 to vector<2x32xf32>
    %1418 = arith.addf %1417, %1416 : vector<2x32xf32>
    %1419 = arith.divf %1417, %1418 : vector<2x32xf32>
    %1420 = arith.mulf %1403, %1380 : vector<2x32xf32>
    %1421 = arith.mulf %1393, %1409 : vector<2x32xf32>
    %1422 = arith.addf %1420, %1421 : vector<2x32xf32>
    %1423 = math.tanh %1422 : vector<2x32xf32>
    %1424 = arith.mulf %1419, %1423 : vector<2x32xf32>
    %c12_766 = arith.constant 12 : index
    %c0_767 = arith.constant 0 : index
    %1425 = vector.load %arg17[%c12_766, %c0_767] : memref<16x32xf32, #tpu.memory_space<vmem>>, vector<2x32xf32>
    tpu.vector_store %arg17[%c12_766, %c0_767], %1424 {strides = array<i32>} : memref<16x32xf32, #tpu.memory_space<vmem>>, vector<2x32xf32>,
    %1426 = vector.extract_strided_slice %1108 {offsets = [14, 0], sizes = [2, 32], strides = [1, 1]} : vector<16x32xf32> to vector<2x32xf32>
    %c0_768 = arith.constant 0 : index
    %c0_769 = arith.constant 0 : index
    %c0_770 = arith.constant 0 : index
    %1427 = vector.load %arg12[%c0_768, %c0_769, %c0_770] : memref<4x32x32xf32, #tpu.memory_space<vmem>>, vector<1x32x32xf32>
    %1428 = vector.shape_cast %1427 : vector<1x32x32xf32> to vector<32x32xf32>
    %cst_771 = arith.constant dense<0.000000e+00> : vector<2x32xf32>
    %1429 = tpu.matmul %1424, %1428, %cst_771 {dimension_numbers = #tpu.dot_dimension_numbers<[1], [0], [0], [1], [0, 0, 1, 1], [], []>} : vector<2x32xf32>, vector<32x32xf32>, vector<2x32xf32> -> vector<2x32xf32>
    %1430 = arith.addf %1426, %1429 : vector<2x32xf32>
    %1431 = arith.negf %1430 : vector<2x32xf32>
    %1432 = math.exp %1431 : vector<2x32xf32>
    %cst_772 = arith.constant 1.000000e+00 : f32
    %1433 = vector.broadcast %cst_772 : f32 to vector<2x32xf32>
    %1434 = arith.addf %1433, %1432 : vector<2x32xf32>
    %1435 = arith.divf %1433, %1434 : vector<2x32xf32>
    %1436 = vector.extract_strided_slice %1115 {offsets = [14, 0], sizes = [2, 32], strides = [1, 1]} : vector<16x32xf32> to vector<2x32xf32>
    %c1_773 = arith.constant 1 : index
    %c0_774 = arith.constant 0 : index
    %c0_775 = arith.constant 0 : index
    %1437 = vector.load %arg12[%c1_773, %c0_774, %c0_775] : memref<4x32x32xf32, #tpu.memory_space<vmem>>, vector<1x32x32xf32>
    %1438 = vector.shape_cast %1437 : vector<1x32x32xf32> to vector<32x32xf32>
    %cst_776 = arith.constant dense<0.000000e+00> : vector<2x32xf32>
    %1439 = tpu.matmul %1424, %1438, %cst_776 {dimension_numbers = #tpu.dot_dimension_numbers<[1], [0], [0], [1], [0, 0, 1, 1], [], []>} : vector<2x32xf32>, vector<32x32xf32>, vector<2x32xf32> -> vector<2x32xf32>
    %1440 = arith.addf %1436, %1439 : vector<2x32xf32>
    %1441 = arith.negf %1440 : vector<2x32xf32>
    %1442 = math.exp %1441 : vector<2x32xf32>
    %cst_777 = arith.constant 1.000000e+00 : f32
    %1443 = vector.broadcast %cst_777 : f32 to vector<2x32xf32>
    %1444 = arith.addf %1443, %1442 : vector<2x32xf32>
    %1445 = arith.divf %1443, %1444 : vector<2x32xf32>
    %1446 = vector.extract_strided_slice %1122 {offsets = [14, 0], sizes = [2, 32], strides = [1, 1]} : vector<16x32xf32> to vector<2x32xf32>
    %c2_778 = arith.constant 2 : index
    %c0_779 = arith.constant 0 : index
    %c0_780 = arith.constant 0 : index
    %1447 = vector.load %arg12[%c2_778, %c0_779, %c0_780] : memref<4x32x32xf32, #tpu.memory_space<vmem>>, vector<1x32x32xf32>
    %1448 = vector.shape_cast %1447 : vector<1x32x32xf32> to vector<32x32xf32>
    %cst_781 = arith.constant dense<0.000000e+00> : vector<2x32xf32>
    %1449 = tpu.matmul %1424, %1448, %cst_781 {dimension_numbers = #tpu.dot_dimension_numbers<[1], [0], [0], [1], [0, 0, 1, 1], [], []>} : vector<2x32xf32>, vector<32x32xf32>, vector<2x32xf32> -> vector<2x32xf32>
    %1450 = arith.addf %1446, %1449 : vector<2x32xf32>
    %1451 = math.tanh %1450 : vector<2x32xf32>
    %1452 = vector.extract_strided_slice %1129 {offsets = [14, 0], sizes = [2, 32], strides = [1, 1]} : vector<16x32xf32> to vector<2x32xf32>
    %c3_782 = arith.constant 3 : index
    %c0_783 = arith.constant 0 : index
    %c0_784 = arith.constant 0 : index
    %1453 = vector.load %arg12[%c3_782, %c0_783, %c0_784] : memref<4x32x32xf32, #tpu.memory_space<vmem>>, vector<1x32x32xf32>
    %1454 = vector.shape_cast %1453 : vector<1x32x32xf32> to vector<32x32xf32>
    %cst_785 = arith.constant dense<0.000000e+00> : vector<2x32xf32>
    %1455 = tpu.matmul %1424, %1454, %cst_785 {dimension_numbers = #tpu.dot_dimension_numbers<[1], [0], [0], [1], [0, 0, 1, 1], [], []>} : vector<2x32xf32>, vector<32x32xf32>, vector<2x32xf32> -> vector<2x32xf32>
    %1456 = arith.addf %1452, %1455 : vector<2x32xf32>
    %1457 = arith.negf %1456 : vector<2x32xf32>
    %1458 = math.exp %1457 : vector<2x32xf32>
    %cst_786 = arith.constant 1.000000e+00 : f32
    %1459 = vector.broadcast %cst_786 : f32 to vector<2x32xf32>
    %1460 = arith.addf %1459, %1458 : vector<2x32xf32>
    %1461 = arith.divf %1459, %1460 : vector<2x32xf32>
    %1462 = arith.mulf %1445, %1422 : vector<2x32xf32>
    %1463 = arith.mulf %1435, %1451 : vector<2x32xf32>
    %1464 = arith.addf %1462, %1463 : vector<2x32xf32>
    %1465 = math.tanh %1464 : vector<2x32xf32>
    %1466 = arith.mulf %1461, %1465 : vector<2x32xf32>
    %c14_787 = arith.constant 14 : index
    %c0_788 = arith.constant 0 : index
    %1467 = vector.load %arg17[%c14_787, %c0_788] : memref<16x32xf32, #tpu.memory_space<vmem>>, vector<2x32xf32>
    tpu.vector_store %arg17[%c14_787, %c0_788], %1466 {strides = array<i32>} : memref<16x32xf32, #tpu.memory_space<vmem>>, vector<2x32xf32>,
    %c0_789 = arith.constant 0 : index
    %c0_790 = arith.constant 0 : index
    %1468 = vector.load %arg17[%c0_789, %c0_790] : memref<16x32xf32, #tpu.memory_space<vmem>>, vector<16x32xf32>
    %c0_791 = arith.constant 0 : index
    %c0_792 = arith.constant 0 : index
    %1469 = vector.load %arg14[%c0_791, %c0_792] : memref<32x1xf32, #tpu.memory_space<vmem>>, vector<32x1xf32>
    %cst_793 = arith.constant dense<0.000000e+00> : vector<16x1xf32>
    %1470 = tpu.matmul %1468, %1469, %cst_793 {dimension_numbers = #tpu.dot_dimension_numbers<[1], [0], [0], [1], [0, 0, 1, 1], [], []>} : vector<16x32xf32>, vector<32x1xf32>, vector<16x1xf32> -> vector<16x1xf32>
    %c0_794 = arith.constant 0 : index
    %c0_795 = arith.constant 0 : index
    %1471 = vector.load %arg15[%c0_794, %c0_795] : memref<1x1xf32, #tpu.memory_space<vmem>>, vector<1x1xf32>
    %1472 = vector.broadcast %1471 : vector<1x1xf32> to vector<16x1xf32>
    %1473 = arith.addf %1470, %1472 : vector<16x1xf32>
    %c0_796 = arith.constant 0 : index
    %c0_797 = arith.constant 0 : index
    %1474 = vector.load %arg1[%c0_796, %c0_797] : memref<16x1xf32, #tpu.memory_space<vmem>>, vector<16x1xf32>
    %cst_798 = arith.constant 1.000000e+01 : f32
    %1475 = vector.broadcast %cst_798 : f32 to vector<16x1xf32>
    %1476 = arith.mulf %1474, %1475 : vector<16x1xf32>
    %1477 = arith.addf %1473, %1476 : vector<16x1xf32>
    %c0_799 = arith.constant 0 : index
    %c0_800 = arith.constant 0 : index
    %1478 = vector.load %arg16[%c0_799, %c0_800] : memref<16x1xf32, #tpu.memory_space<vmem>>, vector<16x1xf32>
    tpu.vector_store %arg16[%c0_799, %c0_800], %1477 {strides = array<i32>} : memref<16x1xf32, #tpu.memory_space<vmem>>, vector<16x1xf32>,
    return
  }
}

</mosaic_0001>

<bundles_post_ra>
// kernel: tpu_custom_call.1
= control target key start
LH: loop header
LB: loop body
LE: loop exit
PB: predicated region body
PF: predicated region fallthrough
CT: control target
= control target key end

     0   :  { %s18527_s0 = inlined_call_operand.vmem [shape: f32[16,16], index: 0, kind: input, shape index: {}]   ;;  %s18528_s1 = inlined_call_operand.vmem [shape: f32[16,1], index: 1, kind: input, shape index: {}]   ;;  %s18529_s2 = inlined_call_operand.hbm [shape: f32[4,16,32], index: 2, kind: input, shape index: {}]   ;;  %s18530_s3 = inlined_call_operand.hbm [shape: f32[4,32,32], index: 3, kind: input, shape index: {}]   ;;  %s18531_s4 = inlined_call_operand.vmem [shape: f32[4,1,32], index: 4, kind: input, shape index: {}]   ;;  %s18532_s5 = inlined_call_operand.hbm [shape: f32[4,32,32], index: 5, kind: input, shape index: {}]   ;;  %s18533_s6 = inlined_call_operand.hbm [shape: f32[4,32,32], index: 6, kind: input, shape index: {}]   ;;  %s18534_s7 = inlined_call_operand.vmem [shape: f32[4,1,32], index: 7, kind: input, shape index: {}]   ;;  %s18535_s8 = inlined_call_operand.hbm [shape: f32[4,32,32], index: 8, kind: input, shape index: {}]   ;;  %s18536_s9 = inlined_call_operand.hbm [shape: f32[4,32,32], index: 9, kind: input, shape index: {}]   ;;  %s18537_s10 = inlined_call_operand.vmem [shape: f32[4,1,32], index: 10, kind: input, shape index: {}]   ;;  %s18538_s11 = inlined_call_operand.hbm [shape: f32[4,32,32], index: 11, kind: input, shape index: {}]   ;;  %s18539_s12 = inlined_call_operand.hbm [shape: f32[4,32,32], index: 12, kind: input, shape index: {}]   ;;  %s18540_s13 = inlined_call_operand.vmem [shape: f32[4,1,32], index: 13, kind: input, shape index: {}]   ;;  %s18541_s14 = inlined_call_operand.vmem [shape: f32[32,1], index: 14, kind: input, shape index: {}]   ;;  %s18542_s15 = inlined_call_operand.<no memory space> [shape: f32[1,1], index: 15, kind: input, shape index: {}]   ;;  %s18543_s16 = inlined_call_operand.vmem [shape: f32[16,1], index: 16, kind: output, shape index: {}]  }
   0x1   :  { %18545 = sst [smem:[#allocation22_spill]] %s18527_s0  ;;  %v21_v0 = vstv %s18542_s15 }
   0x2   :  { %22 = vst [vmem:[#allocation3] sm:$0x1] %v21_v0 }
   0x3   :  { %23 = vsyncpa [#allocation5], 0 }
   0x4   :  { %24 = vsyncpa [#allocation7], 0 }
   0x5   :  { %25 = vsyncpa [#allocation10], 0 }
   0x6   :  { %26 = vsyncpa [#allocation13], 0 }
   0x7   :  { %27 = vsyncpa [#allocation16], 0  ;;  %s16780_s23 = smov [#allocation6]   ;;  %s16781_s25 = smov [#allocation9]  }
   0x8   :  { %s49_s24 = sshll.u32 %s16780_s23, 4  ;;  %s75_s26 = sshll.u32 %s16781_s25, 4  ;;  %s50_s24 = int_to_ptr.vmem [resolvable:$true] %s49_s24  ;;  %s16881_s26 = int_to_ptr.vmem [resolvable:$true] %s75_s26 }
   0x9   :  { %s16594_s29 = scalar_lea.hbm %s18530_s3, 2048 }
   0xa   :  { %p16595_p0 = scmp.ne.s32.totalorder %s18530_s3, %s16594_s29  ;;  %p16598_p1 = scmp.lt.u32.totalorder %s16594_s29, %s18530_s3 }
   0xc   :  { %p16600_p2 = pnand %p16598_p1, %p16595_p0 }
   0xe   :  { %16603 = shalt.err (!%p16600_p2)
}
   0xf   :  { %s16604_s18 = scalar_lea.vmem %s50_s24, 2048  ;;  %p16609_p4 = scmp.lt.s32.totalorder %s50_s24, %s50_s24 }
  0x10   :  { %p16605_p3 = scmp.ne.s32.totalorder %s50_s24, %s16604_s18  ;;  %p16610_p5 = scmp.lt.s32.totalorder %s16604_s18, %s16604_s18 }
  0x12   :  { %p16611_p6 = por %p16610_p5, %p16609_p4 }
  0x14   :  { %p16612_p7 = pnand %p16611_p6, %p16605_p3 }
  0x16   :  { %16615 = shalt.err (!%p16612_p7)
}
  0x17   :  { %s16782_s19 = smov 128   ;;  %s16783_s20 = smov 8  }
  0x18   :  { %55 = dma.hbm_to_vmem [thread:$0]  %s18530_s3, 2048, %s50_s24, [#allocation7], %s16782_s19, %s16782_s19, %s16783_s20  }
  0x19   :  { %s16616_s27 = scalar_lea.hbm %s18533_s6, 2048 }
  0x1a   :  { %p16617_p8 = scmp.ne.s32.totalorder %s18533_s6, %s16616_s27  ;;  %p16620_p9 = scmp.lt.u32.totalorder %s16616_s27, %s18533_s6 }
  0x1c   :  { %p16622_p10 = pnand %p16620_p9, %p16617_p8 }
  0x1e   :  { %16625 = shalt.err (!%p16622_p10)
}
  0x1f   :  { %s16626_s15 = scalar_lea.vmem %s16881_s26, 2048  ;;  %p16631_p12 = scmp.lt.s32.totalorder %s16881_s26, %s16881_s26 }
  0x20   :  { %p16627_p11 = scmp.ne.s32.totalorder %s16881_s26, %s16626_s15  ;;  %p16632_p13 = scmp.lt.s32.totalorder %s16626_s15, %s16626_s15 }
  0x22   :  { %p16633_p0 = por %p16632_p13, %p16631_p12 }
  0x24   :  { %p16634_p1 = pnand %p16633_p0, %p16627_p11 }
  0x26   :  { %16637 = shalt.err (!%p16634_p1)
}
  0x27   :  { %81 = dma.hbm_to_vmem [thread:$0]  %s18533_s6, 2048, %s16881_s26, [#allocation10], %s16782_s19, %s16782_s19, %s16783_s20  }
  0x28   :  { %s16784_s17 = smov [#allocation12]   ;;  %s16785_s21 = smov [#allocation4]  }
  0x29   :  { %s101_s18 = sshll.u32 %s16784_s17, 4  ;;  %s37_s22 = sshll.u32 %s16785_s21, 4  ;;  %s102_s18 = int_to_ptr.vmem [resolvable:$true] %s101_s18  ;;  %s16918_s22 = int_to_ptr.vmem [resolvable:$true] %s37_s22 }
  0x2a   :  { %s16638_s27 = scalar_lea.hbm %s18536_s9, 2048 }
  0x2b   :  { %p16639_p2 = scmp.ne.s32.totalorder %s18536_s9, %s16638_s27  ;;  %p16642_p3 = scmp.lt.u32.totalorder %s16638_s27, %s18536_s9 }
  0x2d   :  { %p16644_p4 = pnand %p16642_p3, %p16639_p2 }
  0x2f   :  { %16647 = shalt.err (!%p16644_p4)
}
  0x30   :  { %s16648_s6 = scalar_lea.vmem %s102_s18, 2048  ;;  %p16653_p6 = scmp.lt.s32.totalorder %s102_s18, %s102_s18 }
  0x31   :  { %p16649_p5 = scmp.ne.s32.totalorder %s102_s18, %s16648_s6  ;;  %p16654_p7 = scmp.lt.s32.totalorder %s16648_s6, %s16648_s6 }
  0x33   :  { %p16655_p8 = por %p16654_p7, %p16653_p6 }
  0x35   :  { %p16656_p9 = pnand %p16655_p8, %p16649_p5 }
  0x37   :  { %16659 = shalt.err (!%p16656_p9)
}
  0x38   :  { %107 = dma.hbm_to_vmem [thread:$0]  %s18536_s9, 2048, %s102_s18, [#allocation13], %s16782_s19, %s16782_s19, %s16783_s20  }
  0x39   :  { %s16660_s17 = scalar_lea.hbm %s18529_s2, 1024 }
  0x3a   :  { %p16661_p10 = scmp.ne.s32.totalorder %s18529_s2, %s16660_s17  ;;  %p16664_p11 = scmp.lt.u32.totalorder %s16660_s17, %s18529_s2 }
  0x3c   :  { %p16666_p12 = pnand %p16664_p11, %p16661_p10 }
  0x3e   :  { %16669 = shalt.err (!%p16666_p12)
}
  0x3f   :  { %s16670_s28 = scalar_lea.vmem %s16918_s22, 1024  ;;  %p16675_p0 = scmp.lt.s32.totalorder %s16918_s22, %s16918_s22 }
  0x40   :  { %p16671_p13 = scmp.ne.s32.totalorder %s16918_s22, %s16670_s28  ;;  %p16676_p1 = scmp.lt.s32.totalorder %s16670_s28, %s16670_s28 }
  0x42   :  { %p16677_p2 = por %p16676_p1, %p16675_p0 }
  0x44   :  { %p16678_p3 = pnand %p16677_p2, %p16671_p13 }
  0x46   :  { %16681 = shalt.err (!%p16678_p3)
}
  0x47   :  { %43 = dma.hbm_to_vmem [thread:$0]  %s18529_s2, 1024, %s16918_s22, [#allocation5], %s16782_s19, %s16782_s19, %s16783_s20  }
  0x48   :  { %s16786_s29 = smov [#allocation8]   ;;  %s16787_s0 = smov [#allocation11]  }
  0x49   :  { %s63_s30 = sshll.u32 %s16786_s29, 4  ;;  %s89_s6 = sshll.u32 %s16787_s0, 4  ;;  %s64_s30 = int_to_ptr.vmem [resolvable:$true] %s63_s30  ;;  %s16955_s6 = int_to_ptr.vmem [resolvable:$true] %s89_s6 }
  0x4a   :  { %s16682_s3 = scalar_lea.hbm %s18532_s5, 2048 }
  0x4b   :  { %p16683_p4 = scmp.ne.s32.totalorder %s18532_s5, %s16682_s3  ;;  %p16686_p5 = scmp.lt.u32.totalorder %s16682_s3, %s18532_s5 }
  0x4d   :  { %p16688_p6 = pnand %p16686_p5, %p16683_p4 }
  0x4f   :  { %16691 = shalt.err (!%p16688_p6)
}
  0x50   :  { %s16692_s2 = scalar_lea.vmem %s64_s30, 2048  ;;  %p16697_p8 = scmp.lt.s32.totalorder %s64_s30, %s64_s30 }
  0x51   :  { %p16693_p7 = scmp.ne.s32.totalorder %s64_s30, %s16692_s2  ;;  %p16698_p9 = scmp.lt.s32.totalorder %s16692_s2, %s16692_s2 }
  0x53   :  { %p16699_p10 = por %p16698_p9, %p16697_p8 }
  0x55   :  { %p16700_p11 = pnand %p16699_p10, %p16693_p7 }
  0x57   :  { %16703 = shalt.err (!%p16700_p11)
}
  0x58   :  { %69 = dma.hbm_to_vmem [thread:$0]  %s18532_s5, 2048, %s64_s30, [#allocation7], %s16782_s19, %s16782_s19, %s16783_s20  }
  0x59   :  { %s16704_s9 = scalar_lea.hbm %s18535_s8, 2048 }
  0x5a   :  { %p16705_p12 = scmp.ne.s32.totalorder %s18535_s8, %s16704_s9  ;;  %p16708_p13 = scmp.lt.u32.totalorder %s16704_s9, %s18535_s8 }
  0x5c   :  { %p16710_p0 = pnand %p16708_p13, %p16705_p12 }
  0x5e   :  { %16713 = shalt.err (!%p16710_p0)
}
  0x5f   :  { %s16714_s15 = scalar_lea.vmem %s16955_s6, 2048  ;;  %p16719_p2 = scmp.lt.s32.totalorder %s16955_s6, %s16955_s6 }
  0x60   :  { %p16715_p1 = scmp.ne.s32.totalorder %s16955_s6, %s16714_s15  ;;  %p16720_p3 = scmp.lt.s32.totalorder %s16714_s15, %s16714_s15 }
  0x62   :  { %p16721_p4 = por %p16720_p3, %p16719_p2 }
  0x64   :  { %p16722_p5 = pnand %p16721_p4, %p16715_p1 }
  0x66   :  { %16725 = shalt.err (!%p16722_p5)
}
  0x67   :  { %95 = dma.hbm_to_vmem [thread:$0]  %s18535_s8, 2048, %s16955_s6, [#allocation10], %s16782_s19, %s16782_s19, %s16783_s20  }
  0x68   :  { %s16788_s3 = smov [#allocation14]   ;;  %s16789_s17 = smov [#allocation15]  }
  0x69   :  { %s115_s24 = sshll.u32 %s16788_s3, 4  ;;  %s127_s21 = sshll.u32 %s16789_s17, 4  ;;  %s116_s24 = int_to_ptr.vmem [resolvable:$true] %s115_s24  ;;  %s16992_s21 = int_to_ptr.vmem [resolvable:$true] %s127_s21 }
  0x6a   :  { %s16726_s22 = scalar_lea.hbm %s18538_s11, 2048 }
  0x6b   :  { %p16727_p6 = scmp.ne.s32.totalorder %s18538_s11, %s16726_s22  ;;  %p16730_p7 = scmp.lt.u32.totalorder %s16726_s22, %s18538_s11 }
  0x6d   :  { %p16732_p8 = pnand %p16730_p7, %p16727_p6 }
  0x6f   :  { %16735 = shalt.err (!%p16732_p8)
}
  0x70   :  { %s16736_s8 = scalar_lea.vmem %s116_s24, 2048  ;;  %p16741_p10 = scmp.lt.s32.totalorder %s116_s24, %s116_s24 }
  0x71   :  { %p16737_p9 = scmp.ne.s32.totalorder %s116_s24, %s16736_s8  ;;  %p16742_p11 = scmp.lt.s32.totalorder %s16736_s8, %s16736_s8 }
  0x73   :  { %p16743_p12 = por %p16742_p11, %p16741_p10 }
  0x75   :  { %p16744_p13 = pnand %p16743_p12, %p16737_p9 }
  0x77   :  { %16747 = shalt.err (!%p16744_p13)
}
  0x78   :  { %121 = dma.hbm_to_vmem [thread:$0]  %s18538_s11, 2048, %s116_s24, [#allocation13], %s16782_s19, %s16782_s19, %s16783_s20  }
  0x79   :  { %s16748_s26 = scalar_lea.hbm %s18539_s12, 2048 }
  0x7a   :  { %p16749_p0 = scmp.ne.s32.totalorder %s18539_s12, %s16748_s26  ;;  %p16752_p1 = scmp.lt.u32.totalorder %s16748_s26, %s18539_s12 }
  0x7c   :  { %p16754_p2 = pnand %p16752_p1, %p16749_p0 }
  0x7e   :  { %16757 = shalt.err (!%p16754_p2)
}
  0x7f   :  { %s16758_s17 = scalar_lea.vmem %s16992_s21, 2048  ;;  %p16763_p4 = scmp.lt.s32.totalorder %s16992_s21, %s16992_s21 }
  0x80   :  { %p16759_p3 = scmp.ne.s32.totalorder %s16992_s21, %s16758_s17  ;;  %p16764_p5 = scmp.lt.s32.totalorder %s16758_s17, %s16758_s17 }
  0x82   :  { %p16765_p6 = por %p16764_p5, %p16763_p4 }
  0x84   :  { %p16766_p7 = pnand %p16765_p6, %p16759_p3 }
  0x86   :  { %16769 = shalt.err (!%p16766_p7)
}
  0x87   :  { %133 = dma.hbm_to_vmem [thread:$0]  %s18539_s12, 2048, %s16992_s21, [#allocation16], %s16782_s19, %s16782_s19, %s16783_s20  }
  0x88   :  { %16770 = dma.done.wait [#allocation5], 1024  }
  0x89   :  { %16771 = vsyncadd [#allocation5], 4294966272 }
  0x8a   :  { %16772 = dma.done.wait [#allocation7], 4096  }
  0x8b   :  { %16773 = vsyncadd [#allocation7], 4294963200 }
  0x8c   :  { %16774 = dma.done.wait [#allocation10], 4096  }
  0x8d   :  { %16775 = vsyncadd [#allocation10], 4294963200 }
  0x8e   :  { %16776 = dma.done.wait [#allocation13], 4096  }
  0x8f   :  { %16777 = vsyncadd [#allocation13], 4294963200 }
  0x90   :  { %16778 = dma.done.wait [#allocation16], 2048  }
  0x91   :  { %16779 = vsyncadd [#allocation16], 4294965248  ;;  %vm175_vm0 = vcmask 130048   ;;  %v166_v1 = vld [vmem:[#allocation4] sm:$0xff]  ;;  %v167_v2 = vld [vmem:[#allocation4 + $0x8] sm:$0xff]  ;;  %s18546_s22 = sld [smem:[#allocation22_spill]] }
  0x92   :  { %v344_v3 = vld [vmem:[#allocation4 + $0x20] sm:$0xff]  ;;  %v15181_v4 = vpack.c.bf16 %v167_v2, %v166_v1  ;;  %v345_v5 = vld [vmem:[#allocation4 + $0x28] sm:$0xff]  ;;  %v258_v8 = vld [vmem:[#allocation4 + $0x10] sm:$0xff]  ;;  %v16790_v17 = vmov 0.0|0.0   ;;  %vm16791_vm1 = vmmov 0   ;;  %v16792_v26 = vmov 0.0  }
  0x93   :  { %v15189_v7 = vpack.c.bf16 %v345_v5, %v344_v3  ;;  %v259_v9 = vld [vmem:[#allocation4 + $0x18] sm:$0xff]  ;;  %v515_v10 = vld [vmem:[#allocation6] sm:$0xff]  ;;  %v516_v12 = vld [vmem:[#allocation6 + $0x8] sm:$0xff]  ;;  %vm519_vm2 = vcmask 261120   ;;  %vm846_vm3 = vcmask 254976   ;;  %vm1190_vm4 = vcmask 257026  }
  0x94   :  { %15182 = vmatprep.subr.bf16.mxu1 %v15181_v4  ;;  %v15185_v11 = vpack.c.bf16 %v259_v9, %v258_v8  ;;  %v430_v13 = vld [vmem:[#allocation4 + $0x30] sm:$0xff]  ;;  %v431_v14 = vld [vmem:[#allocation4 + $0x38] sm:$0xff]  ;;  %v17037_v16 = vpack.c.bf16 %v516_v12, %v515_v10  ;;  %v601_v22 = vld [vmem:[#allocation6 + $0x20] sm:$0xff]  ;;  %vm1535_vm5 = vcmask 259076   ;;  %vm1880_vm6 = vcmask 261126  }
  0x95   :  { %15190 = vmatprep.subr.bf16.mxu0 %v15189_v7  ;;  %15184 = vmatpush3.bf16.msra.mxu1 %v15181_v4  ;;  %v15193_v18 = vpack.c.bf16 %v431_v14, %v430_v13  ;;  %v517_v19 = vld [vmem:[#allocation6 + $0x10] sm:$0xff]  ;;  %v518_v20 = vld [vmem:[#allocation6 + $0x18] sm:$0xff]  ;;  %v602_v23 = vld [vmem:[#allocation6 + $0x28] sm:$0xff]  ;;  %vm12585_vm7 = vcmask 7168  }
  0x96   :  { %15192 = vmatpush3.bf16.msra.mxu0 %v15189_v7  ;;  %15186 = vmatprep.subr.bf16.mxu1 %v15185_v11  ;;  %v17044_v21 = vpack.c.bf16 %v518_v20, %v517_v19  ;;  %v683_v24 = vld [vmem:[#allocation6 + $0x40] sm:$0xff]  ;;  %v684_v25 = vld [vmem:[#allocation6 + $0x48] sm:$0xff]  ;;  %v17051_v27 = vpack.c.bf16 %v602_v23, %v601_v22  ;;  %v603_v29 = vld [vmem:[#allocation6 + $0x30] sm:$0xff] }
  0x97   :  { %v164_v6 = vld [vmem:[%s18546_s22] sm:$0xff]  ;;  %v165_v15 = vld [vmem:[%s18546_s22 + $0x8] sm:$0xff]  ;;  %15197 = vmatprep.subr.bf16.mxu0 %v16790_v17  ;;  %v17055_v28 = vpack.c.bf16 %v684_v25, %v683_v24  ;;  %v760_v35 = vld [vmem:[#allocation6 + $0x60] sm:$0xff] }
  0x98   :  { %13606 = vmatprep.mubr.msk.f32.mxu1 %vm175_vm0, %v164_v6  ;;  %13620 = vmatprep.mubr.msk.f32.mxu0 %vm175_vm0, %v164_v6  ;;  %v604_v30 = vld [vmem:[#allocation6 + $0x38] sm:$0xff]  ;;  %v685_v31 = vld [vmem:[#allocation6 + $0x50] sm:$0xff]  ;;  %v761_v36 = vld [vmem:[#allocation6 + $0x68] sm:$0xff] }
  0x99   :  { %13607 = vmatmul.mubr.msk.f32.vlgmr.msra.gmra.mrb[0].mxu1 %vm175_vm0, %v165_v15  ;;  %13621 = vmatmul.mubr.msk.f32.vlgmr.msra.gmra.mrb[0].mxu0 %vm175_vm0, %v165_v15  ;;  %v686_v32 = vld [vmem:[#allocation6 + $0x58] sm:$0xff]  ;;  %v17061_v33 = vpack.c.bf16 %v604_v30, %v603_v29  ;;  %v17073_v37 = vpack.c.bf16 %v761_v36, %v760_v35  ;;  %v762_v38 = vld [vmem:[#allocation6 + $0x70] sm:$0xff]  ;;  %v12597_v41 = vld [vmem:[%s18531_s4] ss:$0 sm:$0xff] }
  0x9a   :  { %15188 = vmatpush3.bf16.msra.mxu1 %v15185_v11  ;;  %15199 = vmatpush3.bf16.msra.mxu0 %v17037_v16  ;;  %v17065_v34 = vpack.c.bf16 %v686_v32, %v685_v31  ;;  %v763_v39 = vld [vmem:[#allocation6 + $0x78] sm:$0xff]  ;;  %v12605_v42 = vld [vmem:[%s18531_s4 + $0x2] ss:$0 sm:$0xff]  ;;  %v12601_v47 = vld [vmem:[%s18531_s4 + $0x1] ss:$0 sm:$0xff] }
  0x9b   :  { %13613 = vmatprep.mubr.msk.f32.mxu1 %vm175_vm0, %v164_v6  ;;  %15194 = vmatprep.subr.bf16.mxu1 %v15193_v18  ;;  %v17081_v40 = vpack.c.bf16 %v763_v39, %v762_v38  ;;  %v12609_v53 = vld [vmem:[%s18531_s4 + $0x3] ss:$0 sm:$0xff] }
  0x9c   :  { %15200 = vmatprep.subr.bf16.mxu0 %v16790_v17  ;;  %13638 = vmatprep.mubr.msk.f32.mxu0 %vm16791_vm1, %v16792_v26 }
  0x9d   :  { %13614 = vmatmul.mubr.msk.f32.vlgmr.msra.gmra.mrb[2].mxu1 %vm175_vm0, %v165_v15 }
  0x9e   :  { %15196 = vmatpush3.bf16.msra.mxu1 %v15193_v18  ;;  %13627 = vmatprep.mubr.msk.f32.mxu1 %vm175_vm0, %v164_v6 }
  0x9f   :  { %15202 = vmatpush3.bf16.msra.mxu0 %v17044_v21  ;;  %15203 = vmatprep.subr.bf16.mxu1 %v16790_v17 }
  0xa0   :  { %15209 = vmatprep.subr.bf16.mxu0 %v16790_v17 }
  0xa1   :  { %13628 = vmatmul.mubr.msk.f32.vlgmr.msra.gmra.mrb[4].mxu1 %vm175_vm0, %v165_v15 }
  0xa2   :  { %13639 = vmatmul.mubr.f32.vlgmr.msra.gmra.mrb[2].mxu0 %v16792_v26  ;;  %15205 = vmatpush3.bf16.msra.mxu1 %v17051_v27 }
  0xa3   :  { %15211 = vmatpush3.bf16.msra.mxu0 %v17055_v28  ;;  %15206 = vmatprep.subr.bf16.mxu1 %v16790_v17 }
  0xa4   :  { %15212 = vmatprep.subr.bf16.mxu0 %v16790_v17  ;;  %13649 = vmatprep.mubr.msk.f32.mxu1 %vm16791_vm1, %v16792_v26 }
  0xa5   :  { %13660 = vmatprep.mubr.msk.f32.mxu0 %vm16791_vm1, %v16792_v26 }
  0xa6   :  { %15208 = vmatpush3.bf16.msra.mxu1 %v17061_v33 }
  0xa7   :  { %15214 = vmatpush3.bf16.msra.mxu0 %v17065_v34  ;;  %15215 = vmatprep.subr.bf16.mxu1 %v16790_v17 }
  0xa8   :  { %15221 = vmatprep.subr.bf16.mxu0 %v16790_v17 }
  0xa9   :  { %13650 = vmatmul.mubr.f32.vlgmr.msra.gmra.mrb[6].mxu1 %v16792_v26 }
  0xaa   :  { %13661 = vmatmul.mubr.f32.vlgmr.msra.gmra.mrb[4].mxu0 %v16792_v26  ;;  %15217 = vmatpush3.bf16.msra.mxu1 %v17073_v37 }
  0xab   :  { %15218 = vmatprep.subr.bf16.mxu1 %v16790_v17  ;;  %13671 = vmatprep.mubr.msk.f32.mxu1 %vm16791_vm1, %v16792_v26 }
  0xac   :  { %15223 = vmatpush3.bf16.msra.mxu0 %v17037_v16  ;;  %13682 = vmatprep.mubr.msk.f32.mxu0 %vm16791_vm1, %v16792_v26 }
  0xad   :  { %15224 = vmatprep.subr.bf16.mxu0 %v16790_v17 }
  0xae   :  { %15220 = vmatpush3.bf16.msra.mxu1 %v17081_v40 }
  0xaf   :  { %15227 = vmatprep.subr.bf16.mxu1 %v16790_v17 }
  0xb0   :  { %15226 = vmatpush3.bf16.msra.mxu0 %v17044_v21 }
  0xb1   :  { %13672 = vmatmul.mubr.f32.vlgmr.msra.gmra.mrb[8].mxu1 %v16792_v26  ;;  %15233 = vmatprep.subr.bf16.mxu0 %v16790_v17 }
  0xb2   :  { %15229 = vmatpush3.bf16.msra.mxu1 %v17051_v27  ;;  %13693 = vmatprep.mubr.msk.f32.mxu1 %vm16791_vm1, %v16792_v26 }
  0xb3   :  { %15230 = vmatprep.subr.bf16.mxu1 %v16790_v17 }
  0xb6   :  { %15232 = vmatpush3.bf16.msra.mxu1 %v17061_v33 }
  0xb7   :  { %15239 = vmatprep.subr.bf16.mxu1 %v16790_v17 }
 0x16c   :  { %v13608_v43 = vpop.f32.mrb[0].mxu1  ;;  %v13622_v46 = vpop.f32.mrb[0].mxu0 }
 0x16d   :  { %v17107_v44 = vadd.f32 %v13608_v43, %v12597_v41  ;;  %v248_v45 = vpop.f32.mrb[1].mxu1  ;;  %v17112_v48 = vadd.f32 %v13622_v46, %v12605_v42  ;;  %v420_v49 = vpop.f32.mrb[1].mxu0 }
 0x16e   :  { %v17119_v54 = vadd.f32 %v12597_v41, %v248_v45  ;;  %v17127_v5 = vadd.f32 %v12605_v42, %v420_v49 }
 0x170   :  { %v13615_v50 = vpop.f32.mrb[2].mxu1 }
 0x171   :  { %v17114_v51 = vadd.f32 %v13615_v50, %v12601_v47  ;;  %v334_v52 = vpop.f32.mrb[3].mxu1 }
 0x172   :  { %v17124_v62 = vadd.f32 %v12601_v47, %v334_v52 }
 0x174   :  { %v13629_v55 = vpop.f32.mrb[4].mxu1 }
 0x175   :  { %v17121_v56 = vadd.f32 %v13629_v55, %v12609_v53  ;;  %v589_v57 = vpop.f32.mrb[2].mxu0  ;;  %v506_v58 = vpop.f32.mrb[5].mxu1 }
 0x176   :  { %v593_v59 = vadd.f32 %v589_v57, %v17119_v54  ;;  %v13640_v60 = vpop.f32.mrb[3].mxu0  ;;  %v17130_v7 = vadd.f32 %v12609_v53, %v506_v58 }
 0x178   :  { %v12612_v61 = vmul.f32 -1.442695, %v593_v59 }
 0x17a   :  { %16082 = vpow2.f32 %v12612_v61 }
 0x17c   :  { %v671_v63 = vpop.f32.mrb[6].mxu1 }
 0x17d   :  { %v675_v0 = vadd.f32 %v671_v63, %v17124_v62  ;;  %v753_v1 = vpop.f32.mrb[4].mxu0  ;;  %v13651_v2 = vpop.f32.mrb[7].mxu1 }
 0x17e   :  { %v13662_v3 = vpop.f32.mrb[5].mxu0  ;;  %v757_v6 = vadd.f32 %v753_v1, %v17127_v5 }
 0x17f   :  { %v12613_v4 = vmul.f32 -1.442695, %v675_v0 }
 0x181   :  { %16084 = vpow2.f32 %v12613_v4 }
 0x182   :  { %16086 = vtanh.f32 %v757_v6 }
 0x184   :  { %v16083_v8 = vpop.eup %16082  ;;  %v830_v9 = vpop.f32.mrb[8].mxu1 }
 0x185   :  { %v597_v10 = vadd.f32 1.0, %v16083_v8  ;;  %v834_v11 = vadd.f32 %v830_v9, %v17130_v7  ;;  %v13673_v12 = vpop.f32.mrb[9].mxu1 }
 0x187   :  { %16088 = vrcp.f32 %v597_v10  ;;  %v12614_v13 = vmul.f32 -1.442695, %v834_v11 }
 0x189   :  { %16090 = vpow2.f32 %v12614_v13 }
 0x18b   :  { %v16085_v14 = vpop.eup %16084 }
 0x18c   :  { %v679_v15 = vadd.f32 1.0, %v16085_v14  ;;  %v16087_v18 = vpop.eup %16086 }
 0x18e   :  { %16092 = vrcp.f32 %v679_v15 }
 0x191   :  { %v16089_v19 = vpop.eup %16088 }
 0x192   :  { %v842_v20 = vmul.f32 %v16089_v19, %v16087_v18 }
 0x193   :  { %v16091_v22 = vpop.eup %16090 }
 0x194   :  { %v838_v24 = vadd.f32 1.0, %v16091_v22 }
 0x196   :  { %16094 = vrcp.f32 %v838_v24 }
 0x198   :  { %v16093_v23 = vpop.eup %16092 }
 0x199   :  { %v841_v25 = vmul.f32 0.0, %v16093_v23 }
 0x19b   :  { %v17133_v29 = vadd.f32 %v842_v20, %v841_v25 }
 0x19d   :  { %16096 = vtanh.f32 %v17133_v29  ;;  %v1183_v6 = vrot.slane %v17133_v29, 6 }
 0x1a0   :  { %v16095_v30 = vpop.eup %16094 }
 0x1a7   :  { %v16097_v31 = vpop.eup %16096 }
 0x1a8   :  { %v845_v32 = vmul.f32 %v16097_v31, %v16095_v30 }
 0x1aa   :  { %847 = vst.msk [vmem:[#allocation2] sm:$0x3] %vm846_vm3, %v845_v32  ;;  %13683 = vmatmul.mubr.msk.f32.vlgmr.msra.gmra.mrb[6].mxu0 %vm519_vm2, %v845_v32  ;;  %13694 = vmatmul.mubr.msk.f32.vlgmr.msra.gmra.mrb[10].mxu1 %vm519_vm2, %v845_v32 }
 0x1ab   :  { %15235 = vmatpush3.bf16.msra.mxu0 %v17055_v28  ;;  %15241 = vmatpush3.bf16.msra.mxu1 %v17073_v37 }
 0x1ac   :  { %15236 = vmatprep.subr.bf16.mxu0 %v16790_v17  ;;  %15242 = vmatprep.subr.bf16.mxu1 %v16790_v17 }
 0x1ad   :  { %13704 = vmatprep.mubr.msk.f32.mxu0 %vm16791_vm1, %v16792_v26  ;;  %13715 = vmatprep.mubr.msk.f32.mxu1 %vm16791_vm1, %v16792_v26 }
 0x1af   :  { %15238 = vmatpush3.bf16.msra.mxu0 %v17065_v34  ;;  %15244 = vmatpush3.bf16.msra.mxu1 %v17081_v40 }
 0x1b0   :  { %15245 = vmatprep.subr.bf16.mxu0 %v16790_v17  ;;  %15251 = vmatprep.subr.bf16.mxu1 %v16790_v17 }
 0x1b2   :  { %13705 = vmatmul.mubr.msk.f32.vlgmr.msra.gmra.mrb[8].mxu0 %vm519_vm2, %v845_v32  ;;  %13716 = vmatmul.mubr.msk.f32.vlgmr.msra.gmra.mrb[12].mxu1 %vm519_vm2, %v845_v32 }
 0x1b3   :  { %15247 = vmatpush3.bf16.msra.mxu0 %v17037_v16  ;;  %15253 = vmatpush3.bf16.msra.mxu1 %v17051_v27 }
 0x1b4   :  { %15248 = vmatprep.subr.bf16.mxu0 %v16790_v17  ;;  %15254 = vmatprep.subr.bf16.mxu1 %v16790_v17 }
 0x1b5   :  { %13726 = vmatprep.mubr.msk.f32.mxu0 %vm16791_vm1, %v16792_v26  ;;  %13737 = vmatprep.mubr.msk.f32.mxu1 %vm16791_vm1, %v16792_v26 }
 0x1b7   :  { %15250 = vmatpush3.bf16.msra.mxu0 %v17044_v21  ;;  %15256 = vmatpush3.bf16.msra.mxu1 %v17061_v33 }
 0x1b8   :  { %15257 = vmatprep.subr.bf16.mxu0 %v16790_v17  ;;  %15263 = vmatprep.subr.bf16.mxu1 %v16790_v17 }
 0x27d   :  { %v921_v35 = vpop.f32.mrb[6].mxu0  ;;  %v1005_v36 = vpop.f32.mrb[10].mxu1 }
 0x27e   :  { %v926_v38 = vrot.slane %v921_v35, 6  ;;  %v1010_v39 = vrot.slane %v1005_v36, 6  ;;  %v13684_v41 = vpop.f32.mrb[7].mxu0  ;;  %v13695_v42 = vpop.f32.mrb[11].mxu1 }
 0x280   :  { %v928_v43 = vadd.f32 %v926_v38, %v17119_v54  ;;  %v1012_v45 = vadd.f32 %v1010_v39, %v17124_v62 }
 0x282   :  { %v12616_v46 = vmul.f32 -1.442695, %v928_v43  ;;  %v12618_v47 = vmul.f32 -1.442695, %v1012_v45 }
 0x284   :  { %16098 = vpow2.f32 %v12616_v46 }
 0x285   :  { %16100 = vpow2.f32 %v12618_v47  ;;  %v1089_v49 = vpop.f32.mrb[8].mxu0  ;;  %v1168_v50 = vpop.f32.mrb[12].mxu1 }
 0x286   :  { %v1173_v52 = vrot.slane %v1168_v50, 6  ;;  %v13706_v53 = vpop.f32.mrb[9].mxu0  ;;  %v13717_v55 = vpop.f32.mrb[13].mxu1  ;;  %v1094_v57 = vrot.slane %v1089_v49, 6 }
 0x288   :  { %v1175_v58 = vadd.f32 %v1173_v52, %v17130_v7  ;;  %v1096_v60 = vadd.f32 %v1094_v57, %v17127_v5 }
 0x28a   :  { %v12621_v59 = vmul.f32 -1.442695, %v1175_v58 }
 0x28c   :  { %16102 = vpow2.f32 %v12621_v59 }
 0x28d   :  { %16104 = vtanh.f32 %v1096_v60 }
 0x28e   :  { %v16099_v61 = vpop.eup %16098 }
 0x28f   :  { %v16101_v63 = vpop.eup %16100  ;;  %v932_v0 = vadd.f32 1.0, %v16099_v61 }
 0x290   :  { %v1016_v1 = vadd.f32 1.0, %v16101_v63 }
 0x291   :  { %16106 = vrcp.f32 %v932_v0 }
 0x292   :  { %16108 = vrcp.f32 %v1016_v1 }
 0x296   :  { %v16103_v2 = vpop.eup %16102 }
 0x297   :  { %v16105_v3 = vpop.eup %16104  ;;  %v1179_v10 = vadd.f32 1.0, %v16103_v2 }
 0x299   :  { %16110 = vrcp.f32 %v1179_v10 }
 0x29b   :  { %v16107_v4 = vpop.eup %16106 }
 0x29c   :  { %v16109_v8 = vpop.eup %16108  ;;  %v1186_v9 = vmul.f32 %v16107_v4, %v16105_v3 }
 0x29d   :  { %v1185_v11 = vmul.f32 %v16109_v8, %v1183_v6 }
 0x29f   :  { %v17170_v12 = vadd.f32 %v1186_v9, %v1185_v11 }
 0x2a1   :  { %16112 = vtanh.f32 %v17170_v12  ;;  %v1528_v58 = vrot.slane %v17170_v12, 6 }
 0x2a3   :  { %v16111_v13 = vpop.eup %16110 }
 0x2ab   :  { %v16113_v14 = vpop.eup %16112 }
 0x2ac   :  { %v1189_v15 = vmul.f32 %v16113_v14, %v16111_v13 }
 0x2ae   :  { %1191 = vst.msk [vmem:[#allocation2] sm:$0xc] %vm1190_vm4, %v1189_v15  ;;  %v1197_v18 = vrot.slane %v1189_v15, 2 }
 0x2b0   :  { %13727 = vmatmul.mubr.msk.f32.vlgmr.msra.gmra.mrb[10].mxu0 %vm519_vm2, %v1197_v18  ;;  %13738 = vmatmul.mubr.msk.f32.vlgmr.msra.gmra.mrb[14].mxu1 %vm519_vm2, %v1197_v18 }
 0x2b1   :  { %15259 = vmatpush3.bf16.msra.mxu0 %v17055_v28  ;;  %15265 = vmatpush3.bf16.msra.mxu1 %v17073_v37 }
 0x2b2   :  { %15260 = vmatprep.subr.bf16.mxu0 %v16790_v17  ;;  %15266 = vmatprep.subr.bf16.mxu1 %v16790_v17 }
 0x2b3   :  { %13748 = vmatprep.mubr.msk.f32.mxu0 %vm16791_vm1, %v16792_v26  ;;  %13759 = vmatprep.mubr.msk.f32.mxu1 %vm16791_vm1, %v16792_v26 }
 0x2b5   :  { %15262 = vmatpush3.bf16.msra.mxu0 %v17065_v34  ;;  %15268 = vmatpush3.bf16.msra.mxu1 %v17081_v40 }
 0x2b6   :  { %15269 = vmatprep.subr.bf16.mxu0 %v16790_v17  ;;  %15275 = vmatprep.subr.bf16.mxu1 %v16790_v17 }
 0x2b8   :  { %13749 = vmatmul.mubr.msk.f32.vlgmr.msra.gmra.mrb[12].mxu0 %vm519_vm2, %v1197_v18  ;;  %13760 = vmatmul.mubr.msk.f32.vlgmr.msra.gmra.mrb[16].mxu1 %vm519_vm2, %v1197_v18 }
 0x2b9   :  { %15271 = vmatpush3.bf16.msra.mxu0 %v17037_v16  ;;  %15277 = vmatpush3.bf16.msra.mxu1 %v17051_v27 }
 0x2ba   :  { %15272 = vmatprep.subr.bf16.mxu0 %v16790_v17  ;;  %15278 = vmatprep.subr.bf16.mxu1 %v16790_v17 }
 0x2bb   :  { %13770 = vmatprep.mubr.msk.f32.mxu0 %vm16791_vm1, %v16792_v26  ;;  %13781 = vmatprep.mubr.msk.f32.mxu1 %vm16791_vm1, %v16792_v26 }
 0x2bd   :  { %15274 = vmatpush3.bf16.msra.mxu0 %v17044_v21  ;;  %15280 = vmatpush3.bf16.msra.mxu1 %v17061_v33 }
 0x2be   :  { %15281 = vmatprep.subr.bf16.mxu0 %v16790_v17  ;;  %15287 = vmatprep.subr.bf16.mxu1 %v16790_v17 }
 0x383   :  { %v1266_v19 = vpop.f32.mrb[10].mxu0  ;;  %v1350_v20 = vpop.f32.mrb[14].mxu1 }
 0x384   :  { %v1271_v22 = vrot.slane %v1266_v19, 4  ;;  %v1355_v23 = vrot.slane %v1350_v20, 4  ;;  %v13728_v24 = vpop.f32.mrb[11].mxu0  ;;  %v13739_v25 = vpop.f32.mrb[15].mxu1 }
 0x386   :  { %v1273_v29 = vadd.f32 %v1271_v22, %v17119_v54  ;;  %v1357_v30 = vadd.f32 %v1355_v23, %v17124_v62 }
 0x388   :  { %v12623_v31 = vmul.f32 -1.442695, %v1273_v29  ;;  %v12625_v32 = vmul.f32 -1.442695, %v1357_v30 }
 0x38a   :  { %16114 = vpow2.f32 %v12623_v31 }
 0x38b   :  { %16116 = vpow2.f32 %v12625_v32  ;;  %v1434_v35 = vpop.f32.mrb[12].mxu0  ;;  %v1513_v36 = vpop.f32.mrb[16].mxu1 }
 0x38c   :  { %v1518_v38 = vrot.slane %v1513_v36, 4  ;;  %v13750_v39 = vpop.f32.mrb[13].mxu0  ;;  %v13761_v41 = vpop.f32.mrb[17].mxu1  ;;  %v1439_v42 = vrot.slane %v1434_v35, 4 }
 0x38e   :  { %v1520_v43 = vadd.f32 %v1518_v38, %v17130_v7  ;;  %v1441_v46 = vadd.f32 %v1439_v42, %v17127_v5 }
 0x390   :  { %v12628_v45 = vmul.f32 -1.442695, %v1520_v43 }
 0x392   :  { %16118 = vpow2.f32 %v12628_v45 }
 0x393   :  { %16120 = vtanh.f32 %v1441_v46 }
 0x394   :  { %v16115_v47 = vpop.eup %16114 }
 0x395   :  { %v16117_v49 = vpop.eup %16116  ;;  %v1277_v50 = vadd.f32 1.0, %v16115_v47 }
 0x396   :  { %v1361_v52 = vadd.f32 1.0, %v16117_v49 }
 0x397   :  { %16122 = vrcp.f32 %v1277_v50 }
 0x398   :  { %16124 = vrcp.f32 %v1361_v52 }
 0x39c   :  { %v16119_v53 = vpop.eup %16118 }
 0x39d   :  { %v16121_v55 = vpop.eup %16120  ;;  %v1524_v61 = vadd.f32 1.0, %v16119_v53 }
 0x39f   :  { %16126 = vrcp.f32 %v1524_v61 }
 0x3a1   :  { %v16123_v57 = vpop.eup %16122 }
 0x3a2   :  { %v16125_v59 = vpop.eup %16124  ;;  %v1531_v60 = vmul.f32 %v16123_v57, %v16121_v55 }
 0x3a3   :  { %v1530_v63 = vmul.f32 %v16125_v59, %v1528_v58 }
 0x3a5   :  { %v17207_v0 = vadd.f32 %v1531_v60, %v1530_v63 }
 0x3a7   :  { %16128 = vtanh.f32 %v17207_v0  ;;  %v1873_v41 = vrot.slane %v17207_v0, 6 }
 0x3a9   :  { %v16127_v1 = vpop.eup %16126 }
 0x3b1   :  { %v16129_v2 = vpop.eup %16128 }
 0x3b2   :  { %v1534_v3 = vmul.f32 %v16129_v2, %v16127_v1 }
 0x3b4   :  { %1536 = vst.msk [vmem:[#allocation2] sm:$0x30] %vm1535_vm5, %v1534_v3  ;;  %v1542_v4 = vrot.slane %v1534_v3, 4 }
 0x3b6   :  { %13771 = vmatmul.mubr.msk.f32.vlgmr.msra.gmra.mrb[14].mxu0 %vm519_vm2, %v1542_v4  ;;  %13782 = vmatmul.mubr.msk.f32.vlgmr.msra.gmra.mrb[18].mxu1 %vm519_vm2, %v1542_v4 }
 0x3b7   :  { %15283 = vmatpush3.bf16.msra.mxu0 %v17055_v28  ;;  %15289 = vmatpush3.bf16.msra.mxu1 %v17073_v37 }
 0x3b8   :  { %15284 = vmatprep.subr.bf16.mxu0 %v16790_v17  ;;  %15290 = vmatprep.subr.bf16.mxu1 %v16790_v17 }
 0x3b9   :  { %13792 = vmatprep.mubr.msk.f32.mxu0 %vm16791_vm1, %v16792_v26  ;;  %13803 = vmatprep.mubr.msk.f32.mxu1 %vm16791_vm1, %v16792_v26 }
 0x3bb   :  { %15286 = vmatpush3.bf16.msra.mxu0 %v17065_v34  ;;  %15292 = vmatpush3.bf16.msra.mxu1 %v17081_v40 }
 0x3bc   :  { %15293 = vmatprep.subr.bf16.mxu0 %v16790_v17  ;;  %15299 = vmatprep.subr.bf16.mxu1 %v16790_v17 }
 0x3be   :  { %13793 = vmatmul.mubr.msk.f32.vlgmr.msra.gmra.mrb[16].mxu0 %vm519_vm2, %v1542_v4  ;;  %13804 = vmatmul.mubr.msk.f32.vlgmr.msra.gmra.mrb[20].mxu1 %vm519_vm2, %v1542_v4 }
 0x3bf   :  { %15295 = vmatpush3.bf16.msra.mxu0 %v17037_v16  ;;  %15301 = vmatpush3.bf16.msra.mxu1 %v17051_v27 }
 0x3c0   :  { %15296 = vmatprep.subr.bf16.mxu0 %v16790_v17  ;;  %15302 = vmatprep.subr.bf16.mxu1 %v16790_v17 }
 0x3c1   :  { %13814 = vmatprep.mubr.msk.f32.mxu0 %vm16791_vm1, %v16792_v26  ;;  %13825 = vmatprep.mubr.msk.f32.mxu1 %vm16791_vm1, %v16792_v26 }
 0x3c3   :  { %15298 = vmatpush3.bf16.msra.mxu0 %v17044_v21  ;;  %15304 = vmatpush3.bf16.msra.mxu1 %v17061_v33 }
 0x3c4   :  { %15305 = vmatprep.subr.bf16.mxu0 %v16790_v17  ;;  %15311 = vmatprep.subr.bf16.mxu1 %v16790_v17 }
 0x489   :  { %v1611_v6 = vpop.f32.mrb[14].mxu0  ;;  %v1695_v8 = vpop.f32.mrb[18].mxu1 }
 0x48a   :  { %v1616_v9 = vrot.slane %v1611_v6, 2  ;;  %v1700_v10 = vrot.slane %v1695_v8, 2  ;;  %v13772_v11 = vpop.f32.mrb[15].mxu0  ;;  %v13783_v12 = vpop.f32.mrb[19].mxu1 }
 0x48c   :  { %v1618_v13 = vadd.f32 %v1616_v9, %v17119_v54  ;;  %v1702_v14 = vadd.f32 %v1700_v10, %v17124_v62 }
 0x48e   :  { %v12630_v15 = vmul.f32 -1.442695, %v1618_v13  ;;  %v12632_v18 = vmul.f32 -1.442695, %v1702_v14 }
 0x490   :  { %16130 = vpow2.f32 %v12630_v15 }
 0x491   :  { %16132 = vpow2.f32 %v12632_v18  ;;  %v1779_v19 = vpop.f32.mrb[16].mxu0  ;;  %v1858_v20 = vpop.f32.mrb[20].mxu1 }
 0x492   :  { %v1863_v22 = vrot.slane %v1858_v20, 2  ;;  %v13794_v23 = vpop.f32.mrb[17].mxu0  ;;  %v13805_v24 = vpop.f32.mrb[21].mxu1  ;;  %v1784_v25 = vrot.slane %v1779_v19, 2 }
 0x493   :  { %v2645_v23 = vld [vmem:[#allocation6 + $0x20] sm:$0xff]  ;;  %v2559_v24 = vld [vmem:[#allocation6 + $0x10] sm:$0xff] }
 0x494   :  { %v1865_v29 = vadd.f32 %v1863_v22, %v17130_v7  ;;  %v1786_v31 = vadd.f32 %v1784_v25, %v17127_v5  ;;  %v2560_v25 = vld [vmem:[#allocation6 + $0x18] sm:$0xff] }
 0x496   :  { %v12635_v30 = vmul.f32 -1.442695, %v1865_v29 }
 0x498   :  { %16134 = vpow2.f32 %v12635_v30  ;;  %v2647_v30 = vld [vmem:[#allocation6 + $0x30] sm:$0xff] }
 0x499   :  { %16136 = vtanh.f32 %v1786_v31  ;;  %v2648_v31 = vld [vmem:[#allocation6 + $0x38] sm:$0xff] }
 0x49a   :  { %v16131_v32 = vpop.eup %16130 }
 0x49b   :  { %v16133_v35 = vpop.eup %16132  ;;  %v1622_v54 = vadd.f32 1.0, %v16131_v32  ;;  %v17310_v32 = vpack.c.bf16 %v2560_v25, %v2559_v24 }
 0x49c   :  { %v1706_v62 = vadd.f32 1.0, %v16133_v35  ;;  %v17314_v35 = vpack.c.bf16 %v2648_v31, %v2647_v30 }
 0x49d   :  { %16138 = vrcp.f32 %v1622_v54 }
 0x49e   :  { %16140 = vrcp.f32 %v1706_v62 }
 0x4a2   :  { %v16135_v36 = vpop.eup %16134 }
 0x4a3   :  { %v16137_v38 = vpop.eup %16136  ;;  %v1869_v45 = vadd.f32 1.0, %v16135_v36 }
 0x4a5   :  { %16142 = vrcp.f32 %v1869_v45 }
 0x4a7   :  { %v16139_v39 = vpop.eup %16138 }
 0x4a8   :  { %v16141_v42 = vpop.eup %16140  ;;  %v1876_v43 = vmul.f32 %v16139_v39, %v16137_v38 }
 0x4a9   :  { %v1875_v7 = vmul.f32 %v16141_v42, %v1873_v41 }
 0x4ab   :  { %v17244_v46 = vadd.f32 %v1876_v43, %v1875_v7 }
 0x4ad   :  { %16144 = vtanh.f32 %v17244_v46  ;;  %v2206_v11 = vrot.slane %v17244_v46, 6 }
 0x4af   :  { %v16143_v5 = vpop.eup %16142 }
 0x4b7   :  { %v16145_v47 = vpop.eup %16144 }
 0x4b8   :  { %v1879_v49 = vmul.f32 %v16145_v47, %v16143_v5 }
 0x4ba   :  { %1881 = vst.msk [vmem:[#allocation2] sm:$0xc0] %vm1880_vm6, %v1879_v49  ;;  %v1887_v50 = vrot.slane %v1879_v49, 6 }
 0x4bc   :  { %13815 = vmatmul.mubr.msk.f32.vlgmr.msra.gmra.mrb[18].mxu0 %vm519_vm2, %v1887_v50  ;;  %13826 = vmatmul.mubr.msk.f32.vlgmr.msra.gmra.mrb[22].mxu1 %vm519_vm2, %v1887_v50 }
 0x4bd   :  { %15307 = vmatpush3.bf16.msra.mxu0 %v17055_v28  ;;  %15313 = vmatpush3.bf16.msra.mxu1 %v17073_v37 }
 0x4be   :  { %15308 = vmatprep.subr.bf16.mxu0 %v16790_v17  ;;  %15314 = vmatprep.subr.bf16.mxu1 %v16790_v17 }
 0x4bf   :  { %13836 = vmatprep.mubr.msk.f32.mxu0 %vm16791_vm1, %v16792_v26  ;;  %13847 = vmatprep.mubr.msk.f32.mxu1 %vm16791_vm1, %v16792_v26 }
 0x4c1   :  { %15310 = vmatpush3.bf16.msra.mxu0 %v17065_v34  ;;  %15316 = vmatpush3.bf16.msra.mxu1 %v17081_v40 }
 0x4c2   :  { %15317 = vmatprep.subr.bf16.mxu0 %v16790_v17  ;;  %15323 = vmatprep.subr.bf16.mxu1 %v16790_v17 }
 0x4c4   :  { %13837 = vmatmul.mubr.msk.f32.vlgmr.msra.gmra.mrb[20].mxu0 %vm519_vm2, %v1887_v50  ;;  %13848 = vmatmul.mubr.msk.f32.vlgmr.msra.gmra.mrb[24].mxu1 %vm519_vm2, %v1887_v50 }
 0x4c5   :  { %15319 = vmatpush3.bf16.msra.mxu0 %v17037_v16  ;;  %15325 = vmatpush3.bf16.msra.mxu1 %v17051_v27 }
 0x4c6   :  { %15320 = vmatprep.subr.bf16.mxu0 %v16790_v17  ;;  %15326 = vmatprep.subr.bf16.mxu1 %v16790_v17 }
 0x4c7   :  { %13858 = vmatprep.mubr.msk.f32.mxu0 %vm16791_vm1, %v16792_v26  ;;  %13869 = vmatprep.mubr.msk.f32.mxu1 %vm16791_vm1, %v16792_v26 }
 0x4c9   :  { %15322 = vmatpush3.bf16.msra.mxu0 %v17044_v21  ;;  %15328 = vmatpush3.bf16.msra.mxu1 %v17061_v33 }
 0x4ca   :  { %15329 = vmatprep.subr.bf16.mxu0 %v16790_v17  ;;  %15335 = vmatprep.subr.bf16.mxu1 %v16790_v17 }
 0x58f   :  { %v1956_v16 = vpop.f32.mrb[18].mxu0  ;;  %v2037_v27 = vpop.f32.mrb[22].mxu1 }
 0x590   :  { %v1960_v52 = vadd.f32 %v1956_v16, %v17107_v44  ;;  %v2041_v53 = vadd.f32 %v2037_v27, %v17114_v51  ;;  %v13816_v55 = vpop.f32.mrb[19].mxu0  ;;  %v13827_v57 = vpop.f32.mrb[23].mxu1 }
 0x592   :  { %v12637_v58 = vmul.f32 -1.442695, %v1960_v52  ;;  %v12639_v59 = vmul.f32 -1.442695, %v2041_v53 }
 0x594   :  { %16146 = vpow2.f32 %v12637_v58 }
 0x595   :  { %16148 = vpow2.f32 %v12639_v59 }
 0x597   :  { %v2118_v60 = vpop.f32.mrb[20].mxu0  ;;  %v2194_v21 = vpop.f32.mrb[24].mxu1 }
 0x598   :  { %v2198_v33 = vadd.f32 %v2194_v21, %v17121_v56  ;;  %v13838_v61 = vpop.f32.mrb[21].mxu0  ;;  %v13849_v63 = vpop.f32.mrb[25].mxu1  ;;  %v2122_v1 = vadd.f32 %v2118_v60, %v17112_v48 }
 0x59a   :  { %v12642_v0 = vmul.f32 -1.442695, %v2198_v33 }
 0x59c   :  { %16150 = vpow2.f32 %v12642_v0 }
 0x59d   :  { %16152 = vtanh.f32 %v2122_v1 }
 0x59e   :  { %v16147_v2 = vpop.eup %16146 }
 0x59f   :  { %v16149_v3 = vpop.eup %16148  ;;  %v1964_v4 = vadd.f32 1.0, %v16147_v2 }
 0x5a0   :  { %v2045_v6 = vadd.f32 1.0, %v16149_v3 }
 0x5a1   :  { %16154 = vrcp.f32 %v1964_v4  ;;  %v2729_v4 = vld [vmem:[#allocation6 + $0x40] sm:$0xff] }
 0x5a2   :  { %16156 = vrcp.f32 %v2045_v6 }
 0x5a6   :  { %v16151_v8 = vpop.eup %16150 }
 0x5a7   :  { %v16153_v9 = vpop.eup %16152  ;;  %v2202_v14 = vadd.f32 1.0, %v16151_v8  ;;  %v2730_v8 = vld [vmem:[#allocation6 + $0x48] sm:$0xff] }
 0x5a9   :  { %16158 = vrcp.f32 %v2202_v14 }
 0x5ab   :  { %v16155_v10 = vpop.eup %16154 }
 0x5ac   :  { %v16157_v12 = vpop.eup %16156  ;;  %v2209_v13 = vmul.f32 %v16155_v10, %v16153_v9  ;;  %v2808_v9 = vld [vmem:[#allocation6 + $0x60] sm:$0xff]  ;;  %v2809_v10 = vld [vmem:[#allocation6 + $0x68] sm:$0xff] }
 0x5ad   :  { %v2208_v15 = vmul.f32 %v16157_v12, %v2206_v11  ;;  %v17331_v14 = vpack.c.bf16 %v2809_v10, %v2808_v9  ;;  %v3342_v9 = vld [vmem:[#allocation8 + $0x30] sm:$0xff] }
 0x5af   :  { %v17281_v18 = vadd.f32 %v2209_v13, %v2208_v15  ;;  %v17329_v13 = vpack.c.bf16 %v2730_v8, %v2729_v4  ;;  %v2731_v15 = vld [vmem:[#allocation6 + $0x50] sm:$0xff]  ;;  %v3250_v8 = vld [vmem:[#allocation8 + $0x18] sm:$0xff] }
 0x5b1   :  { %16160 = vtanh.f32 %v17281_v18  ;;  %v2549_v61 = vrot.slane %v17281_v18, 6 }
 0x5b3   :  { %v16159_v19 = vpop.eup %16158 }
 0x5bb   :  { %v16161_v20 = vpop.eup %16160 }
 0x5bc   :  { %v2212_v22 = vmul.f32 %v16161_v20, %v16159_v19  ;;  %v2732_v19 = vld [vmem:[#allocation6 + $0x58] sm:$0xff]  ;;  %v2810_v20 = vld [vmem:[#allocation6 + $0x70] sm:$0xff] }
 0x5be   :  { %2213 = vst.msk [vmem:[#allocation2 + $0x8] sm:$0x3] %vm846_vm3, %v2212_v22  ;;  %13859 = vmatmul.mubr.msk.f32.vlgmr.msra.gmra.mrb[22].mxu0 %vm519_vm2, %v2212_v22  ;;  %13870 = vmatmul.mubr.msk.f32.vlgmr.msra.gmra.mrb[26].mxu1 %vm519_vm2, %v2212_v22 }
 0x5bf   :  { %15331 = vmatpush3.bf16.msra.mxu0 %v17055_v28  ;;  %15337 = vmatpush3.bf16.msra.mxu1 %v17073_v37  ;;  %v2557_v28 = vld [vmem:[#allocation6] sm:$0xff]  ;;  %v2558_v37 = vld [vmem:[#allocation6 + $0x8] sm:$0xff] }
 0x5c0   :  { %15332 = vmatprep.subr.bf16.mxu0 %v16790_v17  ;;  %15338 = vmatprep.subr.bf16.mxu1 %v16790_v17 }
 0x5c1   :  { %13880 = vmatprep.mubr.msk.f32.mxu0 %vm16791_vm1, %v16792_v26  ;;  %13891 = vmatprep.mubr.msk.f32.mxu1 %vm16791_vm1, %v16792_v26 }
 0x5c3   :  { %15334 = vmatpush3.bf16.msra.mxu0 %v17065_v34  ;;  %15340 = vmatpush3.bf16.msra.mxu1 %v17081_v40  ;;  %v17305_v34 = vpack.c.bf16 %v2558_v37, %v2557_v28  ;;  %v2646_v40 = vld [vmem:[#allocation6 + $0x28] sm:$0xff]  ;;  %v17338_v28 = vpack.c.bf16 %v2732_v19, %v2731_v15  ;;  %v3516_v15 = vld [vmem:[#allocation8 + $0x60] sm:$0xff] }
 0x5c4   :  { %15341 = vmatprep.subr.bf16.mxu0 %v16790_v17  ;;  %15347 = vmatprep.subr.bf16.mxu1 %v16790_v17  ;;  %v17307_v29 = vpack.c.bf16 %v2646_v40, %v2645_v23  ;;  %v3517_v19 = vld [vmem:[#allocation8 + $0x68] sm:$0xff] }
 0x5c6   :  { %13881 = vmatmul.mubr.msk.f32.vlgmr.msra.gmra.mrb[24].mxu0 %vm519_vm2, %v2212_v22  ;;  %13892 = vmatmul.mubr.msk.f32.vlgmr.msra.gmra.mrb[28].mxu1 %vm519_vm2, %v2212_v22  ;;  %v2811_v22 = vld [vmem:[#allocation6 + $0x78] sm:$0xff] }
 0x5c7   :  { %13902 = vmatprep.mubr.msk.f32.mxu0 %vm16791_vm1, %v16792_v26  ;;  %13913 = vmatprep.mubr.msk.f32.mxu1 %vm16791_vm1, %v16792_v26  ;;  %v17340_v37 = vpack.c.bf16 %v2811_v22, %v2810_v20  ;;  %v15413_v20 = vpack.c.bf16 %v3517_v19, %v3516_v15  ;;  %v3769_v19 = vld [vmem:[#allocation9 + $0x50] sm:$0xff] }
 0x5c8   :  { %15343 = vmatpush3.bf16.msra.mxu0 %v17305_v34  ;;  %15349 = vmatpush3.bf16.msra.mxu1 %v17307_v29 }
 0x5c9   :  { %15344 = vmatprep.subr.bf16.mxu0 %v16790_v17  ;;  %15350 = vmatprep.subr.bf16.mxu1 %v16790_v17 }
 0x5cc   :  { %15346 = vmatpush3.bf16.msra.mxu0 %v17310_v32  ;;  %15352 = vmatpush3.bf16.msra.mxu1 %v17314_v35 }
 0x5cd   :  { %15353 = vmatprep.subr.bf16.mxu0 %v16790_v17  ;;  %15359 = vmatprep.subr.bf16.mxu1 %v16790_v17 }
 0x691   :  { %v2287_v54 = vpop.f32.mrb[22].mxu0  ;;  %v2371_v62 = vpop.f32.mrb[26].mxu1 }
 0x692   :  { %v2292_v36 = vrot.slane %v2287_v54, 6  ;;  %v2376_v38 = vrot.slane %v2371_v62, 6  ;;  %v13860_v39 = vpop.f32.mrb[23].mxu0  ;;  %v13871_v41 = vpop.f32.mrb[27].mxu1 }
 0x694   :  { %v2294_v42 = vadd.f32 %v2292_v36, %v17107_v44  ;;  %v2378_v43 = vadd.f32 %v2376_v38, %v17114_v51 }
 0x696   :  { %v12644_v45 = vmul.f32 -1.442695, %v2294_v42  ;;  %v12646_v7 = vmul.f32 -1.442695, %v2378_v43 }
 0x698   :  { %16162 = vpow2.f32 %v12644_v45 }
 0x699   :  { %16164 = vpow2.f32 %v12646_v7  ;;  %v2455_v46 = vpop.f32.mrb[24].mxu0  ;;  %v2534_v5 = vpop.f32.mrb[28].mxu1 }
 0x69a   :  { %v2539_v47 = vrot.slane %v2534_v5, 6  ;;  %v13882_v49 = vpop.f32.mrb[25].mxu0  ;;  %v13893_v50 = vpop.f32.mrb[29].mxu1  ;;  %v2460_v16 = vrot.slane %v2455_v46, 6 }
 0x69c   :  { %v2541_v27 = vadd.f32 %v2539_v47, %v17121_v56  ;;  %v2462_v53 = vadd.f32 %v2460_v16, %v17112_v48 }
 0x69e   :  { %v12649_v52 = vmul.f32 -1.442695, %v2541_v27 }
 0x6a0   :  { %16166 = vpow2.f32 %v12649_v52 }
 0x6a1   :  { %16168 = vtanh.f32 %v2462_v53 }
 0x6a2   :  { %v16163_v55 = vpop.eup %16162 }
 0x6a3   :  { %v16165_v57 = vpop.eup %16164  ;;  %v2298_v58 = vadd.f32 1.0, %v16163_v55 }
 0x6a4   :  { %v2382_v59 = vadd.f32 1.0, %v16165_v57 }
 0x6a5   :  { %16170 = vrcp.f32 %v2298_v58 }
 0x6a6   :  { %16172 = vrcp.f32 %v2382_v59 }
 0x6aa   :  { %v16167_v60 = vpop.eup %16166 }
 0x6ab   :  { %v16169_v21 = vpop.eup %16168  ;;  %v2545_v1 = vadd.f32 1.0, %v16167_v60 }
 0x6ad   :  { %16174 = vrcp.f32 %v2545_v1  ;;  %v3340_v1 = vld [vmem:[#allocation8 + $0x20] sm:$0xff] }
 0x6af   :  { %v16171_v33 = vpop.eup %16170 }
 0x6b0   :  { %v16173_v63 = vpop.eup %16172  ;;  %v2552_v0 = vmul.f32 %v16171_v33, %v16169_v21 }
 0x6b1   :  { %v2551_v2 = vmul.f32 %v16173_v63, %v2549_v61  ;;  %v17387_v61 = vld [vmem:[#allocation2] sm:$0xff]  ;;  %v3247_v63 = vld [vmem:[#allocation8] sm:$0xff] }
 0x6b3   :  { %v17326_v3 = vadd.f32 %v2552_v0, %v2551_v2  ;;  %v3248_v0 = vld [vmem:[#allocation8 + $0x8] sm:$0xff] }
 0x6b4   :  { %v15389_v2 = vpack.c.bf16 %v3248_v0, %v3247_v63  ;;  %v3604_v63 = vld [vmem:[#allocation9 + $0x8] sm:$0xff]  ;;  %v3685_v0 = vld [vmem:[#allocation9 + $0x20] sm:$0xff] }
 0x6b5   :  { %16176 = vtanh.f32 %v17326_v3  ;;  %v2893_v27 = vrot.slane %v17326_v3, 6  ;;  %v3341_v3 = vld [vmem:[#allocation8 + $0x28] sm:$0xff] }
 0x6b6   :  { %v15397_v4 = vpack.c.bf16 %v3341_v3, %v3340_v1  ;;  %v3686_v1 = vld [vmem:[#allocation9 + $0x28] sm:$0xff] }
 0x6b7   :  { %v16175_v6 = vpop.eup %16174  ;;  %v17409_v3 = vpack.c.bf16 %v3686_v1, %v3685_v0 }
 0x6bf   :  { %v16177_v11 = vpop.eup %16176 }
 0x6c0   :  { %v2555_v12 = vmul.f32 %v16177_v11, %v16175_v6  ;;  %v3249_v6 = vld [vmem:[#allocation8 + $0x10] sm:$0xff]  ;;  %v3343_v11 = vld [vmem:[#allocation8 + $0x38] sm:$0xff] }
 0x6c1   :  { %v15393_v10 = vpack.c.bf16 %v3250_v8, %v3249_v6  ;;  %v3606_v6 = vld [vmem:[#allocation9 + $0x18] sm:$0xff]  ;;  %v3687_v8 = vld [vmem:[#allocation9 + $0x30] sm:$0xff] }
 0x6c2   :  { %2556 = vst.msk [vmem:[#allocation2 + $0x8] sm:$0xc] %vm1190_vm4, %v2555_v12  ;;  %v2562_v18 = vrot.slane %v2555_v12, 2  ;;  %v15401_v12 = vpack.c.bf16 %v3343_v11, %v3342_v9  ;;  %v3688_v9 = vld [vmem:[#allocation9 + $0x38] sm:$0xff]  ;;  %v3767_v11 = vld [vmem:[#allocation9 + $0x40] sm:$0xff] }
 0x6c4   :  { %13903 = vmatmul.mubr.msk.f32.vlgmr.msra.gmra.mrb[26].mxu0 %vm519_vm2, %v2562_v18  ;;  %13914 = vmatmul.mubr.msk.f32.vlgmr.msra.gmra.mrb[30].mxu1 %vm519_vm2, %v2562_v18 }
 0x6c5   :  { %15355 = vmatpush3.bf16.msra.mxu0 %v17329_v13  ;;  %15361 = vmatpush3.bf16.msra.mxu1 %v17331_v14 }
 0x6c6   :  { %15356 = vmatprep.subr.bf16.mxu0 %v16790_v17  ;;  %15362 = vmatprep.subr.bf16.mxu1 %v16790_v17 }
 0x6c7   :  { %13924 = vmatprep.mubr.msk.f32.mxu0 %vm16791_vm1, %v16792_v26  ;;  %13935 = vmatprep.mubr.msk.f32.mxu1 %vm16791_vm1, %v16792_v26 }
 0x6c9   :  { %15358 = vmatpush3.bf16.msra.mxu0 %v17338_v28  ;;  %15364 = vmatpush3.bf16.msra.mxu1 %v17340_v37 }
 0x6ca   :  { %15365 = vmatprep.subr.bf16.mxu0 %v16790_v17  ;;  %15371 = vmatprep.subr.bf16.mxu1 %v16790_v17 }
 0x6cc   :  { %13925 = vmatmul.mubr.msk.f32.vlgmr.msra.gmra.mrb[28].mxu0 %vm519_vm2, %v2562_v18  ;;  %13936 = vmatmul.mubr.msk.f32.vlgmr.msra.gmra.mrb[32].mxu1 %vm519_vm2, %v2562_v18 }
 0x6cd   :  { %15367 = vmatpush3.bf16.msra.mxu0 %v17305_v34  ;;  %15373 = vmatpush3.bf16.msra.mxu1 %v17307_v29 }
 0x6ce   :  { %15368 = vmatprep.subr.bf16.mxu0 %v16790_v17  ;;  %15374 = vmatprep.subr.bf16.mxu1 %v16790_v17 }
 0x6cf   :  { %13946 = vmatprep.mubr.msk.f32.mxu0 %vm16791_vm1, %v16792_v26  ;;  %13957 = vmatprep.mubr.msk.f32.mxu1 %vm16791_vm1, %v16792_v26 }
 0x6d1   :  { %15370 = vmatpush3.bf16.msra.mxu0 %v17310_v32  ;;  %15376 = vmatpush3.bf16.msra.mxu1 %v17314_v35 }
 0x6d2   :  { %15377 = vmatprep.subr.bf16.mxu0 %v16790_v17  ;;  %15383 = vmatprep.subr.bf16.mxu1 %v16790_v17 }
 0x797   :  { %v2631_v23 = vpop.f32.mrb[26].mxu0  ;;  %v2715_v34 = vpop.f32.mrb[30].mxu1 }
 0x798   :  { %v2636_v40 = vrot.slane %v2631_v23, 4  ;;  %v2720_v24 = vrot.slane %v2715_v34, 4  ;;  %v13904_v25 = vpop.f32.mrb[27].mxu0  ;;  %v13915_v29 = vpop.f32.mrb[31].mxu1 }
 0x79a   :  { %v2638_v30 = vadd.f32 %v2636_v40, %v17107_v44  ;;  %v2722_v31 = vadd.f32 %v2720_v24, %v17114_v51 }
 0x79c   :  { %v12651_v54 = vmul.f32 -1.442695, %v2638_v30  ;;  %v12653_v62 = vmul.f32 -1.442695, %v2722_v31 }
 0x79e   :  { %16178 = vpow2.f32 %v12651_v54 }
 0x79f   :  { %16180 = vpow2.f32 %v12653_v62  ;;  %v2799_v32 = vpop.f32.mrb[28].mxu0  ;;  %v2878_v35 = vpop.f32.mrb[32].mxu1 }
 0x7a0   :  { %v2883_v36 = vrot.slane %v2878_v35, 4  ;;  %v13926_v38 = vpop.f32.mrb[29].mxu0  ;;  %v13937_v39 = vpop.f32.mrb[33].mxu1  ;;  %v2804_v41 = vrot.slane %v2799_v32, 4 }
 0x7a2   :  { %v2885_v42 = vadd.f32 %v2883_v36, %v17121_v56  ;;  %v2806_v45 = vadd.f32 %v2804_v41, %v17112_v48 }
 0x7a4   :  { %v12656_v43 = vmul.f32 -1.442695, %v2885_v42 }
 0x7a6   :  { %16182 = vpow2.f32 %v12656_v43 }
 0x7a7   :  { %16184 = vtanh.f32 %v2806_v45 }
 0x7a8   :  { %v16179_v7 = vpop.eup %16178 }
 0x7a9   :  { %v16181_v46 = vpop.eup %16180  ;;  %v2642_v5 = vadd.f32 1.0, %v16179_v7 }
 0x7aa   :  { %v2726_v47 = vadd.f32 1.0, %v16181_v46 }
 0x7ab   :  { %16186 = vrcp.f32 %v2642_v5 }
 0x7ac   :  { %16188 = vrcp.f32 %v2726_v47 }
 0x7b0   :  { %v16183_v49 = vpop.eup %16182 }
 0x7b1   :  { %v16185_v50 = vpop.eup %16184  ;;  %v2889_v55 = vadd.f32 1.0, %v16183_v49 }
 0x7b3   :  { %16190 = vrcp.f32 %v2889_v55  ;;  %v3431_v55 = vld [vmem:[#allocation8 + $0x58] sm:$0xff] }
 0x7b5   :  { %v16187_v16 = vpop.eup %16186 }
 0x7b6   :  { %v16189_v52 = vpop.eup %16188  ;;  %v2896_v53 = vmul.f32 %v16187_v16, %v16185_v50 }
 0x7b7   :  { %v2895_v57 = vmul.f32 %v16189_v52, %v2893_v27 }
 0x7b9   :  { %v17371_v58 = vadd.f32 %v2896_v53, %v2895_v57  ;;  %v3430_v53 = vld [vmem:[#allocation8 + $0x50] sm:$0xff] }
 0x7ba   :  { %v3518_v57 = vld [vmem:[#allocation8 + $0x70] sm:$0xff] }
 0x7bb   :  { %16192 = vtanh.f32 %v17371_v58  ;;  %v3237_v5 = vrot.slane %v17371_v58, 6  ;;  %v3603_v58 = vld [vmem:[#allocation9] sm:$0xff] }
 0x7bd   :  { %v16191_v59 = vpop.eup %16190 }
 0x7c5   :  { %v16193_v60 = vpop.eup %16192 }
 0x7c6   :  { %v2899_v21 = vmul.f32 %v16193_v60, %v16191_v59  ;;  %v3519_v59 = vld [vmem:[#allocation8 + $0x78] sm:$0xff] }
 0x7c8   :  { %2900 = vst.msk [vmem:[#allocation2 + $0x8] sm:$0x30] %vm1535_vm5, %v2899_v21  ;;  %v2906_v33 = vrot.slane %v2899_v21, 4  ;;  %v15409_v21 = vpack.c.bf16 %v3431_v55, %v3430_v53 }
 0x7ca   :  { %13947 = vmatmul.mubr.msk.f32.vlgmr.msra.gmra.mrb[30].mxu0 %vm519_vm2, %v2906_v33  ;;  %13958 = vmatmul.mubr.msk.f32.vlgmr.msra.gmra.mrb[34].mxu1 %vm519_vm2, %v2906_v33 }
 0x7cb   :  { %15379 = vmatpush3.bf16.msra.mxu0 %v17329_v13  ;;  %15385 = vmatpush3.bf16.msra.mxu1 %v17331_v14  ;;  %v3428_v13 = vld [vmem:[#allocation8 + $0x40] sm:$0xff]  ;;  %v3429_v14 = vld [vmem:[#allocation8 + $0x48] sm:$0xff] }
 0x7cc   :  { %15380 = vmatprep.subr.bf16.mxu0 %v16790_v17  ;;  %15386 = vmatprep.subr.bf16.mxu1 %v16790_v17  ;;  %v15405_v18 = vpack.c.bf16 %v3429_v14, %v3428_v13  ;;  %v3844_v13 = vld [vmem:[#allocation9 + $0x60] sm:$0xff]  ;;  %v3845_v14 = vld [vmem:[#allocation9 + $0x68] sm:$0xff] }
 0x7cd   :  { %13968 = vmatprep.mubr.msk.f32.mxu0 %vm16791_vm1, %v16792_v26  ;;  %13979 = vmatprep.mubr.msk.f32.mxu1 %vm16791_vm1, %v16792_v26 }
 0x7cf   :  { %15382 = vmatpush3.bf16.msra.mxu0 %v17338_v28  ;;  %15388 = vmatpush3.bf16.msra.mxu1 %v17340_v37 }
 0x7d0   :  { %15390 = vmatprep.subr.bf16.mxu0 %v15389_v2  ;;  %15398 = vmatprep.subr.bf16.mxu1 %v15397_v4 }
 0x7d2   :  { %13969 = vmatmul.mubr.msk.f32.vlgmr.msra.gmra.mrb[32].mxu0 %vm519_vm2, %v2906_v33  ;;  %13980 = vmatmul.mubr.msk.f32.vlgmr.msra.gmra.mrb[36].mxu1 %vm519_vm2, %v2906_v33  ;;  %v15417_v33 = vpack.c.bf16 %v3519_v59, %v3518_v57 }
 0x7d3   :  { %13990 = vmatprep.mubr.msk.f32.mxu0 %vm519_vm2, %v17387_v61  ;;  %14001 = vmatprep.mubr.msk.f32.mxu1 %vm519_vm2, %v17387_v61 }
 0x7d4   :  { %15392 = vmatpush3.bf16.msra.mxu0 %v15389_v2  ;;  %15400 = vmatpush3.bf16.msra.mxu1 %v15397_v4  ;;  %v17407_v2 = vpack.c.bf16 %v3604_v63, %v3603_v58  ;;  %v3605_v4 = vld [vmem:[#allocation9 + $0x10] sm:$0xff] }
 0x7d5   :  { %15394 = vmatprep.subr.bf16.mxu0 %v15393_v10  ;;  %15402 = vmatprep.subr.bf16.mxu1 %v15401_v12 }
 0x7d8   :  { %15396 = vmatpush3.bf16.msra.mxu0 %v15393_v10  ;;  %15404 = vmatpush3.bf16.msra.mxu1 %v15401_v12  ;;  %v17419_v10 = vpack.c.bf16 %v3688_v9, %v3687_v8  ;;  %v3768_v12 = vld [vmem:[#allocation9 + $0x48] sm:$0xff] }
 0x7d9   :  { %15406 = vmatprep.subr.bf16.mxu0 %v15405_v18  ;;  %15414 = vmatprep.subr.bf16.mxu1 %v15413_v20  ;;  %v17429_v15 = vpack.c.bf16 %v3768_v12, %v3767_v11 }
 0x89d   :  { %v2975_v22 = vpop.f32.mrb[30].mxu0  ;;  %v3059_v28 = vpop.f32.mrb[34].mxu1 }
 0x89e   :  { %v2980_v37 = vrot.slane %v2975_v22, 2  ;;  %v3064_v23 = vrot.slane %v3059_v28, 2  ;;  %v13948_v34 = vpop.f32.mrb[31].mxu0  ;;  %v13959_v40 = vpop.f32.mrb[35].mxu1  ;;  %v3846_v22 = vld [vmem:[#allocation9 + $0x70] sm:$0xff]  ;;  %v3847_v28 = vld [vmem:[#allocation9 + $0x78] sm:$0xff] }
 0x89f   :  { %v12664_v34 = vld [vmem:[%s18534_s7] ss:$0 sm:$0xff]  ;;  %v12668_v40 = vld [vmem:[%s18534_s7 + $0x1] ss:$0 sm:$0xff] }
 0x8a0   :  { %v2982_v24 = vadd.f32 %v2980_v37, %v17107_v44  ;;  %v3066_v25 = vadd.f32 %v3064_v23, %v17114_v51  ;;  %v17441_v23 = vpack.c.bf16 %v3847_v28, %v3846_v22 }
 0x8a2   :  { %v12658_v29 = vmul.f32 -1.442695, %v2982_v24  ;;  %v12660_v30 = vmul.f32 -1.442695, %v3066_v25 }
 0x8a4   :  { %16194 = vpow2.f32 %v12658_v29 }
 0x8a5   :  { %16196 = vpow2.f32 %v12660_v30  ;;  %v3143_v31 = vpop.f32.mrb[32].mxu0  ;;  %v3222_v54 = vpop.f32.mrb[36].mxu1 }
 0x8a6   :  { %v3227_v62 = vrot.slane %v3222_v54, 2  ;;  %v13970_v32 = vpop.f32.mrb[33].mxu0  ;;  %v13981_v35 = vpop.f32.mrb[37].mxu1  ;;  %v3148_v36 = vrot.slane %v3143_v31, 2 }
 0x8a7   :  { %v12676_v32 = vld [vmem:[%s18534_s7 + $0x3] ss:$0 sm:$0xff] }
 0x8a8   :  { %v3229_v38 = vadd.f32 %v3227_v62, %v17121_v56  ;;  %v3150_v41 = vadd.f32 %v3148_v36, %v17112_v48  ;;  %v12672_v62 = vld [vmem:[%s18534_s7 + $0x2] ss:$0 sm:$0xff] }
 0x8aa   :  { %v12663_v39 = vmul.f32 -1.442695, %v3229_v38 }
 0x8ac   :  { %16198 = vpow2.f32 %v12663_v39 }
 0x8ad   :  { %16200 = vtanh.f32 %v3150_v41 }
 0x8ae   :  { %v16195_v42 = vpop.eup %16194 }
 0x8af   :  { %v16197_v43 = vpop.eup %16196  ;;  %v2986_v44 = vadd.f32 1.0, %v16195_v42 }
 0x8b0   :  { %v3070_v51 = vadd.f32 1.0, %v16197_v43 }
 0x8b1   :  { %16202 = vrcp.f32 %v2986_v44 }
 0x8b2   :  { %16204 = vrcp.f32 %v3070_v51 }
 0x8b6   :  { %v16199_v45 = vpop.eup %16198 }
 0x8b7   :  { %v16201_v7 = vpop.eup %16200  ;;  %v3233_v50 = vadd.f32 1.0, %v16199_v45 }
 0x8b9   :  { %16206 = vrcp.f32 %v3233_v50 }
 0x8bb   :  { %v16203_v46 = vpop.eup %16202 }
 0x8bc   :  { %v16205_v47 = vpop.eup %16204  ;;  %v3240_v49 = vmul.f32 %v16203_v46, %v16201_v7 }
 0x8bd   :  { %v3239_v56 = vmul.f32 %v16205_v47, %v3237_v5 }
 0x8bf   :  { %v3241_v16 = vadd.f32 %v3240_v49, %v3239_v56 }
 0x8c1   :  { %16208 = vtanh.f32 %v3241_v16 }
 0x8c3   :  { %v16207_v48 = vpop.eup %16206 }
 0x8cb   :  { %v16209_v27 = vpop.eup %16208 }
 0x8cc   :  { %v3243_v52 = vmul.f32 %v16209_v27, %v16207_v48 }
 0x8ce   :  { %3244 = vst.msk [vmem:[#allocation2 + $0x8] sm:$0xc0] %vm1880_vm6, %v3243_v52 }
 0x8d5   :  { %v3246_v60 = vld [vmem:[#allocation2 + $0x8] sm:$0xff] }
 0x8d6   :  { %13991 = vmatmul.mubr.msk.f32.vlgmr.msra.gmra.mrb[34].mxu0 %vm519_vm2, %v3246_v60  ;;  %14002 = vmatmul.mubr.msk.f32.vlgmr.msra.gmra.mrb[38].mxu1 %vm519_vm2, %v3246_v60 }
 0x8d7   :  { %15408 = vmatpush3.bf16.msra.mxu0 %v15405_v18  ;;  %15416 = vmatpush3.bf16.msra.mxu1 %v15413_v20  ;;  %v17431_v18 = vpack.c.bf16 %v3845_v14, %v3844_v13  ;;  %v3770_v20 = vld [vmem:[#allocation9 + $0x58] sm:$0xff] }
 0x8d8   :  { %14012 = vmatprep.mubr.msk.f32.mxu0 %vm519_vm2, %v17387_v61  ;;  %14023 = vmatprep.mubr.msk.f32.mxu1 %vm519_vm2, %v17387_v61  ;;  %v17417_v61 = vpack.c.bf16 %v3606_v6, %v3605_v4  ;;  %v17439_v37 = vpack.c.bf16 %v3770_v20, %v3769_v19 }
 0x8d9   :  { %15410 = vmatprep.subr.bf16.mxu0 %v15409_v21  ;;  %15418 = vmatprep.subr.bf16.mxu1 %v15417_v33 }
 0x8db   :  { %15412 = vmatpush3.bf16.msra.mxu0 %v15409_v21  ;;  %15420 = vmatpush3.bf16.msra.mxu1 %v15417_v33 }
 0x8dc   :  { %15421 = vmatprep.subr.bf16.mxu0 %v16790_v17  ;;  %15427 = vmatprep.subr.bf16.mxu1 %v16790_v17 }
 0x8de   :  { %14013 = vmatmul.mubr.msk.f32.vlgmr.msra.gmra.mrb[36].mxu0 %vm519_vm2, %v3246_v60  ;;  %14024 = vmatmul.mubr.msk.f32.vlgmr.msra.gmra.mrb[40].mxu1 %vm519_vm2, %v3246_v60 }
 0x8df   :  { %15423 = vmatpush3.bf16.msra.mxu0 %v17407_v2  ;;  %15429 = vmatpush3.bf16.msra.mxu1 %v17409_v3 }
 0x8e0   :  { %15424 = vmatprep.subr.bf16.mxu0 %v16790_v17  ;;  %15430 = vmatprep.subr.bf16.mxu1 %v16790_v17 }
 0x8e1   :  { %14034 = vmatprep.mubr.msk.f32.mxu0 %vm16791_vm1, %v16792_v26  ;;  %14045 = vmatprep.mubr.msk.f32.mxu1 %vm16791_vm1, %v16792_v26 }
 0x8e3   :  { %15426 = vmatpush3.bf16.msra.mxu0 %v17417_v61  ;;  %15432 = vmatpush3.bf16.msra.mxu1 %v17419_v10 }
 0x8e4   :  { %15433 = vmatprep.subr.bf16.mxu0 %v16790_v17  ;;  %15439 = vmatprep.subr.bf16.mxu1 %v16790_v17 }
 0x8e6   :  { %14035 = vmatmul.mubr.f32.vlgmr.msra.gmra.mrb[38].mxu0 %v16792_v26  ;;  %14046 = vmatmul.mubr.f32.vlgmr.msra.gmra.mrb[42].mxu1 %v16792_v26 }
 0x8e7   :  { %15435 = vmatpush3.bf16.msra.mxu0 %v17429_v15  ;;  %15441 = vmatpush3.bf16.msra.mxu1 %v17431_v18 }
 0x8e8   :  { %15436 = vmatprep.subr.bf16.mxu0 %v16790_v17  ;;  %15442 = vmatprep.subr.bf16.mxu1 %v16790_v17 }
 0x8e9   :  { %14056 = vmatprep.mubr.msk.f32.mxu0 %vm16791_vm1, %v16792_v26  ;;  %14067 = vmatprep.mubr.msk.f32.mxu1 %vm16791_vm1, %v16792_v26 }
 0x8eb   :  { %15438 = vmatpush3.bf16.msra.mxu0 %v17439_v37  ;;  %15444 = vmatpush3.bf16.msra.mxu1 %v17441_v23 }
 0x8ec   :  { %15445 = vmatprep.subr.bf16.mxu0 %v16790_v17  ;;  %15451 = vmatprep.subr.bf16.mxu1 %v16790_v17 }
 0x8ee   :  { %14057 = vmatmul.mubr.f32.vlgmr.msra.gmra.mrb[40].mxu0 %v16792_v26  ;;  %14068 = vmatmul.mubr.f32.vlgmr.msra.gmra.mrb[44].mxu1 %v16792_v26 }
 0x8ef   :  { %15447 = vmatpush3.bf16.msra.mxu0 %v17407_v2  ;;  %15453 = vmatpush3.bf16.msra.mxu1 %v17409_v3 }
 0x8f0   :  { %15448 = vmatprep.subr.bf16.mxu0 %v16790_v17  ;;  %15454 = vmatprep.subr.bf16.mxu1 %v16790_v17 }
 0x8f1   :  { %14078 = vmatprep.mubr.msk.f32.mxu0 %vm16791_vm1, %v16792_v26  ;;  %14089 = vmatprep.mubr.msk.f32.mxu1 %vm16791_vm1, %v16792_v26 }
 0x8f3   :  { %15450 = vmatpush3.bf16.msra.mxu0 %v17417_v61  ;;  %15456 = vmatpush3.bf16.msra.mxu1 %v17419_v10 }
 0x8f4   :  { %15457 = vmatprep.subr.bf16.mxu0 %v16790_v17  ;;  %15463 = vmatprep.subr.bf16.mxu1 %v16790_v17 }
 0x9a9   :  { %v13992_v24 = vpop.f32.mrb[34].mxu0  ;;  %v14003_v25 = vpop.f32.mrb[38].mxu1 }
 0x9aa   :  { %v17473_v29 = vadd.f32 %v13992_v24, %v12664_v34  ;;  %v17475_v30 = vadd.f32 %v14003_v25, %v12668_v40  ;;  %v3330_v31 = vpop.f32.mrb[35].mxu0  ;;  %v3418_v54 = vpop.f32.mrb[39].mxu1 }
 0x9ab   :  { %v17487_v43 = vadd.f32 %v12664_v34, %v3330_v31  ;;  %v17489_v44 = vadd.f32 %v12668_v40, %v3418_v54 }
 0x9b1   :  { %v14014_v35 = vpop.f32.mrb[36].mxu0  ;;  %v14025_v36 = vpop.f32.mrb[40].mxu1 }
 0x9b2   :  { %v17483_v38 = vadd.f32 %v14014_v35, %v12672_v62  ;;  %v17485_v39 = vadd.f32 %v14025_v36, %v12676_v32  ;;  %v3506_v41 = vpop.f32.mrb[37].mxu0  ;;  %v3594_v42 = vpop.f32.mrb[41].mxu1 }
 0x9b3   :  { %v17493_v56 = vadd.f32 %v12676_v32, %v3594_v42  ;;  %v17496_v55 = vadd.f32 %v12672_v62, %v3506_v41 }
 0x9b9   :  { %v3673_v51 = vpop.f32.mrb[38].mxu0  ;;  %v3755_v45 = vpop.f32.mrb[42].mxu1 }
 0x9ba   :  { %v3677_v7 = vadd.f32 %v3673_v51, %v17487_v43  ;;  %v3759_v46 = vadd.f32 %v3755_v45, %v17489_v44  ;;  %v14036_v5 = vpop.f32.mrb[39].mxu0  ;;  %v14047_v47 = vpop.f32.mrb[43].mxu1 }
 0x9bc   :  { %v12679_v49 = vmul.f32 -1.442695, %v3677_v7  ;;  %v12680_v50 = vmul.f32 -1.442695, %v3759_v46 }
 0x9be   :  { %16210 = vpow2.f32 %v12679_v49 }
 0x9bf   :  { %16212 = vpow2.f32 %v12680_v50 }
 0x9c1   :  { %v3837_v16 = vpop.f32.mrb[40].mxu0  ;;  %v3914_v48 = vpop.f32.mrb[44].mxu1 }
 0x9c2   :  { %v3918_v27 = vadd.f32 %v3914_v48, %v17493_v56  ;;  %v14058_v52 = vpop.f32.mrb[41].mxu0  ;;  %v14069_v53 = vpop.f32.mrb[45].mxu1  ;;  %v3841_v59 = vadd.f32 %v3837_v16, %v17496_v55 }
 0x9c4   :  { %v12681_v57 = vmul.f32 -1.442695, %v3918_v27 }
 0x9c6   :  { %16214 = vpow2.f32 %v12681_v57 }
 0x9c7   :  { %16216 = vtanh.f32 %v3841_v59 }
 0x9c8   :  { %v16211_v60 = vpop.eup %16210 }
 0x9c9   :  { %v16213_v21 = vpop.eup %16212  ;;  %v3681_v33 = vadd.f32 1.0, %v16211_v60 }
 0x9ca   :  { %v3763_v58 = vadd.f32 1.0, %v16213_v21 }
 0x9cb   :  { %16218 = vrcp.f32 %v3681_v33 }
 0x9cc   :  { %16220 = vrcp.f32 %v3763_v58 }
 0x9d0   :  { %v16215_v63 = vpop.eup %16214 }
 0x9d1   :  { %v16217_v0 = vpop.eup %16216  ;;  %v3922_v8 = vadd.f32 1.0, %v16215_v63 }
 0x9d3   :  { %16222 = vrcp.f32 %v3922_v8 }
 0x9d5   :  { %v16219_v1 = vpop.eup %16218 }
 0x9d6   :  { %v16221_v4 = vpop.eup %16220  ;;  %v3926_v6 = vmul.f32 %v16219_v1, %v16217_v0 }
 0x9d7   :  { %v3925_v9 = vmul.f32 0.0, %v16221_v4 }
 0x9d9   :  { %v17499_v11 = vadd.f32 %v3926_v6, %v3925_v9 }
 0x9db   :  { %16224 = vtanh.f32 %v17499_v11  ;;  %v4266_v27 = vrot.slane %v17499_v11, 6 }
 0x9dd   :  { %v16223_v12 = vpop.eup %16222 }
 0x9e5   :  { %v16225_v13 = vpop.eup %16224 }
 0x9e6   :  { %v3929_v14 = vmul.f32 %v16225_v13, %v16223_v12 }
 0x9e8   :  { %3930 = vst.msk [vmem:[#allocation2] sm:$0x3] %vm846_vm3, %v3929_v14  ;;  %14079 = vmatmul.mubr.msk.f32.vlgmr.msra.gmra.mrb[42].mxu0 %vm519_vm2, %v3929_v14  ;;  %14090 = vmatmul.mubr.msk.f32.vlgmr.msra.gmra.mrb[46].mxu1 %vm519_vm2, %v3929_v14 }
 0x9e9   :  { %15459 = vmatpush3.bf16.msra.mxu0 %v17429_v15  ;;  %15465 = vmatpush3.bf16.msra.mxu1 %v17431_v18 }
 0x9ea   :  { %15460 = vmatprep.subr.bf16.mxu0 %v16790_v17  ;;  %15466 = vmatprep.subr.bf16.mxu1 %v16790_v17 }
 0x9eb   :  { %14100 = vmatprep.mubr.msk.f32.mxu0 %vm16791_vm1, %v16792_v26  ;;  %14111 = vmatprep.mubr.msk.f32.mxu1 %vm16791_vm1, %v16792_v26 }
 0x9ed   :  { %15462 = vmatpush3.bf16.msra.mxu0 %v17439_v37  ;;  %15468 = vmatpush3.bf16.msra.mxu1 %v17441_v23 }
 0x9ee   :  { %15469 = vmatprep.subr.bf16.mxu0 %v16790_v17  ;;  %15475 = vmatprep.subr.bf16.mxu1 %v16790_v17 }
 0x9f0   :  { %14101 = vmatmul.mubr.msk.f32.vlgmr.msra.gmra.mrb[44].mxu0 %vm519_vm2, %v3929_v14  ;;  %14112 = vmatmul.mubr.msk.f32.vlgmr.msra.gmra.mrb[48].mxu1 %vm519_vm2, %v3929_v14 }
 0x9f1   :  { %15471 = vmatpush3.bf16.msra.mxu0 %v17407_v2  ;;  %15477 = vmatpush3.bf16.msra.mxu1 %v17409_v3 }
 0x9f2   :  { %15472 = vmatprep.subr.bf16.mxu0 %v16790_v17  ;;  %15478 = vmatprep.subr.bf16.mxu1 %v16790_v17 }
 0x9f3   :  { %14122 = vmatprep.mubr.msk.f32.mxu0 %vm16791_vm1, %v16792_v26  ;;  %14133 = vmatprep.mubr.msk.f32.mxu1 %vm16791_vm1, %v16792_v26 }
 0x9f5   :  { %15474 = vmatpush3.bf16.msra.mxu0 %v17417_v61  ;;  %15480 = vmatpush3.bf16.msra.mxu1 %v17419_v10 }
 0x9f6   :  { %15481 = vmatprep.subr.bf16.mxu0 %v16790_v17  ;;  %15487 = vmatprep.subr.bf16.mxu1 %v16790_v17 }
 0xabb   :  { %v4004_v19 = vpop.f32.mrb[42].mxu0  ;;  %v4088_v20 = vpop.f32.mrb[46].mxu1 }
 0xabc   :  { %v4009_v22 = vrot.slane %v4004_v19, 6  ;;  %v4093_v28 = vrot.slane %v4088_v20, 6  ;;  %v14080_v34 = vpop.f32.mrb[43].mxu0  ;;  %v14091_v40 = vpop.f32.mrb[47].mxu1 }
 0xabe   :  { %v4011_v24 = vadd.f32 %v4009_v22, %v17487_v43  ;;  %v4095_v25 = vadd.f32 %v4093_v28, %v17489_v44 }
 0xac0   :  { %v12683_v31 = vmul.f32 -1.442695, %v4011_v24  ;;  %v12685_v54 = vmul.f32 -1.442695, %v4095_v25 }
 0xac2   :  { %16226 = vpow2.f32 %v12683_v31 }
 0xac3   :  { %16228 = vpow2.f32 %v12685_v54  ;;  %v4172_v62 = vpop.f32.mrb[44].mxu0  ;;  %v4251_v32 = vpop.f32.mrb[48].mxu1 }
 0xac4   :  { %v4256_v35 = vrot.slane %v4251_v32, 6  ;;  %v14102_v36 = vpop.f32.mrb[45].mxu0  ;;  %v14113_v41 = vpop.f32.mrb[49].mxu1  ;;  %v4177_v42 = vrot.slane %v4172_v62, 6 }
 0xac6   :  { %v4258_v51 = vadd.f32 %v4256_v35, %v17493_v56  ;;  %v4179_v7 = vadd.f32 %v4177_v42, %v17496_v55 }
 0xac8   :  { %v12688_v45 = vmul.f32 -1.442695, %v4258_v51 }
 0xaca   :  { %16230 = vpow2.f32 %v12688_v45 }
 0xacb   :  { %16232 = vtanh.f32 %v4179_v7 }
 0xacc   :  { %v16227_v46 = vpop.eup %16226 }
 0xacd   :  { %v16229_v5 = vpop.eup %16228  ;;  %v4015_v47 = vadd.f32 1.0, %v16227_v46 }
 0xace   :  { %v4099_v49 = vadd.f32 1.0, %v16229_v5 }
 0xacf   :  { %16234 = vrcp.f32 %v4015_v47 }
 0xad0   :  { %16236 = vrcp.f32 %v4099_v49 }
 0xad4   :  { %v16231_v50 = vpop.eup %16230 }
 0xad5   :  { %v16233_v16 = vpop.eup %16232  ;;  %v4262_v57 = vadd.f32 1.0, %v16231_v50 }
 0xad7   :  { %16238 = vrcp.f32 %v4262_v57 }
 0xad9   :  { %v16235_v48 = vpop.eup %16234 }
 0xada   :  { %v16237_v52 = vpop.eup %16236  ;;  %v4269_v53 = vmul.f32 %v16235_v48, %v16233_v16 }
 0xadb   :  { %v4268_v59 = vmul.f32 %v16237_v52, %v4266_v27 }
 0xadd   :  { %v17536_v60 = vadd.f32 %v4269_v53, %v4268_v59 }
 0xadf   :  { %16240 = vtanh.f32 %v17536_v60  ;;  %v4610_v51 = vrot.slane %v17536_v60, 6 }
 0xae1   :  { %v16239_v21 = vpop.eup %16238 }
 0xae9   :  { %v16241_v33 = vpop.eup %16240 }
 0xaea   :  { %v4272_v58 = vmul.f32 %v16241_v33, %v16239_v21 }
 0xaec   :  { %4273 = vst.msk [vmem:[#allocation2] sm:$0xc] %vm1190_vm4, %v4272_v58  ;;  %v4279_v63 = vrot.slane %v4272_v58, 2 }
 0xaee   :  { %14123 = vmatmul.mubr.msk.f32.vlgmr.msra.gmra.mrb[46].mxu0 %vm519_vm2, %v4279_v63  ;;  %14134 = vmatmul.mubr.msk.f32.vlgmr.msra.gmra.mrb[50].mxu1 %vm519_vm2, %v4279_v63 }
 0xaef   :  { %15483 = vmatpush3.bf16.msra.mxu0 %v17429_v15  ;;  %15489 = vmatpush3.bf16.msra.mxu1 %v17431_v18 }
 0xaf0   :  { %15484 = vmatprep.subr.bf16.mxu0 %v16790_v17  ;;  %15490 = vmatprep.subr.bf16.mxu1 %v16790_v17 }
 0xaf1   :  { %14144 = vmatprep.mubr.msk.f32.mxu0 %vm16791_vm1, %v16792_v26  ;;  %14155 = vmatprep.mubr.msk.f32.mxu1 %vm16791_vm1, %v16792_v26 }
 0xaf3   :  { %15486 = vmatpush3.bf16.msra.mxu0 %v17439_v37  ;;  %15492 = vmatpush3.bf16.msra.mxu1 %v17441_v23 }
 0xaf4   :  { %15493 = vmatprep.subr.bf16.mxu0 %v16790_v17  ;;  %15499 = vmatprep.subr.bf16.mxu1 %v16790_v17 }
 0xaf6   :  { %14145 = vmatmul.mubr.msk.f32.vlgmr.msra.gmra.mrb[48].mxu0 %vm519_vm2, %v4279_v63  ;;  %14156 = vmatmul.mubr.msk.f32.vlgmr.msra.gmra.mrb[52].mxu1 %vm519_vm2, %v4279_v63 }
 0xaf7   :  { %15495 = vmatpush3.bf16.msra.mxu0 %v17407_v2  ;;  %15501 = vmatpush3.bf16.msra.mxu1 %v17409_v3 }
 0xaf8   :  { %15496 = vmatprep.subr.bf16.mxu0 %v16790_v17  ;;  %15502 = vmatprep.subr.bf16.mxu1 %v16790_v17 }
 0xaf9   :  { %14166 = vmatprep.mubr.msk.f32.mxu0 %vm16791_vm1, %v16792_v26  ;;  %14177 = vmatprep.mubr.msk.f32.mxu1 %vm16791_vm1, %v16792_v26 }
 0xafb   :  { %15498 = vmatpush3.bf16.msra.mxu0 %v17417_v61  ;;  %15504 = vmatpush3.bf16.msra.mxu1 %v17419_v10 }
 0xafc   :  { %15505 = vmatprep.subr.bf16.mxu0 %v16790_v17  ;;  %15511 = vmatprep.subr.bf16.mxu1 %v16790_v17 }
 0xbc1   :  { %v4348_v0 = vpop.f32.mrb[46].mxu0  ;;  %v4432_v1 = vpop.f32.mrb[50].mxu1 }
 0xbc2   :  { %v4353_v4 = vrot.slane %v4348_v0, 4  ;;  %v4437_v6 = vrot.slane %v4432_v1, 4  ;;  %v14124_v8 = vpop.f32.mrb[47].mxu0  ;;  %v14135_v9 = vpop.f32.mrb[51].mxu1 }
 0xbc4   :  { %v4355_v11 = vadd.f32 %v4353_v4, %v17487_v43  ;;  %v4439_v12 = vadd.f32 %v4437_v6, %v17489_v44 }
 0xbc6   :  { %v12690_v13 = vmul.f32 -1.442695, %v4355_v11  ;;  %v12692_v14 = vmul.f32 -1.442695, %v4439_v12 }
 0xbc8   :  { %16242 = vpow2.f32 %v12690_v13 }
 0xbc9   :  { %16244 = vpow2.f32 %v12692_v14  ;;  %v4516_v19 = vpop.f32.mrb[48].mxu0  ;;  %v4595_v20 = vpop.f32.mrb[52].mxu1 }
 0xbca   :  { %v4600_v22 = vrot.slane %v4595_v20, 4  ;;  %v14146_v28 = vpop.f32.mrb[49].mxu0  ;;  %v14157_v34 = vpop.f32.mrb[53].mxu1  ;;  %v4521_v40 = vrot.slane %v4516_v19, 4 }
 0xbcc   :  { %v4602_v24 = vadd.f32 %v4600_v22, %v17493_v56  ;;  %v4523_v31 = vadd.f32 %v4521_v40, %v17496_v55 }
 0xbce   :  { %v12695_v25 = vmul.f32 -1.442695, %v4602_v24 }
 0xbd0   :  { %16246 = vpow2.f32 %v12695_v25 }
 0xbd1   :  { %16248 = vtanh.f32 %v4523_v31 }
 0xbd2   :  { %v16243_v54 = vpop.eup %16242 }
 0xbd3   :  { %v16245_v62 = vpop.eup %16244  ;;  %v4359_v32 = vadd.f32 1.0, %v16243_v54 }
 0xbd4   :  { %v4443_v35 = vadd.f32 1.0, %v16245_v62 }
 0xbd5   :  { %16250 = vrcp.f32 %v4359_v32 }
 0xbd6   :  { %16252 = vrcp.f32 %v4443_v35 }
 0xbda   :  { %v16247_v36 = vpop.eup %16246 }
 0xbdb   :  { %v16249_v41 = vpop.eup %16248  ;;  %v4606_v46 = vadd.f32 1.0, %v16247_v36 }
 0xbdd   :  { %16254 = vrcp.f32 %v4606_v46 }
 0xbdf   :  { %v16251_v42 = vpop.eup %16250 }
 0xbe0   :  { %v16253_v45 = vpop.eup %16252  ;;  %v4613_v7 = vmul.f32 %v16251_v42, %v16249_v41 }
 0xbe1   :  { %v4612_v5 = vmul.f32 %v16253_v45, %v4610_v51 }
 0xbe3   :  { %v17573_v47 = vadd.f32 %v4613_v7, %v4612_v5 }
 0xbe5   :  { %16256 = vtanh.f32 %v17573_v47  ;;  %v4954_v34 = vrot.slane %v17573_v47, 6 }
 0xbe7   :  { %v16255_v49 = vpop.eup %16254 }
 0xbef   :  { %v16257_v50 = vpop.eup %16256 }
 0xbf0   :  { %v4616_v16 = vmul.f32 %v16257_v50, %v16255_v49 }
 0xbf2   :  { %4617 = vst.msk [vmem:[#allocation2] sm:$0x30] %vm1535_vm5, %v4616_v16  ;;  %v4623_v48 = vrot.slane %v4616_v16, 4 }
 0xbf4   :  { %14167 = vmatmul.mubr.msk.f32.vlgmr.msra.gmra.mrb[50].mxu0 %vm519_vm2, %v4623_v48  ;;  %14178 = vmatmul.mubr.msk.f32.vlgmr.msra.gmra.mrb[54].mxu1 %vm519_vm2, %v4623_v48 }
 0xbf5   :  { %15507 = vmatpush3.bf16.msra.mxu0 %v17429_v15  ;;  %15513 = vmatpush3.bf16.msra.mxu1 %v17431_v18 }
 0xbf6   :  { %15508 = vmatprep.subr.bf16.mxu0 %v16790_v17  ;;  %15514 = vmatprep.subr.bf16.mxu1 %v16790_v17 }
 0xbf7   :  { %14188 = vmatprep.mubr.msk.f32.mxu0 %vm16791_vm1, %v16792_v26  ;;  %14199 = vmatprep.mubr.msk.f32.mxu1 %vm16791_vm1, %v16792_v26 }
 0xbf9   :  { %15510 = vmatpush3.bf16.msra.mxu0 %v17439_v37  ;;  %15516 = vmatpush3.bf16.msra.mxu1 %v17441_v23 }
 0xbfa   :  { %15517 = vmatprep.subr.bf16.mxu0 %v16790_v17  ;;  %15523 = vmatprep.subr.bf16.mxu1 %v16790_v17 }
 0xbfc   :  { %14189 = vmatmul.mubr.msk.f32.vlgmr.msra.gmra.mrb[52].mxu0 %vm519_vm2, %v4623_v48  ;;  %14200 = vmatmul.mubr.msk.f32.vlgmr.msra.gmra.mrb[56].mxu1 %vm519_vm2, %v4623_v48 }
 0xbfd   :  { %15519 = vmatpush3.bf16.msra.mxu0 %v17407_v2  ;;  %15525 = vmatpush3.bf16.msra.mxu1 %v17409_v3 }
 0xbfe   :  { %15520 = vmatprep.subr.bf16.mxu0 %v16790_v17  ;;  %15526 = vmatprep.subr.bf16.mxu1 %v16790_v17 }
 0xbff   :  { %14210 = vmatprep.mubr.msk.f32.mxu0 %vm16791_vm1, %v16792_v26  ;;  %14221 = vmatprep.mubr.msk.f32.mxu1 %vm16791_vm1, %v16792_v26 }
 0xc01   :  { %15522 = vmatpush3.bf16.msra.mxu0 %v17417_v61  ;;  %15528 = vmatpush3.bf16.msra.mxu1 %v17419_v10 }
 0xc02   :  { %15529 = vmatprep.subr.bf16.mxu0 %v16790_v17  ;;  %15535 = vmatprep.subr.bf16.mxu1 %v16790_v17 }
 0xcc7   :  { %v4692_v27 = vpop.f32.mrb[50].mxu0  ;;  %v4776_v52 = vpop.f32.mrb[54].mxu1 }
 0xcc8   :  { %v4697_v53 = vrot.slane %v4692_v27, 2  ;;  %v4781_v57 = vrot.slane %v4776_v52, 2  ;;  %v14168_v59 = vpop.f32.mrb[51].mxu0  ;;  %v14179_v60 = vpop.f32.mrb[55].mxu1 }
 0xcca   :  { %v4699_v21 = vadd.f32 %v4697_v53, %v17487_v43  ;;  %v4783_v33 = vadd.f32 %v4781_v57, %v17489_v44 }
 0xccc   :  { %v12697_v58 = vmul.f32 -1.442695, %v4699_v21  ;;  %v12699_v63 = vmul.f32 -1.442695, %v4783_v33 }
 0xcce   :  { %16258 = vpow2.f32 %v12697_v58 }
 0xccf   :  { %16260 = vpow2.f32 %v12699_v63  ;;  %v4860_v0 = vpop.f32.mrb[52].mxu0  ;;  %v4939_v1 = vpop.f32.mrb[56].mxu1 }
 0xcd0   :  { %v4944_v4 = vrot.slane %v4939_v1, 2  ;;  %v14190_v6 = vpop.f32.mrb[53].mxu0  ;;  %v14201_v8 = vpop.f32.mrb[57].mxu1  ;;  %v4865_v9 = vrot.slane %v4860_v0, 2 }
 0xcd1   :  { %v5725_v6 = vld [vmem:[#allocation9 + $0x20] sm:$0xff]  ;;  %v5639_v8 = vld [vmem:[#allocation9 + $0x10] sm:$0xff] }
 0xcd2   :  { %v4946_v11 = vadd.f32 %v4944_v4, %v17493_v56  ;;  %v4867_v13 = vadd.f32 %v4865_v9, %v17496_v55  ;;  %v5640_v9 = vld [vmem:[#allocation9 + $0x18] sm:$0xff] }
 0xcd4   :  { %v12702_v12 = vmul.f32 -1.442695, %v4946_v11 }
 0xcd6   :  { %16262 = vpow2.f32 %v12702_v12  ;;  %v5727_v12 = vld [vmem:[#allocation9 + $0x30] sm:$0xff] }
 0xcd7   :  { %16264 = vtanh.f32 %v4867_v13  ;;  %v5728_v13 = vld [vmem:[#allocation9 + $0x38] sm:$0xff] }
 0xcd8   :  { %v16259_v14 = vpop.eup %16258 }
 0xcd9   :  { %v16261_v19 = vpop.eup %16260  ;;  %v4703_v43 = vadd.f32 1.0, %v16259_v14  ;;  %v17676_v14 = vpack.c.bf16 %v5640_v9, %v5639_v8 }
 0xcda   :  { %v4787_v44 = vadd.f32 1.0, %v16261_v19  ;;  %v17680_v19 = vpack.c.bf16 %v5728_v13, %v5727_v12 }
 0xcdb   :  { %16266 = vrcp.f32 %v4703_v43 }
 0xcdc   :  { %16268 = vrcp.f32 %v4787_v44 }
 0xce0   :  { %v16263_v20 = vpop.eup %16262 }
 0xce1   :  { %v16265_v22 = vpop.eup %16264  ;;  %v4950_v25 = vadd.f32 1.0, %v16263_v20 }
 0xce3   :  { %16270 = vrcp.f32 %v4950_v25 }
 0xce5   :  { %v16267_v28 = vpop.eup %16266 }
 0xce6   :  { %v16269_v40 = vpop.eup %16268  ;;  %v4957_v24 = vmul.f32 %v16267_v28, %v16265_v22 }
 0xce7   :  { %v4956_v56 = vmul.f32 %v16269_v40, %v4954_v34 }
 0xce9   :  { %v17610_v31 = vadd.f32 %v4957_v24, %v4956_v56 }
 0xceb   :  { %16272 = vtanh.f32 %v17610_v31  ;;  %v5286_v59 = vrot.slane %v17610_v31, 6 }
 0xced   :  { %v16271_v55 = vpop.eup %16270 }
 0xcf5   :  { %v16273_v54 = vpop.eup %16272 }
 0xcf6   :  { %v4960_v62 = vmul.f32 %v16273_v54, %v16271_v55 }
 0xcf8   :  { %4961 = vst.msk [vmem:[#allocation2] sm:$0xc0] %vm1880_vm6, %v4960_v62  ;;  %v4967_v32 = vrot.slane %v4960_v62, 6 }
 0xcfa   :  { %14211 = vmatmul.mubr.msk.f32.vlgmr.msra.gmra.mrb[54].mxu0 %vm519_vm2, %v4967_v32  ;;  %14222 = vmatmul.mubr.msk.f32.vlgmr.msra.gmra.mrb[58].mxu1 %vm519_vm2, %v4967_v32 }
 0xcfb   :  { %15531 = vmatpush3.bf16.msra.mxu0 %v17429_v15  ;;  %15537 = vmatpush3.bf16.msra.mxu1 %v17431_v18 }
 0xcfc   :  { %15532 = vmatprep.subr.bf16.mxu0 %v16790_v17  ;;  %15538 = vmatprep.subr.bf16.mxu1 %v16790_v17 }
 0xcfd   :  { %14232 = vmatprep.mubr.msk.f32.mxu0 %vm16791_vm1, %v16792_v26  ;;  %14243 = vmatprep.mubr.msk.f32.mxu1 %vm16791_vm1, %v16792_v26 }
 0xcff   :  { %15534 = vmatpush3.bf16.msra.mxu0 %v17439_v37  ;;  %15540 = vmatpush3.bf16.msra.mxu1 %v17441_v23 }
 0xd00   :  { %15541 = vmatprep.subr.bf16.mxu0 %v16790_v17  ;;  %15547 = vmatprep.subr.bf16.mxu1 %v16790_v17 }
 0xd02   :  { %14233 = vmatmul.mubr.msk.f32.vlgmr.msra.gmra.mrb[56].mxu0 %vm519_vm2, %v4967_v32  ;;  %14244 = vmatmul.mubr.msk.f32.vlgmr.msra.gmra.mrb[60].mxu1 %vm519_vm2, %v4967_v32 }
 0xd03   :  { %15543 = vmatpush3.bf16.msra.mxu0 %v17407_v2  ;;  %15549 = vmatpush3.bf16.msra.mxu1 %v17409_v3 }
 0xd04   :  { %15544 = vmatprep.subr.bf16.mxu0 %v16790_v17  ;;  %15550 = vmatprep.subr.bf16.mxu1 %v16790_v17 }
 0xd05   :  { %14254 = vmatprep.mubr.msk.f32.mxu0 %vm16791_vm1, %v16792_v26  ;;  %14265 = vmatprep.mubr.msk.f32.mxu1 %vm16791_vm1, %v16792_v26 }
 0xd07   :  { %15546 = vmatpush3.bf16.msra.mxu0 %v17417_v61  ;;  %15552 = vmatpush3.bf16.msra.mxu1 %v17419_v10 }
 0xd08   :  { %15553 = vmatprep.subr.bf16.mxu0 %v16790_v17  ;;  %15559 = vmatprep.subr.bf16.mxu1 %v16790_v17 }
 0xdcd   :  { %v5036_v2 = vpop.f32.mrb[54].mxu0  ;;  %v5117_v3 = vpop.f32.mrb[58].mxu1 }
 0xdce   :  { %v5040_v35 = vadd.f32 %v5036_v2, %v17473_v29  ;;  %v5121_v36 = vadd.f32 %v5117_v3, %v17475_v30  ;;  %v14212_v41 = vpop.f32.mrb[55].mxu0  ;;  %v14223_v42 = vpop.f32.mrb[59].mxu1 }
 0xdd0   :  { %v12704_v51 = vmul.f32 -1.442695, %v5040_v35  ;;  %v12706_v45 = vmul.f32 -1.442695, %v5121_v36 }
 0xdd2   :  { %16274 = vpow2.f32 %v12704_v51 }
 0xdd3   :  { %16276 = vpow2.f32 %v12706_v45 }
 0xdd5   :  { %v5198_v7 = vpop.f32.mrb[56].mxu0  ;;  %v5274_v61 = vpop.f32.mrb[60].mxu1 }
 0xdd6   :  { %v5278_v10 = vadd.f32 %v5274_v61, %v17485_v39  ;;  %v14234_v46 = vpop.f32.mrb[57].mxu0  ;;  %v14245_v5 = vpop.f32.mrb[61].mxu1  ;;  %v5202_v49 = vadd.f32 %v5198_v7, %v17483_v38 }
 0xdd8   :  { %v12709_v47 = vmul.f32 -1.442695, %v5278_v10 }
 0xdda   :  { %16278 = vpow2.f32 %v12709_v47 }
 0xddb   :  { %16280 = vtanh.f32 %v5202_v49 }
 0xddc   :  { %v16275_v50 = vpop.eup %16274 }
 0xddd   :  { %v16277_v16 = vpop.eup %16276  ;;  %v5044_v48 = vadd.f32 1.0, %v16275_v50 }
 0xdde   :  { %v5125_v27 = vadd.f32 1.0, %v16277_v16 }
 0xddf   :  { %16282 = vrcp.f32 %v5044_v48  ;;  %v5809_v48 = vld [vmem:[#allocation9 + $0x40] sm:$0xff] }
 0xde0   :  { %16284 = vrcp.f32 %v5125_v27 }
 0xde4   :  { %v16279_v52 = vpop.eup %16278 }
 0xde5   :  { %v16281_v53 = vpop.eup %16280  ;;  %v5282_v33 = vadd.f32 1.0, %v16279_v52  ;;  %v5810_v52 = vld [vmem:[#allocation9 + $0x48] sm:$0xff] }
 0xde7   :  { %16286 = vrcp.f32 %v5282_v33 }
 0xde9   :  { %v16283_v57 = vpop.eup %16282 }
 0xdea   :  { %v16285_v60 = vpop.eup %16284  ;;  %v5289_v21 = vmul.f32 %v16283_v57, %v16281_v53  ;;  %v5888_v53 = vld [vmem:[#allocation9 + $0x60] sm:$0xff]  ;;  %v5889_v57 = vld [vmem:[#allocation9 + $0x68] sm:$0xff] }
 0xdeb   :  { %v5288_v58 = vmul.f32 %v16285_v60, %v5286_v59  ;;  %v17697_v33 = vpack.c.bf16 %v5889_v57, %v5888_v53  ;;  %v6422_v53 = vld [vmem:[#allocation11 + $0x30] sm:$0xff] }
 0xded   :  { %v17647_v63 = vadd.f32 %v5289_v21, %v5288_v58  ;;  %v17695_v21 = vpack.c.bf16 %v5810_v52, %v5809_v48  ;;  %v5811_v58 = vld [vmem:[#allocation9 + $0x50] sm:$0xff]  ;;  %v6330_v52 = vld [vmem:[#allocation11 + $0x18] sm:$0xff] }
 0xdef   :  { %16288 = vtanh.f32 %v17647_v63  ;;  %v5629_v46 = vrot.slane %v17647_v63, 6 }
 0xdf1   :  { %v16287_v0 = vpop.eup %16286 }
 0xdf9   :  { %v16289_v1 = vpop.eup %16288 }
 0xdfa   :  { %v5292_v4 = vmul.f32 %v16289_v1, %v16287_v0  ;;  %v5812_v0 = vld [vmem:[#allocation9 + $0x58] sm:$0xff]  ;;  %v5890_v1 = vld [vmem:[#allocation9 + $0x70] sm:$0xff] }
 0xdfc   :  { %5293 = vst.msk [vmem:[#allocation2 + $0x8] sm:$0x3] %vm846_vm3, %v5292_v4  ;;  %14255 = vmatmul.mubr.msk.f32.vlgmr.msra.gmra.mrb[58].mxu0 %vm519_vm2, %v5292_v4  ;;  %14266 = vmatmul.mubr.msk.f32.vlgmr.msra.gmra.mrb[62].mxu1 %vm519_vm2, %v5292_v4 }
 0xdfd   :  { %15555 = vmatpush3.bf16.msra.mxu0 %v17429_v15  ;;  %15561 = vmatpush3.bf16.msra.mxu1 %v17431_v18  ;;  %v5637_v15 = vld [vmem:[#allocation9] sm:$0xff]  ;;  %v5638_v18 = vld [vmem:[#allocation9 + $0x8] sm:$0xff] }
 0xdfe   :  { %15556 = vmatprep.subr.bf16.mxu0 %v16790_v17  ;;  %15562 = vmatprep.subr.bf16.mxu1 %v16790_v17 }
 0xdff   :  { %14276 = vmatprep.mubr.msk.f32.mxu0 %vm16791_vm1, %v16792_v26  ;;  %14287 = vmatprep.mubr.msk.f32.mxu1 %vm16791_vm1, %v16792_v26 }
 0xe01   :  { %15558 = vmatpush3.bf16.msra.mxu0 %v17439_v37  ;;  %15564 = vmatpush3.bf16.msra.mxu1 %v17441_v23  ;;  %v17671_v37 = vpack.c.bf16 %v5638_v18, %v5637_v15  ;;  %v5726_v23 = vld [vmem:[#allocation9 + $0x28] sm:$0xff]  ;;  %v17704_v15 = vpack.c.bf16 %v5812_v0, %v5811_v58 }
 0xe02   :  { %15565 = vmatprep.subr.bf16.mxu0 %v16790_v17  ;;  %15571 = vmatprep.subr.bf16.mxu1 %v16790_v17  ;;  %v17673_v11 = vpack.c.bf16 %v5726_v23, %v5725_v6  ;;  %v6597_v0 = vld [vmem:[#allocation11 + $0x68] sm:$0xff] }
 0xe04   :  { %14277 = vmatmul.mubr.msk.f32.vlgmr.msra.gmra.mrb[60].mxu0 %vm519_vm2, %v5292_v4  ;;  %14288 = vmatmul.mubr.msk.f32.vlgmr.msra.gmra.mrb[64].mxu1 %vm519_vm2, %v5292_v4  ;;  %v5891_v4 = vld [vmem:[#allocation9 + $0x78] sm:$0xff] }
 0xe05   :  { %14298 = vmatprep.mubr.msk.f32.mxu0 %vm16791_vm1, %v16792_v26  ;;  %14309 = vmatprep.mubr.msk.f32.mxu1 %vm16791_vm1, %v16792_v26  ;;  %v17706_v18 = vpack.c.bf16 %v5891_v4, %v5890_v1 }
 0xe06   :  { %15567 = vmatpush3.bf16.msra.mxu0 %v17671_v37  ;;  %15573 = vmatpush3.bf16.msra.mxu1 %v17673_v11 }
 0xe07   :  { %15568 = vmatprep.subr.bf16.mxu0 %v16790_v17  ;;  %15574 = vmatprep.subr.bf16.mxu1 %v16790_v17 }
 0xe0a   :  { %15570 = vmatpush3.bf16.msra.mxu0 %v17676_v14  ;;  %15576 = vmatpush3.bf16.msra.mxu1 %v17680_v19 }
 0xe0b   :  { %15577 = vmatprep.subr.bf16.mxu0 %v16790_v17  ;;  %15583 = vmatprep.subr.bf16.mxu1 %v16790_v17 }
 0xecf   :  { %v5367_v43 = vpop.f32.mrb[58].mxu0  ;;  %v5451_v44 = vpop.f32.mrb[62].mxu1 }
 0xed0   :  { %v5372_v20 = vrot.slane %v5367_v43, 6  ;;  %v5456_v22 = vrot.slane %v5451_v44, 6  ;;  %v14256_v28 = vpop.f32.mrb[59].mxu0  ;;  %v14267_v34 = vpop.f32.mrb[63].mxu1 }
 0xed2   :  { %v5374_v40 = vadd.f32 %v5372_v20, %v17473_v29  ;;  %v5458_v24 = vadd.f32 %v5456_v22, %v17475_v30 }
 0xed4   :  { %v12711_v25 = vmul.f32 -1.442695, %v5374_v40  ;;  %v12713_v56 = vmul.f32 -1.442695, %v5458_v24 }
 0xed6   :  { %16290 = vpow2.f32 %v12711_v25 }
 0xed7   :  { %16292 = vpow2.f32 %v12713_v56  ;;  %v5535_v31 = vpop.f32.mrb[60].mxu0  ;;  %v5614_v55 = vpop.f32.mrb[64].mxu1 }
 0xed8   :  { %v5619_v54 = vrot.slane %v5614_v55, 6  ;;  %v14278_v62 = vpop.f32.mrb[61].mxu0  ;;  %v14289_v32 = vpop.f32.mrb[65].mxu1  ;;  %v5540_v2 = vrot.slane %v5535_v31, 6 }
 0xeda   :  { %v5621_v3 = vadd.f32 %v5619_v54, %v17485_v39  ;;  %v5542_v36 = vadd.f32 %v5540_v2, %v17483_v38 }
 0xedc   :  { %v12716_v35 = vmul.f32 -1.442695, %v5621_v3 }
 0xede   :  { %16294 = vpow2.f32 %v12716_v35 }
 0xedf   :  { %16296 = vtanh.f32 %v5542_v36 }
 0xee0   :  { %v16291_v41 = vpop.eup %16290 }
 0xee1   :  { %v16293_v42 = vpop.eup %16292  ;;  %v5378_v51 = vadd.f32 1.0, %v16291_v41 }
 0xee2   :  { %v5462_v45 = vadd.f32 1.0, %v16293_v42 }
 0xee3   :  { %16298 = vrcp.f32 %v5378_v51 }
 0xee4   :  { %16300 = vrcp.f32 %v5462_v45 }
 0xee8   :  { %v16295_v7 = vpop.eup %16294 }
 0xee9   :  { %v16297_v61 = vpop.eup %16296  ;;  %v5625_v49 = vadd.f32 1.0, %v16295_v7 }
 0xeeb   :  { %16302 = vrcp.f32 %v5625_v49  ;;  %v6420_v49 = vld [vmem:[#allocation11 + $0x20] sm:$0xff] }
 0xeed   :  { %v16299_v10 = vpop.eup %16298 }
 0xeee   :  { %v16301_v5 = vpop.eup %16300  ;;  %v5632_v47 = vmul.f32 %v16299_v10, %v16297_v61 }
 0xeef   :  { %v5631_v50 = vmul.f32 %v16301_v5, %v5629_v46  ;;  %v17755_v46 = vld [vmem:[#allocation2] sm:$0xff]  ;;  %v6327_v5 = vld [vmem:[#allocation11] sm:$0xff] }
 0xef1   :  { %v17692_v16 = vadd.f32 %v5632_v47, %v5631_v50  ;;  %v6328_v47 = vld [vmem:[#allocation11 + $0x8] sm:$0xff] }
 0xef2   :  { %v15613_v50 = vpack.c.bf16 %v6328_v47, %v6327_v5  ;;  %v6684_v5 = vld [vmem:[#allocation12 + $0x8] sm:$0xff]  ;;  %v6765_v47 = vld [vmem:[#allocation12 + $0x20] sm:$0xff] }
 0xef3   :  { %16304 = vtanh.f32 %v17692_v16  ;;  %v5973_v3 = vrot.slane %v17692_v16, 6  ;;  %v6421_v16 = vld [vmem:[#allocation11 + $0x28] sm:$0xff] }
 0xef4   :  { %v15621_v48 = vpack.c.bf16 %v6421_v16, %v6420_v49  ;;  %v6766_v49 = vld [vmem:[#allocation12 + $0x28] sm:$0xff] }
 0xef5   :  { %v16303_v27 = vpop.eup %16302  ;;  %v17779_v16 = vpack.c.bf16 %v6766_v49, %v6765_v47 }
 0xefd   :  { %v16305_v59 = vpop.eup %16304 }
 0xefe   :  { %v5635_v60 = vmul.f32 %v16305_v59, %v16303_v27  ;;  %v6329_v27 = vld [vmem:[#allocation11 + $0x10] sm:$0xff]  ;;  %v6423_v59 = vld [vmem:[#allocation11 + $0x38] sm:$0xff] }
 0xeff   :  { %v15617_v57 = vpack.c.bf16 %v6330_v52, %v6329_v27  ;;  %v6686_v27 = vld [vmem:[#allocation12 + $0x18] sm:$0xff]  ;;  %v6767_v52 = vld [vmem:[#allocation12 + $0x30] sm:$0xff] }
 0xf00   :  { %5636 = vst.msk [vmem:[#allocation2 + $0x8] sm:$0xc] %vm1190_vm4, %v5635_v60  ;;  %v5642_v63 = vrot.slane %v5635_v60, 2  ;;  %v6508_v60 = vld [vmem:[#allocation11 + $0x40] sm:$0xff] }
 0xf02   :  { %14299 = vmatmul.mubr.msk.f32.vlgmr.msra.gmra.mrb[62].mxu0 %vm519_vm2, %v5642_v63  ;;  %14310 = vmatmul.mubr.msk.f32.vlgmr.msra.gmra.mrb[66].mxu1 %vm519_vm2, %v5642_v63 }
 0xf03   :  { %15579 = vmatpush3.bf16.msra.mxu0 %v17695_v21  ;;  %15585 = vmatpush3.bf16.msra.mxu1 %v17697_v33 }
 0xf04   :  { %15580 = vmatprep.subr.bf16.mxu0 %v16790_v17  ;;  %15586 = vmatprep.subr.bf16.mxu1 %v16790_v17 }
 0xf05   :  { %14320 = vmatprep.mubr.msk.f32.mxu0 %vm16791_vm1, %v16792_v26  ;;  %14331 = vmatprep.mubr.msk.f32.mxu1 %vm16791_vm1, %v16792_v26 }
 0xf07   :  { %15582 = vmatpush3.bf16.msra.mxu0 %v17704_v15  ;;  %15588 = vmatpush3.bf16.msra.mxu1 %v17706_v18 }
 0xf08   :  { %15589 = vmatprep.subr.bf16.mxu0 %v16790_v17  ;;  %15595 = vmatprep.subr.bf16.mxu1 %v16790_v17 }
 0xf0a   :  { %14321 = vmatmul.mubr.msk.f32.vlgmr.msra.gmra.mrb[64].mxu0 %vm519_vm2, %v5642_v63  ;;  %14332 = vmatmul.mubr.msk.f32.vlgmr.msra.gmra.mrb[68].mxu1 %vm519_vm2, %v5642_v63  ;;  %v6596_v63 = vld [vmem:[#allocation11 + $0x60] sm:$0xff] }
 0xf0b   :  { %15591 = vmatpush3.bf16.msra.mxu0 %v17671_v37  ;;  %15597 = vmatpush3.bf16.msra.mxu1 %v17673_v11  ;;  %v15637_v1 = vpack.c.bf16 %v6597_v0, %v6596_v63  ;;  %v6849_v0 = vld [vmem:[#allocation12 + $0x50] sm:$0xff] }
 0xf0c   :  { %15592 = vmatprep.subr.bf16.mxu0 %v16790_v17  ;;  %15598 = vmatprep.subr.bf16.mxu1 %v16790_v17 }
 0xf0d   :  { %14342 = vmatprep.mubr.msk.f32.mxu0 %vm16791_vm1, %v16792_v26  ;;  %14353 = vmatprep.mubr.msk.f32.mxu1 %vm16791_vm1, %v16792_v26 }
 0xf0f   :  { %15594 = vmatpush3.bf16.msra.mxu0 %v17676_v14  ;;  %15600 = vmatpush3.bf16.msra.mxu1 %v17680_v19 }
 0xf10   :  { %15601 = vmatprep.subr.bf16.mxu0 %v16790_v17  ;;  %15607 = vmatprep.subr.bf16.mxu1 %v16790_v17 }
 0xfd5   :  { %v5711_v6 = vpop.f32.mrb[62].mxu0  ;;  %v5795_v37 = vpop.f32.mrb[66].mxu1 }
 0xfd6   :  { %v5716_v23 = vrot.slane %v5711_v6, 4  ;;  %v5800_v8 = vrot.slane %v5795_v37, 4  ;;  %v14300_v9 = vpop.f32.mrb[63].mxu0  ;;  %v14311_v11 = vpop.f32.mrb[67].mxu1 }
 0xfd8   :  { %v5718_v12 = vadd.f32 %v5716_v23, %v17473_v29  ;;  %v5802_v13 = vadd.f32 %v5800_v8, %v17475_v30 }
 0xfda   :  { %v12718_v43 = vmul.f32 -1.442695, %v5718_v12  ;;  %v12720_v44 = vmul.f32 -1.442695, %v5802_v13 }
 0xfdc   :  { %16306 = vpow2.f32 %v12718_v43 }
 0xfdd   :  { %16308 = vpow2.f32 %v12720_v44  ;;  %v5879_v14 = vpop.f32.mrb[64].mxu0  ;;  %v5958_v19 = vpop.f32.mrb[68].mxu1 }
 0xfde   :  { %v5963_v20 = vrot.slane %v5958_v19, 4  ;;  %v14322_v22 = vpop.f32.mrb[65].mxu0  ;;  %v14333_v28 = vpop.f32.mrb[69].mxu1  ;;  %v5884_v34 = vrot.slane %v5879_v14, 4 }
 0xfe0   :  { %v5965_v40 = vadd.f32 %v5963_v20, %v17485_v39  ;;  %v5886_v25 = vadd.f32 %v5884_v34, %v17483_v38 }
 0xfe2   :  { %v12723_v24 = vmul.f32 -1.442695, %v5965_v40 }
 0xfe4   :  { %16310 = vpow2.f32 %v12723_v24 }
 0xfe5   :  { %16312 = vtanh.f32 %v5886_v25 }
 0xfe6   :  { %v16307_v56 = vpop.eup %16306 }
 0xfe7   :  { %v16309_v31 = vpop.eup %16308  ;;  %v5722_v55 = vadd.f32 1.0, %v16307_v56 }
 0xfe8   :  { %v5806_v54 = vadd.f32 1.0, %v16309_v31 }
 0xfe9   :  { %16314 = vrcp.f32 %v5722_v55 }
 0xfea   :  { %16316 = vrcp.f32 %v5806_v54 }
 0xfee   :  { %v16311_v62 = vpop.eup %16310 }
 0xfef   :  { %v16313_v32 = vpop.eup %16312  ;;  %v5969_v41 = vadd.f32 1.0, %v16311_v62 }
 0xff1   :  { %16318 = vrcp.f32 %v5969_v41  ;;  %v6511_v41 = vld [vmem:[#allocation11 + $0x58] sm:$0xff] }
 0xff3   :  { %v16315_v2 = vpop.eup %16314 }
 0xff4   :  { %v16317_v35 = vpop.eup %16316  ;;  %v5976_v36 = vmul.f32 %v16315_v2, %v16313_v32 }
 0xff5   :  { %v5975_v42 = vmul.f32 %v16317_v35, %v5973_v3 }
 0xff7   :  { %v17737_v51 = vadd.f32 %v5976_v36, %v5975_v42  ;;  %v6510_v36 = vld [vmem:[#allocation11 + $0x50] sm:$0xff] }
 0xff8   :  { %v6598_v42 = vld [vmem:[#allocation11 + $0x70] sm:$0xff] }
 0xff9   :  { %16320 = vtanh.f32 %v17737_v51  ;;  %v6317_v55 = vrot.slane %v17737_v51, 6  ;;  %v6683_v51 = vld [vmem:[#allocation12] sm:$0xff] }
 0xffb   :  { %v16319_v45 = vpop.eup %16318 }
0x1003   :  { %v16321_v7 = vpop.eup %16320 }
0x1004   :  { %v5979_v61 = vmul.f32 %v16321_v7, %v16319_v45  ;;  %v6599_v45 = vld [vmem:[#allocation11 + $0x78] sm:$0xff] }
0x1006   :  { %5980 = vst.msk [vmem:[#allocation2 + $0x8] sm:$0x30] %vm1535_vm5, %v5979_v61  ;;  %v5986_v10 = vrot.slane %v5979_v61, 4  ;;  %v15633_v61 = vpack.c.bf16 %v6511_v41, %v6510_v36 }
0x1008   :  { %14343 = vmatmul.mubr.msk.f32.vlgmr.msra.gmra.mrb[66].mxu0 %vm519_vm2, %v5986_v10  ;;  %14354 = vmatmul.mubr.msk.f32.vlgmr.msra.gmra.mrb[70].mxu1 %vm519_vm2, %v5986_v10 }
0x1009   :  { %15603 = vmatpush3.bf16.msra.mxu0 %v17695_v21  ;;  %15609 = vmatpush3.bf16.msra.mxu1 %v17697_v33  ;;  %v6509_v21 = vld [vmem:[#allocation11 + $0x48] sm:$0xff]  ;;  %v15625_v33 = vpack.c.bf16 %v6423_v59, %v6422_v53  ;;  %v6768_v53 = vld [vmem:[#allocation12 + $0x38] sm:$0xff]  ;;  %v6847_v59 = vld [vmem:[#allocation12 + $0x40] sm:$0xff] }
0x100a   :  { %15604 = vmatprep.subr.bf16.mxu0 %v16790_v17  ;;  %15610 = vmatprep.subr.bf16.mxu1 %v16790_v17  ;;  %v17761_v58 = vpack.c.bf16 %v6509_v21, %v6508_v60  ;;  %v6848_v60 = vld [vmem:[#allocation12 + $0x48] sm:$0xff]  ;;  %v6924_v21 = vld [vmem:[#allocation12 + $0x60] sm:$0xff] }
0x100b   :  { %14364 = vmatprep.mubr.msk.f32.mxu0 %vm16791_vm1, %v16792_v26  ;;  %14375 = vmatprep.mubr.msk.f32.mxu1 %vm16791_vm1, %v16792_v26 }
0x100d   :  { %15606 = vmatpush3.bf16.msra.mxu0 %v17704_v15  ;;  %15612 = vmatpush3.bf16.msra.mxu1 %v17706_v18 }
0x100e   :  { %15614 = vmatprep.subr.bf16.mxu0 %v15613_v50  ;;  %15622 = vmatprep.subr.bf16.mxu1 %v15621_v48 }
0x1010   :  { %14365 = vmatmul.mubr.msk.f32.vlgmr.msra.gmra.mrb[68].mxu0 %vm519_vm2, %v5986_v10  ;;  %14376 = vmatmul.mubr.msk.f32.vlgmr.msra.gmra.mrb[72].mxu1 %vm519_vm2, %v5986_v10  ;;  %v15641_v10 = vpack.c.bf16 %v6599_v45, %v6598_v42 }
0x1011   :  { %14386 = vmatprep.mubr.msk.f32.mxu0 %vm519_vm2, %v17755_v46  ;;  %14397 = vmatprep.mubr.msk.f32.mxu1 %vm519_vm2, %v17755_v46 }
0x1012   :  { %15616 = vmatpush3.bf16.msra.mxu0 %v15613_v50  ;;  %15624 = vmatpush3.bf16.msra.mxu1 %v15621_v48  ;;  %v17777_v50 = vpack.c.bf16 %v6684_v5, %v6683_v51  ;;  %v6685_v48 = vld [vmem:[#allocation12 + $0x10] sm:$0xff] }
0x1013   :  { %15618 = vmatprep.subr.bf16.mxu0 %v15617_v57  ;;  %15626 = vmatprep.subr.bf16.mxu1 %v15625_v33 }
0x1016   :  { %15620 = vmatpush3.bf16.msra.mxu0 %v15617_v57  ;;  %15628 = vmatpush3.bf16.msra.mxu1 %v15625_v33  ;;  %v17789_v57 = vpack.c.bf16 %v6768_v53, %v6767_v52  ;;  %v6925_v33 = vld [vmem:[#allocation12 + $0x68] sm:$0xff] }
0x1017   :  { %15630 = vmatprep.subr.bf16.mxu0 %v17761_v58  ;;  %15638 = vmatprep.subr.bf16.mxu1 %v15637_v1  ;;  %v17801_v63 = vpack.c.bf16 %v6925_v33, %v6924_v21 }
0x10db   :  { %v6055_v4 = vpop.f32.mrb[66].mxu0  ;;  %v6139_v15 = vpop.f32.mrb[70].mxu1 }
0x10dc   :  { %v6060_v18 = vrot.slane %v6055_v4, 2  ;;  %v6144_v6 = vrot.slane %v6139_v15, 2  ;;  %v14344_v37 = vpop.f32.mrb[67].mxu0  ;;  %v14355_v23 = vpop.f32.mrb[71].mxu1  ;;  %v6926_v4 = vld [vmem:[#allocation12 + $0x70] sm:$0xff]  ;;  %v6927_v15 = vld [vmem:[#allocation12 + $0x78] sm:$0xff] }
0x10dd   :  { %v12731_v37 = vld [vmem:[%s18537_s10] ss:$0 sm:$0xff]  ;;  %v12735_v23 = vld [vmem:[%s18537_s10 + $0x1] ss:$0 sm:$0xff] }
0x10de   :  { %v6062_v8 = vadd.f32 %v6060_v18, %v17473_v29  ;;  %v6146_v9 = vadd.f32 %v6144_v6, %v17475_v30  ;;  %v17811_v6 = vpack.c.bf16 %v6927_v15, %v6926_v4 }
0x10e0   :  { %v12725_v11 = vmul.f32 -1.442695, %v6062_v8  ;;  %v12727_v12 = vmul.f32 -1.442695, %v6146_v9 }
0x10e2   :  { %16322 = vpow2.f32 %v12725_v11 }
0x10e3   :  { %16324 = vpow2.f32 %v12727_v12  ;;  %v6223_v13 = vpop.f32.mrb[68].mxu0  ;;  %v6302_v43 = vpop.f32.mrb[72].mxu1 }
0x10e4   :  { %v6307_v44 = vrot.slane %v6302_v43, 2  ;;  %v14366_v14 = vpop.f32.mrb[69].mxu0  ;;  %v14377_v19 = vpop.f32.mrb[73].mxu1  ;;  %v6228_v20 = vrot.slane %v6223_v13, 2 }
0x10e5   :  { %v12743_v14 = vld [vmem:[%s18537_s10 + $0x3] ss:$0 sm:$0xff] }
0x10e6   :  { %v6309_v22 = vadd.f32 %v6307_v44, %v17485_v39  ;;  %v6230_v34 = vadd.f32 %v6228_v20, %v17483_v38  ;;  %v12739_v44 = vld [vmem:[%s18537_s10 + $0x2] ss:$0 sm:$0xff] }
0x10e8   :  { %v12730_v28 = vmul.f32 -1.442695, %v6309_v22 }
0x10ea   :  { %16326 = vpow2.f32 %v12730_v28 }
0x10eb   :  { %16328 = vtanh.f32 %v6230_v34 }
0x10ec   :  { %v16323_v40 = vpop.eup %16322 }
0x10ed   :  { %v16325_v24 = vpop.eup %16324  ;;  %v6066_v29 = vadd.f32 1.0, %v16323_v40 }
0x10ee   :  { %v6150_v30 = vadd.f32 1.0, %v16325_v24 }
0x10ef   :  { %16330 = vrcp.f32 %v6066_v29 }
0x10f0   :  { %16332 = vrcp.f32 %v6150_v30 }
0x10f4   :  { %v16327_v25 = vpop.eup %16326 }
0x10f5   :  { %v16329_v56 = vpop.eup %16328  ;;  %v6313_v32 = vadd.f32 1.0, %v16327_v25 }
0x10f7   :  { %16334 = vrcp.f32 %v6313_v32 }
0x10f9   :  { %v16331_v31 = vpop.eup %16330 }
0x10fa   :  { %v16333_v54 = vpop.eup %16332  ;;  %v6320_v62 = vmul.f32 %v16331_v31, %v16329_v56 }
0x10fb   :  { %v6319_v39 = vmul.f32 %v16333_v54, %v6317_v55 }
0x10fd   :  { %v6321_v2 = vadd.f32 %v6320_v62, %v6319_v39 }
0x10ff   :  { %16336 = vtanh.f32 %v6321_v2 }
0x1101   :  { %v16335_v38 = vpop.eup %16334 }
0x1109   :  { %v16337_v3 = vpop.eup %16336 }
0x110a   :  { %v6323_v35 = vmul.f32 %v16337_v3, %v16335_v38 }
0x110c   :  { %6324 = vst.msk [vmem:[#allocation2 + $0x8] sm:$0xc0] %vm1880_vm6, %v6323_v35 }
0x1113   :  { %v6326_v7 = vld [vmem:[#allocation2 + $0x8] sm:$0xff] }
0x1114   :  { %14387 = vmatmul.mubr.msk.f32.vlgmr.msra.gmra.mrb[70].mxu0 %vm519_vm2, %v6326_v7  ;;  %14398 = vmatmul.mubr.msk.f32.vlgmr.msra.gmra.mrb[74].mxu1 %vm519_vm2, %v6326_v7 }
0x1115   :  { %15632 = vmatpush3.bf16.msra.mxu0 %v17761_v58  ;;  %15640 = vmatpush3.bf16.msra.mxu1 %v15637_v1  ;;  %v17799_v58 = vpack.c.bf16 %v6848_v60, %v6847_v59  ;;  %v6850_v1 = vld [vmem:[#allocation12 + $0x58] sm:$0xff] }
0x1116   :  { %14408 = vmatprep.mubr.msk.f32.mxu0 %vm519_vm2, %v17755_v46  ;;  %14419 = vmatprep.mubr.msk.f32.mxu1 %vm519_vm2, %v17755_v46  ;;  %v17787_v46 = vpack.c.bf16 %v6686_v27, %v6685_v48  ;;  %v17809_v18 = vpack.c.bf16 %v6850_v1, %v6849_v0 }
0x1117   :  { %15634 = vmatprep.subr.bf16.mxu0 %v15633_v61  ;;  %15642 = vmatprep.subr.bf16.mxu1 %v15641_v10 }
0x1119   :  { %15636 = vmatpush3.bf16.msra.mxu0 %v15633_v61  ;;  %15644 = vmatpush3.bf16.msra.mxu1 %v15641_v10 }
0x111a   :  { %15645 = vmatprep.subr.bf16.mxu0 %v16790_v17  ;;  %15651 = vmatprep.subr.bf16.mxu1 %v16790_v17 }
0x111c   :  { %14409 = vmatmul.mubr.msk.f32.vlgmr.msra.gmra.mrb[72].mxu0 %vm519_vm2, %v6326_v7  ;;  %14420 = vmatmul.mubr.msk.f32.vlgmr.msra.gmra.mrb[76].mxu1 %vm519_vm2, %v6326_v7 }
0x111d   :  { %15647 = vmatpush3.bf16.msra.mxu0 %v17777_v50  ;;  %15653 = vmatpush3.bf16.msra.mxu1 %v17779_v16 }
0x111e   :  { %15648 = vmatprep.subr.bf16.mxu0 %v16790_v17  ;;  %15654 = vmatprep.subr.bf16.mxu1 %v16790_v17 }
0x111f   :  { %14430 = vmatprep.mubr.msk.f32.mxu0 %vm16791_vm1, %v16792_v26  ;;  %14441 = vmatprep.mubr.msk.f32.mxu1 %vm16791_vm1, %v16792_v26 }
0x1121   :  { %15650 = vmatpush3.bf16.msra.mxu0 %v17787_v46  ;;  %15656 = vmatpush3.bf16.msra.mxu1 %v17789_v57 }
0x1122   :  { %15657 = vmatprep.subr.bf16.mxu0 %v16790_v17  ;;  %15663 = vmatprep.subr.bf16.mxu1 %v16790_v17 }
0x1124   :  { %14431 = vmatmul.mubr.f32.vlgmr.msra.gmra.mrb[74].mxu0 %v16792_v26  ;;  %14442 = vmatmul.mubr.f32.vlgmr.msra.gmra.mrb[78].mxu1 %v16792_v26 }
0x1125   :  { %15659 = vmatpush3.bf16.msra.mxu0 %v17799_v58  ;;  %15665 = vmatpush3.bf16.msra.mxu1 %v17801_v63 }
0x1126   :  { %15660 = vmatprep.subr.bf16.mxu0 %v16790_v17  ;;  %15666 = vmatprep.subr.bf16.mxu1 %v16790_v17 }
0x1127   :  { %14452 = vmatprep.mubr.msk.f32.mxu0 %vm16791_vm1, %v16792_v26  ;;  %14463 = vmatprep.mubr.msk.f32.mxu1 %vm16791_vm1, %v16792_v26 }
0x1129   :  { %15662 = vmatpush3.bf16.msra.mxu0 %v17809_v18  ;;  %15668 = vmatpush3.bf16.msra.mxu1 %v17811_v6 }
0x112a   :  { %15669 = vmatprep.subr.bf16.mxu0 %v16790_v17  ;;  %15675 = vmatprep.subr.bf16.mxu1 %v16790_v17 }
0x112c   :  { %14453 = vmatmul.mubr.f32.vlgmr.msra.gmra.mrb[76].mxu0 %v16792_v26  ;;  %14464 = vmatmul.mubr.f32.vlgmr.msra.gmra.mrb[80].mxu1 %v16792_v26 }
0x112d   :  { %15671 = vmatpush3.bf16.msra.mxu0 %v17777_v50  ;;  %15677 = vmatpush3.bf16.msra.mxu1 %v17779_v16 }
0x112e   :  { %15672 = vmatprep.subr.bf16.mxu0 %v16790_v17  ;;  %15678 = vmatprep.subr.bf16.mxu1 %v16790_v17 }
0x112f   :  { %14474 = vmatprep.mubr.msk.f32.mxu0 %vm16791_vm1, %v16792_v26  ;;  %14485 = vmatprep.mubr.msk.f32.mxu1 %vm16791_vm1, %v16792_v26 }
0x1131   :  { %15674 = vmatpush3.bf16.msra.mxu0 %v17787_v46  ;;  %15680 = vmatpush3.bf16.msra.mxu1 %v17789_v57 }
0x1132   :  { %15681 = vmatprep.subr.bf16.mxu0 %v16790_v17  ;;  %15687 = vmatprep.subr.bf16.mxu1 %v16790_v17 }
0x11e7   :  { %v14388_v8 = vpop.f32.mrb[70].mxu0  ;;  %v14399_v9 = vpop.f32.mrb[74].mxu1 }
0x11e8   :  { %v17843_v11 = vadd.f32 %v14388_v8, %v12731_v37  ;;  %v17845_v12 = vadd.f32 %v14399_v9, %v12735_v23  ;;  %v6410_v13 = vpop.f32.mrb[71].mxu0  ;;  %v6498_v43 = vpop.f32.mrb[75].mxu1 }
0x11e9   :  { %v17857_v24 = vadd.f32 %v12731_v37, %v6410_v13  ;;  %v17859_v29 = vadd.f32 %v12735_v23, %v6498_v43 }
0x11ef   :  { %v14410_v19 = vpop.f32.mrb[72].mxu0  ;;  %v14421_v20 = vpop.f32.mrb[76].mxu1 }
0x11f0   :  { %v17853_v22 = vadd.f32 %v14410_v19, %v12739_v44  ;;  %v17855_v28 = vadd.f32 %v14421_v20, %v12743_v14  ;;  %v6586_v34 = vpop.f32.mrb[73].mxu0  ;;  %v6674_v40 = vpop.f32.mrb[77].mxu1 }
0x11f1   :  { %v17863_v39 = vadd.f32 %v12743_v14, %v6674_v40  ;;  %v17866_v41 = vadd.f32 %v12739_v44, %v6586_v34 }
0x11f7   :  { %v6753_v30 = vpop.f32.mrb[74].mxu0  ;;  %v6835_v25 = vpop.f32.mrb[78].mxu1 }
0x11f8   :  { %v6757_v56 = vadd.f32 %v6753_v30, %v17857_v24  ;;  %v6839_v31 = vadd.f32 %v6835_v25, %v17859_v29  ;;  %v14432_v55 = vpop.f32.mrb[75].mxu0  ;;  %v14443_v54 = vpop.f32.mrb[79].mxu1 }
0x11fa   :  { %v12746_v62 = vmul.f32 -1.442695, %v6757_v56  ;;  %v12747_v32 = vmul.f32 -1.442695, %v6839_v31 }
0x11fc   :  { %16338 = vpow2.f32 %v12746_v62 }
0x11fd   :  { %16340 = vpow2.f32 %v12747_v32 }
0x11ff   :  { %v6917_v2 = vpop.f32.mrb[76].mxu0  ;;  %v6994_v38 = vpop.f32.mrb[80].mxu1 }
0x1200   :  { %v6998_v3 = vadd.f32 %v6994_v38, %v17863_v39  ;;  %v14454_v35 = vpop.f32.mrb[77].mxu0  ;;  %v14465_v36 = vpop.f32.mrb[81].mxu1  ;;  %v6921_v45 = vadd.f32 %v6917_v2, %v17866_v41 }
0x1202   :  { %v12748_v42 = vmul.f32 -1.442695, %v6998_v3 }
0x1204   :  { %16342 = vpow2.f32 %v12748_v42 }
0x1205   :  { %16344 = vtanh.f32 %v6921_v45 }
0x1206   :  { %v16339_v7 = vpop.eup %16338 }
0x1207   :  { %v16341_v61 = vpop.eup %16340  ;;  %v6761_v10 = vadd.f32 1.0, %v16339_v7 }
0x1208   :  { %v6843_v51 = vadd.f32 1.0, %v16341_v61 }
0x1209   :  { %16346 = vrcp.f32 %v6761_v10 }
0x120a   :  { %16348 = vrcp.f32 %v6843_v51 }
0x120e   :  { %v16343_v5 = vpop.eup %16342 }
0x120f   :  { %v16345_v47 = vpop.eup %16344  ;;  %v7002_v52 = vadd.f32 1.0, %v16343_v5 }
0x1211   :  { %16350 = vrcp.f32 %v7002_v52 }
0x1213   :  { %v16347_v49 = vpop.eup %16346 }
0x1214   :  { %v16349_v48 = vpop.eup %16348  ;;  %v7006_v27 = vmul.f32 %v16347_v49, %v16345_v47 }
0x1215   :  { %v7005_v53 = vmul.f32 0.0, %v16349_v48 }
0x1217   :  { %v17869_v59 = vadd.f32 %v7006_v27, %v7005_v53 }
0x1219   :  { %16352 = vtanh.f32 %v17869_v59  ;;  %v7346_v3 = vrot.slane %v17869_v59, 6 }
0x121b   :  { %v16351_v60 = vpop.eup %16350 }
0x1223   :  { %v16353_v21 = vpop.eup %16352 }
0x1224   :  { %v7009_v33 = vmul.f32 %v16353_v21, %v16351_v60 }
0x1226   :  { %7010 = vst.msk [vmem:[#allocation2] sm:$0x3] %vm846_vm3, %v7009_v33  ;;  %14475 = vmatmul.mubr.msk.f32.vlgmr.msra.gmra.mrb[78].mxu0 %vm519_vm2, %v7009_v33  ;;  %14486 = vmatmul.mubr.msk.f32.vlgmr.msra.gmra.mrb[82].mxu1 %vm519_vm2, %v7009_v33 }
0x1227   :  { %15683 = vmatpush3.bf16.msra.mxu0 %v17799_v58  ;;  %15689 = vmatpush3.bf16.msra.mxu1 %v17801_v63 }
0x1228   :  { %15684 = vmatprep.subr.bf16.mxu0 %v16790_v17  ;;  %15690 = vmatprep.subr.bf16.mxu1 %v16790_v17 }
0x1229   :  { %14496 = vmatprep.mubr.msk.f32.mxu0 %vm16791_vm1, %v16792_v26  ;;  %14507 = vmatprep.mubr.msk.f32.mxu1 %vm16791_vm1, %v16792_v26 }
0x122b   :  { %15686 = vmatpush3.bf16.msra.mxu0 %v17809_v18  ;;  %15692 = vmatpush3.bf16.msra.mxu1 %v17811_v6 }
0x122c   :  { %15693 = vmatprep.subr.bf16.mxu0 %v16790_v17  ;;  %15699 = vmatprep.subr.bf16.mxu1 %v16790_v17 }
0x122e   :  { %14497 = vmatmul.mubr.msk.f32.vlgmr.msra.gmra.mrb[80].mxu0 %vm519_vm2, %v7009_v33  ;;  %14508 = vmatmul.mubr.msk.f32.vlgmr.msra.gmra.mrb[84].mxu1 %vm519_vm2, %v7009_v33 }
0x122f   :  { %15695 = vmatpush3.bf16.msra.mxu0 %v17777_v50  ;;  %15701 = vmatpush3.bf16.msra.mxu1 %v17779_v16 }
0x1230   :  { %15696 = vmatprep.subr.bf16.mxu0 %v16790_v17  ;;  %15702 = vmatprep.subr.bf16.mxu1 %v16790_v17 }
0x1231   :  { %14518 = vmatprep.mubr.msk.f32.mxu0 %vm16791_vm1, %v16792_v26  ;;  %14529 = vmatprep.mubr.msk.f32.mxu1 %vm16791_vm1, %v16792_v26 }
0x1233   :  { %15698 = vmatpush3.bf16.msra.mxu0 %v17787_v46  ;;  %15704 = vmatpush3.bf16.msra.mxu1 %v17789_v57 }
0x1234   :  { %15705 = vmatprep.subr.bf16.mxu0 %v16790_v17  ;;  %15711 = vmatprep.subr.bf16.mxu1 %v16790_v17 }
0x12f9   :  { %v7084_v0 = vpop.f32.mrb[78].mxu0  ;;  %v7168_v1 = vpop.f32.mrb[82].mxu1 }
0x12fa   :  { %v7089_v4 = vrot.slane %v7084_v0, 6  ;;  %v7173_v15 = vrot.slane %v7168_v1, 6  ;;  %v14476_v37 = vpop.f32.mrb[79].mxu0  ;;  %v14487_v23 = vpop.f32.mrb[83].mxu1 }
0x12fc   :  { %v7091_v8 = vadd.f32 %v7089_v4, %v17857_v24  ;;  %v7175_v9 = vadd.f32 %v7173_v15, %v17859_v29 }
0x12fe   :  { %v12750_v13 = vmul.f32 -1.442695, %v7091_v8  ;;  %v12752_v43 = vmul.f32 -1.442695, %v7175_v9 }
0x1300   :  { %16354 = vpow2.f32 %v12750_v13 }
0x1301   :  { %16356 = vpow2.f32 %v12752_v43  ;;  %v7252_v44 = vpop.f32.mrb[80].mxu0  ;;  %v7331_v14 = vpop.f32.mrb[84].mxu1 }
0x1302   :  { %v7336_v19 = vrot.slane %v7331_v14, 6  ;;  %v14498_v20 = vpop.f32.mrb[81].mxu0  ;;  %v14509_v34 = vpop.f32.mrb[85].mxu1  ;;  %v7257_v40 = vrot.slane %v7252_v44, 6 }
0x1304   :  { %v7338_v30 = vadd.f32 %v7336_v19, %v17863_v39  ;;  %v7259_v56 = vadd.f32 %v7257_v40, %v17866_v41 }
0x1306   :  { %v12755_v25 = vmul.f32 -1.442695, %v7338_v30 }
0x1308   :  { %16358 = vpow2.f32 %v12755_v25 }
0x1309   :  { %16360 = vtanh.f32 %v7259_v56 }
0x130a   :  { %v16355_v31 = vpop.eup %16354 }
0x130b   :  { %v16357_v55 = vpop.eup %16356  ;;  %v7095_v54 = vadd.f32 1.0, %v16355_v31 }
0x130c   :  { %v7179_v62 = vadd.f32 1.0, %v16357_v55 }
0x130d   :  { %16362 = vrcp.f32 %v7095_v54 }
0x130e   :  { %16364 = vrcp.f32 %v7179_v62 }
0x1312   :  { %v16359_v32 = vpop.eup %16358 }
0x1313   :  { %v16361_v2 = vpop.eup %16360  ;;  %v7342_v42 = vadd.f32 1.0, %v16359_v32 }
0x1315   :  { %16366 = vrcp.f32 %v7342_v42 }
0x1317   :  { %v16363_v38 = vpop.eup %16362 }
0x1318   :  { %v16365_v35 = vpop.eup %16364  ;;  %v7349_v36 = vmul.f32 %v16363_v38, %v16361_v2 }
0x1319   :  { %v7348_v45 = vmul.f32 %v16365_v35, %v7346_v3 }
0x131b   :  { %v17906_v7 = vadd.f32 %v7349_v36, %v7348_v45 }
0x131d   :  { %16368 = vtanh.f32 %v17906_v7  ;;  %v7690_v30 = vrot.slane %v17906_v7, 6 }
0x131f   :  { %v16367_v61 = vpop.eup %16366 }
0x1327   :  { %v16369_v10 = vpop.eup %16368 }
0x1328   :  { %v7352_v51 = vmul.f32 %v16369_v10, %v16367_v61 }
0x132a   :  { %7353 = vst.msk [vmem:[#allocation2] sm:$0xc] %vm1190_vm4, %v7352_v51  ;;  %v7359_v5 = vrot.slane %v7352_v51, 2 }
0x132c   :  { %14519 = vmatmul.mubr.msk.f32.vlgmr.msra.gmra.mrb[82].mxu0 %vm519_vm2, %v7359_v5  ;;  %14530 = vmatmul.mubr.msk.f32.vlgmr.msra.gmra.mrb[86].mxu1 %vm519_vm2, %v7359_v5 }
0x132d   :  { %15707 = vmatpush3.bf16.msra.mxu0 %v17799_v58  ;;  %15713 = vmatpush3.bf16.msra.mxu1 %v17801_v63 }
0x132e   :  { %15708 = vmatprep.subr.bf16.mxu0 %v16790_v17  ;;  %15714 = vmatprep.subr.bf16.mxu1 %v16790_v17 }
0x132f   :  { %14540 = vmatprep.mubr.msk.f32.mxu0 %vm16791_vm1, %v16792_v26  ;;  %14551 = vmatprep.mubr.msk.f32.mxu1 %vm16791_vm1, %v16792_v26 }
0x1331   :  { %15710 = vmatpush3.bf16.msra.mxu0 %v17809_v18  ;;  %15716 = vmatpush3.bf16.msra.mxu1 %v17811_v6 }
0x1332   :  { %15717 = vmatprep.subr.bf16.mxu0 %v16790_v17  ;;  %15723 = vmatprep.subr.bf16.mxu1 %v16790_v17 }
0x1334   :  { %14541 = vmatmul.mubr.msk.f32.vlgmr.msra.gmra.mrb[84].mxu0 %vm519_vm2, %v7359_v5  ;;  %14552 = vmatmul.mubr.msk.f32.vlgmr.msra.gmra.mrb[88].mxu1 %vm519_vm2, %v7359_v5 }
0x1335   :  { %15719 = vmatpush3.bf16.msra.mxu0 %v17777_v50  ;;  %15725 = vmatpush3.bf16.msra.mxu1 %v17779_v16 }
0x1336   :  { %15720 = vmatprep.subr.bf16.mxu0 %v16790_v17  ;;  %15726 = vmatprep.subr.bf16.mxu1 %v16790_v17 }
0x1337   :  { %14562 = vmatprep.mubr.msk.f32.mxu0 %vm16791_vm1, %v16792_v26  ;;  %14573 = vmatprep.mubr.msk.f32.mxu1 %vm16791_vm1, %v16792_v26 }
0x1339   :  { %15722 = vmatpush3.bf16.msra.mxu0 %v17787_v46  ;;  %15728 = vmatpush3.bf16.msra.mxu1 %v17789_v57 }
0x133a   :  { %15729 = vmatprep.subr.bf16.mxu0 %v16790_v17  ;;  %15735 = vmatprep.subr.bf16.mxu1 %v16790_v17 }
0x13ff   :  { %v7428_v47 = vpop.f32.mrb[82].mxu0  ;;  %v7512_v49 = vpop.f32.mrb[86].mxu1 }
0x1400   :  { %v7433_v48 = vrot.slane %v7428_v47, 4  ;;  %v7517_v27 = vrot.slane %v7512_v49, 4  ;;  %v14520_v52 = vpop.f32.mrb[83].mxu0  ;;  %v14531_v53 = vpop.f32.mrb[87].mxu1 }
0x1402   :  { %v7435_v59 = vadd.f32 %v7433_v48, %v17857_v24  ;;  %v7519_v60 = vadd.f32 %v7517_v27, %v17859_v29 }
0x1404   :  { %v12757_v21 = vmul.f32 -1.442695, %v7435_v59  ;;  %v12759_v33 = vmul.f32 -1.442695, %v7519_v60 }
0x1406   :  { %16370 = vpow2.f32 %v12757_v21 }
0x1407   :  { %16372 = vpow2.f32 %v12759_v33  ;;  %v7596_v0 = vpop.f32.mrb[84].mxu0  ;;  %v7675_v1 = vpop.f32.mrb[88].mxu1 }
0x1408   :  { %v7680_v4 = vrot.slane %v7675_v1, 4  ;;  %v14542_v15 = vpop.f32.mrb[85].mxu0  ;;  %v14553_v37 = vpop.f32.mrb[89].mxu1  ;;  %v7601_v23 = vrot.slane %v7596_v0, 4 }
0x140a   :  { %v7682_v8 = vadd.f32 %v7680_v4, %v17863_v39  ;;  %v7603_v13 = vadd.f32 %v7601_v23, %v17866_v41 }
0x140c   :  { %v12762_v9 = vmul.f32 -1.442695, %v7682_v8 }
0x140e   :  { %16374 = vpow2.f32 %v12762_v9 }
0x140f   :  { %16376 = vtanh.f32 %v7603_v13 }
0x1410   :  { %v16371_v43 = vpop.eup %16370 }
0x1411   :  { %v16373_v44 = vpop.eup %16372  ;;  %v7439_v14 = vadd.f32 1.0, %v16371_v43 }
0x1412   :  { %v7523_v19 = vadd.f32 1.0, %v16373_v44 }
0x1413   :  { %16378 = vrcp.f32 %v7439_v14 }
0x1414   :  { %16380 = vrcp.f32 %v7523_v19 }
0x1418   :  { %v16375_v20 = vpop.eup %16374 }
0x1419   :  { %v16377_v34 = vpop.eup %16376  ;;  %v7686_v31 = vadd.f32 1.0, %v16375_v20 }
0x141b   :  { %16382 = vrcp.f32 %v7686_v31 }
0x141d   :  { %v16379_v40 = vpop.eup %16378 }
0x141e   :  { %v16381_v25 = vpop.eup %16380  ;;  %v7693_v56 = vmul.f32 %v16379_v40, %v16377_v34 }
0x141f   :  { %v7692_v55 = vmul.f32 %v16381_v25, %v7690_v30 }
0x1421   :  { %v17943_v54 = vadd.f32 %v7693_v56, %v7692_v55 }
0x1423   :  { %16384 = vtanh.f32 %v17943_v54  ;;  %v8034_v37 = vrot.slane %v17943_v54, 6 }
0x1425   :  { %v16383_v62 = vpop.eup %16382 }
0x142d   :  { %v16385_v32 = vpop.eup %16384 }
0x142e   :  { %v7696_v2 = vmul.f32 %v16385_v32, %v16383_v62 }
0x1430   :  { %7697 = vst.msk [vmem:[#allocation2] sm:$0x30] %vm1535_vm5, %v7696_v2  ;;  %v7703_v38 = vrot.slane %v7696_v2, 4 }
0x1432   :  { %14563 = vmatmul.mubr.msk.f32.vlgmr.msra.gmra.mrb[86].mxu0 %vm519_vm2, %v7703_v38  ;;  %14574 = vmatmul.mubr.msk.f32.vlgmr.msra.gmra.mrb[90].mxu1 %vm519_vm2, %v7703_v38 }
0x1433   :  { %15731 = vmatpush3.bf16.msra.mxu0 %v17799_v58  ;;  %15737 = vmatpush3.bf16.msra.mxu1 %v17801_v63 }
0x1434   :  { %15732 = vmatprep.subr.bf16.mxu0 %v16790_v17  ;;  %15738 = vmatprep.subr.bf16.mxu1 %v16790_v17 }
0x1435   :  { %14584 = vmatprep.mubr.msk.f32.mxu0 %vm16791_vm1, %v16792_v26  ;;  %14595 = vmatprep.mubr.msk.f32.mxu1 %vm16791_vm1, %v16792_v26 }
0x1437   :  { %15734 = vmatpush3.bf16.msra.mxu0 %v17809_v18  ;;  %15740 = vmatpush3.bf16.msra.mxu1 %v17811_v6 }
0x1438   :  { %15741 = vmatprep.subr.bf16.mxu0 %v16790_v17  ;;  %15747 = vmatprep.subr.bf16.mxu1 %v16790_v17 }
0x143a   :  { %14585 = vmatmul.mubr.msk.f32.vlgmr.msra.gmra.mrb[88].mxu0 %vm519_vm2, %v7703_v38  ;;  %14596 = vmatmul.mubr.msk.f32.vlgmr.msra.gmra.mrb[92].mxu1 %vm519_vm2, %v7703_v38 }
0x143b   :  { %15743 = vmatpush3.bf16.msra.mxu0 %v17777_v50  ;;  %15749 = vmatpush3.bf16.msra.mxu1 %v17779_v16 }
0x143c   :  { %15744 = vmatprep.subr.bf16.mxu0 %v16790_v17  ;;  %15750 = vmatprep.subr.bf16.mxu1 %v16790_v17 }
0x143d   :  { %14606 = vmatprep.mubr.msk.f32.mxu0 %vm16791_vm1, %v16792_v26  ;;  %14617 = vmatprep.mubr.msk.f32.mxu1 %vm16791_vm1, %v16792_v26 }
0x143f   :  { %15746 = vmatpush3.bf16.msra.mxu0 %v17787_v46  ;;  %15752 = vmatpush3.bf16.msra.mxu1 %v17789_v57 }
0x1440   :  { %15753 = vmatprep.subr.bf16.mxu0 %v16790_v17  ;;  %15759 = vmatprep.subr.bf16.mxu1 %v16790_v17 }
0x1505   :  { %v7772_v3 = vpop.f32.mrb[86].mxu0  ;;  %v7856_v35 = vpop.f32.mrb[90].mxu1 }
0x1506   :  { %v7777_v36 = vrot.slane %v7772_v3, 2  ;;  %v7861_v42 = vrot.slane %v7856_v35, 2  ;;  %v14564_v45 = vpop.f32.mrb[87].mxu0  ;;  %v14575_v7 = vpop.f32.mrb[91].mxu1 }
0x1508   :  { %v7779_v61 = vadd.f32 %v7777_v36, %v17857_v24  ;;  %v7863_v10 = vadd.f32 %v7861_v42, %v17859_v29 }
0x150a   :  { %v12764_v51 = vmul.f32 -1.442695, %v7779_v61  ;;  %v12766_v5 = vmul.f32 -1.442695, %v7863_v10 }
0x150c   :  { %16386 = vpow2.f32 %v12764_v51 }
0x150d   :  { %16388 = vpow2.f32 %v12766_v5  ;;  %v7940_v47 = vpop.f32.mrb[88].mxu0  ;;  %v8019_v49 = vpop.f32.mrb[92].mxu1 }
0x150e   :  { %v8024_v48 = vrot.slane %v8019_v49, 2  ;;  %v14586_v27 = vpop.f32.mrb[89].mxu0  ;;  %v14597_v52 = vpop.f32.mrb[93].mxu1  ;;  %v7945_v53 = vrot.slane %v7940_v47, 2 }
0x150f   :  { %v8805_v27 = vld [vmem:[#allocation12 + $0x20] sm:$0xff]  ;;  %v8719_v52 = vld [vmem:[#allocation12 + $0x10] sm:$0xff] }
0x1510   :  { %v8026_v59 = vadd.f32 %v8024_v48, %v17863_v39  ;;  %v7947_v21 = vadd.f32 %v7945_v53, %v17866_v41  ;;  %v8720_v53 = vld [vmem:[#allocation12 + $0x18] sm:$0xff] }
0x1512   :  { %v12769_v60 = vmul.f32 -1.442695, %v8026_v59 }
0x1514   :  { %16390 = vpow2.f32 %v12769_v60  ;;  %v8807_v60 = vld [vmem:[#allocation12 + $0x30] sm:$0xff] }
0x1515   :  { %16392 = vtanh.f32 %v7947_v21  ;;  %v8808_v21 = vld [vmem:[#allocation12 + $0x38] sm:$0xff] }
0x1516   :  { %v16387_v33 = vpop.eup %16386 }
0x1517   :  { %v16389_v0 = vpop.eup %16388  ;;  %v7783_v24 = vadd.f32 1.0, %v16387_v33  ;;  %v18046_v33 = vpack.c.bf16 %v8720_v53, %v8719_v52 }
0x1518   :  { %v7867_v29 = vadd.f32 1.0, %v16389_v0  ;;  %v18050_v0 = vpack.c.bf16 %v8808_v21, %v8807_v60 }
0x1519   :  { %16394 = vrcp.f32 %v7783_v24 }
0x151a   :  { %16396 = vrcp.f32 %v7867_v29 }
0x151e   :  { %v16391_v1 = vpop.eup %16390 }
0x151f   :  { %v16393_v4 = vpop.eup %16392  ;;  %v8030_v9 = vadd.f32 1.0, %v16391_v1 }
0x1521   :  { %16398 = vrcp.f32 %v8030_v9 }
0x1523   :  { %v16395_v15 = vpop.eup %16394 }
0x1524   :  { %v16397_v23 = vpop.eup %16396  ;;  %v8037_v8 = vmul.f32 %v16395_v15, %v16393_v4 }
0x1525   :  { %v8036_v39 = vmul.f32 %v16397_v23, %v8034_v37 }
0x1527   :  { %v17980_v13 = vadd.f32 %v8037_v8, %v8036_v39 }
0x1529   :  { %16400 = vtanh.f32 %v17980_v13  ;;  %v8366_v45 = vrot.slane %v17980_v13, 6 }
0x152b   :  { %v16399_v41 = vpop.eup %16398 }
0x1533   :  { %v16401_v43 = vpop.eup %16400 }
0x1534   :  { %v8040_v44 = vmul.f32 %v16401_v43, %v16399_v41 }
0x1536   :  { %8041 = vst.msk [vmem:[#allocation2] sm:$0xc0] %vm1880_vm6, %v8040_v44  ;;  %v8047_v14 = vrot.slane %v8040_v44, 6 }
0x1538   :  { %14607 = vmatmul.mubr.msk.f32.vlgmr.msra.gmra.mrb[90].mxu0 %vm519_vm2, %v8047_v14  ;;  %14618 = vmatmul.mubr.msk.f32.vlgmr.msra.gmra.mrb[94].mxu1 %vm519_vm2, %v8047_v14 }
0x1539   :  { %15755 = vmatpush3.bf16.msra.mxu0 %v17799_v58  ;;  %15761 = vmatpush3.bf16.msra.mxu1 %v17801_v63 }
0x153a   :  { %15756 = vmatprep.subr.bf16.mxu0 %v16790_v17  ;;  %15762 = vmatprep.subr.bf16.mxu1 %v16790_v17 }
0x153b   :  { %14628 = vmatprep.mubr.msk.f32.mxu0 %vm16791_vm1, %v16792_v26  ;;  %14639 = vmatprep.mubr.msk.f32.mxu1 %vm16791_vm1, %v16792_v26 }
0x153d   :  { %15758 = vmatpush3.bf16.msra.mxu0 %v17809_v18  ;;  %15764 = vmatpush3.bf16.msra.mxu1 %v17811_v6 }
0x153e   :  { %15765 = vmatprep.subr.bf16.mxu0 %v16790_v17  ;;  %15771 = vmatprep.subr.bf16.mxu1 %v16790_v17 }
0x1540   :  { %14629 = vmatmul.mubr.msk.f32.vlgmr.msra.gmra.mrb[92].mxu0 %vm519_vm2, %v8047_v14  ;;  %14640 = vmatmul.mubr.msk.f32.vlgmr.msra.gmra.mrb[96].mxu1 %vm519_vm2, %v8047_v14 }
0x1541   :  { %15767 = vmatpush3.bf16.msra.mxu0 %v17777_v50  ;;  %15773 = vmatpush3.bf16.msra.mxu1 %v17779_v16 }
0x1542   :  { %15768 = vmatprep.subr.bf16.mxu0 %v16790_v17  ;;  %15774 = vmatprep.subr.bf16.mxu1 %v16790_v17 }
0x1543   :  { %14650 = vmatprep.mubr.msk.f32.mxu0 %vm16791_vm1, %v16792_v26  ;;  %14661 = vmatprep.mubr.msk.f32.mxu1 %vm16791_vm1, %v16792_v26 }
0x1545   :  { %15770 = vmatpush3.bf16.msra.mxu0 %v17787_v46  ;;  %15776 = vmatpush3.bf16.msra.mxu1 %v17789_v57 }
0x1546   :  { %15777 = vmatprep.subr.bf16.mxu0 %v16790_v17  ;;  %15783 = vmatprep.subr.bf16.mxu1 %v16790_v17 }
0x160b   :  { %v8116_v50 = vpop.f32.mrb[90].mxu0  ;;  %v8197_v16 = vpop.f32.mrb[94].mxu1 }
0x160c   :  { %v8120_v19 = vadd.f32 %v8116_v50, %v17843_v11  ;;  %v8201_v20 = vadd.f32 %v8197_v16, %v17845_v12  ;;  %v14608_v34 = vpop.f32.mrb[91].mxu0  ;;  %v14619_v40 = vpop.f32.mrb[95].mxu1 }
0x160e   :  { %v12771_v30 = vmul.f32 -1.442695, %v8120_v19  ;;  %v12773_v25 = vmul.f32 -1.442695, %v8201_v20 }
0x1610   :  { %16402 = vpow2.f32 %v12771_v30 }
0x1611   :  { %16404 = vpow2.f32 %v12773_v25 }
0x1613   :  { %v8278_v56 = vpop.f32.mrb[92].mxu0  ;;  %v8354_v46 = vpop.f32.mrb[96].mxu1 }
0x1614   :  { %v8358_v57 = vadd.f32 %v8354_v46, %v17855_v28  ;;  %v14630_v31 = vpop.f32.mrb[93].mxu0  ;;  %v14641_v55 = vpop.f32.mrb[97].mxu1  ;;  %v8282_v62 = vadd.f32 %v8278_v56, %v17853_v22 }
0x1616   :  { %v12776_v54 = vmul.f32 -1.442695, %v8358_v57 }
0x1618   :  { %16406 = vpow2.f32 %v12776_v54 }
0x1619   :  { %16408 = vtanh.f32 %v8282_v62 }
0x161a   :  { %v16403_v32 = vpop.eup %16402 }
0x161b   :  { %v16405_v2 = vpop.eup %16404  ;;  %v8124_v38 = vadd.f32 1.0, %v16403_v32 }
0x161c   :  { %v8205_v3 = vadd.f32 1.0, %v16405_v2 }
0x161d   :  { %16410 = vrcp.f32 %v8124_v38  ;;  %v8889_v38 = vld [vmem:[#allocation12 + $0x40] sm:$0xff] }
0x161e   :  { %16412 = vrcp.f32 %v8205_v3 }
0x1622   :  { %v16407_v35 = vpop.eup %16406 }
0x1623   :  { %v16409_v36 = vpop.eup %16408  ;;  %v8362_v10 = vadd.f32 1.0, %v16407_v35  ;;  %v8890_v35 = vld [vmem:[#allocation12 + $0x48] sm:$0xff] }
0x1625   :  { %16414 = vrcp.f32 %v8362_v10 }
0x1627   :  { %v16411_v42 = vpop.eup %16410 }
0x1628   :  { %v16413_v7 = vpop.eup %16412  ;;  %v8369_v61 = vmul.f32 %v16411_v42, %v16409_v36  ;;  %v8968_v36 = vld [vmem:[#allocation12 + $0x60] sm:$0xff]  ;;  %v8969_v42 = vld [vmem:[#allocation12 + $0x68] sm:$0xff] }
0x1629   :  { %v8368_v51 = vmul.f32 %v16413_v7, %v8366_v45  ;;  %v18067_v10 = vpack.c.bf16 %v8969_v42, %v8968_v36  ;;  %v9502_v36 = vld [vmem:[#allocation14 + $0x30] sm:$0xff] }
0x162b   :  { %v18017_v5 = vadd.f32 %v8369_v61, %v8368_v51  ;;  %v18065_v61 = vpack.c.bf16 %v8890_v35, %v8889_v38  ;;  %v8891_v51 = vld [vmem:[#allocation12 + $0x50] sm:$0xff]  ;;  %v9410_v35 = vld [vmem:[#allocation14 + $0x18] sm:$0xff] }
0x162d   :  { %16416 = vtanh.f32 %v18017_v5  ;;  %v8709_v31 = vrot.slane %v18017_v5, 6 }
0x162f   :  { %v16415_v47 = vpop.eup %16414 }
0x1637   :  { %v16417_v49 = vpop.eup %16416 }
0x1638   :  { %v8372_v48 = vmul.f32 %v16417_v49, %v16415_v47  ;;  %v8892_v47 = vld [vmem:[#allocation12 + $0x58] sm:$0xff]  ;;  %v8970_v49 = vld [vmem:[#allocation12 + $0x70] sm:$0xff] }
0x163a   :  { %8373 = vst.msk [vmem:[#allocation2 + $0x8] sm:$0x3] %vm846_vm3, %v8372_v48  ;;  %14651 = vmatmul.mubr.msk.f32.vlgmr.msra.gmra.mrb[94].mxu0 %vm519_vm2, %v8372_v48  ;;  %14662 = vmatmul.mubr.msk.f32.vlgmr.msra.gmra.mrb[98].mxu1 %vm519_vm2, %v8372_v48 }
0x163b   :  { %15779 = vmatpush3.bf16.msra.mxu0 %v17799_v58  ;;  %15785 = vmatpush3.bf16.msra.mxu1 %v17801_v63  ;;  %v8717_v58 = vld [vmem:[#allocation12] sm:$0xff]  ;;  %v8718_v63 = vld [vmem:[#allocation12 + $0x8] sm:$0xff] }
0x163c   :  { %15780 = vmatprep.subr.bf16.mxu0 %v16790_v17  ;;  %15786 = vmatprep.subr.bf16.mxu1 %v16790_v17 }
0x163d   :  { %14672 = vmatprep.mubr.msk.f32.mxu0 %vm16791_vm1, %v16792_v26  ;;  %14683 = vmatprep.mubr.msk.f32.mxu1 %vm16791_vm1, %v16792_v26 }
0x163f   :  { %15782 = vmatpush3.bf16.msra.mxu0 %v17809_v18  ;;  %15788 = vmatpush3.bf16.msra.mxu1 %v17811_v6  ;;  %v18041_v18 = vpack.c.bf16 %v8718_v63, %v8717_v58  ;;  %v8806_v6 = vld [vmem:[#allocation12 + $0x28] sm:$0xff]  ;;  %v18074_v58 = vpack.c.bf16 %v8892_v47, %v8891_v51 }
0x1640   :  { %15789 = vmatprep.subr.bf16.mxu0 %v16790_v17  ;;  %15795 = vmatprep.subr.bf16.mxu1 %v16790_v17  ;;  %v18043_v59 = vpack.c.bf16 %v8806_v6, %v8805_v27  ;;  %v9677_v47 = vld [vmem:[#allocation14 + $0x68] sm:$0xff] }
0x1642   :  { %14673 = vmatmul.mubr.msk.f32.vlgmr.msra.gmra.mrb[96].mxu0 %vm519_vm2, %v8372_v48  ;;  %14684 = vmatmul.mubr.msk.f32.vlgmr.msra.gmra.mrb[100].mxu1 %vm519_vm2, %v8372_v48  ;;  %v8971_v48 = vld [vmem:[#allocation12 + $0x78] sm:$0xff] }
0x1643   :  { %14694 = vmatprep.mubr.msk.f32.mxu0 %vm16791_vm1, %v16792_v26  ;;  %14705 = vmatprep.mubr.msk.f32.mxu1 %vm16791_vm1, %v16792_v26  ;;  %v18076_v63 = vpack.c.bf16 %v8971_v48, %v8970_v49 }
0x1644   :  { %15791 = vmatpush3.bf16.msra.mxu0 %v18041_v18  ;;  %15797 = vmatpush3.bf16.msra.mxu1 %v18043_v59 }
0x1645   :  { %15792 = vmatprep.subr.bf16.mxu0 %v16790_v17  ;;  %15798 = vmatprep.subr.bf16.mxu1 %v16790_v17 }
0x1648   :  { %15794 = vmatpush3.bf16.msra.mxu0 %v18046_v33  ;;  %15800 = vmatpush3.bf16.msra.mxu1 %v18050_v0 }
0x1649   :  { %15801 = vmatprep.subr.bf16.mxu0 %v16790_v17  ;;  %15807 = vmatprep.subr.bf16.mxu1 %v16790_v17 }
0x170d   :  { %v8447_v24 = vpop.f32.mrb[94].mxu0  ;;  %v8531_v29 = vpop.f32.mrb[98].mxu1 }
0x170e   :  { %v8452_v1 = vrot.slane %v8447_v24, 6  ;;  %v8536_v4 = vrot.slane %v8531_v29, 6  ;;  %v14652_v15 = vpop.f32.mrb[95].mxu0  ;;  %v14663_v37 = vpop.f32.mrb[99].mxu1 }
0x1710   :  { %v8454_v23 = vadd.f32 %v8452_v1, %v17843_v11  ;;  %v8538_v8 = vadd.f32 %v8536_v4, %v17845_v12 }
0x1712   :  { %v12778_v9 = vmul.f32 -1.442695, %v8454_v23  ;;  %v12780_v39 = vmul.f32 -1.442695, %v8538_v8 }
0x1714   :  { %16418 = vpow2.f32 %v12778_v9 }
0x1715   :  { %16420 = vpow2.f32 %v12780_v39  ;;  %v8615_v13 = vpop.f32.mrb[96].mxu0  ;;  %v8694_v41 = vpop.f32.mrb[100].mxu1 }
0x1716   :  { %v8699_v43 = vrot.slane %v8694_v41, 6  ;;  %v14674_v44 = vpop.f32.mrb[97].mxu0  ;;  %v14685_v14 = vpop.f32.mrb[101].mxu1  ;;  %v8620_v50 = vrot.slane %v8615_v13, 6 }
0x1718   :  { %v8701_v16 = vadd.f32 %v8699_v43, %v17855_v28  ;;  %v8622_v20 = vadd.f32 %v8620_v50, %v17853_v22 }
0x171a   :  { %v12783_v19 = vmul.f32 -1.442695, %v8701_v16 }
0x171c   :  { %16422 = vpow2.f32 %v12783_v19 }
0x171d   :  { %16424 = vtanh.f32 %v8622_v20 }
0x171e   :  { %v16419_v34 = vpop.eup %16418 }
0x171f   :  { %v16421_v40 = vpop.eup %16420  ;;  %v8458_v30 = vadd.f32 1.0, %v16419_v34 }
0x1720   :  { %v8542_v25 = vadd.f32 1.0, %v16421_v40 }
0x1721   :  { %16426 = vrcp.f32 %v8458_v30 }
0x1722   :  { %16428 = vrcp.f32 %v8542_v25 }
0x1726   :  { %v16423_v56 = vpop.eup %16422 }
0x1727   :  { %v16425_v46 = vpop.eup %16424  ;;  %v8705_v62 = vadd.f32 1.0, %v16423_v56 }
0x1729   :  { %16430 = vrcp.f32 %v8705_v62  ;;  %v9500_v62 = vld [vmem:[#allocation14 + $0x20] sm:$0xff] }
0x172b   :  { %v16427_v57 = vpop.eup %16426 }
0x172c   :  { %v16429_v55 = vpop.eup %16428  ;;  %v8712_v54 = vmul.f32 %v16427_v57, %v16425_v46 }
0x172d   :  { %v8711_v32 = vmul.f32 %v16429_v55, %v8709_v31  ;;  %v18125_v31 = vld [vmem:[#allocation2] sm:$0xff]  ;;  %v9407_v55 = vld [vmem:[#allocation14] sm:$0xff] }
0x172f   :  { %v18062_v2 = vadd.f32 %v8712_v54, %v8711_v32  ;;  %v9408_v54 = vld [vmem:[#allocation14 + $0x8] sm:$0xff] }
0x1730   :  { %v15837_v32 = vpack.c.bf16 %v9408_v54, %v9407_v55  ;;  %v9764_v55 = vld [vmem:[#allocation15 + $0x8] sm:$0xff]  ;;  %v9845_v54 = vld [vmem:[#allocation15 + $0x20] sm:$0xff] }
0x1731   :  { %16432 = vtanh.f32 %v18062_v2  ;;  %v9053_v16 = vrot.slane %v18062_v2, 6  ;;  %v9501_v2 = vld [vmem:[#allocation14 + $0x28] sm:$0xff] }
0x1732   :  { %v15845_v38 = vpack.c.bf16 %v9501_v2, %v9500_v62  ;;  %v9846_v62 = vld [vmem:[#allocation15 + $0x28] sm:$0xff] }
0x1733   :  { %v16431_v3 = vpop.eup %16430  ;;  %v18149_v2 = vpack.c.bf16 %v9846_v62, %v9845_v54 }
0x173b   :  { %v16433_v45 = vpop.eup %16432 }
0x173c   :  { %v8715_v7 = vmul.f32 %v16433_v45, %v16431_v3  ;;  %v9409_v3 = vld [vmem:[#allocation14 + $0x10] sm:$0xff]  ;;  %v9503_v45 = vld [vmem:[#allocation14 + $0x38] sm:$0xff] }
0x173d   :  { %v15841_v42 = vpack.c.bf16 %v9410_v35, %v9409_v3  ;;  %v9766_v3 = vld [vmem:[#allocation15 + $0x18] sm:$0xff]  ;;  %v9847_v35 = vld [vmem:[#allocation15 + $0x30] sm:$0xff] }
0x173e   :  { %8716 = vst.msk [vmem:[#allocation2 + $0x8] sm:$0xc] %vm1190_vm4, %v8715_v7  ;;  %v8722_v5 = vrot.slane %v8715_v7, 2  ;;  %v9588_v7 = vld [vmem:[#allocation14 + $0x40] sm:$0xff] }
0x1740   :  { %14695 = vmatmul.mubr.msk.f32.vlgmr.msra.gmra.mrb[98].mxu0 %vm519_vm2, %v8722_v5  ;;  %14706 = vmatmul.mubr.msk.f32.vlgmr.msra.gmra.mrb[102].mxu1 %vm519_vm2, %v8722_v5 }
0x1741   :  { %15803 = vmatpush3.bf16.msra.mxu0 %v18065_v61  ;;  %15809 = vmatpush3.bf16.msra.mxu1 %v18067_v10 }
0x1742   :  { %15804 = vmatprep.subr.bf16.mxu0 %v16790_v17  ;;  %15810 = vmatprep.subr.bf16.mxu1 %v16790_v17 }
0x1743   :  { %14716 = vmatprep.mubr.msk.f32.mxu0 %vm16791_vm1, %v16792_v26  ;;  %14727 = vmatprep.mubr.msk.f32.mxu1 %vm16791_vm1, %v16792_v26 }
0x1745   :  { %15806 = vmatpush3.bf16.msra.mxu0 %v18074_v58  ;;  %15812 = vmatpush3.bf16.msra.mxu1 %v18076_v63 }
0x1746   :  { %15813 = vmatprep.subr.bf16.mxu0 %v16790_v17  ;;  %15819 = vmatprep.subr.bf16.mxu1 %v16790_v17 }
0x1748   :  { %14717 = vmatmul.mubr.msk.f32.vlgmr.msra.gmra.mrb[100].mxu0 %vm519_vm2, %v8722_v5  ;;  %14728 = vmatmul.mubr.msk.f32.vlgmr.msra.gmra.mrb[104].mxu1 %vm519_vm2, %v8722_v5  ;;  %v9676_v5 = vld [vmem:[#allocation14 + $0x60] sm:$0xff] }
0x1749   :  { %15815 = vmatpush3.bf16.msra.mxu0 %v18041_v18  ;;  %15821 = vmatpush3.bf16.msra.mxu1 %v18043_v59  ;;  %v15861_v49 = vpack.c.bf16 %v9677_v47, %v9676_v5  ;;  %v9929_v47 = vld [vmem:[#allocation15 + $0x50] sm:$0xff] }
0x174a   :  { %15816 = vmatprep.subr.bf16.mxu0 %v16790_v17  ;;  %15822 = vmatprep.subr.bf16.mxu1 %v16790_v17 }
0x174b   :  { %14738 = vmatprep.mubr.msk.f32.mxu0 %vm16791_vm1, %v16792_v26  ;;  %14749 = vmatprep.mubr.msk.f32.mxu1 %vm16791_vm1, %v16792_v26 }
0x174d   :  { %15818 = vmatpush3.bf16.msra.mxu0 %v18046_v33  ;;  %15824 = vmatpush3.bf16.msra.mxu1 %v18050_v0 }
0x174e   :  { %15825 = vmatprep.subr.bf16.mxu0 %v16790_v17  ;;  %15831 = vmatprep.subr.bf16.mxu1 %v16790_v17 }
0x1813   :  { %v8791_v27 = vpop.f32.mrb[98].mxu0  ;;  %v8875_v18 = vpop.f32.mrb[102].mxu1 }
0x1814   :  { %v8796_v6 = vrot.slane %v8791_v27, 4  ;;  %v8880_v52 = vrot.slane %v8875_v18, 4  ;;  %v14696_v53 = vpop.f32.mrb[99].mxu0  ;;  %v14707_v59 = vpop.f32.mrb[103].mxu1 }
0x1816   :  { %v8798_v60 = vadd.f32 %v8796_v6, %v17843_v11  ;;  %v8882_v21 = vadd.f32 %v8880_v52, %v17845_v12 }
0x1818   :  { %v12785_v24 = vmul.f32 -1.442695, %v8798_v60  ;;  %v12787_v29 = vmul.f32 -1.442695, %v8882_v21 }
0x181a   :  { %16434 = vpow2.f32 %v12785_v24 }
0x181b   :  { %16436 = vpow2.f32 %v12787_v29  ;;  %v8959_v33 = vpop.f32.mrb[100].mxu0  ;;  %v9038_v0 = vpop.f32.mrb[104].mxu1 }
0x181c   :  { %v9043_v1 = vrot.slane %v9038_v0, 4  ;;  %v14718_v4 = vpop.f32.mrb[101].mxu0  ;;  %v14729_v15 = vpop.f32.mrb[105].mxu1  ;;  %v8964_v37 = vrot.slane %v8959_v33, 4 }
0x181e   :  { %v9045_v23 = vadd.f32 %v9043_v1, %v17855_v28  ;;  %v8966_v9 = vadd.f32 %v8964_v37, %v17853_v22 }
0x1820   :  { %v12790_v8 = vmul.f32 -1.442695, %v9045_v23 }
0x1822   :  { %16438 = vpow2.f32 %v12790_v8 }
0x1823   :  { %16440 = vtanh.f32 %v8966_v9 }
0x1824   :  { %v16435_v39 = vpop.eup %16434 }
0x1825   :  { %v16437_v13 = vpop.eup %16436  ;;  %v8802_v41 = vadd.f32 1.0, %v16435_v39 }
0x1826   :  { %v8886_v43 = vadd.f32 1.0, %v16437_v13 }
0x1827   :  { %16442 = vrcp.f32 %v8802_v41 }
0x1828   :  { %16444 = vrcp.f32 %v8886_v43 }
0x182c   :  { %v16439_v44 = vpop.eup %16438 }
0x182d   :  { %v16441_v14 = vpop.eup %16440  ;;  %v9049_v34 = vadd.f32 1.0, %v16439_v44 }
0x182f   :  { %16446 = vrcp.f32 %v9049_v34  ;;  %v9591_v34 = vld [vmem:[#allocation14 + $0x58] sm:$0xff] }
0x1831   :  { %v16443_v50 = vpop.eup %16442 }
0x1832   :  { %v16445_v19 = vpop.eup %16444  ;;  %v9056_v20 = vmul.f32 %v16443_v50, %v16441_v14 }
0x1833   :  { %v9055_v40 = vmul.f32 %v16445_v19, %v9053_v16 }
0x1835   :  { %v18107_v30 = vadd.f32 %v9056_v20, %v9055_v40  ;;  %v9590_v20 = vld [vmem:[#allocation14 + $0x50] sm:$0xff] }
0x1836   :  { %v9678_v40 = vld [vmem:[#allocation14 + $0x70] sm:$0xff] }
0x1837   :  { %16448 = vtanh.f32 %v18107_v30  ;;  %v9397_v41 = vrot.slane %v18107_v30, 6  ;;  %v9763_v30 = vld [vmem:[#allocation15] sm:$0xff] }
0x1839   :  { %v16447_v25 = vpop.eup %16446 }
0x1841   :  { %v16449_v56 = vpop.eup %16448 }
0x1842   :  { %v9059_v46 = vmul.f32 %v16449_v56, %v16447_v25  ;;  %v9679_v25 = vld [vmem:[#allocation14 + $0x78] sm:$0xff] }
0x1844   :  { %9060 = vst.msk [vmem:[#allocation2 + $0x8] sm:$0x30] %vm1535_vm5, %v9059_v46  ;;  %v9066_v57 = vrot.slane %v9059_v46, 4  ;;  %v15857_v46 = vpack.c.bf16 %v9591_v34, %v9590_v20 }
0x1846   :  { %14739 = vmatmul.mubr.msk.f32.vlgmr.msra.gmra.mrb[102].mxu0 %vm519_vm2, %v9066_v57  ;;  %14750 = vmatmul.mubr.msk.f32.vlgmr.msra.gmra.mrb[106].mxu1 %vm519_vm2, %v9066_v57 }
0x1847   :  { %15827 = vmatpush3.bf16.msra.mxu0 %v18065_v61  ;;  %15833 = vmatpush3.bf16.msra.mxu1 %v18067_v10  ;;  %v9589_v61 = vld [vmem:[#allocation14 + $0x48] sm:$0xff]  ;;  %v15849_v10 = vpack.c.bf16 %v9503_v45, %v9502_v36  ;;  %v9848_v36 = vld [vmem:[#allocation15 + $0x38] sm:$0xff]  ;;  %v9927_v45 = vld [vmem:[#allocation15 + $0x40] sm:$0xff] }
0x1848   :  { %15828 = vmatprep.subr.bf16.mxu0 %v16790_v17  ;;  %15834 = vmatprep.subr.bf16.mxu1 %v16790_v17  ;;  %v18131_v51 = vpack.c.bf16 %v9589_v61, %v9588_v7  ;;  %v9928_v7 = vld [vmem:[#allocation15 + $0x48] sm:$0xff]  ;;  %v10004_v61 = vld [vmem:[#allocation15 + $0x60] sm:$0xff] }
0x1849   :  { %14760 = vmatprep.mubr.msk.f32.mxu0 %vm16791_vm1, %v16792_v26  ;;  %14771 = vmatprep.mubr.msk.f32.mxu1 %vm16791_vm1, %v16792_v26 }
0x184b   :  { %15830 = vmatpush3.bf16.msra.mxu0 %v18074_v58  ;;  %15836 = vmatpush3.bf16.msra.mxu1 %v18076_v63 }
0x184c   :  { %15838 = vmatprep.subr.bf16.mxu0 %v15837_v32  ;;  %15846 = vmatprep.subr.bf16.mxu1 %v15845_v38 }
0x184e   :  { %14761 = vmatmul.mubr.msk.f32.vlgmr.msra.gmra.mrb[104].mxu0 %vm519_vm2, %v9066_v57  ;;  %14772 = vmatmul.mubr.msk.f32.vlgmr.msra.gmra.mrb[108].mxu1 %vm519_vm2, %v9066_v57  ;;  %v15865_v57 = vpack.c.bf16 %v9679_v25, %v9678_v40 }
0x184f   :  { %14782 = vmatprep.mubr.msk.f32.mxu0 %vm519_vm2, %v18125_v31  ;;  %14793 = vmatprep.mubr.msk.f32.mxu1 %vm519_vm2, %v18125_v31 }
0x1850   :  { %15840 = vmatpush3.bf16.msra.mxu0 %v15837_v32  ;;  %15848 = vmatpush3.bf16.msra.mxu1 %v15845_v38  ;;  %v18147_v32 = vpack.c.bf16 %v9764_v55, %v9763_v30  ;;  %v9765_v38 = vld [vmem:[#allocation15 + $0x10] sm:$0xff] }
0x1851   :  { %15842 = vmatprep.subr.bf16.mxu0 %v15841_v42  ;;  %15850 = vmatprep.subr.bf16.mxu1 %v15849_v10 }
0x1854   :  { %15844 = vmatpush3.bf16.msra.mxu0 %v15841_v42  ;;  %15852 = vmatpush3.bf16.msra.mxu1 %v15849_v10  ;;  %v18159_v42 = vpack.c.bf16 %v9848_v36, %v9847_v35  ;;  %v10005_v10 = vld [vmem:[#allocation15 + $0x68] sm:$0xff] }
0x1855   :  { %15854 = vmatprep.subr.bf16.mxu0 %v18131_v51  ;;  %15862 = vmatprep.subr.bf16.mxu1 %v15861_v49  ;;  %v18171_v5 = vpack.c.bf16 %v10005_v10, %v10004_v61 }
0x1919   :  { %v9135_v48 = vpop.f32.mrb[102].mxu0  ;;  %v9219_v58 = vpop.f32.mrb[106].mxu1 }
0x191a   :  { %v9140_v63 = vrot.slane %v9135_v48, 2  ;;  %v9224_v27 = vrot.slane %v9219_v58, 2  ;;  %v14740_v18 = vpop.f32.mrb[103].mxu0  ;;  %v14751_v6 = vpop.f32.mrb[107].mxu1  ;;  %v10006_v48 = vld [vmem:[#allocation15 + $0x70] sm:$0xff]  ;;  %v10007_v58 = vld [vmem:[#allocation15 + $0x78] sm:$0xff] }
0x191b   :  { %v12798_v18 = vld [vmem:[%s18540_s13] ss:$0 sm:$0xff]  ;;  %v12802_v6 = vld [vmem:[%s18540_s13 + $0x1] ss:$0 sm:$0xff] }
0x191c   :  { %v9142_v52 = vadd.f32 %v9140_v63, %v17843_v11  ;;  %v9226_v53 = vadd.f32 %v9224_v27, %v17845_v12  ;;  %v18181_v27 = vpack.c.bf16 %v10007_v58, %v10006_v48 }
0x191e   :  { %v12792_v59 = vmul.f32 -1.442695, %v9142_v52  ;;  %v12794_v60 = vmul.f32 -1.442695, %v9226_v53 }
0x1920   :  { %16450 = vpow2.f32 %v12792_v59 }
0x1921   :  { %16452 = vpow2.f32 %v12794_v60  ;;  %v9303_v21 = vpop.f32.mrb[104].mxu0  ;;  %v9382_v24 = vpop.f32.mrb[108].mxu1 }
0x1922   :  { %v9387_v29 = vrot.slane %v9382_v24, 2  ;;  %v14762_v33 = vpop.f32.mrb[105].mxu0  ;;  %v14773_v0 = vpop.f32.mrb[109].mxu1  ;;  %v9308_v1 = vrot.slane %v9303_v21, 2 }
0x1923   :  { %v12810_v33 = vld [vmem:[%s18540_s13 + $0x3] ss:$0 sm:$0xff] }
0x1924   :  { %v9389_v4 = vadd.f32 %v9387_v29, %v17855_v28  ;;  %v9310_v37 = vadd.f32 %v9308_v1, %v17853_v22  ;;  %v12806_v29 = vld [vmem:[%s18540_s13 + $0x2] ss:$0 sm:$0xff] }
0x1926   :  { %v12797_v15 = vmul.f32 -1.442695, %v9389_v4 }
0x1928   :  { %16454 = vpow2.f32 %v12797_v15 }
0x1929   :  { %16456 = vtanh.f32 %v9310_v37 }
0x192a   :  { %v16451_v23 = vpop.eup %16450 }
0x192b   :  { %v16453_v8 = vpop.eup %16452  ;;  %v9146_v11 = vadd.f32 1.0, %v16451_v23 }
0x192c   :  { %v9230_v12 = vadd.f32 1.0, %v16453_v8 }
0x192d   :  { %16458 = vrcp.f32 %v9146_v11 }
0x192e   :  { %16460 = vrcp.f32 %v9230_v12 }
0x1932   :  { %v16455_v9 = vpop.eup %16454 }
0x1933   :  { %v16457_v39 = vpop.eup %16456  ;;  %v9393_v14 = vadd.f32 1.0, %v16455_v9 }
0x1935   :  { %16462 = vrcp.f32 %v9393_v14 }
0x1937   :  { %v16459_v13 = vpop.eup %16458 }
0x1938   :  { %v16461_v43 = vpop.eup %16460  ;;  %v9400_v44 = vmul.f32 %v16459_v13, %v16457_v39 }
0x1939   :  { %v9399_v28 = vmul.f32 %v16461_v43, %v9397_v41 }
0x193b   :  { %v9401_v50 = vadd.f32 %v9400_v44, %v9399_v28 }
0x193d   :  { %16464 = vtanh.f32 %v9401_v50 }
0x193f   :  { %v16463_v22 = vpop.eup %16462 }
0x1947   :  { %v16465_v16 = vpop.eup %16464 }
0x1948   :  { %v9403_v19 = vmul.f32 %v16465_v16, %v16463_v22 }
0x194a   :  { %9404 = vst.msk [vmem:[#allocation2 + $0x8] sm:$0xc0] %vm1880_vm6, %v9403_v19 }
0x1951   :  { %v9406_v56 = vld [vmem:[#allocation2 + $0x8] sm:$0xff] }
0x1952   :  { %14783 = vmatmul.mubr.msk.f32.vlgmr.msra.gmra.mrb[106].mxu0 %vm519_vm2, %v9406_v56  ;;  %14794 = vmatmul.mubr.msk.f32.vlgmr.msra.gmra.mrb[110].mxu1 %vm519_vm2, %v9406_v56 }
0x1953   :  { %15856 = vmatpush3.bf16.msra.mxu0 %v18131_v51  ;;  %15864 = vmatpush3.bf16.msra.mxu1 %v15861_v49  ;;  %v18169_v51 = vpack.c.bf16 %v9928_v7, %v9927_v45  ;;  %v9930_v49 = vld [vmem:[#allocation15 + $0x58] sm:$0xff] }
0x1954   :  { %14804 = vmatprep.mubr.msk.f32.mxu0 %vm519_vm2, %v18125_v31  ;;  %14815 = vmatprep.mubr.msk.f32.mxu1 %vm519_vm2, %v18125_v31  ;;  %v18157_v31 = vpack.c.bf16 %v9766_v3, %v9765_v38  ;;  %v18179_v63 = vpack.c.bf16 %v9930_v49, %v9929_v47 }
0x1955   :  { %15858 = vmatprep.subr.bf16.mxu0 %v15857_v46  ;;  %15866 = vmatprep.subr.bf16.mxu1 %v15865_v57 }
0x1957   :  { %15860 = vmatpush3.bf16.msra.mxu0 %v15857_v46  ;;  %15868 = vmatpush3.bf16.msra.mxu1 %v15865_v57 }
0x1958   :  { %15869 = vmatprep.subr.bf16.mxu0 %v16790_v17  ;;  %15875 = vmatprep.subr.bf16.mxu1 %v16790_v17 }
0x195a   :  { %14805 = vmatmul.mubr.msk.f32.vlgmr.msra.gmra.mrb[108].mxu0 %vm519_vm2, %v9406_v56  ;;  %14816 = vmatmul.mubr.msk.f32.vlgmr.msra.gmra.mrb[112].mxu1 %vm519_vm2, %v9406_v56 }
0x195b   :  { %15871 = vmatpush3.bf16.msra.mxu0 %v18147_v32  ;;  %15877 = vmatpush3.bf16.msra.mxu1 %v18149_v2 }
0x195c   :  { %15872 = vmatprep.subr.bf16.mxu0 %v16790_v17  ;;  %15878 = vmatprep.subr.bf16.mxu1 %v16790_v17 }
0x195d   :  { %14826 = vmatprep.mubr.msk.f32.mxu0 %vm16791_vm1, %v16792_v26  ;;  %14837 = vmatprep.mubr.msk.f32.mxu1 %vm16791_vm1, %v16792_v26 }
0x195f   :  { %15874 = vmatpush3.bf16.msra.mxu0 %v18157_v31  ;;  %15880 = vmatpush3.bf16.msra.mxu1 %v18159_v42 }
0x1960   :  { %15881 = vmatprep.subr.bf16.mxu0 %v16790_v17  ;;  %15887 = vmatprep.subr.bf16.mxu1 %v16790_v17 }
0x1962   :  { %14827 = vmatmul.mubr.f32.vlgmr.msra.gmra.mrb[110].mxu0 %v16792_v26  ;;  %14838 = vmatmul.mubr.f32.vlgmr.msra.gmra.mrb[114].mxu1 %v16792_v26 }
0x1963   :  { %15883 = vmatpush3.bf16.msra.mxu0 %v18169_v51  ;;  %15889 = vmatpush3.bf16.msra.mxu1 %v18171_v5 }
0x1964   :  { %15884 = vmatprep.subr.bf16.mxu0 %v16790_v17  ;;  %15890 = vmatprep.subr.bf16.mxu1 %v16790_v17 }
0x1965   :  { %14848 = vmatprep.mubr.msk.f32.mxu0 %vm16791_vm1, %v16792_v26  ;;  %14859 = vmatprep.mubr.msk.f32.mxu1 %vm16791_vm1, %v16792_v26 }
0x1967   :  { %15886 = vmatpush3.bf16.msra.mxu0 %v18179_v63  ;;  %15892 = vmatpush3.bf16.msra.mxu1 %v18181_v27 }
0x1968   :  { %15893 = vmatprep.subr.bf16.mxu0 %v16790_v17  ;;  %15899 = vmatprep.subr.bf16.mxu1 %v16790_v17 }
0x196a   :  { %14849 = vmatmul.mubr.f32.vlgmr.msra.gmra.mrb[112].mxu0 %v16792_v26  ;;  %14860 = vmatmul.mubr.f32.vlgmr.msra.gmra.mrb[116].mxu1 %v16792_v26 }
0x196b   :  { %15895 = vmatpush3.bf16.msra.mxu0 %v18147_v32  ;;  %15901 = vmatpush3.bf16.msra.mxu1 %v18149_v2 }
0x196c   :  { %15896 = vmatprep.subr.bf16.mxu0 %v16790_v17  ;;  %15902 = vmatprep.subr.bf16.mxu1 %v16790_v17 }
0x196d   :  { %14870 = vmatprep.mubr.msk.f32.mxu0 %vm16791_vm1, %v16792_v26  ;;  %14881 = vmatprep.mubr.msk.f32.mxu1 %vm16791_vm1, %v16792_v26 }
0x196f   :  { %15898 = vmatpush3.bf16.msra.mxu0 %v18157_v31  ;;  %15904 = vmatpush3.bf16.msra.mxu1 %v18159_v42 }
0x1970   :  { %15905 = vmatprep.subr.bf16.mxu0 %v16790_v17  ;;  %15911 = vmatprep.subr.bf16.mxu1 %v16790_v17 }
0x1a25   :  { %v14784_v52 = vpop.f32.mrb[106].mxu0  ;;  %v14795_v53 = vpop.f32.mrb[110].mxu1 }
0x1a26   :  { %v18213_v59 = vadd.f32 %v14784_v52, %v12798_v18  ;;  %v18215_v60 = vadd.f32 %v14795_v53, %v12802_v6  ;;  %v9490_v21 = vpop.f32.mrb[107].mxu0  ;;  %v9578_v24 = vpop.f32.mrb[111].mxu1 }
0x1a27   :  { %v18227_v8 = vadd.f32 %v12798_v18, %v9490_v21  ;;  %v18229_v11 = vadd.f32 %v12802_v6, %v9578_v24 }
0x1a2d   :  { %v14806_v0 = vpop.f32.mrb[108].mxu0  ;;  %v14817_v1 = vpop.f32.mrb[112].mxu1 }
0x1a2e   :  { %v18223_v4 = vadd.f32 %v14806_v0, %v12806_v29  ;;  %v18225_v15 = vadd.f32 %v14817_v1, %v12810_v33  ;;  %v9666_v37 = vpop.f32.mrb[109].mxu0  ;;  %v9754_v23 = vpop.f32.mrb[113].mxu1 }
0x1a2f   :  { %v18233_v28 = vadd.f32 %v12810_v33, %v9754_v23  ;;  %v18236_v34 = vadd.f32 %v12806_v29, %v9666_v37 }
0x1a35   :  { %v9833_v12 = vpop.f32.mrb[110].mxu0  ;;  %v9915_v9 = vpop.f32.mrb[114].mxu1 }
0x1a36   :  { %v9837_v39 = vadd.f32 %v9833_v12, %v18227_v8  ;;  %v9919_v13 = vadd.f32 %v9915_v9, %v18229_v11  ;;  %v14828_v41 = vpop.f32.mrb[111].mxu0  ;;  %v14839_v43 = vpop.f32.mrb[115].mxu1 }
0x1a38   :  { %v12813_v44 = vmul.f32 -1.442695, %v9837_v39  ;;  %v12814_v14 = vmul.f32 -1.442695, %v9919_v13 }
0x1a3a   :  { %16466 = vpow2.f32 %v12813_v44 }
0x1a3b   :  { %16468 = vpow2.f32 %v12814_v14 }
0x1a3d   :  { %v9997_v50 = vpop.f32.mrb[112].mxu0  ;;  %v10074_v22 = vpop.f32.mrb[116].mxu1 }
0x1a3e   :  { %v10078_v16 = vadd.f32 %v10074_v22, %v18233_v28  ;;  %v14850_v19 = vpop.f32.mrb[113].mxu0  ;;  %v14861_v20 = vpop.f32.mrb[117].mxu1  ;;  %v10001_v25 = vadd.f32 %v9997_v50, %v18236_v34 }
0x1a40   :  { %v12815_v40 = vmul.f32 -1.442695, %v10078_v16 }
0x1a42   :  { %16470 = vpow2.f32 %v12815_v40 }
0x1a43   :  { %16472 = vtanh.f32 %v10001_v25 }
0x1a44   :  { %v16467_v56 = vpop.eup %16466 }
0x1a45   :  { %v16469_v46 = vpop.eup %16468  ;;  %v9841_v57 = vadd.f32 1.0, %v16467_v56 }
0x1a46   :  { %v9923_v30 = vadd.f32 1.0, %v16469_v46 }
0x1a47   :  { %16474 = vrcp.f32 %v9841_v57 }
0x1a48   :  { %16476 = vrcp.f32 %v9923_v30 }
0x1a4c   :  { %v16471_v55 = vpop.eup %16470 }
0x1a4d   :  { %v16473_v54 = vpop.eup %16472  ;;  %v10082_v35 = vadd.f32 1.0, %v16471_v55 }
0x1a4f   :  { %16478 = vrcp.f32 %v10082_v35 }
0x1a51   :  { %v16475_v62 = vpop.eup %16474 }
0x1a52   :  { %v16477_v38 = vpop.eup %16476  ;;  %v10086_v3 = vmul.f32 %v16475_v62, %v16473_v54 }
0x1a53   :  { %v10085_v36 = vmul.f32 0.0, %v16477_v38 }
0x1a55   :  { %v18239_v45 = vadd.f32 %v10086_v3, %v10085_v36 }
0x1a57   :  { %16480 = vtanh.f32 %v18239_v45  ;;  %v10426_v16 = vrot.slane %v18239_v45, 6 }
0x1a59   :  { %v16479_v7 = vpop.eup %16478 }
0x1a61   :  { %v16481_v61 = vpop.eup %16480 }
0x1a62   :  { %v10089_v10 = vmul.f32 %v16481_v61, %v16479_v7 }
0x1a64   :  { %14871 = vmatmul.mubr.msk.f32.vlgmr.msra.gmra.mrb[114].mxu0 %vm519_vm2, %v10089_v10  ;;  %10090 = vst.msk [vmem:[#allocation2] sm:$0x3] %vm846_vm3, %v10089_v10  ;;  %14882 = vmatmul.mubr.msk.f32.vlgmr.msra.gmra.mrb[118].mxu1 %vm519_vm2, %v10089_v10 }
0x1a65   :  { %15907 = vmatpush3.bf16.msra.mxu0 %v18169_v51  ;;  %15913 = vmatpush3.bf16.msra.mxu1 %v18171_v5 }
0x1a66   :  { %15908 = vmatprep.subr.bf16.mxu0 %v16790_v17  ;;  %15914 = vmatprep.subr.bf16.mxu1 %v16790_v17 }
0x1a67   :  { %14892 = vmatprep.mubr.msk.f32.mxu0 %vm16791_vm1, %v16792_v26  ;;  %14903 = vmatprep.mubr.msk.f32.mxu1 %vm16791_vm1, %v16792_v26 }
0x1a69   :  { %15910 = vmatpush3.bf16.msra.mxu0 %v18179_v63  ;;  %15916 = vmatpush3.bf16.msra.mxu1 %v18181_v27 }
0x1a6a   :  { %15917 = vmatprep.subr.bf16.mxu0 %v16790_v17  ;;  %15923 = vmatprep.subr.bf16.mxu1 %v16790_v17 }
0x1a6c   :  { %14893 = vmatmul.mubr.msk.f32.vlgmr.msra.gmra.mrb[116].mxu0 %vm519_vm2, %v10089_v10  ;;  %14904 = vmatmul.mubr.msk.f32.vlgmr.msra.gmra.mrb[120].mxu1 %vm519_vm2, %v10089_v10 }
0x1a6d   :  { %15919 = vmatpush3.bf16.msra.mxu0 %v18147_v32  ;;  %15925 = vmatpush3.bf16.msra.mxu1 %v18149_v2 }
0x1a6e   :  { %15920 = vmatprep.subr.bf16.mxu0 %v16790_v17  ;;  %15926 = vmatprep.subr.bf16.mxu1 %v16790_v17 }
0x1a6f   :  { %14914 = vmatprep.mubr.msk.f32.mxu0 %vm16791_vm1, %v16792_v26  ;;  %14925 = vmatprep.mubr.msk.f32.mxu1 %vm16791_vm1, %v16792_v26 }
0x1a71   :  { %15922 = vmatpush3.bf16.msra.mxu0 %v18157_v31  ;;  %15928 = vmatpush3.bf16.msra.mxu1 %v18159_v42 }
0x1a72   :  { %15929 = vmatprep.subr.bf16.mxu0 %v16790_v17  ;;  %15935 = vmatprep.subr.bf16.mxu1 %v16790_v17 }
0x1b37   :  { %v10164_v47 = vpop.f32.mrb[114].mxu0  ;;  %v10248_v49 = vpop.f32.mrb[118].mxu1 }
0x1b38   :  { %v10169_v48 = vrot.slane %v10164_v47, 6  ;;  %v10253_v58 = vrot.slane %v10248_v49, 6  ;;  %v14872_v18 = vpop.f32.mrb[115].mxu0  ;;  %v14883_v6 = vpop.f32.mrb[119].mxu1 }
0x1b3a   :  { %v10171_v52 = vadd.f32 %v10169_v48, %v18227_v8  ;;  %v10255_v53 = vadd.f32 %v10253_v58, %v18229_v11 }
0x1b3c   :  { %v12817_v21 = vmul.f32 -1.442695, %v10171_v52  ;;  %v12819_v24 = vmul.f32 -1.442695, %v10255_v53 }
0x1b3e   :  { %16482 = vpow2.f32 %v12817_v21 }
0x1b3f   :  { %16484 = vpow2.f32 %v12819_v24  ;;  %v10332_v29 = vpop.f32.mrb[116].mxu0  ;;  %v10411_v33 = vpop.f32.mrb[120].mxu1 }
0x1b40   :  { %v10416_v0 = vrot.slane %v10411_v33, 6  ;;  %v14894_v1 = vpop.f32.mrb[117].mxu0  ;;  %v14905_v37 = vpop.f32.mrb[121].mxu1  ;;  %v10337_v23 = vrot.slane %v10332_v29, 6 }
0x1b42   :  { %v10418_v12 = vadd.f32 %v10416_v0, %v18233_v28  ;;  %v10339_v39 = vadd.f32 %v10337_v23, %v18236_v34 }
0x1b44   :  { %v12822_v9 = vmul.f32 -1.442695, %v10418_v12 }
0x1b46   :  { %16486 = vpow2.f32 %v12822_v9 }
0x1b47   :  { %16488 = vtanh.f32 %v10339_v39 }
0x1b48   :  { %v16483_v13 = vpop.eup %16482 }
0x1b49   :  { %v16485_v41 = vpop.eup %16484  ;;  %v10175_v43 = vadd.f32 1.0, %v16483_v13 }
0x1b4a   :  { %v10259_v44 = vadd.f32 1.0, %v16485_v41 }
0x1b4b   :  { %16490 = vrcp.f32 %v10175_v43 }
0x1b4c   :  { %16492 = vrcp.f32 %v10259_v44 }
0x1b50   :  { %v16487_v14 = vpop.eup %16486 }
0x1b51   :  { %v16489_v50 = vpop.eup %16488  ;;  %v10422_v40 = vadd.f32 1.0, %v16487_v14 }
0x1b53   :  { %16494 = vrcp.f32 %v10422_v40 }
0x1b55   :  { %v16491_v22 = vpop.eup %16490 }
0x1b56   :  { %v16493_v19 = vpop.eup %16492  ;;  %v10429_v20 = vmul.f32 %v16491_v22, %v16489_v50 }
0x1b57   :  { %v10428_v25 = vmul.f32 %v16493_v19, %v10426_v16 }
0x1b59   :  { %v18276_v56 = vadd.f32 %v10429_v20, %v10428_v25 }
0x1b5b   :  { %16496 = vtanh.f32 %v18276_v56  ;;  %v10770_v12 = vrot.slane %v18276_v56, 6 }
0x1b5d   :  { %v16495_v46 = vpop.eup %16494 }
0x1b65   :  { %v16497_v57 = vpop.eup %16496 }
0x1b66   :  { %v10432_v30 = vmul.f32 %v16497_v57, %v16495_v46 }
0x1b68   :  { %v10439_v55 = vrot.slane %v10432_v30, 2  ;;  %10433 = vst.msk [vmem:[#allocation2] sm:$0xc] %vm1190_vm4, %v10432_v30 }
0x1b6a   :  { %14915 = vmatmul.mubr.msk.f32.vlgmr.msra.gmra.mrb[118].mxu0 %vm519_vm2, %v10439_v55  ;;  %14926 = vmatmul.mubr.msk.f32.vlgmr.msra.gmra.mrb[122].mxu1 %vm519_vm2, %v10439_v55 }
0x1b6b   :  { %15931 = vmatpush3.bf16.msra.mxu0 %v18169_v51  ;;  %15937 = vmatpush3.bf16.msra.mxu1 %v18171_v5 }
0x1b6c   :  { %15932 = vmatprep.subr.bf16.mxu0 %v16790_v17  ;;  %15938 = vmatprep.subr.bf16.mxu1 %v16790_v17 }
0x1b6d   :  { %14936 = vmatprep.mubr.msk.f32.mxu0 %vm16791_vm1, %v16792_v26  ;;  %14947 = vmatprep.mubr.msk.f32.mxu1 %vm16791_vm1, %v16792_v26 }
0x1b6f   :  { %15934 = vmatpush3.bf16.msra.mxu0 %v18179_v63  ;;  %15940 = vmatpush3.bf16.msra.mxu1 %v18181_v27 }
0x1b70   :  { %15941 = vmatprep.subr.bf16.mxu0 %v16790_v17  ;;  %15947 = vmatprep.subr.bf16.mxu1 %v16790_v17 }
0x1b72   :  { %14937 = vmatmul.mubr.msk.f32.vlgmr.msra.gmra.mrb[120].mxu0 %vm519_vm2, %v10439_v55  ;;  %14948 = vmatmul.mubr.msk.f32.vlgmr.msra.gmra.mrb[124].mxu1 %vm519_vm2, %v10439_v55 }
0x1b73   :  { %15943 = vmatpush3.bf16.msra.mxu0 %v18147_v32  ;;  %15949 = vmatpush3.bf16.msra.mxu1 %v18149_v2 }
0x1b74   :  { %15944 = vmatprep.subr.bf16.mxu0 %v16790_v17  ;;  %15950 = vmatprep.subr.bf16.mxu1 %v16790_v17 }
0x1b75   :  { %14958 = vmatprep.mubr.msk.f32.mxu0 %vm16791_vm1, %v16792_v26  ;;  %14969 = vmatprep.mubr.msk.f32.mxu1 %vm16791_vm1, %v16792_v26 }
0x1b77   :  { %15946 = vmatpush3.bf16.msra.mxu0 %v18157_v31  ;;  %15952 = vmatpush3.bf16.msra.mxu1 %v18159_v42 }
0x1b78   :  { %15953 = vmatprep.subr.bf16.mxu0 %v16790_v17  ;;  %15959 = vmatprep.subr.bf16.mxu1 %v16790_v17 }
0x1c3d   :  { %v10508_v54 = vpop.f32.mrb[118].mxu0  ;;  %v10592_v62 = vpop.f32.mrb[122].mxu1 }
0x1c3e   :  { %v10513_v38 = vrot.slane %v10508_v54, 4  ;;  %v10597_v3 = vrot.slane %v10592_v62, 4  ;;  %v14916_v35 = vpop.f32.mrb[119].mxu0  ;;  %v14927_v36 = vpop.f32.mrb[123].mxu1 }
0x1c40   :  { %v10515_v45 = vadd.f32 %v10513_v38, %v18227_v8  ;;  %v10599_v7 = vadd.f32 %v10597_v3, %v18229_v11 }
0x1c42   :  { %v12824_v61 = vmul.f32 -1.442695, %v10515_v45  ;;  %v12826_v10 = vmul.f32 -1.442695, %v10599_v7 }
0x1c44   :  { %16498 = vpow2.f32 %v12824_v61 }
0x1c45   :  { %16500 = vpow2.f32 %v12826_v10  ;;  %v10676_v47 = vpop.f32.mrb[120].mxu0  ;;  %v10755_v49 = vpop.f32.mrb[124].mxu1 }
0x1c46   :  { %v10760_v48 = vrot.slane %v10755_v49, 4  ;;  %v14938_v58 = vpop.f32.mrb[121].mxu0  ;;  %v14949_v18 = vpop.f32.mrb[125].mxu1  ;;  %v10681_v6 = vrot.slane %v10676_v47, 4 }
0x1c48   :  { %v10762_v52 = vadd.f32 %v10760_v48, %v18233_v28  ;;  %v10683_v21 = vadd.f32 %v10681_v6, %v18236_v34 }
0x1c4a   :  { %v12829_v53 = vmul.f32 -1.442695, %v10762_v52 }
0x1c4c   :  { %16502 = vpow2.f32 %v12829_v53 }
0x1c4d   :  { %16504 = vtanh.f32 %v10683_v21 }
0x1c4e   :  { %v16499_v24 = vpop.eup %16498 }
0x1c4f   :  { %v16501_v29 = vpop.eup %16500  ;;  %v10519_v33 = vadd.f32 1.0, %v16499_v24 }
0x1c50   :  { %v10603_v0 = vadd.f32 1.0, %v16501_v29 }
0x1c51   :  { %16506 = vrcp.f32 %v10519_v33 }
0x1c52   :  { %16508 = vrcp.f32 %v10603_v0 }
0x1c56   :  { %v16503_v1 = vpop.eup %16502 }
0x1c57   :  { %v16505_v37 = vpop.eup %16504  ;;  %v10766_v13 = vadd.f32 1.0, %v16503_v1 }
0x1c59   :  { %16510 = vrcp.f32 %v10766_v13 }
0x1c5b   :  { %v16507_v23 = vpop.eup %16506 }
0x1c5c   :  { %v16509_v9 = vpop.eup %16508  ;;  %v10773_v39 = vmul.f32 %v16507_v23, %v16505_v37 }
0x1c5d   :  { %v10772_v41 = vmul.f32 %v16509_v9, %v10770_v12 }
0x1c5f   :  { %v18313_v43 = vadd.f32 %v10773_v39, %v10772_v41 }
0x1c61   :  { %16512 = vtanh.f32 %v18313_v43  ;;  %v11114_v18 = vrot.slane %v18313_v43, 6 }
0x1c63   :  { %v16511_v44 = vpop.eup %16510 }
0x1c6b   :  { %v16513_v14 = vpop.eup %16512 }
0x1c6c   :  { %v10776_v50 = vmul.f32 %v16513_v14, %v16511_v44 }
0x1c6e   :  { %v10783_v22 = vrot.slane %v10776_v50, 4  ;;  %10777 = vst.msk [vmem:[#allocation2] sm:$0x30] %vm1535_vm5, %v10776_v50 }
0x1c70   :  { %14959 = vmatmul.mubr.msk.f32.vlgmr.msra.gmra.mrb[122].mxu0 %vm519_vm2, %v10783_v22  ;;  %14970 = vmatmul.mubr.msk.f32.vlgmr.msra.gmra.mrb[126].mxu1 %vm519_vm2, %v10783_v22 }
0x1c71   :  { %15955 = vmatpush3.bf16.msra.mxu0 %v18169_v51  ;;  %15961 = vmatpush3.bf16.msra.mxu1 %v18171_v5 }
0x1c72   :  { %15956 = vmatprep.subr.bf16.mxu0 %v16790_v17  ;;  %15962 = vmatprep.subr.bf16.mxu1 %v16790_v17 }
0x1c73   :  { %14980 = vmatprep.mubr.msk.f32.mxu0 %vm16791_vm1, %v16792_v26  ;;  %14991 = vmatprep.mubr.msk.f32.mxu1 %vm16791_vm1, %v16792_v26 }
0x1c75   :  { %15958 = vmatpush3.bf16.msra.mxu0 %v18179_v63  ;;  %15964 = vmatpush3.bf16.msra.mxu1 %v18181_v27 }
0x1c76   :  { %15965 = vmatprep.subr.bf16.mxu0 %v16790_v17  ;;  %15971 = vmatprep.subr.bf16.mxu1 %v16790_v17 }
0x1c78   :  { %14981 = vmatmul.mubr.msk.f32.vlgmr.msra.gmra.mrb[124].mxu0 %vm519_vm2, %v10783_v22  ;;  %14992 = vmatmul.mubr.msk.f32.vlgmr.msra.gmra.mrb[128].mxu1 %vm519_vm2, %v10783_v22 }
0x1c79   :  { %15967 = vmatpush3.bf16.msra.mxu0 %v18147_v32  ;;  %15973 = vmatpush3.bf16.msra.mxu1 %v18149_v2 }
0x1c7a   :  { %15968 = vmatprep.subr.bf16.mxu0 %v16790_v17  ;;  %15974 = vmatprep.subr.bf16.mxu1 %v16790_v17 }
0x1c7b   :  { %15002 = vmatprep.mubr.msk.f32.mxu0 %vm16791_vm1, %v16792_v26  ;;  %15013 = vmatprep.mubr.msk.f32.mxu1 %vm16791_vm1, %v16792_v26 }
0x1c7d   :  { %15970 = vmatpush3.bf16.msra.mxu0 %v18157_v31  ;;  %15976 = vmatpush3.bf16.msra.mxu1 %v18159_v42 }
0x1c7e   :  { %15977 = vmatprep.subr.bf16.mxu0 %v16790_v17  ;;  %15983 = vmatprep.subr.bf16.mxu1 %v16790_v17 }
0x1d43   :  { %v10852_v16 = vpop.f32.mrb[122].mxu0  ;;  %v10936_v19 = vpop.f32.mrb[126].mxu1 }
0x1d44   :  { %v10857_v20 = vrot.slane %v10852_v16, 2  ;;  %v10941_v40 = vrot.slane %v10936_v19, 2  ;;  %v14960_v25 = vpop.f32.mrb[123].mxu0  ;;  %v14971_v56 = vpop.f32.mrb[127].mxu1 }
0x1d46   :  { %v10859_v46 = vadd.f32 %v10857_v20, %v18227_v8  ;;  %v10943_v57 = vadd.f32 %v10941_v40, %v18229_v11 }
0x1d48   :  { %v12831_v30 = vmul.f32 -1.442695, %v10859_v46  ;;  %v12833_v55 = vmul.f32 -1.442695, %v10943_v57 }
0x1d4a   :  { %16514 = vpow2.f32 %v12831_v30 }
0x1d4b   :  { %16516 = vpow2.f32 %v12833_v55  ;;  %v11020_v54 = vpop.f32.mrb[124].mxu0  ;;  %v11099_v62 = vpop.f32.mrb[128].mxu1 }
0x1d4c   :  { %v11104_v38 = vrot.slane %v11099_v62, 2  ;;  %v14982_v3 = vpop.f32.mrb[125].mxu0  ;;  %v14993_v35 = vpop.f32.mrb[129].mxu1  ;;  %v11025_v36 = vrot.slane %v11020_v54, 2 }
0x1d4d   :  { %v11885_v3 = vld [vmem:[#allocation15 + $0x20] sm:$0xff]  ;;  %v11799_v35 = vld [vmem:[#allocation15 + $0x10] sm:$0xff] }
0x1d4e   :  { %v11106_v45 = vadd.f32 %v11104_v38, %v18233_v28  ;;  %v11027_v61 = vadd.f32 %v11025_v36, %v18236_v34  ;;  %v11800_v36 = vld [vmem:[#allocation15 + $0x18] sm:$0xff] }
0x1d50   :  { %v12836_v7 = vmul.f32 -1.442695, %v11106_v45 }
0x1d52   :  { %16518 = vpow2.f32 %v12836_v7  ;;  %v11887_v7 = vld [vmem:[#allocation15 + $0x30] sm:$0xff] }
0x1d53   :  { %16520 = vtanh.f32 %v11027_v61  ;;  %v11888_v61 = vld [vmem:[#allocation15 + $0x38] sm:$0xff] }
0x1d54   :  { %v16515_v10 = vpop.eup %16514 }
0x1d55   :  { %v16517_v47 = vpop.eup %16516  ;;  %v10863_v8 = vadd.f32 1.0, %v16515_v10  ;;  %v18416_v10 = vpack.c.bf16 %v11800_v36, %v11799_v35 }
0x1d56   :  { %v10947_v11 = vadd.f32 1.0, %v16517_v47  ;;  %v18420_v47 = vpack.c.bf16 %v11888_v61, %v11887_v7 }
0x1d57   :  { %16522 = vrcp.f32 %v10863_v8 }
0x1d58   :  { %16524 = vrcp.f32 %v10947_v11 }
0x1d5c   :  { %v16519_v49 = vpop.eup %16518 }
0x1d5d   :  { %v16521_v48 = vpop.eup %16520  ;;  %v11110_v53 = vadd.f32 1.0, %v16519_v49 }
0x1d5f   :  { %16526 = vrcp.f32 %v11110_v53 }
0x1d61   :  { %v16523_v58 = vpop.eup %16522 }
0x1d62   :  { %v16525_v6 = vpop.eup %16524  ;;  %v11117_v52 = vmul.f32 %v16523_v58, %v16521_v48 }
0x1d63   :  { %v11116_v28 = vmul.f32 %v16525_v6, %v11114_v18 }
0x1d65   :  { %v18350_v21 = vadd.f32 %v11117_v52, %v11116_v28 }
0x1d67   :  { %16528 = vtanh.f32 %v18350_v21  ;;  %v11446_v25 = vrot.slane %v18350_v21, 6 }
0x1d69   :  { %v16527_v34 = vpop.eup %16526 }
0x1d71   :  { %v16529_v24 = vpop.eup %16528 }
0x1d72   :  { %v11120_v29 = vmul.f32 %v16529_v24, %v16527_v34 }
0x1d74   :  { %v11127_v33 = vrot.slane %v11120_v29, 6  ;;  %11121 = vst.msk [vmem:[#allocation2] sm:$0xc0] %vm1880_vm6, %v11120_v29 }
0x1d76   :  { %15003 = vmatmul.mubr.msk.f32.vlgmr.msra.gmra.mrb[126].mxu0 %vm519_vm2, %v11127_v33  ;;  %15014 = vmatmul.mubr.msk.f32.vlgmr.msra.gmra.mrb[130].mxu1 %vm519_vm2, %v11127_v33 }
0x1d77   :  { %15979 = vmatpush3.bf16.msra.mxu0 %v18169_v51  ;;  %15985 = vmatpush3.bf16.msra.mxu1 %v18171_v5 }
0x1d78   :  { %15980 = vmatprep.subr.bf16.mxu0 %v16790_v17  ;;  %15986 = vmatprep.subr.bf16.mxu1 %v16790_v17 }
0x1d79   :  { %15024 = vmatprep.mubr.msk.f32.mxu0 %vm16791_vm1, %v16792_v26  ;;  %15035 = vmatprep.mubr.msk.f32.mxu1 %vm16791_vm1, %v16792_v26 }
0x1d7b   :  { %15982 = vmatpush3.bf16.msra.mxu0 %v18179_v63  ;;  %15988 = vmatpush3.bf16.msra.mxu1 %v18181_v27 }
0x1d7c   :  { %15989 = vmatprep.subr.bf16.mxu0 %v16790_v17  ;;  %15995 = vmatprep.subr.bf16.mxu1 %v16790_v17 }
0x1d7e   :  { %15025 = vmatmul.mubr.msk.f32.vlgmr.msra.gmra.mrb[128].mxu0 %vm519_vm2, %v11127_v33  ;;  %15036 = vmatmul.mubr.msk.f32.vlgmr.msra.gmra.mrb[132].mxu1 %vm519_vm2, %v11127_v33 }
0x1d7f   :  { %15991 = vmatpush3.bf16.msra.mxu0 %v18147_v32  ;;  %15997 = vmatpush3.bf16.msra.mxu1 %v18149_v2 }
0x1d80   :  { %15992 = vmatprep.subr.bf16.mxu0 %v16790_v17  ;;  %15998 = vmatprep.subr.bf16.mxu1 %v16790_v17 }
0x1d81   :  { %15046 = vmatprep.mubr.msk.f32.mxu0 %vm16791_vm1, %v16792_v26  ;;  %15057 = vmatprep.mubr.msk.f32.mxu1 %vm16791_vm1, %v16792_v26 }
0x1d83   :  { %15994 = vmatpush3.bf16.msra.mxu0 %v18157_v31  ;;  %16000 = vmatpush3.bf16.msra.mxu1 %v18159_v42 }
0x1d84   :  { %16001 = vmatprep.subr.bf16.mxu0 %v16790_v17  ;;  %16007 = vmatprep.subr.bf16.mxu1 %v16790_v17 }
0x1e49   :  { %v11196_v32 = vpop.f32.mrb[126].mxu0  ;;  %v11277_v2 = vpop.f32.mrb[130].mxu1 }
0x1e4a   :  { %v11200_v0 = vadd.f32 %v11196_v32, %v18213_v59  ;;  %v11281_v1 = vadd.f32 %v11277_v2, %v18215_v60  ;;  %v15004_v37 = vpop.f32.mrb[127].mxu0  ;;  %v15015_v23 = vpop.f32.mrb[131].mxu1 }
0x1e4c   :  { %v12838_v12 = vmul.f32 -1.442695, %v11200_v0  ;;  %v12840_v9 = vmul.f32 -1.442695, %v11281_v1 }
0x1e4e   :  { %16530 = vpow2.f32 %v12838_v12 }
0x1e4f   :  { %16532 = vpow2.f32 %v12840_v9 }
0x1e51   :  { %v11358_v39 = vpop.f32.mrb[128].mxu0  ;;  %v11434_v31 = vpop.f32.mrb[132].mxu1 }
0x1e52   :  { %v11438_v42 = vadd.f32 %v11434_v31, %v18225_v15  ;;  %v15026_v13 = vpop.f32.mrb[129].mxu0  ;;  %v15037_v41 = vpop.f32.mrb[133].mxu1  ;;  %v11362_v44 = vadd.f32 %v11358_v39, %v18223_v4 }
0x1e54   :  { %v12843_v43 = vmul.f32 -1.442695, %v11438_v42 }
0x1e56   :  { %16534 = vpow2.f32 %v12843_v43 }
0x1e57   :  { %16536 = vtanh.f32 %v11362_v44 }
0x1e58   :  { %v16531_v14 = vpop.eup %16530 }
0x1e59   :  { %v16533_v50 = vpop.eup %16532  ;;  %v11204_v22 = vadd.f32 1.0, %v16531_v14 }
0x1e5a   :  { %v11285_v16 = vadd.f32 1.0, %v16533_v50 }
0x1e5b   :  { %16538 = vrcp.f32 %v11204_v22  ;;  %v11969_v22 = vld [vmem:[#allocation15 + $0x40] sm:$0xff] }
0x1e5c   :  { %16540 = vrcp.f32 %v11285_v16 }
0x1e60   :  { %v16535_v19 = vpop.eup %16534 }
0x1e61   :  { %v16537_v20 = vpop.eup %16536  ;;  %v11442_v57 = vadd.f32 1.0, %v16535_v19  ;;  %v11970_v19 = vld [vmem:[#allocation15 + $0x48] sm:$0xff] }
0x1e63   :  { %16542 = vrcp.f32 %v11442_v57 }
0x1e65   :  { %v16539_v40 = vpop.eup %16538 }
0x1e66   :  { %v16541_v56 = vpop.eup %16540  ;;  %v11449_v46 = vmul.f32 %v16539_v40, %v16537_v20  ;;  %v12048_v20 = vld [vmem:[#allocation15 + $0x60] sm:$0xff]  ;;  %v12049_v40 = vld [vmem:[#allocation15 + $0x68] sm:$0xff] }
0x1e67   :  { %v11448_v30 = vmul.f32 %v16541_v56, %v11446_v25  ;;  %v18437_v57 = vpack.c.bf16 %v12049_v40, %v12048_v20 }
0x1e69   :  { %v18387_v55 = vadd.f32 %v11449_v46, %v11448_v30  ;;  %v18435_v46 = vpack.c.bf16 %v11970_v19, %v11969_v22  ;;  %v11971_v30 = vld [vmem:[#allocation15 + $0x50] sm:$0xff] }
0x1e6b   :  { %16544 = vtanh.f32 %v18387_v55  ;;  %v11789_v13 = vrot.slane %v18387_v55, 6 }
0x1e6d   :  { %v16543_v54 = vpop.eup %16542 }
0x1e75   :  { %v16545_v62 = vpop.eup %16544 }
0x1e76   :  { %v11452_v38 = vmul.f32 %v16545_v62, %v16543_v54  ;;  %v11972_v54 = vld [vmem:[#allocation15 + $0x58] sm:$0xff]  ;;  %v12050_v62 = vld [vmem:[#allocation15 + $0x70] sm:$0xff] }
0x1e78   :  { %11453 = vst.msk [vmem:[#allocation2 + $0x8] sm:$0x3] %vm846_vm3, %v11452_v38  ;;  %15047 = vmatmul.mubr.msk.f32.vlgmr.msra.gmra.mrb[130].mxu0 %vm519_vm2, %v11452_v38  ;;  %15058 = vmatmul.mubr.msk.f32.vlgmr.msra.gmra.mrb[134].mxu1 %vm519_vm2, %v11452_v38 }
0x1e79   :  { %16003 = vmatpush3.bf16.msra.mxu0 %v18169_v51  ;;  %16009 = vmatpush3.bf16.msra.mxu1 %v18171_v5  ;;  %v11797_v51 = vld [vmem:[#allocation15] sm:$0xff]  ;;  %v11798_v5 = vld [vmem:[#allocation15 + $0x8] sm:$0xff] }
0x1e7a   :  { %16004 = vmatprep.subr.bf16.mxu0 %v16790_v17  ;;  %16010 = vmatprep.subr.bf16.mxu1 %v16790_v17 }
0x1e7b   :  { %15068 = vmatprep.mubr.msk.f32.mxu0 %vm16791_vm1, %v16792_v26  ;;  %15079 = vmatprep.mubr.msk.f32.mxu1 %vm16791_vm1, %v16792_v26 }
0x1e7d   :  { %16006 = vmatpush3.bf16.msra.mxu0 %v18179_v63  ;;  %16012 = vmatpush3.bf16.msra.mxu1 %v18181_v27  ;;  %v18411_v63 = vpack.c.bf16 %v11798_v5, %v11797_v51  ;;  %v11886_v27 = vld [vmem:[#allocation15 + $0x28] sm:$0xff]  ;;  %v18444_v51 = vpack.c.bf16 %v11972_v54, %v11971_v30 }
0x1e7e   :  { %16013 = vmatprep.subr.bf16.mxu0 %v16790_v17  ;;  %16019 = vmatprep.subr.bf16.mxu1 %v16790_v17  ;;  %v18413_v45 = vpack.c.bf16 %v11886_v27, %v11885_v3 }
0x1e80   :  { %15069 = vmatmul.mubr.msk.f32.vlgmr.msra.gmra.mrb[132].mxu0 %vm519_vm2, %v11452_v38  ;;  %15080 = vmatmul.mubr.msk.f32.vlgmr.msra.gmra.mrb[136].mxu1 %vm519_vm2, %v11452_v38  ;;  %v12051_v38 = vld [vmem:[#allocation15 + $0x78] sm:$0xff] }
0x1e81   :  { %15090 = vmatprep.mubr.msk.f32.mxu0 %vm16791_vm1, %v16792_v26  ;;  %15101 = vmatprep.mubr.msk.f32.mxu1 %vm16791_vm1, %v16792_v26  ;;  %v18446_v5 = vpack.c.bf16 %v12051_v38, %v12050_v62 }
0x1e82   :  { %16015 = vmatpush3.bf16.msra.mxu0 %v18411_v63  ;;  %16021 = vmatpush3.bf16.msra.mxu1 %v18413_v45 }
0x1e83   :  { %16016 = vmatprep.subr.bf16.mxu0 %v16790_v17  ;;  %16022 = vmatprep.subr.bf16.mxu1 %v16790_v17 }
0x1e86   :  { %16018 = vmatpush3.bf16.msra.mxu0 %v18416_v10  ;;  %16024 = vmatpush3.bf16.msra.mxu1 %v18420_v47 }
0x1e87   :  { %16025 = vmatprep.subr.bf16.mxu0 %v16790_v17  ;;  %16031 = vmatprep.subr.bf16.mxu1 %v16790_v17 }
0x1f4b   :  { %v11527_v8 = vpop.f32.mrb[130].mxu0  ;;  %v11611_v11 = vpop.f32.mrb[134].mxu1 }
0x1f4c   :  { %v11532_v49 = vrot.slane %v11527_v8, 6  ;;  %v11616_v48 = vrot.slane %v11611_v11, 6  ;;  %v15048_v58 = vpop.f32.mrb[131].mxu0  ;;  %v15059_v18 = vpop.f32.mrb[135].mxu1 }
0x1f4e   :  { %v11534_v6 = vadd.f32 %v11532_v49, %v18213_v59  ;;  %v11618_v52 = vadd.f32 %v11616_v48, %v18215_v60 }
0x1f50   :  { %v12845_v53 = vmul.f32 -1.442695, %v11534_v6  ;;  %v12847_v28 = vmul.f32 -1.442695, %v11618_v52 }
0x1f52   :  { %16546 = vpow2.f32 %v12845_v53 }
0x1f53   :  { %16548 = vpow2.f32 %v12847_v28  ;;  %v11695_v21 = vpop.f32.mrb[132].mxu0  ;;  %v11774_v34 = vpop.f32.mrb[136].mxu1 }
0x1f54   :  { %v11779_v24 = vrot.slane %v11774_v34, 6  ;;  %v15070_v29 = vpop.f32.mrb[133].mxu0  ;;  %v15081_v33 = vpop.f32.mrb[137].mxu1  ;;  %v11700_v32 = vrot.slane %v11695_v21, 6 }
0x1f56   :  { %v11781_v2 = vadd.f32 %v11779_v24, %v18225_v15  ;;  %v11702_v1 = vadd.f32 %v11700_v32, %v18223_v4 }
0x1f58   :  { %v12850_v0 = vmul.f32 -1.442695, %v11781_v2 }
0x1f5a   :  { %16550 = vpow2.f32 %v12850_v0 }
0x1f5b   :  { %16552 = vtanh.f32 %v11702_v1 }
0x1f5c   :  { %v16547_v37 = vpop.eup %16546 }
0x1f5d   :  { %v16549_v23 = vpop.eup %16548  ;;  %v11538_v12 = vadd.f32 1.0, %v16547_v37 }
0x1f5e   :  { %v11622_v9 = vadd.f32 1.0, %v16549_v23 }
0x1f5f   :  { %16554 = vrcp.f32 %v11538_v12 }
0x1f60   :  { %16556 = vrcp.f32 %v11622_v9 }
0x1f64   :  { %v16551_v39 = vpop.eup %16550 }
0x1f65   :  { %v16553_v31 = vpop.eup %16552  ;;  %v11785_v44 = vadd.f32 1.0, %v16551_v39 }
0x1f67   :  { %16558 = vrcp.f32 %v11785_v44  ;;  %v12490_v44 = vld [vmem:[%s18541_s14 + $0x18] sm:$0xff] }
0x1f69   :  { %v16555_v42 = vpop.eup %16554 }
0x1f6a   :  { %v16557_v41 = vpop.eup %16556  ;;  %v11792_v43 = vmul.f32 %v16555_v42, %v16553_v31 }
0x1f6b   :  { %v11791_v14 = vmul.f32 %v16557_v41, %v11789_v13  ;;  %v12485_v13 = vld [vmem:[#allocation2] sm:$0xff]  ;;  %v12488_v41 = vld [vmem:[%s18541_s14 + $0x8] sm:$0xff] }
0x1f6d   :  { %v18432_v50 = vadd.f32 %v11792_v43, %v11791_v14  ;;  %v12489_v43 = vld [vmem:[%s18541_s14 + $0x10] sm:$0xff] }
0x1f6e   :  { %v16065_v14 = vpack.c.bf16 %v12490_v44, %v12489_v43 }
0x1f6f   :  { %16560 = vtanh.f32 %v18432_v50  ;;  %v12133_v2 = vrot.slane %v18432_v50, 6 }
0x1f71   :  { %v16559_v16 = vpop.eup %16558 }
0x1f79   :  { %v16561_v25 = vpop.eup %16560 }
0x1f7a   :  { %v11795_v56 = vmul.f32 %v16561_v25, %v16559_v16 }
0x1f7c   :  { %v11802_v55 = vrot.slane %v11795_v56, 2  ;;  %11796 = vst.msk [vmem:[#allocation2 + $0x8] sm:$0xc] %vm1190_vm4, %v11795_v56 }
0x1f7e   :  { %15091 = vmatmul.mubr.msk.f32.vlgmr.msra.gmra.mrb[134].mxu0 %vm519_vm2, %v11802_v55  ;;  %15102 = vmatmul.mubr.msk.f32.vlgmr.msra.gmra.mrb[138].mxu1 %vm519_vm2, %v11802_v55 }
0x1f7f   :  { %16027 = vmatpush3.bf16.msra.mxu0 %v18435_v46  ;;  %16033 = vmatpush3.bf16.msra.mxu1 %v18437_v57 }
0x1f80   :  { %16028 = vmatprep.subr.bf16.mxu0 %v16790_v17  ;;  %16034 = vmatprep.subr.bf16.mxu1 %v16790_v17 }
0x1f81   :  { %15112 = vmatprep.mubr.msk.f32.mxu0 %vm16791_vm1, %v16792_v26  ;;  %15123 = vmatprep.mubr.msk.f32.mxu1 %vm16791_vm1, %v16792_v26 }
0x1f83   :  { %16030 = vmatpush3.bf16.msra.mxu0 %v18444_v51  ;;  %16036 = vmatpush3.bf16.msra.mxu1 %v18446_v5 }
0x1f84   :  { %16037 = vmatprep.subr.bf16.mxu0 %v16790_v17  ;;  %16043 = vmatprep.subr.bf16.mxu1 %v16790_v17 }
0x1f86   :  { %15113 = vmatmul.mubr.msk.f32.vlgmr.msra.gmra.mrb[136].mxu0 %vm519_vm2, %v11802_v55  ;;  %15124 = vmatmul.mubr.msk.f32.vlgmr.msra.gmra.mrb[140].mxu1 %vm519_vm2, %v11802_v55 }
0x1f87   :  { %16039 = vmatpush3.bf16.msra.mxu0 %v18411_v63  ;;  %16045 = vmatpush3.bf16.msra.mxu1 %v18413_v45 }
0x1f88   :  { %16040 = vmatprep.subr.bf16.mxu0 %v16790_v17  ;;  %16046 = vmatprep.subr.bf16.mxu1 %v16790_v17 }
0x1f89   :  { %15134 = vmatprep.mubr.msk.f32.mxu0 %vm16791_vm1, %v16792_v26  ;;  %15145 = vmatprep.mubr.msk.f32.mxu1 %vm16791_vm1, %v16792_v26 }
0x1f8b   :  { %16042 = vmatpush3.bf16.msra.mxu0 %v18416_v10  ;;  %16048 = vmatpush3.bf16.msra.mxu1 %v18420_v47 }
0x1f8c   :  { %16049 = vmatprep.subr.bf16.mxu0 %v16790_v17  ;;  %16055 = vmatprep.subr.bf16.mxu1 %v16790_v17 }
0x2051   :  { %v11871_v3 = vpop.f32.mrb[134].mxu0  ;;  %v11955_v63 = vpop.f32.mrb[138].mxu1 }
0x2052   :  { %v11876_v27 = vrot.slane %v11871_v3, 4  ;;  %v11960_v35 = vrot.slane %v11955_v63, 4  ;;  %v15092_v36 = vpop.f32.mrb[135].mxu0  ;;  %v15103_v45 = vpop.f32.mrb[139].mxu1 }
0x2054   :  { %v11878_v7 = vadd.f32 %v11876_v27, %v18213_v59  ;;  %v11962_v61 = vadd.f32 %v11960_v35, %v18215_v60 }
0x2056   :  { %v12852_v8 = vmul.f32 -1.442695, %v11878_v7  ;;  %v12854_v11 = vmul.f32 -1.442695, %v11962_v61 }
0x2058   :  { %16562 = vpow2.f32 %v12852_v8 }
0x2059   :  { %16564 = vpow2.f32 %v12854_v11  ;;  %v12039_v10 = vpop.f32.mrb[136].mxu0  ;;  %v12118_v47 = vpop.f32.mrb[140].mxu1 }
0x205a   :  { %v12123_v49 = vrot.slane %v12118_v47, 4  ;;  %v15114_v48 = vpop.f32.mrb[137].mxu0  ;;  %v15125_v58 = vpop.f32.mrb[141].mxu1  ;;  %v12044_v18 = vrot.slane %v12039_v10, 4 }
0x205c   :  { %v12125_v6 = vadd.f32 %v12123_v49, %v18225_v15  ;;  %v12046_v53 = vadd.f32 %v12044_v18, %v18223_v4  ;;  %v12580_v18 = vld [vmem:[%s18528_s1 + $0x8] sm:$0xff] }
0x205e   :  { %v12857_v52 = vmul.f32 -1.442695, %v12125_v6  ;;  %v12579_v6 = vld [vmem:[%s18528_s1] sm:$0xff] }
0x2060   :  { %16566 = vpow2.f32 %v12857_v52  ;;  %v12865_v52 = vld [vmem:[#allocation3] ss:$0 sm:$0xff] }
0x2061   :  { %16568 = vtanh.f32 %v12046_v53  ;;  %v12582_v53 = vmul.f32 10.0, %v12580_v18 }
0x2062   :  { %v16563_v28 = vpop.eup %16562 }
0x2063   :  { %v16565_v21 = vpop.eup %16564  ;;  %v11882_v34 = vadd.f32 1.0, %v16563_v28 }
0x2064   :  { %v11966_v24 = vadd.f32 1.0, %v16565_v21  ;;  %v12581_v21 = vmul.f32 10.0, %v12579_v6 }
0x2065   :  { %16570 = vrcp.f32 %v11882_v34 }
0x2066   :  { %16572 = vrcp.f32 %v11966_v24 }
0x206a   :  { %v16567_v29 = vpop.eup %16566 }
0x206b   :  { %v16569_v33 = vpop.eup %16568  ;;  %v12129_v37 = vadd.f32 1.0, %v16567_v29 }
0x206d   :  { %16574 = vrcp.f32 %v12129_v37 }
0x206f   :  { %v16571_v32 = vpop.eup %16570 }
0x2070   :  { %v16573_v0 = vpop.eup %16572  ;;  %v12136_v1 = vmul.f32 %v16571_v32, %v16569_v33 }
0x2071   :  { %v12135_v23 = vmul.f32 %v16573_v0, %v12133_v2 }
0x2073   :  { %v18477_v12 = vadd.f32 %v12136_v1, %v12135_v23 }
0x2075   :  { %16576 = vtanh.f32 %v18477_v12  ;;  %v12477_v61 = vrot.slane %v18477_v12, 6 }
0x2077   :  { %v16575_v9 = vpop.eup %16574 }
0x207f   :  { %v16577_v39 = vpop.eup %16576 }
0x2080   :  { %v12139_v31 = vmul.f32 %v16577_v39, %v16575_v9 }
0x2082   :  { %v12146_v42 = vrot.slane %v12139_v31, 4  ;;  %12140 = vst.msk [vmem:[#allocation2 + $0x8] sm:$0x30] %vm1535_vm5, %v12139_v31 }
0x2084   :  { %15135 = vmatmul.mubr.msk.f32.vlgmr.msra.gmra.mrb[138].mxu0 %vm519_vm2, %v12146_v42  ;;  %15146 = vmatmul.mubr.msk.f32.vlgmr.msra.gmra.mrb[142].mxu1 %vm519_vm2, %v12146_v42 }
0x2085   :  { %16051 = vmatpush3.bf16.msra.mxu0 %v18435_v46  ;;  %16057 = vmatpush3.bf16.msra.mxu1 %v18437_v57 }
0x2086   :  { %16052 = vmatprep.subr.bf16.mxu0 %v16790_v17  ;;  %16058 = vmatprep.subr.bf16.mxu1 %v16790_v17  ;;  %v12487_v17 = vld [vmem:[%s18541_s14] sm:$0xff] }
0x2087   :  { %15156 = vmatprep.mubr.msk.f32.mxu0 %vm16791_vm1, %v16792_v26  ;;  %15167 = vmatprep.mubr.msk.f32.mxu1 %vm16791_vm1, %v16792_v26  ;;  %v16061_v26 = vpack.c.bf16 %v12488_v41, %v12487_v17 }
0x2089   :  { %16054 = vmatpush3.bf16.msra.mxu0 %v18444_v51  ;;  %16060 = vmatpush3.bf16.msra.mxu1 %v18446_v5 }
0x208a   :  { %16062 = vmatprep.subr.bf16.mxu0 %v16061_v26 }
0x208c   :  { %15157 = vmatmul.mubr.msk.f32.vlgmr.msra.gmra.mrb[140].mxu0 %vm519_vm2, %v12146_v42  ;;  %15168 = vmatmul.mubr.msk.f32.vlgmr.msra.gmra.mrb[144].mxu1 %vm519_vm2, %v12146_v42 }
0x208d   :  { %15178 = vmatprep.mubr.msk.f32.mxu0 %vm519_vm2, %v12485_v13  ;;  %16064 = vmatpush3.bf16.msra.mxu0 %v16061_v26 }
0x208e   :  { %16066 = vmatprep.subr.bf16.mxu0 %v16065_v14 }
0x2091   :  { %16068 = vmatpush3.bf16.msra.mxu0 %v16065_v14 }
0x2157   :  { %v12215_v50 = vpop.f32.mrb[138].mxu0  ;;  %v12299_v22 = vpop.f32.mrb[142].mxu1 }
0x2158   :  { %v12220_v16 = vrot.slane %v12215_v50, 2  ;;  %v12304_v19 = vrot.slane %v12299_v22, 2  ;;  %v15136_v20 = vpop.f32.mrb[139].mxu0  ;;  %v15147_v40 = vpop.f32.mrb[143].mxu1 }
0x215a   :  { %v12222_v25 = vadd.f32 %v12220_v16, %v18213_v59  ;;  %v12306_v56 = vadd.f32 %v12304_v19, %v18215_v60 }
0x215c   :  { %v12859_v46 = vmul.f32 -1.442695, %v12222_v25  ;;  %v12861_v57 = vmul.f32 -1.442695, %v12306_v56 }
0x215e   :  { %16578 = vpow2.f32 %v12859_v46 }
0x215f   :  { %16580 = vpow2.f32 %v12861_v57  ;;  %v12383_v30 = vpop.f32.mrb[140].mxu0  ;;  %v12462_v55 = vpop.f32.mrb[144].mxu1 }
0x2160   :  { %v12467_v54 = vrot.slane %v12462_v55, 2  ;;  %v15158_v62 = vpop.f32.mrb[141].mxu0  ;;  %v15169_v38 = vpop.f32.mrb[145].mxu1  ;;  %v12388_v51 = vrot.slane %v12383_v30, 2 }
0x2162   :  { %v12469_v5 = vadd.f32 %v12467_v54, %v18225_v15  ;;  %v12390_v63 = vadd.f32 %v12388_v51, %v18223_v4 }
0x2164   :  { %v12864_v3 = vmul.f32 -1.442695, %v12469_v5 }
0x2166   :  { %16582 = vpow2.f32 %v12864_v3 }
0x2167   :  { %16584 = vtanh.f32 %v12390_v63 }
0x2168   :  { %v16579_v27 = vpop.eup %16578 }
0x2169   :  { %v16581_v35 = vpop.eup %16580  ;;  %v12226_v59 = vadd.f32 1.0, %v16579_v27 }
0x216a   :  { %v12310_v60 = vadd.f32 1.0, %v16581_v35 }
0x216b   :  { %16586 = vrcp.f32 %v12226_v59 }
0x216c   :  { %16588 = vrcp.f32 %v12310_v60 }
0x2170   :  { %v16583_v36 = vpop.eup %16582 }
0x2171   :  { %v16585_v45 = vpop.eup %16584  ;;  %v12473_v10 = vadd.f32 1.0, %v16583_v36 }
0x2173   :  { %16590 = vrcp.f32 %v12473_v10 }
0x2175   :  { %v16587_v7 = vpop.eup %16586 }
0x2176   :  { %v16589_v8 = vpop.eup %16588  ;;  %v12480_v11 = vmul.f32 %v16587_v7, %v16585_v45 }
0x2177   :  { %v12479_v15 = vmul.f32 %v16589_v8, %v12477_v61 }
0x2179   :  { %v12481_v47 = vadd.f32 %v12480_v11, %v12479_v15 }
0x217b   :  { %16592 = vtanh.f32 %v12481_v47 }
0x217d   :  { %v16591_v4 = vpop.eup %16590 }
0x2185   :  { %v16593_v49 = vpop.eup %16592 }
0x2186   :  { %v12483_v48 = vmul.f32 %v16593_v49, %v16591_v4 }
0x2188   :  { %12484 = vst.msk [vmem:[#allocation2 + $0x8] sm:$0xc0] %vm1880_vm6, %v12483_v48 }
0x218f   :  { %v12486_v58 = vld [vmem:[#allocation2 + $0x8] sm:$0xff] }
0x2190   :  { %15179 = vmatmul.mubr.msk.f32.vlgmr.msra.gmra.mrb[142].mxu0 %vm519_vm2, %v12486_v58 }
0x2263   :  { %v15180_v28 = vpop.f32.mrb[142].mxu0 }
0x2264   :  { %v12576_v34 = vadd.f32 %v15180_v28, %v12865_v52  ;;  %v12570_v24 = vpop.f32.mrb[143].mxu0 }
0x2265   :  { %v12571_v29 = vadd.f32 %v12865_v52, %v12570_v24 }
0x2266   :  { %v12584_v33 = vadd.f32 %v12582_v53, %v12576_v34 }
0x2267   :  { %v12583_v32 = vadd.f32 %v12581_v21, %v12571_v29 }
0x2268   :  { %12587 = vst.msk [vmem:[%s18543_s16 + $0x8] sm:$0xff] %vm12585_vm7, %v12584_v33 }
0x2269   :  { %12586 = vst.msk [vmem:[%s18543_s16] sm:$0xff] %vm12585_vm7, %v12583_v32 }
0x226a   :  { %12592 = vsyncpa [#allocation5], 1 }
0x226b   :  { %12593 = vsyncpa [#allocation7], 1 }
0x226c   :  { %12594 = vsyncpa [#allocation10], 1 }
0x226d   :  { %12595 = vsyncpa [#allocation13], 1 }
0x226e   :  { %12596 = vsyncpa [#allocation16], 1 }

</bundles_post_ra>
